<compile_context>
chip_gen: v6e
topology: v6e:2x2x1
jax: 0.10.0
libtpu: 0.0.40
codegen_flags: <defaults>
</compile_context>

<pallas_src>
import math
from functools import partial

import jax
import jax.numpy as jnp
from jax import lax
from jax.experimental import pallas as pl
from jax.experimental.pallas import tpu as pltpu

LANE = 128
INV_SQRT2 = 1.0 / math.sqrt(2.0)


def _round_up(n, m):
    return ((n + m - 1) // m) * m


# ----------------------------- in-kernel helpers ----------------------------

def _leaky_relu(v, slope=0.2):
    # slope in (0,1) => max(v, slope*v) == LeakyReLU(v); single VPU op.
    return jnp.maximum(v, slope * v)


def _adain_norm(v, gamma, beta, eps=1e-5):
    """InstanceNorm2d (biased, over H,W) fused with the AdaIN affine:
    (1+gamma) * (v - mean) * rsqrt(var + eps) + beta, as one scale/shift FMA.
    Single-pass statistics (sum & sum of squares) in f32."""
    H, W, C = v.shape
    inv_n = 1.0 / float(H * W)
    flat = v.reshape(H * W, C)
    mean = jnp.sum(flat, axis=0, keepdims=True) * inv_n            # (1, C)
    ex2 = jnp.sum(flat * flat, axis=0, keepdims=True) * inv_n      # (1, C)
    var = jnp.maximum(ex2 - mean * mean, 0.0)
    inv = lax.rsqrt(var + eps)                                     # EUP
    scale = (1.0 + gamma) * inv.reshape(1, 1, C)
    shift = beta - scale * mean.reshape(1, 1, C)
    return v * scale + shift


def _up2(a):
    """Nearest-neighbour 2x upsample, (H, W, C) -> (2H, 2W, C)."""
    H, W, C = a.shape
    a = jnp.broadcast_to(a[:, None, :, None, :], (H, 2, W, 2, C))
    return a.reshape(2 * H, 2 * W, C)


def _fill_patch(patch_ref, a, ci, use_roll):
    """Write the three width-tap copies of bf16 `a` (H, W, ci) into the shared
    patch scratch rows 1..H (rows 0 and H+1 stay zero = the conv's H padding):
      channels [0,   ci)  : b[:, w] = a[:, w-1]   (kj = 0)
      channels [ci, 2ci)  : a                     (kj = 1)
      channels [2ci,3ci)  : b[:, w] = a[:, w+1]   (kj = 2)
    Width shift via XLU sublane roll + a single zero boundary-column store, or
    a portable slice+concat fallback (boundary zeros come along for free)."""
    H, W, _ = a.shape
    rows = pl.ds(1, H)
    zcol = jnp.zeros((H, 1, ci), a.dtype)
    patch_ref[rows, :, pl.ds(ci, ci)] = a                          # centre tap
    if use_roll:
        patch_ref[rows, :, pl.ds(0, ci)] = pltpu.roll(a, 1, 1)         # a[w-1]
        patch_ref[rows, :, pl.ds(2 * ci, ci)] = pltpu.roll(a, W - 1, 1)  # a[w+1]
        patch_ref[rows, pl.ds(0, 1), pl.ds(0, ci)] = zcol
        patch_ref[rows, pl.ds(W - 1, 1), pl.ds(2 * ci, ci)] = zcol
    else:
        patch_ref[rows, :, pl.ds(0, ci)] = jnp.concatenate(
            [zcol, a[:, :W - 1, :]], axis=1)
        patch_ref[rows, :, pl.ds(2 * ci, ci)] = jnp.concatenate(
            [a[:, 1:, :], zcol], axis=1)


def _conv3x3_from_patch(patch_ref, w3_ref, bias, H, W, ci, co):
    """3x3 'same' conv (PyTorch cross-correlation) from the pre-built patch.

    patch_ref rows hold input rows shifted by +1 (rows 0 / H+1 are zero), so
    the ki-th row tap is simply patch rows [ki, ki+H).  Three K=3*ci MXU
    matmuls, accumulated in value space (no accumulator-ref RMW)."""
    k3 = 3 * ci

    def tap(ki):
        p = patch_ref[pl.ds(ki, H), :, pl.ds(0, k3)]               # (H, W, 3ci)
        return jnp.dot(p.reshape(H * W, k3), w3_ref[ki],
                       preferred_element_type=jnp.float32)

    out = tap(0) + tap(1) + tap(2)                                 # (H*W, co)
    return out.reshape(H, W, co) + bias.reshape(1, 1, co)


# --------------------------------- kernel ----------------------------------

def _adain_resblock_kernel(*refs, is_up, is_sc, use_roll):
    if is_sc:
        (x_ref, gb1_ref, gb2_ref, w1_ref, c1b_ref, w2_ref, c2b_ref, wsc_ref,
         o_ref, patch_ref) = refs
    else:
        (x_ref, gb1_ref, gb2_ref, w1_ref, c1b_ref, w2_ref, c2b_ref,
         o_ref, patch_ref) = refs
        wsc_ref = None

    x_bf = x_ref[0]                                   # (Hi, Wi, cin_p) bf16
    Hi, Wi, cin_p = x_bf.shape
    cout_p = o_ref.shape[-1]
    Ho, Wo = patch_ref.shape[0] - 2, patch_ref.shape[1]

    # Zero the two H-padding rows of the shared patch scratch (tiny stores;
    # done unconditionally so it is megacore/"parallel"-grid safe).
    zrow = jnp.zeros((1,) + patch_ref.shape[1:], patch_ref.dtype)
    patch_ref[pl.ds(0, 1)] = zrow
    patch_ref[pl.ds(Ho + 1, 1)] = zrow

    xin = x_bf.astype(jnp.float32)                    # f32 copy for IN stats

    # res = lrelu(AdaIN_1(x, s))
    gb1 = gb1_ref[0]                                  # (2, cin_p) f32
    res = _leaky_relu(_adain_norm(xin,
                                  gb1[0:1].reshape(1, 1, cin_p),
                                  gb1[1:2].reshape(1, 1, cin_p)))
    if is_up:
        res = _up2(res)

    # res = conv1(res): cast to bf16 once, build the 3-tap patch, 3 matmuls.
    _fill_patch(patch_ref, res.astype(jnp.bfloat16), cin_p, use_roll)
    c1 = _conv3x3_from_patch(patch_ref, w1_ref, c1b_ref[...],
                             Ho, Wo, cin_p, cout_p)               # f32

    # r = lrelu(AdaIN_2(res, s))
    gb2 = gb2_ref[0]                                  # (2, cout_p) f32
    r = _leaky_relu(_adain_norm(c1,
                                gb2[0:1].reshape(1, 1, cout_p),
                                gb2[1:2].reshape(1, 1, cout_p)))

    # res = conv2(r): weights/bias pre-scaled by 1/sqrt(2) host-side; the
    # result feeds the epilogue directly (no second accumulator scratch).
    _fill_patch(patch_ref, r.astype(jnp.bfloat16), cout_p, use_roll)
    c2 = _conv3x3_from_patch(patch_ref, w2_ref, c2b_ref[...],
                             Ho, Wo, cout_p, cout_p)              # f32

    # shortcut at the pre-upsample resolution (1x1 conv commutes with
    # nearest-2x); 1/sqrt(2) folded into wsc, or applied once to xin.
    if is_sc:
        xsc = jnp.dot(x_bf.reshape(Hi * Wi, cin_p), wsc_ref[...],
                      preferred_element_type=jnp.float32
                      ).reshape(Hi, Wi, cout_p)
    else:
        xsc = xin * INV_SQRT2
    if is_up:
        xsc = _up2(xsc)

    o_ref[...] = (xsc + c2).reshape(1, Ho, Wo, cout_p).astype(o_ref.dtype)


# -------------------------- sublane-roll probe ------------------------------

_SUBLANE_ROLL_OK = None


def _sublane_roll_supported():
    """Probe whether pltpu.roll along the sublane (W) axis of a rank-3 bf16
    array lowers on this toolchain with jnp.roll semantics; otherwise the
    portable slice+concat shift is used."""
    global _SUBLANE_ROLL_OK
    if _SUBLANE_ROLL_OK is not None:
        return _SUBLANE_ROLL_OK
    H, W, C = 16, 16, 128

    def probe_kernel(x_ref, o1_ref, o2_ref):
        o1_ref[...] = pltpu.roll(x_ref[...], 1, 1)
        o2_ref[...] = pltpu.roll(x_ref[...], W - 1, 1)

    try:
        x = (jnp.arange(H * W * C, dtype=jnp.float32) % 251.0
             ).reshape(H, W, C).astype(jnp.bfloat16)   # integers exact in bf16
        o1, o2 = pl.pallas_call(
            probe_kernel,
            out_shape=(jax.ShapeDtypeStruct((H, W, C), jnp.bfloat16),
                       jax.ShapeDtypeStruct((H, W, C), jnp.bfloat16)),
        )(x)
        ok = bool(jnp.array_equal(o1, jnp.roll(x, 1, axis=1))
                  and jnp.array_equal(o2, jnp.roll(x, W - 1, axis=1)))
    except Exception:
        ok = False
    _SUBLANE_ROLL_OK = ok
    return ok


# ------------------------- VMEM capacity (per gen) ---------------------------

def _vmem_capacity_bytes():
    try:
        info = pltpu.get_tpu_info()
        for attr in ("vmem_capacity_bytes", "vmem_size_bytes", "vmem_bytes"):
            v = getattr(info, attr, None)
            if isinstance(v, int) and v > 0:
                return v
    except Exception:
        pass
    return 128 * 1024 * 1024   # conservative fallback (v5e/v6e physical)


# --------------------------------- wrapper ----------------------------------

def adain_resblock_forward(x_nchw, s, params, *, is_up=False, use_roll=None,
                           out_dtype=jnp.float32):
    """AdaINResBlock.forward (NCHW in / NCHW out).

    NOTE: when chaining blocks, keep activations in channel-padded NHWC bf16
    between blocks and do the NCHW<->NHWC transpose + pad/strip only at the
    network boundaries; the glue is included here so this is a module drop-in.
    """
    B, Cin, H, W = x_nchw.shape
    Cout = params["conv1_w"].shape[0]
    is_sc = Cin != Cout
    if use_roll is None:
        use_roll = _sublane_roll_supported()
    hp = lax.Precision.HIGHEST

    cin_p = _round_up(Cin, LANE)
    cout_p = _round_up(Cout, LANE)
    maxc = max(cin_p, cout_p)
    Ho, Wo = (2 * H, 2 * W) if is_up else (H, W)

    def pad_last(a, target):
        d = target - a.shape[-1]
        return a if d == 0 else jnp.pad(a, [(0, 0)] * (a.ndim - 1) + [(0, d)])

    # glue: tiny style MLPs (nn.Linear sdim->nf); gamma/beta stacked so their
    # per-batch blocks keep full (sublane, lane) extents.
    g1 = pad_last(jnp.dot(s, params["g1_w"].T, precision=hp) + params["g1_b"], cin_p)
    b1 = pad_last(jnp.dot(s, params["b1_w"].T, precision=hp) + params["b1_b"], cin_p)
    g2 = pad_last(jnp.dot(s, params["g2_w"].T, precision=hp) + params["g2_b"], cout_p)
    b2 = pad_last(jnp.dot(s, params["b2_w"].T, precision=hp) + params["b2_b"], cout_p)
    gb1 = jnp.stack([g1, b1], axis=1)                        # (B, 2, cin_p) f32
    gb2 = jnp.stack([g2, b2], axis=1)                        # (B, 2, cout_p) f32

    # NHWC, channel-padded to full lanes, bf16 (halved input DMA / block VMEM).
    x = pad_last(jnp.transpose(x_nchw, (0, 2, 3, 1)), cin_p).astype(jnp.bfloat16)

    # Conv weights: OIHW -> (3, 3*Ci_p, Co_p) bf16, width taps fused along K.
    def fuse_w(w_oihw, ci_p, co_p, scale=1.0):
        w = jnp.transpose(w_oihw, (2, 3, 1, 0)) * scale      # (3, 3, Ci, Co)
        w = jnp.pad(w, ((0, 0), (0, 0),
                        (0, ci_p - w.shape[2]), (0, co_p - w.shape[3])))
        return w.reshape(3, 3 * ci_p, co_p).astype(jnp.bfloat16)

    # Fold the 1/sqrt(2) epilogue into conv2 and the shortcut (host-side).
    w1 = fuse_w(params["conv1_w"], cin_p, cout_p)
    w2 = fuse_w(params["conv2_w"], cout_p, cout_p, scale=INV_SQRT2)
    c1b = pad_last(params["conv1_b"], cout_p).reshape(1, cout_p)
    c2b = (pad_last(params["conv2_b"], cout_p) * INV_SQRT2).reshape(1, cout_p)

    inputs = [x, gb1, gb2, w1, c1b, w2, c2b]
    in_specs = [
        pl.BlockSpec((1, H, W, cin_p), lambda b: (b, 0, 0, 0)),
        pl.BlockSpec((1, 2, cin_p), lambda b: (b, 0, 0)),
        pl.BlockSpec((1, 2, cout_p), lambda b: (b, 0, 0)),
        pl.BlockSpec((3, 3 * cin_p, cout_p), lambda b: (0, 0, 0)),
        pl.BlockSpec((1, cout_p), lambda b: (0, 0)),
        pl.BlockSpec((3, 3 * cout_p, cout_p), lambda b: (0, 0, 0)),
        pl.BlockSpec((1, cout_p), lambda b: (0, 0)),
    ]
    if is_sc:
        wsc = jnp.transpose(params["sc_w"][:, :, 0, 0], (1, 0)) * INV_SQRT2
        wsc = jnp.pad(wsc, ((0, cin_p - Cin),
                            (0, cout_p - Cout))).astype(jnp.bfloat16)
        inputs.append(wsc)
        in_specs.append(pl.BlockSpec((cin_p, cout_p), lambda b: (0, 0)))
    # (is_sc == False: the identity shortcut needs no weight at all)

    # Generation-aware VMEM budget (v5e/v6e 128 MiB physical, v7x 64 MiB).
    out_isize = jnp.dtype(out_dtype).itemsize
    in_blk = H * W * cin_p * 2
    out_blk = Ho * Wo * cout_p * out_isize
    w_bytes = int(sum(int(a.size) for a in inputs[3:]) * 2)
    patch_bytes = (Ho + 2) * Wo * 3 * maxc * 2
    live_f32 = 6 * Ho * Wo * maxc * 4
    need = 2 * (in_blk + out_blk) + 2 * w_bytes + patch_bytes + live_f32 + (8 << 20)
    cap = _vmem_capacity_bytes()
    vmem_limit = int(max(min(need, int(cap * 0.85)), 32 << 20))

    kernel = partial(_adain_resblock_kernel,
                     is_up=is_up, is_sc=is_sc, use_roll=use_roll)
    out_nhwc = pl.pallas_call(
        kernel,
        out_shape=jax.ShapeDtypeStruct((B, Ho, Wo, cout_p), out_dtype),
        grid=(B,),
        in_specs=in_specs,
        out_specs=pl.BlockSpec((1, Ho, Wo, cout_p), lambda b: (b, 0, 0, 0)),
        scratch_shapes=[pltpu.VMEM((Ho + 2, Wo, 3 * maxc), jnp.bfloat16)],
        compiler_params=pltpu.CompilerParams(
            dimension_semantics=("parallel",),
            vmem_limit_bytes=vmem_limit),
    )(*inputs)

    # strip channel padding; return NCHW f32 like the PyTorch module.
    return jnp.transpose(out_nhwc[..., :Cout].astype(jnp.float32), (0, 3, 1, 2))


# ------------------------ pure-JAX reference (check) ------------------------

def adain_resblock_reference(x, s, params, *, is_up=False):
    eps = 1e-5
    Cout = params["conv1_w"].shape[0]
    is_sc = x.shape[1] != Cout
    hp = lax.Precision.HIGHEST

    def inorm(v):
        m = v.mean(axis=(2, 3), keepdims=True)
        var = ((v - m) ** 2).mean(axis=(2, 3), keepdims=True)
        return (v - m) / jnp.sqrt(var + eps)

    def adain(v, gw, gb, bw, bb):
        g = (jnp.dot(s, gw.T, precision=hp) + gb)[:, :, None, None]
        b = (jnp.dot(s, bw.T, precision=hp) + bb)[:, :, None, None]
        return (1.0 + g) * inorm(v) + b

    def lrelu(v):
        return jnp.where(v >= 0, v, 0.2 * v)

    def conv(v, w, b=None, pad=1):
        out = lax.conv_general_dilated(
            v, w, window_strides=(1, 1), padding=[(pad, pad), (pad, pad)],
            dimension_numbers=("NCHW", "OIHW", "NCHW"), precision=hp)
        if b is not None:
            out = out + b[None, :, None, None]
        return out

    res = lrelu(adain(x, params["g1_w"], params["g1_b"],
                      params["b1_w"], params["b1_b"]))
    if is_up:
        x = jnp.repeat(jnp.repeat(x, 2, axis=2), 2, axis=3)
        res = jnp.repeat(jnp.repeat(res, 2, axis=2), 2, axis=3)
    if is_sc:
        x = conv(x, params["sc_w"], None, pad=0)
    res = conv(res, params["conv1_w"], params["conv1_b"])
    res = lrelu(adain(res, params["g2_w"], params["g2_b"],
                      params["b2_w"], params["b2_b"]))
    res = conv(res, params["conv2_w"], params["conv2_b"])
    return (x + res) / math.sqrt(2.0)


# ----------------------------------- main -----------------------------------

if __name__ == "__main__":
    def make_params(key, Cin, Cout, sdim):
        keys = jax.random.split(key, 13)

        def init(k, shape, scale=0.1):
            return scale * jax.random.normal(k, shape, jnp.float32)

        # TODO(synk): init_fc_weight_one is not defined in the snippet; plain
        # deterministic random init is used for the AdaIN Linear layers.
        return {
            "conv1_w": init(keys[0], (Cout, Cin, 3, 3)),
            "conv1_b": init(keys[1], (Cout,)),
            "conv2_w": init(keys[2], (Cout, Cout, 3, 3)),
            "conv2_b": init(keys[3], (Cout,)),
            "sc_w":    init(keys[4], (Cout, Cin, 1, 1)),
            "g1_w":    init(keys[5], (Cin, sdim)),
            "g1_b":    init(keys[6], (Cin,)),
            "b1_w":    init(keys[7], (Cin, sdim)),
            "b1_b":    init(keys[8], (Cin,)),
            "g2_w":    init(keys[9], (Cout, sdim)),
            "g2_b":    init(keys[10], (Cout,)),
            "b2_w":    init(keys[11], (Cout, sdim)),
            "b2_b":    init(keys[12], (Cout,)),
        }

    key = jax.random.PRNGKey(0)
    kx, ks, kp1, kp2 = jax.random.split(key, 4)
    B, H, W, sdim = 2, 16, 16, 8
    s = jax.random.normal(ks, (B, sdim), jnp.float32)

    # config A: channel-changing block (learned 1x1 shortcut), up=False
    # config B: same-channel block (identity shortcut), up=False
    configs = [("sc", 4, 8, kp1), ("identity", 8, 8, kp2)]
    for name, Cin, Cout, kp in configs:
        x = jax.random.normal(jax.random.fold_in(kx, Cin), (B, Cin, H, W),
                              jnp.float32)
        params = make_params(kp, Cin, Cout, sdim)
        out = jax.block_until_ready(
            adain_resblock_forward(x, s, params, is_up=False))
        ref = adain_resblock_reference(x, s, params, is_up=False)
        assert out.shape == ref.shape
        err = float(jnp.max(jnp.abs(out - ref)))
        # bf16 activations + bf16 MXU operands (per perf review) vs. an f32
        # reference; genuine bugs (wrong taps / weight packing / IN stats)
        # produce O(0.3+) errors at these scales.
        if not err < 5e-2:
            raise AssertionError(f"[{name}] max abs error too large: {err}")
    print("KERNEL_OK")
</pallas_src>

<mosaic_0001>
module attributes {stable_mosaic.version = 11 : i64} {
  func.func @probe_kernel(%arg0: memref<16x16x128xbf16, #tpu.memory_space<vmem>>, %arg1: memref<16x16x128xbf16, #tpu.memory_space<vmem>>, %arg2: memref<16x16x128xbf16, #tpu.memory_space<vmem>>) attributes {dimension_semantics = [], scalar_prefetch = 0 : i64, scratch_operands = 0 : i64, tpu.core_type = #tpu.core_type<tc>} {
    %c0 = arith.constant 0 : index
    %c0_0 = arith.constant 0 : index
    %c0_1 = arith.constant 0 : index
    %0 = vector.load %arg0[%c0, %c0_0, %c0_1] : memref<16x16x128xbf16, #tpu.memory_space<vmem>>, vector<16x16x128xbf16>
    %c1_i32 = arith.constant 1 : i32
    %1 = tpu.dynamic_rotate %0 by %c1_i32 dim 1 : vector<16x16x128xbf16>, i32 -> vector<16x16x128xbf16>
    %c0_2 = arith.constant 0 : index
    %c0_3 = arith.constant 0 : index
    %c0_4 = arith.constant 0 : index
    %2 = vector.load %arg1[%c0_2, %c0_3, %c0_4] : memref<16x16x128xbf16, #tpu.memory_space<vmem>>, vector<16x16x128xbf16>
    tpu.vector_store %arg1[%c0_2, %c0_3, %c0_4], %1 {strides = array<i32>} : memref<16x16x128xbf16, #tpu.memory_space<vmem>>, vector<16x16x128xbf16>,
    %c0_5 = arith.constant 0 : index
    %c0_6 = arith.constant 0 : index
    %c0_7 = arith.constant 0 : index
    %3 = vector.load %arg0[%c0_5, %c0_6, %c0_7] : memref<16x16x128xbf16, #tpu.memory_space<vmem>>, vector<16x16x128xbf16>
    %c15_i32 = arith.constant 15 : i32
    %4 = tpu.dynamic_rotate %3 by %c15_i32 dim 1 : vector<16x16x128xbf16>, i32 -> vector<16x16x128xbf16>
    %c0_8 = arith.constant 0 : index
    %c0_9 = arith.constant 0 : index
    %c0_10 = arith.constant 0 : index
    %5 = vector.load %arg2[%c0_8, %c0_9, %c0_10] : memref<16x16x128xbf16, #tpu.memory_space<vmem>>, vector<16x16x128xbf16>
    tpu.vector_store %arg2[%c0_8, %c0_9, %c0_10], %4 {strides = array<i32>} : memref<16x16x128xbf16, #tpu.memory_space<vmem>>, vector<16x16x128xbf16>,
    return
  }
}

module attributes {stable_mosaic.version = 11 : i64} {
  func.func @_adain_resblock_kernel(%arg0: i32, %arg1: memref<1x16x16x128xbf16, #tpu.memory_space<vmem>>, %arg2: memref<1x2x128xf32, #tpu.memory_space<vmem>>, %arg3: memref<1x2x128xf32, #tpu.memory_space<vmem>>, %arg4: memref<3x384x128xbf16, #tpu.memory_space<vmem>>, %arg5: memref<1x128xf32, #tpu.memory_space<vmem>>, %arg6: memref<3x384x128xbf16, #tpu.memory_space<vmem>>, %arg7: memref<1x128xf32, #tpu.memory_space<vmem>>, %arg8: memref<128x128xbf16, #tpu.memory_space<vmem>>, %arg9: memref<1x16x16x128xf32, #tpu.memory_space<vmem>>, %arg10: memref<18x16x384xbf16, #tpu.memory_space<vmem>>) attributes {dimension_semantics = [#tpu.dimension_semantics<parallel>], iteration_bounds = array<i64: 2>, scalar_prefetch = 0 : i64, scratch_operands = 1 : i64, tpu.core_type = #tpu.core_type<tc>, window_params = [{transform_indices = @transform_0, window_bounds = array<i64: 1, 16, 16, 128>}, {transform_indices = @transform_1, window_bounds = array<i64: 1, 2, 128>}, {transform_indices = @transform_2, window_bounds = array<i64: 1, 2, 128>}, {pipeline_mode = #tpu.pipeline_mode<synchronous>, transform_indices = @transform_3, window_bounds = array<i64: 3, 384, 128>}, {pipeline_mode = #tpu.pipeline_mode<synchronous>, transform_indices = @transform_4, window_bounds = array<i64: 1, 128>}, {pipeline_mode = #tpu.pipeline_mode<synchronous>, transform_indices = @transform_5, window_bounds = array<i64: 3, 384, 128>}, {pipeline_mode = #tpu.pipeline_mode<synchronous>, transform_indices = @transform_6, window_bounds = array<i64: 1, 128>}, {pipeline_mode = #tpu.pipeline_mode<synchronous>, transform_indices = @transform_7, window_bounds = array<i64: 128, 128>}, {transform_indices = @transform_8, window_bounds = array<i64: 1, 16, 16, 128>}]} {
    %c0 = arith.constant 0 : index
    %c0_0 = arith.constant 0 : index
    %c0_1 = arith.constant 0 : index
    %c0_2 = arith.constant 0 : index
    %0 = vector.load %arg1[%c0, %c0_0, %c0_1, %c0_2] : memref<1x16x16x128xbf16, #tpu.memory_space<vmem>>, vector<1x16x16x128xbf16>
    %1 = vector.shape_cast %0 : vector<1x16x16x128xbf16> to vector<16x16x128xbf16>
    %cst = arith.constant 0.000000e+00 : bf16
    %2 = vector.broadcast %cst : bf16 to vector<1x16x384xbf16>
    %c0_3 = arith.constant 0 : index
    %c0_4 = arith.constant 0 : index
    %c0_5 = arith.constant 0 : index
    %3 = vector.load %arg10[%c0_3, %c0_4, %c0_5] : memref<18x16x384xbf16, #tpu.memory_space<vmem>>, vector<1x16x384xbf16>
    tpu.vector_store %arg10[%c0_3, %c0_4, %c0_5], %2 {strides = array<i32>} : memref<18x16x384xbf16, #tpu.memory_space<vmem>>, vector<1x16x384xbf16>,
    %c17 = arith.constant 17 : index
    %c0_6 = arith.constant 0 : index
    %c0_7 = arith.constant 0 : index
    %4 = vector.load %arg10[%c17, %c0_6, %c0_7] : memref<18x16x384xbf16, #tpu.memory_space<vmem>>, vector<1x16x384xbf16>
    tpu.vector_store %arg10[%c17, %c0_6, %c0_7], %2 {strides = array<i32>} : memref<18x16x384xbf16, #tpu.memory_space<vmem>>, vector<1x16x384xbf16>,
    %5 = arith.extf %1 : vector<16x16x128xbf16> to vector<16x16x128xf32>
    %c0_8 = arith.constant 0 : index
    %c0_9 = arith.constant 0 : index
    %c0_10 = arith.constant 0 : index
    %6 = vector.load %arg2[%c0_8, %c0_9, %c0_10] : memref<1x2x128xf32, #tpu.memory_space<vmem>>, vector<1x2x128xf32>
    %7 = vector.shape_cast %6 : vector<1x2x128xf32> to vector<2x128xf32>
    %8 = vector.extract_strided_slice %7 {offsets = [0, 0], sizes = [1, 128], strides = [1, 1]} : vector<2x128xf32> to vector<1x128xf32>
    %9 = vector.shape_cast %8 : vector<1x128xf32> to vector<1x1x128xf32>
    %10 = vector.extract_strided_slice %7 {offsets = [1, 0], sizes = [1, 128], strides = [1, 1]} : vector<2x128xf32> to vector<1x128xf32>
    %11 = vector.shape_cast %10 : vector<1x128xf32> to vector<1x1x128xf32>
    %12 = vector.shape_cast %5 : vector<16x16x128xf32> to vector<256x128xf32>
    %cst_11 = arith.constant dense<0.000000e+00> : vector<128xf32>
    %13 = vector.multi_reduction <add>, %12, %cst_11 [0] : vector<256x128xf32> to vector<128xf32>
    %14 = vector.shape_cast %13 : vector<128xf32> to vector<1x128xf32>
    %cst_12 = arith.constant 3.906250e-03 : f32
    %15 = vector.broadcast %cst_12 : f32 to vector<1x128xf32>
    %16 = arith.mulf %14, %15 : vector<1x128xf32>
    %17 = arith.mulf %12, %12 : vector<256x128xf32>
    %cst_13 = arith.constant dense<0.000000e+00> : vector<128xf32>
    %18 = vector.multi_reduction <add>, %17, %cst_13 [0] : vector<256x128xf32> to vector<128xf32>
    %19 = vector.shape_cast %18 : vector<128xf32> to vector<1x128xf32>
    %cst_14 = arith.constant 3.906250e-03 : f32
    %20 = vector.broadcast %cst_14 : f32 to vector<1x128xf32>
    %21 = arith.mulf %19, %20 : vector<1x128xf32>
    %22 = arith.mulf %16, %16 : vector<1x128xf32>
    %23 = arith.subf %21, %22 : vector<1x128xf32>
    %cst_15 = arith.constant 0.000000e+00 : f32
    %24 = vector.broadcast %cst_15 : f32 to vector<1x128xf32>
    %25 = arith.maximumf %23, %24 : vector<1x128xf32>
    %cst_16 = arith.constant 9.99999974E-6 : f32
    %26 = vector.broadcast %cst_16 : f32 to vector<1x128xf32>
    %27 = arith.addf %25, %26 : vector<1x128xf32>
    %28 = math.rsqrt %27 : vector<1x128xf32>
    %cst_17 = arith.constant 1.000000e+00 : f32
    %29 = vector.broadcast %cst_17 : f32 to vector<1x1x128xf32>
    %30 = arith.addf %29, %9 : vector<1x1x128xf32>
    %31 = vector.shape_cast %28 : vector<1x128xf32> to vector<1x1x128xf32>
    %32 = arith.mulf %30, %31 : vector<1x1x128xf32>
    %33 = vector.shape_cast %16 : vector<1x128xf32> to vector<1x1x128xf32>
    %34 = arith.mulf %32, %33 : vector<1x1x128xf32>
    %35 = arith.subf %11, %34 : vector<1x1x128xf32>
    %36 = vector.broadcast %32 : vector<1x1x128xf32> to vector<16x16x128xf32>
    %37 = arith.mulf %5, %36 : vector<16x16x128xf32>
    %38 = vector.broadcast %35 : vector<1x1x128xf32> to vector<16x16x128xf32>
    %39 = arith.addf %37, %38 : vector<16x16x128xf32>
    %cst_18 = arith.constant 2.000000e-01 : f32
    %40 = vector.broadcast %cst_18 : f32 to vector<16x16x128xf32>
    %41 = arith.mulf %40, %39 : vector<16x16x128xf32>
    %42 = arith.maximumf %39, %41 : vector<16x16x128xf32>
    %43 = arith.truncf %42 : vector<16x16x128xf32> to vector<16x16x128xbf16>
    %cst_19 = arith.constant 0.000000e+00 : bf16
    %44 = vector.broadcast %cst_19 : bf16 to vector<16x1x128xbf16>
    %c1 = arith.constant 1 : index
    %c0_20 = arith.constant 0 : index
    %c128 = arith.constant 128 : index
    %45 = vector.load %arg10[%c1, %c0_20, %c128] : memref<18x16x384xbf16, #tpu.memory_space<vmem>>, vector<16x16x128xbf16>
    tpu.vector_store %arg10[%c1, %c0_20, %c128], %43 {strides = array<i32>} : memref<18x16x384xbf16, #tpu.memory_space<vmem>>, vector<16x16x128xbf16>,
    %46 = vector.extract_strided_slice %43 {offsets = [0, 0, 0], sizes = [16, 15, 128], strides = [1, 1, 1]} : vector<16x16x128xbf16> to vector<16x15x128xbf16>
    %47 = tpu.concatenate %44, %46 in 1 : vector<16x1x128xbf16>, vector<16x15x128xbf16> -> vector<16x16x128xbf16>
    %c1_21 = arith.constant 1 : index
    %c0_22 = arith.constant 0 : index
    %c0_23 = arith.constant 0 : index
    %48 = vector.load %arg10[%c1_21, %c0_22, %c0_23] : memref<18x16x384xbf16, #tpu.memory_space<vmem>>, vector<16x16x128xbf16>
    tpu.vector_store %arg10[%c1_21, %c0_22, %c0_23], %47 {strides = array<i32>} : memref<18x16x384xbf16, #tpu.memory_space<vmem>>, vector<16x16x128xbf16>,
    %49 = vector.extract_strided_slice %43 {offsets = [0, 1, 0], sizes = [16, 15, 128], strides = [1, 1, 1]} : vector<16x16x128xbf16> to vector<16x15x128xbf16>
    %50 = tpu.concatenate %49, %44 in 1 : vector<16x15x128xbf16>, vector<16x1x128xbf16> -> vector<16x16x128xbf16>
    %c1_24 = arith.constant 1 : index
    %c0_25 = arith.constant 0 : index
    %c256 = arith.constant 256 : index
    %51 = vector.load %arg10[%c1_24, %c0_25, %c256] : memref<18x16x384xbf16, #tpu.memory_space<vmem>>, vector<16x16x128xbf16>
    tpu.vector_store %arg10[%c1_24, %c0_25, %c256], %50 {strides = array<i32>} : memref<18x16x384xbf16, #tpu.memory_space<vmem>>, vector<16x16x128xbf16>,
    %c0_26 = arith.constant 0 : index
    %c0_27 = arith.constant 0 : index
    %52 = vector.load %arg5[%c0_26, %c0_27] : memref<1x128xf32, #tpu.memory_space<vmem>>, vector<1x128xf32>
    %c0_28 = arith.constant 0 : index
    %c0_29 = arith.constant 0 : index
    %c0_30 = arith.constant 0 : index
    %53 = vector.load %arg10[%c0_28, %c0_29, %c0_30] : memref<18x16x384xbf16, #tpu.memory_space<vmem>>, vector<16x16x384xbf16>
    %54 = vector.shape_cast %53 : vector<16x16x384xbf16> to vector<256x384xbf16>
    %c0_31 = arith.constant 0 : index
    %c0_32 = arith.constant 0 : index
    %c0_33 = arith.constant 0 : index
    %55 = vector.load %arg4[%c0_31, %c0_32, %c0_33] : memref<3x384x128xbf16, #tpu.memory_space<vmem>>, vector<1x384x128xbf16>
    %56 = vector.shape_cast %55 : vector<1x384x128xbf16> to vector<384x128xbf16>
    %cst_34 = arith.constant dense<0.000000e+00> : vector<256x128xf32>
    %57 = tpu.matmul %54, %56, %cst_34 {dimension_numbers = #tpu.dot_dimension_numbers<[1], [0], [0], [1], [0, 0, 1, 1], [], []>} : vector<256x384xbf16>, vector<384x128xbf16>, vector<256x128xf32> -> vector<256x128xf32>
    %c1_35 = arith.constant 1 : index
    %c0_36 = arith.constant 0 : index
    %c0_37 = arith.constant 0 : index
    %58 = vector.load %arg10[%c1_35, %c0_36, %c0_37] : memref<18x16x384xbf16, #tpu.memory_space<vmem>>, vector<16x16x384xbf16>
    %59 = vector.shape_cast %58 : vector<16x16x384xbf16> to vector<256x384xbf16>
    %c1_38 = arith.constant 1 : index
    %c0_39 = arith.constant 0 : index
    %c0_40 = arith.constant 0 : index
    %60 = vector.load %arg4[%c1_38, %c0_39, %c0_40] : memref<3x384x128xbf16, #tpu.memory_space<vmem>>, vector<1x384x128xbf16>
    %61 = vector.shape_cast %60 : vector<1x384x128xbf16> to vector<384x128xbf16>
    %cst_41 = arith.constant dense<0.000000e+00> : vector<256x128xf32>
    %62 = tpu.matmul %59, %61, %cst_41 {dimension_numbers = #tpu.dot_dimension_numbers<[1], [0], [0], [1], [0, 0, 1, 1], [], []>} : vector<256x384xbf16>, vector<384x128xbf16>, vector<256x128xf32> -> vector<256x128xf32>
    %63 = arith.addf %57, %62 : vector<256x128xf32>
    %c2 = arith.constant 2 : index
    %c0_42 = arith.constant 0 : index
    %c0_43 = arith.constant 0 : index
    %64 = vector.load %arg10[%c2, %c0_42, %c0_43] : memref<18x16x384xbf16, #tpu.memory_space<vmem>>, vector<16x16x384xbf16>
    %65 = vector.shape_cast %64 : vector<16x16x384xbf16> to vector<256x384xbf16>
    %c2_44 = arith.constant 2 : index
    %c0_45 = arith.constant 0 : index
    %c0_46 = arith.constant 0 : index
    %66 = vector.load %arg4[%c2_44, %c0_45, %c0_46] : memref<3x384x128xbf16, #tpu.memory_space<vmem>>, vector<1x384x128xbf16>
    %67 = vector.shape_cast %66 : vector<1x384x128xbf16> to vector<384x128xbf16>
    %cst_47 = arith.constant dense<0.000000e+00> : vector<256x128xf32>
    %68 = tpu.matmul %65, %67, %cst_47 {dimension_numbers = #tpu.dot_dimension_numbers<[1], [0], [0], [1], [0, 0, 1, 1], [], []>} : vector<256x384xbf16>, vector<384x128xbf16>, vector<256x128xf32> -> vector<256x128xf32>
    %69 = arith.addf %63, %68 : vector<256x128xf32>
    %70 = vector.shape_cast %69 : vector<256x128xf32> to vector<16x16x128xf32>
    %71 = vector.shape_cast %52 : vector<1x128xf32> to vector<1x1x128xf32>
    %72 = vector.broadcast %71 : vector<1x1x128xf32> to vector<16x16x128xf32>
    %73 = arith.addf %70, %72 : vector<16x16x128xf32>
    %c0_48 = arith.constant 0 : index
    %c0_49 = arith.constant 0 : index
    %c0_50 = arith.constant 0 : index
    %74 = vector.load %arg3[%c0_48, %c0_49, %c0_50] : memref<1x2x128xf32, #tpu.memory_space<vmem>>, vector<1x2x128xf32>
    %75 = vector.shape_cast %74 : vector<1x2x128xf32> to vector<2x128xf32>
    %76 = vector.extract_strided_slice %75 {offsets = [0, 0], sizes = [1, 128], strides = [1, 1]} : vector<2x128xf32> to vector<1x128xf32>
    %77 = vector.shape_cast %76 : vector<1x128xf32> to vector<1x1x128xf32>
    %78 = vector.extract_strided_slice %75 {offsets = [1, 0], sizes = [1, 128], strides = [1, 1]} : vector<2x128xf32> to vector<1x128xf32>
    %79 = vector.shape_cast %78 : vector<1x128xf32> to vector<1x1x128xf32>
    %80 = vector.shape_cast %73 : vector<16x16x128xf32> to vector<256x128xf32>
    %cst_51 = arith.constant dense<0.000000e+00> : vector<128xf32>
    %81 = vector.multi_reduction <add>, %80, %cst_51 [0] : vector<256x128xf32> to vector<128xf32>
    %82 = vector.shape_cast %81 : vector<128xf32> to vector<1x128xf32>
    %cst_52 = arith.constant 3.906250e-03 : f32
    %83 = vector.broadcast %cst_52 : f32 to vector<1x128xf32>
    %84 = arith.mulf %82, %83 : vector<1x128xf32>
    %85 = arith.mulf %80, %80 : vector<256x128xf32>
    %cst_53 = arith.constant dense<0.000000e+00> : vector<128xf32>
    %86 = vector.multi_reduction <add>, %85, %cst_53 [0] : vector<256x128xf32> to vector<128xf32>
    %87 = vector.shape_cast %86 : vector<128xf32> to vector<1x128xf32>
    %cst_54 = arith.constant 3.906250e-03 : f32
    %88 = vector.broadcast %cst_54 : f32 to vector<1x128xf32>
    %89 = arith.mulf %87, %88 : vector<1x128xf32>
    %90 = arith.mulf %84, %84 : vector<1x128xf32>
    %91 = arith.subf %89, %90 : vector<1x128xf32>
    %cst_55 = arith.constant 0.000000e+00 : f32
    %92 = vector.broadcast %cst_55 : f32 to vector<1x128xf32>
    %93 = arith.maximumf %91, %92 : vector<1x128xf32>
    %cst_56 = arith.constant 9.99999974E-6 : f32
    %94 = vector.broadcast %cst_56 : f32 to vector<1x128xf32>
    %95 = arith.addf %93, %94 : vector<1x128xf32>
    %96 = math.rsqrt %95 : vector<1x128xf32>
    %cst_57 = arith.constant 1.000000e+00 : f32
    %97 = vector.broadcast %cst_57 : f32 to vector<1x1x128xf32>
    %98 = arith.addf %97, %77 : vector<1x1x128xf32>
    %99 = vector.shape_cast %96 : vector<1x128xf32> to vector<1x1x128xf32>
    %100 = arith.mulf %98, %99 : vector<1x1x128xf32>
    %101 = vector.shape_cast %84 : vector<1x128xf32> to vector<1x1x128xf32>
    %102 = arith.mulf %100, %101 : vector<1x1x128xf32>
    %103 = arith.subf %79, %102 : vector<1x1x128xf32>
    %104 = vector.broadcast %100 : vector<1x1x128xf32> to vector<16x16x128xf32>
    %105 = arith.mulf %73, %104 : vector<16x16x128xf32>
    %106 = vector.broadcast %103 : vector<1x1x128xf32> to vector<16x16x128xf32>
    %107 = arith.addf %105, %106 : vector<16x16x128xf32>
    %cst_58 = arith.constant 2.000000e-01 : f32
    %108 = vector.broadcast %cst_58 : f32 to vector<16x16x128xf32>
    %109 = arith.mulf %108, %107 : vector<16x16x128xf32>
    %110 = arith.maximumf %107, %109 : vector<16x16x128xf32>
    %111 = arith.truncf %110 : vector<16x16x128xf32> to vector<16x16x128xbf16>
    %cst_59 = arith.constant 0.000000e+00 : bf16
    %112 = vector.broadcast %cst_59 : bf16 to vector<16x1x128xbf16>
    %c1_60 = arith.constant 1 : index
    %c0_61 = arith.constant 0 : index
    %c128_62 = arith.constant 128 : index
    %113 = vector.load %arg10[%c1_60, %c0_61, %c128_62] : memref<18x16x384xbf16, #tpu.memory_space<vmem>>, vector<16x16x128xbf16>
    tpu.vector_store %arg10[%c1_60, %c0_61, %c128_62], %111 {strides = array<i32>} : memref<18x16x384xbf16, #tpu.memory_space<vmem>>, vector<16x16x128xbf16>,
    %114 = vector.extract_strided_slice %111 {offsets = [0, 0, 0], sizes = [16, 15, 128], strides = [1, 1, 1]} : vector<16x16x128xbf16> to vector<16x15x128xbf16>
    %115 = tpu.concatenate %112, %114 in 1 : vector<16x1x128xbf16>, vector<16x15x128xbf16> -> vector<16x16x128xbf16>
    %c1_63 = arith.constant 1 : index
    %c0_64 = arith.constant 0 : index
    %c0_65 = arith.constant 0 : index
    %116 = vector.load %arg10[%c1_63, %c0_64, %c0_65] : memref<18x16x384xbf16, #tpu.memory_space<vmem>>, vector<16x16x128xbf16>
    tpu.vector_store %arg10[%c1_63, %c0_64, %c0_65], %115 {strides = array<i32>} : memref<18x16x384xbf16, #tpu.memory_space<vmem>>, vector<16x16x128xbf16>,
    %117 = vector.extract_strided_slice %111 {offsets = [0, 1, 0], sizes = [16, 15, 128], strides = [1, 1, 1]} : vector<16x16x128xbf16> to vector<16x15x128xbf16>
    %118 = tpu.concatenate %117, %112 in 1 : vector<16x15x128xbf16>, vector<16x1x128xbf16> -> vector<16x16x128xbf16>
    %c1_66 = arith.constant 1 : index
    %c0_67 = arith.constant 0 : index
    %c256_68 = arith.constant 256 : index
    %119 = vector.load %arg10[%c1_66, %c0_67, %c256_68] : memref<18x16x384xbf16, #tpu.memory_space<vmem>>, vector<16x16x128xbf16>
    tpu.vector_store %arg10[%c1_66, %c0_67, %c256_68], %118 {strides = array<i32>} : memref<18x16x384xbf16, #tpu.memory_space<vmem>>, vector<16x16x128xbf16>,
    %c0_69 = arith.constant 0 : index
    %c0_70 = arith.constant 0 : index
    %120 = vector.load %arg7[%c0_69, %c0_70] : memref<1x128xf32, #tpu.memory_space<vmem>>, vector<1x128xf32>
    %c0_71 = arith.constant 0 : index
    %c0_72 = arith.constant 0 : index
    %c0_73 = arith.constant 0 : index
    %121 = vector.load %arg10[%c0_71, %c0_72, %c0_73] : memref<18x16x384xbf16, #tpu.memory_space<vmem>>, vector<16x16x384xbf16>
    %122 = vector.shape_cast %121 : vector<16x16x384xbf16> to vector<256x384xbf16>
    %c0_74 = arith.constant 0 : index
    %c0_75 = arith.constant 0 : index
    %c0_76 = arith.constant 0 : index
    %123 = vector.load %arg6[%c0_74, %c0_75, %c0_76] : memref<3x384x128xbf16, #tpu.memory_space<vmem>>, vector<1x384x128xbf16>
    %124 = vector.shape_cast %123 : vector<1x384x128xbf16> to vector<384x128xbf16>
    %cst_77 = arith.constant dense<0.000000e+00> : vector<256x128xf32>
    %125 = tpu.matmul %122, %124, %cst_77 {dimension_numbers = #tpu.dot_dimension_numbers<[1], [0], [0], [1], [0, 0, 1, 1], [], []>} : vector<256x384xbf16>, vector<384x128xbf16>, vector<256x128xf32> -> vector<256x128xf32>
    %c1_78 = arith.constant 1 : index
    %c0_79 = arith.constant 0 : index
    %c0_80 = arith.constant 0 : index
    %126 = vector.load %arg10[%c1_78, %c0_79, %c0_80] : memref<18x16x384xbf16, #tpu.memory_space<vmem>>, vector<16x16x384xbf16>
    %127 = vector.shape_cast %126 : vector<16x16x384xbf16> to vector<256x384xbf16>
    %c1_81 = arith.constant 1 : index
    %c0_82 = arith.constant 0 : index
    %c0_83 = arith.constant 0 : index
    %128 = vector.load %arg6[%c1_81, %c0_82, %c0_83] : memref<3x384x128xbf16, #tpu.memory_space<vmem>>, vector<1x384x128xbf16>
    %129 = vector.shape_cast %128 : vector<1x384x128xbf16> to vector<384x128xbf16>
    %cst_84 = arith.constant dense<0.000000e+00> : vector<256x128xf32>
    %130 = tpu.matmul %127, %129, %cst_84 {dimension_numbers = #tpu.dot_dimension_numbers<[1], [0], [0], [1], [0, 0, 1, 1], [], []>} : vector<256x384xbf16>, vector<384x128xbf16>, vector<256x128xf32> -> vector<256x128xf32>
    %131 = arith.addf %125, %130 : vector<256x128xf32>
    %c2_85 = arith.constant 2 : index
    %c0_86 = arith.constant 0 : index
    %c0_87 = arith.constant 0 : index
    %132 = vector.load %arg10[%c2_85, %c0_86, %c0_87] : memref<18x16x384xbf16, #tpu.memory_space<vmem>>, vector<16x16x384xbf16>
    %133 = vector.shape_cast %132 : vector<16x16x384xbf16> to vector<256x384xbf16>
    %c2_88 = arith.constant 2 : index
    %c0_89 = arith.constant 0 : index
    %c0_90 = arith.constant 0 : index
    %134 = vector.load %arg6[%c2_88, %c0_89, %c0_90] : memref<3x384x128xbf16, #tpu.memory_space<vmem>>, vector<1x384x128xbf16>
    %135 = vector.shape_cast %134 : vector<1x384x128xbf16> to vector<384x128xbf16>
    %cst_91 = arith.constant dense<0.000000e+00> : vector<256x128xf32>
    %136 = tpu.matmul %133, %135, %cst_91 {dimension_numbers = #tpu.dot_dimension_numbers<[1], [0], [0], [1], [0, 0, 1, 1], [], []>} : vector<256x384xbf16>, vector<384x128xbf16>, vector<256x128xf32> -> vector<256x128xf32>
    %137 = arith.addf %131, %136 : vector<256x128xf32>
    %138 = vector.shape_cast %137 : vector<256x128xf32> to vector<16x16x128xf32>
    %139 = vector.shape_cast %120 : vector<1x128xf32> to vector<1x1x128xf32>
    %140 = vector.broadcast %139 : vector<1x1x128xf32> to vector<16x16x128xf32>
    %141 = arith.addf %138, %140 : vector<16x16x128xf32>
    %142 = vector.shape_cast %1 : vector<16x16x128xbf16> to vector<256x128xbf16>
    %c0_92 = arith.constant 0 : index
    %c0_93 = arith.constant 0 : index
    %143 = vector.load %arg8[%c0_92, %c0_93] : memref<128x128xbf16, #tpu.memory_space<vmem>>, vector<128x128xbf16>
    %cst_94 = arith.constant dense<0.000000e+00> : vector<256x128xf32>
    %144 = tpu.matmul %142, %143, %cst_94 {dimension_numbers = #tpu.dot_dimension_numbers<[1], [0], [0], [1], [0, 0, 1, 1], [], []>} : vector<256x128xbf16>, vector<128x128xbf16>, vector<256x128xf32> -> vector<256x128xf32>
    %145 = vector.shape_cast %144 : vector<256x128xf32> to vector<16x16x128xf32>
    %146 = arith.addf %145, %141 : vector<16x16x128xf32>
    %147 = vector.shape_cast %146 : vector<16x16x128xf32> to vector<1x16x16x128xf32>
    %c0_95 = arith.constant 0 : index
    %c0_96 = arith.constant 0 : index
    %c0_97 = arith.constant 0 : index
    %c0_98 = arith.constant 0 : index
    %148 = vector.load %arg9[%c0_95, %c0_96, %c0_97, %c0_98] : memref<1x16x16x128xf32, #tpu.memory_space<vmem>>, vector<1x16x16x128xf32>
    tpu.vector_store %arg9[%c0_95, %c0_96, %c0_97, %c0_98], %147 {strides = array<i32>} : memref<1x16x16x128xf32, #tpu.memory_space<vmem>>, vector<1x16x16x128xf32>,
    return
  }
  func.func @transform_0(%arg0: i32) -> (i32, i32, i32, i32) {
    %c0_i32 = arith.constant 0 : i32
    %c0_i32_0 = arith.constant 0 : i32
    %c0_i32_1 = arith.constant 0 : i32
    %c0_i32_2 = arith.constant 0 : i32
    return %arg0, %c0_i32, %c0_i32_0, %c0_i32_1 : i32, i32, i32, i32
  }
  func.func @transform_1(%arg0: i32) -> (i32, i32, i32) {
    %c0_i32 = arith.constant 0 : i32
    %c0_i32_0 = arith.constant 0 : i32
    %c0_i32_1 = arith.constant 0 : i32
    return %arg0, %c0_i32, %c0_i32_0 : i32, i32, i32
  }
  func.func @transform_2(%arg0: i32) -> (i32, i32, i32) {
    %c0_i32 = arith.constant 0 : i32
    %c0_i32_0 = arith.constant 0 : i32
    %c0_i32_1 = arith.constant 0 : i32
    return %arg0, %c0_i32, %c0_i32_0 : i32, i32, i32
  }
  func.func @transform_3(%arg0: i32) -> (i32, i32, i32) {
    %c0_i32 = arith.constant 0 : i32
    %c0_i32_0 = arith.constant 0 : i32
    %c0_i32_1 = arith.constant 0 : i32
    %c0_i32_2 = arith.constant 0 : i32
    return %c0_i32, %c0_i32_0, %c0_i32_1 : i32, i32, i32
  }
  func.func @transform_4(%arg0: i32) -> (i32, i32) {
    %c0_i32 = arith.constant 0 : i32
    %c0_i32_0 = arith.constant 0 : i32
    %c0_i32_1 = arith.constant 0 : i32
    return %c0_i32, %c0_i32_0 : i32, i32
  }
  func.func @transform_5(%arg0: i32) -> (i32, i32, i32) {
    %c0_i32 = arith.constant 0 : i32
    %c0_i32_0 = arith.constant 0 : i32
    %c0_i32_1 = arith.constant 0 : i32
    %c0_i32_2 = arith.constant 0 : i32
    return %c0_i32, %c0_i32_0, %c0_i32_1 : i32, i32, i32
  }
  func.func @transform_6(%arg0: i32) -> (i32, i32) {
    %c0_i32 = arith.constant 0 : i32
    %c0_i32_0 = arith.constant 0 : i32
    %c0_i32_1 = arith.constant 0 : i32
    return %c0_i32, %c0_i32_0 : i32, i32
  }
  func.func @transform_7(%arg0: i32) -> (i32, i32) {
    %c0_i32 = arith.constant 0 : i32
    %c0_i32_0 = arith.constant 0 : i32
    %c0_i32_1 = arith.constant 0 : i32
    return %c0_i32, %c0_i32_0 : i32, i32
  }
  func.func @transform_8(%arg0: i32) -> (i32, i32, i32, i32) {
    %c0_i32 = arith.constant 0 : i32
    %c0_i32_0 = arith.constant 0 : i32
    %c0_i32_1 = arith.constant 0 : i32
    %c0_i32_2 = arith.constant 0 : i32
    return %arg0, %c0_i32, %c0_i32_0, %c0_i32_1 : i32, i32, i32, i32
  }
}

</mosaic_0001>

<bundles_post_ra>
// kernel: tpu_custom_call.1
= control target key start
LH: loop header
LB: loop body
LE: loop exit
PB: predicated region body
PF: predicated region fallthrough
CT: control target
= control target key end

     0   :  { %s13747_s0 = inlined_call_operand.hbm [shape: bf16[2,16,16,128], index: 0, kind: input, shape index: {}]   ;;  %s13748_s1 = inlined_call_operand.hbm [shape: f32[2,2,128], index: 1, kind: input, shape index: {}]   ;;  %s13749_s2 = inlined_call_operand.hbm [shape: f32[2,2,128], index: 2, kind: input, shape index: {}]   ;;  %s13750_s3 = inlined_call_operand.hbm [shape: bf16[3,384,128], index: 3, kind: input, shape index: {}]   ;;  %s13751_s4 = inlined_call_operand.vmem [shape: f32[1,128], index: 4, kind: input, shape index: {}]   ;;  %s13752_s5 = inlined_call_operand.hbm [shape: bf16[3,384,128], index: 5, kind: input, shape index: {}]   ;;  %s13753_s6 = inlined_call_operand.vmem [shape: f32[1,128], index: 6, kind: input, shape index: {}]   ;;  %s13754_s7 = inlined_call_operand.hbm [shape: bf16[128,128], index: 7, kind: input, shape index: {}]   ;;  %s13755_s8 = inlined_call_operand.hbm [shape: f32[2,16,16,128], index: 8, kind: output, shape index: {}]  }
   0x1   :  { %13796 = sst [smem:[#allocation65_spill]] %s13748_s1 }
   0x2   :  { %13797 = sst [smem:[#allocation66_spill]] %s13750_s3 }
   0x3   :  { %13798 = sst [smem:[#allocation67_spill]] %s13752_s5 }
   0x4   :  { %13799 = sst [smem:[#allocation68_spill]] %s13754_s7 }
   0x5   :  { %13 = vsyncpa [#allocation4], 0 }
   0x6   :  { %15 = vsyncpa [#allocation4 + $0x1], 0 }
   0x7   :  { %16 = vsyncpa [#allocation7], 0 }
   0x8   :  { %18 = vsyncpa [#allocation7 + $0x1], 0 }
   0x9   :  { %19 = vsyncpa [#allocation10], 0 }
   0xa   :  { %20 = vsyncpa [#allocation13], 0 }
   0xb   :  { %21 = vsyncpa [#allocation5], 0 }
   0xc   :  { %23 = vsyncpa [#allocation5 + $0x1], 0  ;;  %s10841_s27 = smov 0   ;;  %s10843_s28 = smov 0  }
   0xd   :  { %s10845_s29 = smov 0   ;;  %s10847_s30 = smov 0  }
   0xe LB: > { %13800 = sst [smem:[#allocation20_spill]] %s10770_s27  ;;  %s10862_s9 = sadd.s32 4294967295, %s10782_s30   ;;  %s10782_s30 = sphi %s10847_s30, %s13986_s30   ;;  %s10778_s29 = sphi %s10845_s29, %s13988_s29   ;;  %s10774_s28 = sphi %s10843_s28, %s13990_s28   ;;  %s10770_s27 = sphi %s10841_s27, %s13989_s27  }
   0xf   : > { %13801 = sst [smem:[#allocation21_spill]] %s10778_s29  ;;  %s8041_s10 = sadd.s32 4294967294, %s10782_s30  }
  0x10   : > { %p49_p0 = scmp.ne.s32.totalorder %s10774_s28, %s10770_s27  ;;  %p13763_p1 = scmp.eq.s32.totalorder %s10862_s9, 0 }
  0x11   : > { %p230_p2 = scmp.eq.s32.totalorder %s10862_s9, 1  ;;  %p236_p3 = scmp.eq.s32.totalorder %s8041_s10, 1 }
  0x12   : > { %p10871_p4 = por %p13763_p1, %p49_p0  ;;  %p8042_p5 = scmp.ge.s32.totalorder %s10782_s30, 1 }
  0x13   : > { %p10876_p6 = por %p236_p3, %p49_p0  ;;  %p243_p7 = scmp.lt.s32.totalorder %s10782_s30, 3 }
  0x14   : > { %s13802_s11 = scalar_select %p10871_p4, 1, 0 }
  0x15   : > { %s13803_s12 = scalar_select %p10876_p6, 1, 0 }
  0x16   : > { %p10881_p8 = pnand %p8042_p5, %p243_p7  ;;  %s10784_s14 = smov [#allocation9]  }
  0x17   : > { %13804 = sst [smem:[#allocation22_spill]] %s13803_s12  ;;  %s255_s15 = sshll.u32 %s10784_s14, 4  ;;  %s256_s15 = int_to_ptr.vmem [resolvable:$true] %s255_s15 }
  0x18   : > { %s13805_s13 = scalar_select %p10881_p8, 1, 0 }
  0x19   : > { %p9995_p9 = pneg %p10881_p8  ;;  %s10895_s17 = sadd.s32 1, %s10782_s30  }
  0x1a   : > { %13807 = sst [smem:[#allocation23_spill]] %s10895_s17  ;;  %s36_s18 = sadd.s32 1, %s10778_s29 }
  0x1b   : > { %p10890_p11 = pnand %p9995_p9, %p13763_p1  ;;  %s33_s19 = ssub.s32 %s10782_s30, %s10895_s17 }
  0x1c   : > { %s10555_s20 = scalar_lea.vmem %s256_s15, 9216  ;;  %p10563_p5 = scmp.lt.s32.totalorder %s256_s15, %s256_s15 }
  0x1d   : > { %s13806_s16 = scalar_select %p10890_p11, 1, 0 }
  0x1e   : > { %p13764_p12 = pneg %p10890_p11  ;;  %p10556_p13 = scmp.ne.s32.totalorder %s256_s15, %s10555_s20 }
  0x1f   : > { %p10564_p7 = scmp.lt.s32.totalorder %s10555_s20, %s10555_s20 }
  0x20   : > { %p10558_p0 = pnand %p10556_p13, %p13764_p12 }
  0x21   : > { %p10565_p9 = por %p10564_p7, %p10563_p5 }
  0x22   : > { %p10559_p3 = pneg %p10558_p0 }
  0x24   : > { %p10566_p10 = pnand %p10565_p9, %p10559_p3 }
  0x26   : > { %10569 = shalt.err (!%p10566_p10)
}
  0x27   : > { %s13756_s21 = smov 64   ;;  %s13758_s22 = smov 4  }
  0x28   : > { %s13808_s3 = sld [smem:[#allocation66_spill]]  ;;  %p34_p10 = scmp.eq.s32.totalorder %s33_s19, 0 }
  0x29   : > { %p43_p13 = scmp.ne.s32.totalorder %s10778_s29, %s10774_s28  ;;  %p44_p0 = scmp.eq.s32.totalorder %s10782_s30, 0 }
  0x2a   : > { %p10022_p3 = scmp.lt.s32.totalorder %s10782_s30, 2  ;;  %s10927_s10 = sand.u32 1, %s10778_s29  }
  0x2b   : > { %s10918_s25 = scalar_select %p34_p10, %s10778_s29, %s36_s18  }
  0x2c   : > { %p45_p5 = por %p44_p0, %p43_p13  ;;  %p10922_p7 = por %p230_p2, %p43_p13 }
  0x2d   : > { %13809 = sst [smem:[#allocation24_spill]] %s10918_s25  ;;  %s322_s14 = sand.u32 1, %s10782_s30  }
  0x2e   : > { %9998 = dma.hbm_to_vmem [thread:$0]  (!%p10890_p11), %s13808_s3, 9216, %s256_s15, [#allocation10], %s13756_s21, %s13756_s21, %s13758_s22  }
  0x2f   : > { %s13810_s26 = scalar_select %p10922_p7, 1, 0 }
  0x30   : > { %p10930_p9 = pnand %p10022_p3, %p45_p5  ;;  %s13762_s15 = sshll.u32 %s10927_s10, 1 }
  0x31   : > { %s13761_s19 = sshll.u32 %s10782_s30, 5  ;;  %s13812_s1 = sld [smem:[#allocation65_spill]] }
  0x32   : > { %s326_s21 = scalar_lea.vmem [#allocation6], %s13762_s15  ;;  %s10945_s3 = scalar_lea.sflag [#allocation7], %s322_s14 }
  0x33   : > { %s333_s22 = sshll.u32 %s326_s21, 4  ;;  %p10951_p10 = pneg %p10930_p9  ;;  %s334_s22 = int_to_ptr.vmem [resolvable:$true] %s333_s22 }
  0x37   : > { %s10941_s24 = scalar_lea.hbm %s13812_s1, %s13761_s19  ;;  %s10575_s19 = scalar_lea.hbm %s13812_s1, 64 }
  0x38   : > { %s10570_s25 = scalar_lea.hbm %s10941_s24, 32  ;;  %p10576_p3 = scmp.lt.s32.totalorder %s10941_s24, %s13812_s1 }
  0x39   : > { %p10571_p2 = scmp.ne.s32.totalorder %s10941_s24, %s10570_s25  ;;  %p10577_p5 = scmp.lt.s32.totalorder %s10575_s19, %s10570_s25 }
  0x3b   : > { %p10573_p13 = pnand %p10951_p10, %p10571_p2  ;;  %p10578_p1 = por %p10577_p5, %p10576_p3 }
  0x3d   : > { %p10574_p0 = pneg %p10573_p13 }
  0x3f   : > { %p10579_p12 = pnand %p10578_p1, %p10574_p0 }
  0x41   : > { %10582 = shalt.err (!%p10579_p12)
}
  0x42   : > { %s10583_s14 = scalar_lea.vmem %s334_s22, 32  ;;  %s10787_s17 = smov [#allocation6]  }
  0x43   : > { %p10584_p6 = scmp.ne.s32.totalorder %s334_s22, %s10583_s14  ;;  %s10588_s12 = sshll.u32 %s10787_s17, 4  ;;  %s10589_s12 = int_to_ptr.vmem [resolvable:$false] %s10588_s12 }
  0x44   : > { %s10590_s27 = scalar_lea.vmem %s10589_s12, 64  ;;  %p10591_p2 = scmp.lt.s32.totalorder %s334_s22, %s10589_s12 }
  0x45   : > { %p10586_p7 = pnand %p10584_p6, %p10951_p10  ;;  %p10592_p13 = scmp.lt.s32.totalorder %s10590_s27, %s10583_s14 }
  0x47   : > { %p10587_p4 = pneg %p10586_p7  ;;  %p10593_p8 = por %p10592_p13, %p10591_p2 }
  0x49   : > { %p10594_p11 = pnand %p10593_p8, %p10587_p4 }
  0x4b   : > { %10597 = shalt.err (!%p10594_p11)
}
  0x4c   : > { %10011 = dma.hbm_to_vmem [thread:$0]  (!%p10930_p9), %s10941_s24, 32, %s334_s22, %s10945_s3  }
  0x4d   : > { %s13814_s25 = sshll.u32 %s10782_s30, 5  ;;  %s10788_s17 = smov [#allocation11]  }
  0x4e   : > { %s10975_s18 = scalar_lea.hbm %s13749_s2, %s13814_s25  ;;  %s271_s23 = sshll.u32 %s10788_s17, 4  ;;  %s272_s23 = int_to_ptr.vmem [resolvable:$true] %s271_s23 }
  0x4f   : > { %s10789_s27 = smov [#allocation12]   ;;  %s10609_s21 = scalar_lea.vmem %s272_s23, 9216 }
  0x50   : > { %s287_s12 = sshll.u32 %s10789_s27, 4  ;;  %p10610_p1 = scmp.ne.s32.totalorder %s272_s23, %s10609_s21  ;;  %s288_s12 = int_to_ptr.vmem [resolvable:$true] %s287_s12 }
  0x51   : > { %p13815_p4 = scmp.ne.s32.totalorder %s13806_s16, 0  ;;  %p10617_p12 = scmp.lt.s32.totalorder %s272_s23, %s272_s23 }
  0x52   : > { %p10618_p7 = scmp.lt.s32.totalorder %s10609_s21, %s10609_s21 }
  0x53   : > { %p13816_p6 = pneg %p13815_p4 }
  0x54   : > { %p10619_p0 = por %p10618_p7, %p10617_p12 }
  0x55   : > { %p10612_p8 = pnand %p10610_p1, %p13816_p6 }
  0x57   : > { %p10613_p11 = pneg %p10612_p8 }
  0x59   : > { %p10620_p3 = pnand %p10619_p0, %p10613_p11 }
  0x5b   : > { %10623 = shalt.err (!%p10620_p3)
}
  0x5c   : > { %s13817_s22 = smov 4   ;;  %s13818_s24 = smov 64  }
  0x5d   : > { %s13819_s5 = sld [smem:[#allocation67_spill]]  ;;  %s10635_s15 = scalar_lea.vmem %s288_s12, 1024 }
  0x5e   : > { %p10636_p5 = scmp.ne.s32.totalorder %s288_s12, %s10635_s15  ;;  %p13820_p2 = pmov %p13816_p6 }
  0x5f   : > { %p10643_p6 = scmp.lt.s32.totalorder %s288_s12, %s288_s12  ;;  %p10644_p8 = scmp.lt.s32.totalorder %s10635_s15, %s10635_s15 }
  0x60   : > { %p10638_p13 = pnand %p10636_p5, %p13820_p2 }
  0x61   : > { %p10645_p11 = por %p10644_p8, %p10643_p6 }
  0x62   : > { %p10639_p1 = pneg %p10638_p13 }
  0x63   : > { %10001 = dma.hbm_to_vmem [thread:$0]  (!%p13815_p4), %s13819_s5, 9216, %s272_s23, [#allocation10], %s13818_s24, %s13818_s24, %s13817_s22  }
  0x64   : > { %p10646_p12 = pnand %p10645_p11, %p10639_p1 }
  0x66   : > { %10649 = shalt.err (!%p10646_p12)
}
  0x67   : > { %s13821_s7 = sld [smem:[#allocation68_spill]]  ;;  %s8047_s23 = sshll.u32 %s10927_s10, 7 }
  0x68   : > { %s8717_s27 = sshll.u32 %s10782_s30, 11  ;;  %s305_s16 = scalar_lea.vmem [#allocation3], %s8047_s23 }
  0x69   : > { %s11004_s25 = scalar_lea.hbm %s13747_s0, %s8717_s27  ;;  %s312_s15 = sshll.u32 %s305_s16, 4  ;;  %s11008_s15 = int_to_ptr.vmem [resolvable:$true] %s312_s15 }
  0x6a   : > { %s13822_s1 = sshll.u32 %s10927_s10, 1  ;;  %s10650_s5 = scalar_lea.hbm %s11004_s25, 2048 }
  0x6b   : > { %s344_s19 = scalar_lea.vmem [#allocation8], %s13822_s1  ;;  %s10655_s14 = scalar_lea.hbm %s13747_s0, 4096 }
  0x6c   : > { %s351_s17 = sshll.u32 %s344_s19, 4  ;;  %p10656_p3 = scmp.lt.s32.totalorder %s11004_s25, %s13747_s0  ;;  %s11010_s17 = int_to_ptr.vmem [resolvable:$true] %s351_s17 }
  0x6d   : > { %10004 = dma.hbm_to_vmem [thread:$0]  (!%p13815_p4), %s13821_s7, 1024, %s288_s12, [#allocation13], %s13818_s24, %s13818_s24, %s13817_s22  }
  0x6e   : > { %s302_s12 = scalar_lea.sflag [#allocation4], %s10927_s10  ;;  %p10651_p4 = scmp.ne.s32.totalorder %s11004_s25, %s10650_s5 }
  0x6f   : > { %p10657_p5 = scmp.lt.s32.totalorder %s10655_s14, %s10650_s5 }
  0x70   : > { %p10653_p7 = pnand %p10651_p4, %p10951_p10 }
  0x71   : > { %p10658_p2 = por %p10657_p5, %p10656_p3 }
  0x72   : > { %p10654_p0 = pneg %p10653_p7 }
  0x74   : > { %p10659_p13 = pnand %p10658_p2, %p10654_p0 }
  0x76   : > { %10662 = shalt.err (!%p10659_p13)
}
  0x77   : > { %s10663_s1 = scalar_lea.vmem %s11008_s15, 2048  ;;  %s10790_s10 = smov [#allocation3]  }
  0x78   : > { %p10664_p1 = scmp.ne.s32.totalorder %s11008_s15, %s10663_s1  ;;  %s10668_s16 = sshll.u32 %s10790_s10, 4  ;;  %s10669_s16 = int_to_ptr.vmem [resolvable:$false] %s10668_s16 }
  0x79   : > { %s10670_s19 = scalar_lea.vmem %s10669_s16, 4096  ;;  %p10671_p11 = scmp.lt.s32.totalorder %s11008_s15, %s10669_s16 }
  0x7a   : > { %p10666_p6 = pnand %p10664_p1, %p10951_p10  ;;  %p10672_p12 = scmp.lt.s32.totalorder %s10670_s19, %s10663_s1 }
  0x7c   : > { %p10667_p8 = pneg %p10666_p6  ;;  %p10673_p4 = por %p10672_p12, %p10671_p11 }
  0x7e   : > { %p10674_p7 = pnand %p10673_p4, %p10667_p8 }
  0x80   : > { %10677 = shalt.err (!%p10674_p7)
}
  0x81   : > { %10008 = dma.hbm_to_vmem [thread:$0]  (!%p10930_p9), %s11004_s25, 2048, %s11008_s15, %s302_s12, %s13818_s24, %s13818_s24, %s13817_s22  }
  0x82   : > { %s10678_s5 = scalar_lea.hbm %s10975_s18, 32  ;;  %s10683_s21 = scalar_lea.hbm %s13749_s2, 64 }
  0x83   : > { %p10679_p0 = scmp.ne.s32.totalorder %s10975_s18, %s10678_s5  ;;  %p10684_p2 = scmp.lt.s32.totalorder %s10975_s18, %s13749_s2 }
  0x84   : > { %p10685_p13 = scmp.lt.s32.totalorder %s10683_s21, %s10678_s5 }
  0x85   : > { %p10681_p3 = pnand %p10679_p0, %p10951_p10 }
  0x86   : > { %p10686_p1 = por %p10685_p13, %p10684_p2 }
  0x87   : > { %p10682_p5 = pneg %p10681_p3 }
  0x89   : > { %p10687_p6 = pnand %p10686_p1, %p10682_p5 }
  0x8b   : > { %10690 = shalt.err (!%p10687_p6)
}
  0x8c   : > { %s10691_s22 = scalar_lea.vmem %s11010_s17, 32  ;;  %s10791_s24 = smov [#allocation8]  }
  0x8d   : > { %p10692_p8 = scmp.ne.s32.totalorder %s11010_s17, %s10691_s22  ;;  %s10696_s25 = sshll.u32 %s10791_s24, 4  ;;  %s10697_s25 = int_to_ptr.vmem [resolvable:$false] %s10696_s25 }
  0x8e   : > { %s10698_s15 = scalar_lea.vmem %s10697_s25, 64  ;;  %p10699_p4 = scmp.lt.s32.totalorder %s11010_s17, %s10697_s25 }
  0x8f   : > { %p10694_p11 = pnand %p10692_p8, %p10951_p10  ;;  %p10700_p7 = scmp.lt.s32.totalorder %s10698_s15, %s10691_s22 }
  0x91   : > { %p10695_p12 = pneg %p10694_p11  ;;  %p10701_p0 = por %p10700_p7, %p10699_p4 }
  0x93   : > { %p10702_p3 = pnand %p10701_p0, %p10695_p12 }
  0x95   : > { %10705 = shalt.err (!%p10702_p3)
}
  0x96   : > { %10014 = dma.hbm_to_vmem [thread:$0]  (!%p10930_p9), %s10975_s18, 32, %s11010_s17, %s10945_s3  }
  0x97   : > { %p13823_p5 = scmp.ne.s32.totalorder %s13805_s13, 0 }
  0x99   : > { %360 = sbr.rel (%p13823_p5) target bundleno = 1487 (0x5cf), region = 52 }
  0x9e   : > { %s11060_s29 = sand.u32 1, %s10774_s28   ;;  %p13824_p10 = scmp.ne.s32.totalorder %s13802_s11, 0 }
  0x9f   : > { %s8055_s12 = sshll.u32 %s11060_s29, 7  ;;  %s363_s1 = scalar_lea.sflag [#allocation4], %s11060_s29 }
  0xa0   : > { %s11064_s10 = scalar_lea.vmem [#allocation3], %s8055_s12 }
  0xa1   : > { %10749 = dma.done.wait (%p13824_p10), %s363_s1, 2048  }
  0xa2   : > { %10751 = vsyncadd (%p13824_p10), %s363_s1, 4294965248  ;;  %s371_s3 = sand.u32 1, %s10862_s9   ;;  %s8056_s13 = sshll.u32 %s11060_s29, 1 }
  0xa3   : > { %s372_s20 = scalar_lea.sflag [#allocation7], %s371_s3  ;;  %s11072_s18 = scalar_lea.vmem [#allocation6], %s8056_s13 }
  0xa4   : > { %10753 = dma.done.wait (%p13824_p10), %s372_s20, 64  }
  0xa5   : > { %10755 = vsyncadd (%p13824_p10), %s372_s20, 4294967232  ;;  %s11078_s17 = scalar_lea.vmem [#allocation8], %s8056_s13  ;;  %p13825_p9 = scmp.eq.s32.totalorder %s10862_s9, 0 }
  0xa7   : > { %10757 = dma.done.wait (%p13825_p9), [#allocation10], 18432   ;;  %p13826_p2 = pmov %p13825_p9 }
  0xa9   : > { %10759 = vsyncadd (%p13826_p2), [#allocation10], 4294948864  ;;  %p13827_p13 = pmov %p13826_p2 }
  0xaa   : > { %p13828_p1 = pmov %p13826_p2 }
  0xab   : > { %10761 = dma.done.wait (%p13827_p13), [#allocation13], 1024  }
  0xac   : > { %10763 = vsyncadd (%p13828_p1), [#allocation13], 4294966272  ;;  %v10067_v0 = vld [vmem:[#allocation9 + $0x138] sm:$0xff]   ;;  %v10069_v2 = vld [vmem:[#allocation9 + $0x130] sm:$0xff]   ;;  %vm1059_vm0 = vcmask 1040384   ;;  %vm1270_vm3 = vcmask 1047552  }
  0xad   : > { %v10068_v1 = vld [vmem:[#allocation9 + $0xf8] sm:$0xff]   ;;  %9959 = vmatprep.subr.bf16.mxu1 %v10067_v0  ;;  %8783 = vmatprep.subr.bf16.mxu0 %v10067_v0  ;;  %v10070_v3 = vld [vmem:[#allocation9 + $0xf0] sm:$0xff]   ;;  %v10071_v4 = vld [vmem:[#allocation9 + $0x128] sm:$0xff]   ;;  %vm1060_vm1 = vsmask.f32 256  ;;  %s8061_s19 = sshll.u32 %s11060_s29, 8 }
  0xae   : > { %9967 = vmatpush3.bf16.msra.mxu1 %v10068_v1  ;;  %8784 = vmatpush3.bf16.msra.mxu0 %v10068_v1  ;;  %v10072_v5 = vld [vmem:[#allocation9 + $0xe8] sm:$0xff]   ;;  %v10073_v6 = vld [vmem:[#allocation9 + $0x120] sm:$0xff]   ;;  %v10075_v8 = vld [vmem:[#allocation9 + $0x118] sm:$0xff]   ;;  %vm1271_vm4 = vsmask.f32 7424  ;;  %s13527_s27 = scalar_lea.vmem [#allocation14], %s8061_s19 }
  0xaf   : > { %9960 = vmatprep.subr.bf16.mxu1 %v10069_v2  ;;  %8785 = vmatprep.subr.bf16.mxu0 %v10069_v2  ;;  %v10074_v7 = vld [vmem:[#allocation9 + $0xe0] sm:$0xff]   ;;  %v10076_v9 = vld [vmem:[#allocation9 + $0xd8] sm:$0xff]   ;;  %v10077_v10 = vld [vmem:[#allocation9 + $0x110] sm:$0xff]   ;;  %s8782_s21 = sshll.u32 %s10862_s9, 12  ;;  %s7896_s14 = sshll.u32 %s13527_s27, 4  ;;  %s13702_s14 = int_to_ptr.vmem [resolvable:$true] %s7896_s14 }
  0xb0   : > { %v440_v11 = vld [vmem:[%s11064_s10] sm:$0xff]   ;;  %v10078_v12 = vld [vmem:[#allocation9 + $0xd0] sm:$0xff]   ;;  %v10079_v13 = vld [vmem:[#allocation9 + $0x108] sm:$0xff]   ;;  %s13700_s24 = scalar_lea.hbm %s13755_s8, %s8782_s21  ;;  %s7883_s25 = scalar_lea.sflag [#allocation5], %s11060_s29 }
  0xb1   : > { %v442_v14 = vld [vmem:[%s11064_s10 + $0x8] sm:$0xff]   ;;  %v10080_v15 = vld [vmem:[#allocation9 + $0xc8] sm:$0xff]   ;;  %v11090_v16 = vunpack.c.l.bf16 %v440_v11  ;;  %v11092_v17 = vunpack.c.h.bf16 %v440_v11  ;;  %v446_v26 = vld [vmem:[%s11064_s10 + $0x18] sm:$0xff]   ;;  %s10706_s9 = scalar_lea.vmem %s13702_s14, 4096  ;;  %p13981_p8 = scmp.ne.s32.totalorder %s13810_s26, 0 }
  0xb2   : > { %9968 = vmatpush3.bf16.msra.mxu1 %v10070_v3  ;;  %8786 = vmatpush3.bf16.msra.mxu0 %v10070_v3  ;;  %v10081_v18 = vld [vmem:[#allocation9 + $0x100] sm:$0xff]   ;;  %v444_v19 = vld [vmem:[%s11064_s10 + $0x10] sm:$0xff]   ;;  %v11095_v20 = vunpack.c.l.bf16 %v442_v14  ;;  %v11097_v21 = vunpack.c.h.bf16 %v442_v14  ;;  %v11108_v29 = vunpack.c.l.bf16 %v446_v26  ;;  %v448_v33 = vld [vmem:[%s11064_s10 + $0x20] sm:$0xff]   ;;  %v11116_v34 = vunpack.c.h.bf16 %v446_v26  ;;  %p10707_p6 = scmp.ne.s32.totalorder %s13702_s14, %s10706_s9  ;;  %s10793_s15 = smov [#allocation14]  }
  0xb3   : > { %9961 = vmatprep.subr.bf16.mxu1 %v10071_v4  ;;  %8787 = vmatprep.subr.bf16.mxu0 %v10071_v4  ;;  %v514_v22 = vadd.f32 %v11092_v17, %v11090_v16  ;;  %v10082_v23 = vld [vmem:[#allocation9 + $0xc0] sm:$0xff]   ;;  %v11101_v24 = vunpack.c.l.bf16 %v444_v19  ;;  %v11105_v27 = vunpack.c.h.bf16 %v444_v19  ;;  %v552_v31 = vmul.f32 %v11090_v16, %v11090_v16  ;;  %v452_v46 = vld [vmem:[%s11064_s10 + $0x30] sm:$0xff]   ;;  %v10087_v51 = vld [vmem:[#allocation9 + $0x178] sm:$0xff]   ;;  %s10710_s12 = sshll.u32 %s10793_s15, 4  ;;  %s10711_s12 = int_to_ptr.vmem [resolvable:$false] %s10710_s12 }
  0xb4   : > { %v553_v32 = vmul.f32 %v11092_v17, %v11092_v17  ;;  %v554_v36 = vmul.f32 %v11095_v20, %v11095_v20  ;;  %v450_v37 = vld [vmem:[%s11064_s10 + $0x28] sm:$0xff]   ;;  %v11122_v38 = vunpack.c.l.bf16 %v448_v33  ;;  %v555_v40 = vmul.f32 %v11097_v21, %v11097_v21  ;;  %v454_v56 = vld [vmem:[%s11064_s10 + $0x38] sm:$0xff]   ;;  %v10090_v57 = vld [vmem:[#allocation9 + $0xb8] sm:$0xff]   ;;  %p10708_p11 = pnand %p10707_p6, %p13981_p8  ;;  %s10712_s1 = scalar_lea.vmem %s10711_s12, 8192 }
  0xb5   : > { %v515_v25 = vadd.f32 %v514_v22, %v11095_v20  ;;  %v11127_v42 = vunpack.c.h.bf16 %v448_v33  ;;  %v556_v44 = vmul.f32 %v11101_v24, %v11101_v24  ;;  %v11133_v47 = vunpack.c.l.bf16 %v450_v37  ;;  %v456_v2 = vld [vmem:[%s11064_s10 + $0x40] sm:$0xff]   ;;  %v458_v11 = vld [vmem:[%s11064_s10 + $0x48] sm:$0xff]   ;;  %vm11367_vm2 = vmand %vm1059_vm0, %vm1060_vm1  ;;  %p10713_p4 = scmp.lt.s32.totalorder %s13702_s14, %s10711_s12  ;;  %p10714_p7 = scmp.lt.s32.totalorder %s10712_s1, %s10706_s9 }
  0xb6   : > { %9969 = vmatpush3.bf16.msra.mxu1 %v10072_v5  ;;  %8788 = vmatpush3.bf16.msra.mxu0 %v10072_v5  ;;  %v584_v41 = vadd.f32 %v553_v32, %v552_v31  ;;  %v557_v49 = vmul.f32 %v11105_v27, %v11105_v27  ;;  %v11138_v52 = vunpack.c.h.bf16 %v450_v37  ;;  %v558_v54 = vmul.f32 %v11108_v29, %v11108_v29  ;;  %v462_v37 = vld [vmem:[%s11064_s10 + $0x58] sm:$0xff]   ;;  %vm11437_vm5 = vmand %vm1270_vm3, %vm1271_vm4  ;;  %p10709_p12 = pneg %p10708_p11 }
  0xb7   : > { %9962 = vmatprep.subr.bf16.mxu1 %v10073_v6  ;;  %8789 = vmatprep.subr.bf16.mxu0 %v10073_v6  ;;  %v516_v28 = vadd.f32 %v515_v25, %v11097_v21  ;;  %v11144_v58 = vunpack.c.l.bf16 %v452_v46  ;;  %v559_v60 = vmul.f32 %v11116_v34, %v11116_v34  ;;  %v11149_v62 = vunpack.c.h.bf16 %v452_v46  ;;  %v460_v25 = vld [vmem:[%s11064_s10 + $0x50] sm:$0xff]   ;;  %p10715_p0 = por %p10714_p7, %p10713_p4 }
  0xb8   : > { %v585_v45 = vadd.f32 %v584_v41, %v554_v36  ;;  %v560_v0 = vmul.f32 %v11122_v38, %v11122_v38  ;;  %v11155_v3 = vunpack.c.l.bf16 %v454_v56  ;;  %v561_v5 = vmul.f32 %v11127_v42, %v11127_v42 }
  0xb9   : > { %v517_v30 = vadd.f32 %v516_v28, %v11101_v24  ;;  %v563_v14 = vmul.f32 %v11138_v52, %v11138_v52  ;;  %v564_v22 = vmul.f32 %v11144_v58, %v11144_v58  ;;  %v11177_v26 = vunpack.c.l.bf16 %v458_v11  ;;  %p10716_p3 = pnand %p10715_p0, %p10709_p12 }
  0xba   : > { %9970 = vmatpush3.bf16.msra.mxu1 %v10074_v7  ;;  %8790 = vmatpush3.bf16.msra.mxu0 %v10074_v7  ;;  %v586_v50 = vadd.f32 %v585_v45, %v555_v40  ;;  %v11160_v7 = vunpack.c.h.bf16 %v454_v56  ;;  %v11182_v32 = vunpack.c.h.bf16 %v458_v11 }
  0xbb   : > { %9963 = vmatprep.subr.bf16.mxu1 %v10075_v8  ;;  %8791 = vmatprep.subr.bf16.mxu0 %v10075_v8  ;;  %v518_v35 = vadd.f32 %v517_v30, %v11105_v27  ;;  %v565_v30 = vmul.f32 %v11149_v62, %v11149_v62 }
  0xbc   : > { %v587_v55 = vadd.f32 %v586_v50, %v556_v44  ;;  %v567_v41 = vmul.f32 %v11160_v7, %v11160_v7  ;;  %v11193_v44 = vunpack.c.h.bf16 %v460_v25  ;;  %v11199_v50 = vunpack.c.l.bf16 %v462_v37 }
  0xbd   : > { %v519_v39 = vadd.f32 %v518_v35, %v11108_v29  ;;  %v566_v35 = vmul.f32 %v11155_v3, %v11155_v3 }
  0xbe   : > { %9971 = vmatpush3.bf16.msra.mxu1 %v10076_v9  ;;  %8792 = vmatpush3.bf16.msra.mxu0 %v10076_v9  ;;  %v588_v61 = vadd.f32 %v587_v55, %v557_v49  ;;  %v562_v9 = vmul.f32 %v11133_v47, %v11133_v47  ;;  %v464_v49 = vld [vmem:[%s11064_s10 + $0x60] sm:$0xff]   ;;  %v11204_v55 = vunpack.c.h.bf16 %v462_v37  ;;  %v573_v11 = vmul.f32 %v11193_v44, %v11193_v44 }
  0xbf   : > { %9964 = vmatprep.subr.bf16.mxu1 %v10077_v10  ;;  %8793 = vmatprep.subr.bf16.mxu0 %v10077_v10  ;;  %v520_v43 = vadd.f32 %v519_v39, %v11116_v34  ;;  %v11188_v39 = vunpack.c.l.bf16 %v460_v25 }
  0xc0   : > { %v589_v1 = vadd.f32 %v588_v61, %v558_v54  ;;  %v11210_v61 = vunpack.c.l.bf16 %v464_v49 }
  0xc1   : > { %v521_v48 = vadd.f32 %v520_v43, %v11122_v38 }
  0xc2   : > { %9972 = vmatpush3.bf16.msra.mxu1 %v10078_v12  ;;  %8794 = vmatpush3.bf16.msra.mxu0 %v10078_v12  ;;  %v590_v6 = vadd.f32 %v589_v1, %v559_v60  ;;  %v11166_v12 = vunpack.c.l.bf16 %v456_v2  ;;  %v466_v60 = vld [vmem:[%s11064_s10 + $0x68] sm:$0xff]  }
  0xc3   : > { %9965 = vmatprep.subr.bf16.mxu1 %v10079_v13  ;;  %8795 = vmatprep.subr.bf16.mxu0 %v10079_v13  ;;  %v522_v53 = vadd.f32 %v521_v48, %v11127_v42 }
  0xc4   : > { %v591_v10 = vadd.f32 %v590_v6, %v560_v0  ;;  %v568_v46 = vmul.f32 %v11166_v12, %v11166_v12  ;;  %v571_v0 = vmul.f32 %v11182_v32, %v11182_v32 }
  0xc5   : > { %v523_v59 = vadd.f32 %v522_v53, %v11133_v47 }
  0xc6   : > { %9973 = vmatpush3.bf16.msra.mxu1 %v10080_v15  ;;  %8796 = vmatpush3.bf16.msra.mxu0 %v10080_v15  ;;  %v592_v15 = vadd.f32 %v591_v10, %v561_v5  ;;  %v572_v5 = vmul.f32 %v11188_v39, %v11188_v39 }
  0xc7   : > { %9966 = vmatprep.subr.bf16.mxu1 %v10081_v18  ;;  %8797 = vmatprep.subr.bf16.mxu0 %v10081_v18  ;;  %v524_v63 = vadd.f32 %v523_v59, %v11138_v52  ;;  %v11171_v18 = vunpack.c.h.bf16 %v456_v2  ;;  %v11215_v2 = vunpack.c.h.bf16 %v464_v49 }
  0xc9   : > { %v525_v4 = vadd.f32 %v524_v63, %v11144_v58  ;;  %v569_v53 = vmul.f32 %v11171_v18, %v11171_v18 }
  0xca   : > { %9974 = vmatpush3.bf16.msra.mxu1 %v10082_v23  ;;  %8798 = vmatpush3.bf16.msra.mxu0 %v10082_v23  ;;  %v593_v23 = vadd.f32 %v592_v15, %v562_v9  ;;  %v11221_v9 = vunpack.c.l.bf16 %v466_v60 }
  0xcb   : > { %9623 = vmatprep.subr.bf16.mxu1 %v10087_v51  ;;  %9671 = vmatprep.subr.bf16.mxu0 %v10090_v57  ;;  %v526_v8 = vadd.f32 %v525_v4, %v11149_v62  ;;  %v570_v57 = vmul.f32 %v11177_v26, %v11177_v26 }
  0xcc   : > { %v594_v31 = vadd.f32 %v593_v23, %v563_v14  ;;  %v11226_v14 = vunpack.c.h.bf16 %v466_v60  ;;  %v470_v23 = vld [vmem:[%s11064_s10 + $0x78] sm:$0xff]   ;;  %v578_v49 = vmul.f32 %v11221_v9, %v11221_v9 }
  0xcd   : > { %v527_v13 = vadd.f32 %v526_v8, %v11155_v3  ;;  %v468_v8 = vld [vmem:[%s11064_s10 + $0x70] sm:$0xff]  }
  0xce   : > { %v595_v36 = vadd.f32 %v594_v31, %v564_v22  ;;  %v11232_v25 = vunpack.c.l.bf16 %v468_v8 }
  0xcf   : > { %v528_v19 = vadd.f32 %v527_v13, %v11160_v7 }
  0xd0   : > { %v596_v43 = vadd.f32 %v595_v36, %v565_v30  ;;  %v575_v30 = vmul.f32 %v11204_v55, %v11204_v55  ;;  %v576_v36 = vmul.f32 %v11210_v61, %v11210_v61 }
  0xd1   : > { %v529_v28 = vadd.f32 %v528_v19, %v11166_v12  ;;  %v574_v19 = vmul.f32 %v11199_v50, %v11199_v50 }
  0xd2   : > { %v597_v48 = vadd.f32 %v596_v43, %v566_v35  ;;  %v577_v43 = vmul.f32 %v11215_v2, %v11215_v2 }
  0xd3   : > { %v530_v33 = vadd.f32 %v529_v28, %v11171_v18 }
  0xd4   : > { %v598_v54 = vadd.f32 %v597_v48, %v567_v41 }
  0xd5   : > { %v531_v40 = vadd.f32 %v530_v33, %v11177_v26  ;;  %v11237_v33 = vunpack.c.h.bf16 %v468_v8 }
  0xd6   : > { %v599_v59 = vadd.f32 %v598_v54, %v568_v46  ;;  %v11247_v46 = vunpack.c.h.bf16 %v470_v23  ;;  %v579_v54 = vmul.f32 %v11226_v14, %v11226_v14 }
  0xd7   : > { %v532_v45 = vadd.f32 %v531_v40, %v11182_v32  ;;  %v11242_v40 = vunpack.c.l.bf16 %v470_v23 }
  0xd8   : > { %v600_v1 = vadd.f32 %v599_v59, %v569_v53  ;;  %v580_v59 = vmul.f32 %v11232_v25, %v11232_v25 }
  0xd9   : > { %v533_v51 = vadd.f32 %v532_v45, %v11188_v39 }
  0xda   : > { %v601_v6 = vadd.f32 %v600_v1, %v570_v57 }
  0xdb   : > { %v534_v56 = vadd.f32 %v533_v51, %v11193_v44 }
  0xdc   : > { %v602_v13 = vadd.f32 %v601_v6, %v571_v0  ;;  %v581_v0 = vmul.f32 %v11237_v33, %v11237_v33 }
  0xdd   : > { %v535_v63 = vadd.f32 %v534_v56, %v11199_v50 }
  0xde   : > { %v603_v22 = vadd.f32 %v602_v13, %v572_v5  ;;  %v582_v5 = vmul.f32 %v11242_v40, %v11242_v40 }
  0xdf   : > { %v536_v4 = vadd.f32 %v535_v63, %v11204_v55 }
  0xe0   : > { %v604_v31 = vadd.f32 %v603_v22, %v573_v11 }
  0xe1   : > { %v537_v10 = vadd.f32 %v536_v4, %v11210_v61 }
  0xe2   : > { %v605_v37 = vadd.f32 %v604_v31, %v574_v19 }
  0xe3   : > { %v538_v15 = vadd.f32 %v537_v10, %v11215_v2  ;;  %v583_v10 = vmul.f32 %v11247_v46, %v11247_v46 }
  0xe4   : > { %v606_v45 = vadd.f32 %v605_v37, %v575_v30 }
  0xe5   : > { %v539_v28 = vadd.f32 %v538_v15, %v11221_v9 }
  0xe6   : > { %v607_v51 = vadd.f32 %v606_v45, %v576_v36 }
  0xe7   : > { %v540_v35 = vadd.f32 %v539_v28, %v11226_v14 }
  0xe8   : > { %v608_v56 = vadd.f32 %v607_v51, %v577_v43 }
  0xe9   : > { %v541_v41 = vadd.f32 %v540_v35, %v11232_v25 }
  0xea   : > { %v609_v60 = vadd.f32 %v608_v56, %v578_v49  ;;  %v513_v56 = vld [vmem:[%s11072_s18] sm:$0x3] }
  0xeb   : > { %v542_v48 = vadd.f32 %v541_v41, %v11237_v33 }
  0xec   : > { %v610_v1 = vadd.f32 %v609_v60, %v579_v54 }
  0xed   : > { %v543_v53 = vadd.f32 %v542_v48, %v11242_v40 }
  0xee   : > { %v611_v6 = vadd.f32 %v610_v1, %v580_v59  ;;  %v10792_v59 = vmov 0  }
  0xef   : > { %v544_v57 = vadd.f32 %v543_v53, %v11247_v46  ;;  %v634_v53 = vlaneseq  ;;  %472 = vst [vmem:[#allocation2] sm:$0xff] %v10792_v59  ;;  %473 = vst [vmem:[#allocation2 + $0x8] sm:$0xf] %v10792_v59 }
  0xf0   : > { %v612_v11 = vadd.f32 %v611_v6, %v581_v0  ;;  %475 = vst [vmem:[#allocation2 + $0x14] sm:$0xf] %v10792_v59  ;;  %478 = vst [vmem:[#allocation2 + $0x1a0] sm:$0xf] %v10792_v59 }
  0xf1   : > { %v545_v63 = vrot.slane %v544_v57, 4  ;;  %v11264_v54 = vshrl.u32 %v634_v53, 7  ;;  %480 = vst [vmem:[#allocation2 + $0x1ac] sm:$0xf] %v10792_v59 }
  0xf2   : > { %v613_v15 = vadd.f32 %v612_v11, %v582_v5 }
  0xf3   : > { %v546_v4 = vadd.f32 %v545_v63, %v544_v57  ;;  %13829 = vst [vmem:[#allocation25_spill] sm:$0xff] %v11264_v54  ;;  %v627_v57 = vadd.f32 1.0, %v513_v56  ;;  %v13775_v60 = vsub.s32 0, %v11264_v54  ;;  %v13774_v5 = vsub.s32 1, %v11264_v54 }
  0xf4   : > { %v614_v22 = vadd.f32 %v613_v15, %v583_v10 }
  0xf5   : > { %v547_v8 = vrot.slane %v546_v4, 2 }
  0xf6   : > { %v615_v28 = vrot.slane %v614_v22, 4 }
  0xf7   : > { %v548_v13 = vadd.f32 %v547_v8, %v546_v4 }
  0xf8   : > { %v616_v30 = vadd.f32 %v615_v28, %v614_v22 }
  0xf9   : > { %v549_v19 = vrot.slane %v548_v13, 1 }
  0xfa   : > { %v617_v35 = vrot.slane %v616_v30, 2 }
  0xfb   : > { %v550_v23 = vadd.f32 %v549_v19, %v548_v13 }
  0xfc   : > { %v618_v36 = vadd.f32 %v617_v35, %v616_v30 }
  0xfd   : > { %v551_v31 = vmul.f32 0.00390625, %v550_v23 }
  0xfe   : > { %v619_v37 = vrot.slane %v618_v36, 1 }
  0xff   : > { %v622_v43 = vmul.f32 %v551_v31, %v551_v31 }
 0x100   : > { %v620_v41 = vadd.f32 %v619_v37, %v618_v36 }
 0x102   : > { %v621_v45 = vmul.f32 0.00390625, %v620_v41 }
 0x104   : > { %v623_v48 = vsub.f32 %v621_v45, %v622_v43 }
 0x106   : > { %v624_v49 = vmax.f32 %v623_v48, 0.0 }
 0x108   : > { %v625_v51 = vadd.f32 1e-05, %v624_v49 }
 0x10a   : > { %10520 = vrsqrt.f32 %v625_v51 }
 0x117   : > { %v10521_v63 = vpop.eup %10520 }
 0x118   : > { %v628_v0 = vmul.f32 %v10521_v63, %v627_v57 }
 0x11a   : > { %v629_v1 = vmul.f32 %v628_v0, %v551_v31  ;;  %v11270_v4 = vrot.slane %v628_v0, %v13775_v60 }
 0x11c   : > { %v631_v6 = vrot.slane %v629_v1, 7  ;;  %v638_v8 = vmul.f32 %v11270_v4, %v11090_v16  ;;  %v639_v10 = vmul.f32 %v11270_v4, %v11092_v17  ;;  %v662_v11 = vmul.f32 %v11270_v4, %v11210_v61 }
 0x11d   : > { %v663_v13 = vmul.f32 %v11270_v4, %v11215_v2  ;;  %v640_v15 = vmul.f32 %v11270_v4, %v11095_v20  ;;  %v641_v19 = vmul.f32 %v11270_v4, %v11097_v21  ;;  %v664_v22 = vmul.f32 %v11270_v4, %v11221_v9 }
 0x11e   : > { %v633_v23 = vsub.f32 %v513_v56, %v631_v6  ;;  %v665_v16 = vmul.f32 %v11270_v4, %v11226_v14  ;;  %v642_v17 = vmul.f32 %v11270_v4, %v11101_v24  ;;  %v643_v61 = vmul.f32 %v11270_v4, %v11105_v27 }
 0x11f   : > { %v11295_v2 = vmul.f32 %v11270_v4, %v11232_v25  ;;  %v11299_v20 = vmul.f32 %v11270_v4, %v11237_v33  ;;  %v11303_v21 = vmul.f32 %v11270_v4, %v11108_v29  ;;  %v11307_v9 = vmul.f32 %v11270_v4, %v11116_v34 }
 0x120   : > { %v11311_v24 = vrot.slane %v633_v23, %v13774_v5  ;;  %v11315_v27 = vmul.f32 %v11270_v4, %v11242_v40  ;;  %v11319_v14 = vmul.f32 %v11270_v4, %v11247_v46  ;;  %v11323_v29 = vmul.f32 %v11270_v4, %v11122_v38  ;;  %v10099_v5 = vld [vmem:[#allocation9 + $0x160] sm:$0xff]  }
 0x121   : > { %v11327_v34 = vmul.f32 %v11270_v4, %v11127_v42  ;;  %v11331_v25 = vmul.f32 %v11270_v4, %v11133_v47  ;;  %v11335_v33 = vmul.f32 %v11270_v4, %v11138_v52  ;;  %v11339_v40 = vmul.f32 %v11270_v4, %v11144_v58 }
 0x122   : > { %v674_v46 = vadd.f32 %v11311_v24, %v638_v8  ;;  %v675_v38 = vadd.f32 %v11311_v24, %v639_v10  ;;  %v698_v42 = vadd.f32 %v11311_v24, %v662_v11  ;;  %v699_v28 = vadd.f32 %v11311_v24, %v663_v13 }
 0x123   : > { %v676_v47 = vadd.f32 %v11311_v24, %v640_v15  ;;  %v677_v30 = vadd.f32 %v11311_v24, %v641_v19  ;;  %v700_v52 = vadd.f32 %v11311_v24, %v664_v22  ;;  %v701_v31 = vadd.f32 %v11311_v24, %v665_v16 }
 0x124   : > { %v706_v58 = vmul.f32 0.2, %v674_v46  ;;  %v707_v35 = vmul.f32 0.2, %v675_v38  ;;  %v730_v36 = vmul.f32 0.2, %v698_v42  ;;  %v678_v37 = vadd.f32 %v11311_v24, %v642_v17 }
 0x125   : > { %v731_v41 = vmul.f32 0.2, %v699_v28  ;;  %v708_v43 = vmul.f32 0.2, %v676_v47  ;;  %v709_v45 = vmul.f32 0.2, %v677_v30  ;;  %v679_v48 = vadd.f32 %v11311_v24, %v643_v61 }
 0x126   : > { %v738_v49 = vmax.f32 %v674_v46, %v706_v58  ;;  %v739_v51 = vmax.f32 %v675_v38, %v707_v35  ;;  %v762_v53 = vmax.f32 %v698_v42, %v730_v36  ;;  %v732_v56 = vmul.f32 0.2, %v700_v52 }
 0x127   : > { %v763_v57 = vmax.f32 %v699_v28, %v731_v41  ;;  %v740_v59 = vmax.f32 %v676_v47, %v708_v43  ;;  %v741_v63 = vmax.f32 %v677_v30, %v709_v45  ;;  %v733_v0 = vmul.f32 0.2, %v701_v31 }
 0x128   : > { %v11351_v1 = vpack.c.bf16 %v739_v51, %v738_v49  ;;  %v8718_v6 = vpack.c.bf16 %v738_v49, %v738_v49  ;;  %v8719_v8 = vpack.c.bf16 %v739_v51, %v739_v51  ;;  %v8742_v10 = vpack.c.bf16 %v762_v53, %v762_v53 }
 0x129   : > { %v11353_v11 = vpack.c.bf16 %v763_v57, %v762_v53  ;;  %v8743_v13 = vpack.c.bf16 %v763_v57, %v763_v57  ;;  %v11355_v15 = vpack.c.bf16 %v741_v63, %v740_v59  ;;  %v8720_v19 = vpack.c.bf16 %v740_v59, %v740_v59 }
 0x12a   : > { %899 = vst [vmem:[#allocation2 + $0x1c] sm:$0xf] %v8718_v6  ;;  %900 = vst [vmem:[#allocation2 + $0x28] sm:$0xf] %v8719_v8  ;;  %v932_v22 = vshrl.u32 %v11351_v1, 16  ;;  %v935_v23 = vshll.u32 %v11351_v1, 16  ;;  %v8721_v16 = vpack.c.bf16 %v741_v63, %v741_v63  ;;  %v764_v17 = vmax.f32 %v700_v52, %v732_v56 }
 0x12b   : > { %923 = vst [vmem:[#allocation2 + $0x13c] sm:$0xf] %v8742_v10  ;;  %924 = vst [vmem:[#allocation2 + $0x148] sm:$0xf] %v8743_v13  ;;  %v1016_v61 = vshrl.u32 %v11353_v11, 16  ;;  %v1019_v46 = vshll.u32 %v11353_v11, 16  ;;  %v765_v47 = vmax.f32 %v701_v31, %v733_v0  ;;  %v702_v59 = vadd.f32 %v11311_v24, %v11295_v2 }
 0x12c   : > { %901 = vst [vmem:[#allocation2 + $0x34] sm:$0xf] %v8720_v19  ;;  %v939_v38 = vshrl.u32 %v11355_v15, 16  ;;  %v942_v42 = vshll.u32 %v11355_v15, 16  ;;  %v934_v28 = vrot.slane %v932_v22, 7  ;;  %v8744_v30 = vpack.c.bf16 %v764_v17, %v764_v17 }
 0x12d   : > { %902 = vst [vmem:[#allocation2 + $0x40] sm:$0xf] %v8721_v16  ;;  %v710_v58 = vmul.f32 0.2, %v678_v37  ;;  %v13830_v52 = vmov 0  ;;  %v1018_v35 = vrot.slane %v1016_v61, 7  ;;  %v11379_v45 = vpack.c.bf16 %v765_v47, %v764_v17 }
 0x12e   : > { %v13831_v52 = vsel %vm11367_vm2, 4294967295, %v13830_v52  ;;  %v941_v36 = vrot.slane %v939_v38, 7  ;;  %v11375_v41 = vrot.slane %v942_v42, 1  ;;  %v711_v43 = vmul.f32 0.2, %v679_v48 }
 0x12f   : > { %13832 = vst [vmem:[#allocation26_spill] sm:$0xff] %v13831_v52  ;;  %v937_v31 = vor.u32 %v935_v23, %v934_v28  ;;  %v8745_v49 = vpack.c.bf16 %v765_v47, %v765_v47  ;;  %925 = vst [vmem:[#allocation2 + $0x154] sm:$0xf] %v8744_v30  ;;  %v742_v51 = vmax.f32 %v678_v37, %v710_v58  ;;  %v1023_v0 = vshrl.u32 %v11379_v45, 16 }
 0x130   : > { %v1021_v53 = vor.u32 %v1019_v46, %v1018_v35  ;;  %v944_v56 = vor.u32 %v942_v42, %v941_v36  ;;  %v743_v57 = vmax.f32 %v679_v48, %v711_v43  ;;  %v1026_v6 = vshll.u32 %v11379_v45, 16 }
 0x131   : > { %v1062_v63 = vsel %vm11367_vm2, 0, %v937_v31  ;;  %926 = vst [vmem:[#allocation2 + $0x160] sm:$0xf] %v8745_v49  ;;  %v8722_v8 = vpack.c.bf16 %v742_v51, %v742_v51  ;;  %v1025_v42 = vrot.slane %v1023_v0, 7  ;;  %v703_v30 = vadd.f32 %v11311_v24, %v11299_v20 }
 0x132   : > { %v8094_v10 = vcombine.low %v1062_v63, %v1062_v63  ;;  %v8095_v13 = vcombine.high %v1062_v63, %v1062_v63  ;;  %v1074_v37 = vsel %vm11367_vm2, 0, %v1021_v53  ;;  %v1063_v48 = vsel %vm11367_vm2, 0, %v944_v56 }
 0x133   : > { %v8118_v19 = vcombine.low %v1074_v37, %v1074_v37  ;;  %v8119_v16 = vcombine.high %v1074_v37, %v1074_v37  ;;  %v8096_v2 = vcombine.low %v1063_v48, %v1063_v48  ;;  %v8097_v17 = vcombine.high %v1063_v48, %v1063_v48  ;;  %903 = vst [vmem:[#allocation2 + $0x4c] sm:$0xf] %v8722_v8 }
 0x134   : > { %1190 = vst [vmem:[#allocation2 + $0x18] sm:$0xf] %v8094_v10  ;;  %1191 = vst [vmem:[#allocation2 + $0x24] sm:$0xf] %v8095_v13  ;;  %v11395_v28 = vpack.c.bf16 %v743_v57, %v742_v51  ;;  %v8723_v47 = vpack.c.bf16 %v743_v57, %v743_v57  ;;  %v734_v58 = vmul.f32 0.2, %v702_v59  ;;  %v680_v35 = vadd.f32 %v11311_v24, %v11303_v21 }
 0x135   : > { %1214 = vst [vmem:[#allocation2 + $0x138] sm:$0xf] %v8118_v19  ;;  %1215 = vst [vmem:[#allocation2 + $0x144] sm:$0xf] %v8119_v16  ;;  %v681_v36 = vadd.f32 %v11311_v24, %v11307_v9  ;;  %v704_v43 = vadd.f32 %v11311_v24, %v11315_v27  ;;  %v1028_v31 = vor.u32 %v1026_v6, %v1025_v42  ;;  %v735_v51 = vmul.f32 0.2, %v703_v30 }
 0x136   : > { %1192 = vst [vmem:[#allocation2 + $0x30] sm:$0xf] %v8096_v2  ;;  %1193 = vst [vmem:[#allocation2 + $0x3c] sm:$0xf] %v8097_v17  ;;  %v946_v20 = vshrl.u32 %v11395_v28, 16  ;;  %v949_v49 = vshll.u32 %v11395_v28, 16  ;;  %v766_v53 = vmax.f32 %v702_v59, %v734_v58  ;;  %v705_v21 = vadd.f32 %v11311_v24, %v11319_v14 }
 0x137   : > { %904 = vst [vmem:[#allocation2 + $0x58] sm:$0xf] %v8723_v47  ;;  %v712_v56 = vmul.f32 0.2, %v680_v35  ;;  %v713_v57 = vmul.f32 0.2, %v681_v36  ;;  %v767_v63 = vmax.f32 %v703_v30, %v735_v51  ;;  %v682_v58 = vadd.f32 %v11311_v24, %v11323_v29 }
 0x138   : > { %v1075_v9 = vsel %vm11367_vm2, 0, %v1028_v31  ;;  %v948_v27 = vrot.slane %v946_v20, 7  ;;  %v736_v8 = vmul.f32 0.2, %v704_v43  ;;  %v8746_v37 = vpack.c.bf16 %v766_v53, %v766_v53  ;;  %v10083_v14 = vld [vmem:[#allocation2 + $0x1c] ss:$12 sps:$4 sm:$0xff]  }
 0x139   : > { %v8120_v10 = vcombine.low %v1075_v9, %v1075_v9  ;;  %v8121_v13 = vcombine.high %v1075_v9, %v1075_v9  ;;  %v744_v48 = vmax.f32 %v680_v35, %v712_v56  ;;  %v11417_v19 = vpack.c.bf16 %v767_v63, %v766_v53  ;;  %v11419_v17 = vld [vmem:[#allocation9 + $0x170] sm:$0xff]   ;;  %2091 = vmatprep.mubr.bf16.mxu0 %v10083_v14  ;;  %v10524_v14 = vld [vmem:[#allocation9 + $0x178] sm:$0xff]  }
 0x13a   : > { %v951_v59 = vor.u32 %v949_v49, %v948_v27  ;;  %v8747_v16 = vpack.c.bf16 %v767_v63, %v767_v63  ;;  %v745_v2 = vmax.f32 %v681_v36, %v713_v57  ;;  %927 = vst [vmem:[#allocation2 + $0x16c] sm:$0xf] %v8746_v37  ;;  %v737_v47 = vmul.f32 0.2, %v705_v21  ;;  %v10085_v35 = vld [vmem:[#allocation2 + $0x13c] ss:$12 sps:$4 sm:$0xff]  }
 0x13b   : > { %1216 = vst [vmem:[#allocation2 + $0x150] sm:$0xf] %v8120_v10  ;;  %1217 = vst [vmem:[#allocation2 + $0x15c] sm:$0xf] %v8121_v13  ;;  %v8724_v42 = vpack.c.bf16 %v744_v48, %v744_v48  ;;  %v768_v30 = vmax.f32 %v704_v43, %v736_v8  ;;  %v11423_v31 = vld [vmem:[#allocation9 + $0xb0] sm:$0xff]   ;;  %v1030_v36 = vshrl.u32 %v11417_v19, 16  ;;  %2187 = vmatprep.mubr.bf16.mxu1 %v10085_v35 }
 0x13c   : > { %v1064_v51 = vsel %vm11367_vm2, 0, %v951_v59  ;;  %928 = vst [vmem:[#allocation2 + $0x178] sm:$0xf] %v8747_v16  ;;  %v11428_v53 = vpack.c.bf16 %v745_v2, %v744_v48  ;;  %v8725_v56 = vpack.c.bf16 %v745_v2, %v745_v2  ;;  %v10088_v57 = vld [vmem:[#allocation2 + $0x18] ss:$12 sps:$4 sm:$0xff]   ;;  %v1033_v63 = vshll.u32 %v11417_v19, 16 }
 0x13d   : > { %v10089_v9 = vld [vmem:[#allocation2 + $0x138] ss:$12 sps:$4 sm:$0xff]   ;;  %v8098_v27 = vcombine.low %v1064_v51, %v1064_v51  ;;  %v8099_v43 = vcombine.high %v1064_v51, %v1064_v51  ;;  %905 = vst [vmem:[#allocation2 + $0x64] sm:$0xf] %v8724_v42  ;;  %v769_v29 = vmax.f32 %v705_v21, %v737_v47  ;;  %v10092_v8 = vld [vmem:[#allocation2 + $0x34] ss:$12 sps:$4 sm:$0xff]   ;;  %v8748_v13 = vpack.c.bf16 %v768_v30, %v768_v30 }
 0x13e   : > { %v1032_v10 = vrot.slane %v1030_v36, 7  ;;  %906 = vst [vmem:[#allocation2 + $0x70] sm:$0xf] %v8725_v56  ;;  %v683_v37 = vadd.f32 %v11311_v24, %v11327_v34  ;;  %v13833_v48 = vmov 0  ;;  %v1225_v21 = vor.u32 %v11375_v41, %v939_v38  ;;  %2092 = vmatmul.mubr.bf16.vlgmr.msra.gmra.mxu0 %v10088_v57  ;;  %2188 = vmatmul.mubr.bf16.vlgmr.msra.gmra.mxu1 %v10089_v9  ;;  %v10525_v42 = vld [vmem:[#allocation9 + $0xb8] sm:$0xff]   ;;  %v10096_v35 = vld [vmem:[#allocation9 + $0x168] sm:$0xff]  }
 0x13f   : > { %v13834_v48 = vsel %vm11437_vm5, 4294967295, %v13833_v48  ;;  %1194 = vst [vmem:[#allocation2 + $0x48] sm:$0xf] %v8098_v27  ;;  %1195 = vst [vmem:[#allocation2 + $0x54] sm:$0xf] %v8099_v43  ;;  %v953_v59 = vshrl.u32 %v11428_v53, 16  ;;  %v11446_v2 = vpack.c.bf16 %v769_v29, %v768_v30  ;;  %v8749_v34 = vpack.c.bf16 %v769_v29, %v769_v29  ;;  %9624 = vmatpush3.bf16.msra.mxu1 %v10524_v14 }
 0x140   : > { %13835 = vst [vmem:[#allocation27_spill] sm:$0xff] %v13834_v48  ;;  %v956_v16 = vshll.u32 %v11428_v53, 16  ;;  %9672 = vmatpush3.bf16.msra.mxu0 %v10525_v42  ;;  %v1035_v15 = vor.u32 %v1033_v63, %v1032_v10  ;;  %929 = vst [vmem:[#allocation2 + $0x184] sm:$0xf] %v8748_v13  ;;  %v714_v38 = vmul.f32 0.2, %v682_v58  ;;  %9625 = vmatprep.subr.bf16.mxu1 %v11419_v17 }
 0x141   : > { %v715_v41 = vmul.f32 0.2, %v683_v37  ;;  %v1222_v47 = vrot.slane %v935_v23, 1  ;;  %2099 = vmatprep.mubr.bf16.mxu0 %v10092_v8  ;;  %v955_v30 = vrot.slane %v953_v59, 7  ;;  %930 = vst [vmem:[#allocation2 + $0x190] sm:$0xf] %v8749_v34  ;;  %9673 = vmatprep.subr.bf16.mxu0 %v11423_v31 }
 0x142   : > { %v1037_v51 = vshrl.u32 %v11446_v2, 16  ;;  %v1040_v56 = vshll.u32 %v11446_v2, 16  ;;  %v10116_v57 = vld [vmem:[#allocation9 + $0xa8] sm:$0xff]   ;;  %v1274_v9 = vsel %vm11437_vm5, %v1225_v21, 0  ;;  %v1076_v23 = vsel %vm11367_vm2, 0, %v1035_v15  ;;  %v10177_v2 = vld [vmem:[#allocation9] sm:$0xff]  }
 0x143   : > { %v10094_v27 = vld [vmem:[#allocation2 + $0x154] ss:$12 sps:$4 sm:$0xff]   ;;  %v746_v43 = vmax.f32 %v682_v58, %v714_v38  ;;  %v747_v29 = vmax.f32 %v683_v37, %v715_v41  ;;  %v1223_v8 = vor.u32 %v1222_v47, %v932_v22  ;;  %v10097_v10 = vld [vmem:[#allocation2 + $0x30] ss:$12 sps:$4 sm:$0xff]   ;;  %v8122_v34 = vcombine.low %v1076_v23, %v1076_v23  ;;  %9626 = vmatpush3.bf16.msra.mxu1 %v11419_v17 }
 0x144   : > { %v10098_v13 = vld [vmem:[#allocation2 + $0x150] ss:$12 sps:$4 sm:$0xff]   ;;  %v8123_v14 = vcombine.high %v1076_v23, %v1076_v23  ;;  %v958_v42 = vor.u32 %v956_v16, %v955_v30  ;;  %v1039_v21 = vrot.slane %v1037_v51, 7  ;;  %2195 = vmatprep.mubr.bf16.mxu1 %v10094_v27  ;;  %9627 = vmatprep.subr.bf16.mxu1 %v10096_v35  ;;  %v10101_v30 = vld [vmem:[#allocation2 + $0x4c] ss:$12 sps:$4 sm:$0xff]  }
 0x145   : > { %v11469_v15 = vpack.c.bf16 %v747_v29, %v746_v43  ;;  %v8726_v58 = vpack.c.bf16 %v746_v43, %v746_v43  ;;  %v8727_v37 = vpack.c.bf16 %v747_v29, %v747_v29  ;;  %v1273_v1 = vsel %vm11437_vm5, %v1223_v8, 0  ;;  %v11473_v22 = vld [vmem:[#allocation9 + $0xa0] sm:$0xff]   ;;  %9674 = vmatpush3.bf16.msra.mxu0 %v11423_v31  ;;  %1218 = vst [vmem:[#allocation2 + $0x168] sm:$0xf] %v8122_v34 }
 0x146   : > { %1219 = vst [vmem:[#allocation2 + $0x174] sm:$0xf] %v8123_v14  ;;  %v1065_v38 = vsel %vm11367_vm2, 0, %v958_v42  ;;  %v1042_v17 = vor.u32 %v1040_v56, %v1039_v21  ;;  %v8126_v41 = vcombine.low %v1273_v1, %v1273_v1  ;;  %v8127_v47 = vcombine.high %v1273_v1, %v1273_v1  ;;  %9675 = vmatprep.subr.bf16.mxu0 %v10116_v57 }
 0x147   : > { %v8100_v27 = vcombine.low %v1065_v38, %v1065_v38  ;;  %v8101_v23 = vcombine.high %v1065_v38, %v1065_v38  ;;  %907 = vst [vmem:[#allocation2 + $0x7c] sm:$0xf] %v8726_v58  ;;  %908 = vst [vmem:[#allocation2 + $0x88] sm:$0xf] %v8727_v37  ;;  %v960_v43 = vshrl.u32 %v11469_v15, 16  ;;  %v963_v31 = vshll.u32 %v11469_v15, 16  ;;  %2100 = vmatmul.mubr.bf16.gmra.mxu0 %v10097_v10 }
 0x148   : > { %2196 = vmatmul.mubr.bf16.gmra.mxu1 %v10098_v13  ;;  %v1077_v29 = vsel %vm11367_vm2, 0, %v1042_v17  ;;  %1401 = vst [vmem:[#allocation2 + $0x20] sm:$0xf] %v8126_v41  ;;  %1402 = vst [vmem:[#allocation2 + $0x2c] sm:$0xf] %v8127_v47  ;;  %v8128_v8 = vcombine.low %v1274_v9, %v1274_v9  ;;  %v8129_v34 = vcombine.high %v1274_v9, %v1274_v9  ;;  %2107 = vmatprep.mubr.bf16.mxu0 %v10101_v30  ;;  %v10105_v13 = vld [vmem:[#allocation9 + $0x158] sm:$0xff]  }
 0x149   : > { %v684_v14 = vadd.f32 %v11311_v24, %v11331_v25  ;;  %9628 = vmatpush3.bf16.msra.mxu1 %v10096_v35  ;;  %1196 = vst [vmem:[#allocation2 + $0x60] sm:$0xf] %v8100_v27  ;;  %1197 = vst [vmem:[#allocation2 + $0x6c] sm:$0xf] %v8101_v23  ;;  %v8124_v42 = vcombine.low %v1077_v29, %v1077_v29  ;;  %v8125_v21 = vcombine.high %v1077_v29, %v1077_v29  ;;  %v10106_v38 = vld [vmem:[#allocation2 + $0x48] ss:$12 sps:$4 sm:$0xff]  }
 0x14a   : > { %v962_v58 = vrot.slane %v960_v43, 7  ;;  %v685_v10 = vadd.f32 %v11311_v24, %v11335_v33  ;;  %9629 = vmatprep.subr.bf16.mxu1 %v10099_v5  ;;  %9676 = vmatpush3.bf16.msra.mxu0 %v10116_v57  ;;  %1403 = vst [vmem:[#allocation2 + $0x38] sm:$0xf] %v8128_v8  ;;  %1404 = vst [vmem:[#allocation2 + $0x44] sm:$0xf] %v8129_v34  ;;  %v1226_v9 = vrot.slane %v949_v49, 1 }
 0x14b   : > { %v716_v15 = vmul.f32 0.2, %v684_v14  ;;  %v1228_v25 = vrot.slane %v956_v16, 1  ;;  %v651_v35 = vmul.f32 %v11270_v4, %v11149_v62  ;;  %1220 = vst [vmem:[#allocation2 + $0x180] sm:$0xf] %v8124_v42  ;;  %9677 = vmatprep.subr.bf16.mxu0 %v11473_v22  ;;  %v11497_v57 = vadd.f32 %v11311_v24, %v11339_v40  ;;  %v11499_v17 = vld [vmem:[#allocation9 + $0x150] sm:$0xff]  }
 0x14c   : > { %1221 = vst [vmem:[#allocation2 + $0x18c] sm:$0xf] %v8125_v21  ;;  %v965_v37 = vor.u32 %v963_v31, %v962_v58  ;;  %v717_v33 = vmul.f32 0.2, %v685_v10  ;;  %v1230_v1 = vrot.slane %v963_v31, 1  ;;  %v1227_v16 = vor.u32 %v1226_v9, %v946_v20 }
 0x14d   : > { %v748_v49 = vmax.f32 %v684_v14, %v716_v15  ;;  %v1229_v62 = vor.u32 %v1228_v25, %v953_v59  ;;  %v11506_v41 = vadd.f32 %v11311_v24, %v651_v35  ;;  %9630 = vmatpush3.bf16.msra.mxu1 %v10099_v5  ;;  %v10103_v47 = vld [vmem:[#allocation2 + $0x16c] ss:$12 sps:$4 sm:$0xff]   ;;  %v652_v23 = vmul.f32 %v11270_v4, %v11155_v3  ;;  %v10107_v31 = vld [vmem:[#allocation2 + $0x168] ss:$12 sps:$4 sm:$0xff]   ;;  %v11515_v3 = vld [vmem:[#allocation9 + $0x148] sm:$0xff]  }
 0x14e   : > { %v1066_v40 = vsel %vm11367_vm2, 0, %v965_v37  ;;  %v749_v30 = vmax.f32 %v685_v10, %v717_v33  ;;  %v1231_v27 = vor.u32 %v1230_v1, %v960_v43  ;;  %9631 = vmatprep.subr.bf16.mxu1 %v10105_v13  ;;  %9678 = vmatpush3.bf16.msra.mxu0 %v11473_v22  ;;  %v1275_v59 = vsel %vm11437_vm5, %v1227_v16, 0  ;;  %v10140_v14 = vld [vmem:[#allocation9 + $0x98] sm:$0xff]   ;;  %v11524_v35 = vld [vmem:[#allocation9 + $0x90] sm:$0xff]  }
 0x14f   : > { %v8102_v28 = vcombine.low %v1066_v40, %v1066_v40  ;;  %v8103_v20 = vcombine.high %v1066_v40, %v1066_v40  ;;  %v8728_v53 = vpack.c.bf16 %v748_v49, %v748_v49  ;;  %2203 = vmatprep.mubr.bf16.mxu1 %v10103_v47  ;;  %v8130_v8 = vcombine.low %v1275_v59, %v1275_v59  ;;  %v10109_v43 = vld [vmem:[#allocation2 + $0x64] ss:$12 sps:$4 sm:$0xff]  }
 0x150   : > { %v775_v5 = vpack.c.bf16 %v749_v30, %v748_v49  ;;  %v8729_v29 = vpack.c.bf16 %v749_v30, %v749_v30  ;;  %v8131_v34 = vcombine.high %v1275_v59, %v1275_v59  ;;  %2108 = vmatmul.mubr.bf16.gmra.mxu0 %v10106_v38  ;;  %2204 = vmatmul.mubr.bf16.gmra.mxu1 %v10107_v31  ;;  %v1276_v22 = vsel %vm11437_vm5, %v1229_v62, 0  ;;  %v10111_v37 = vld [vmem:[#allocation2 + $0x184] ss:$12 sps:$4 sm:$0xff]   ;;  %v10114_v38 = vld [vmem:[#allocation2 + $0x60] ss:$12 sps:$4 sm:$0xff]  }
 0x151   : > { %1198 = vst [vmem:[#allocation2 + $0x78] sm:$0xf] %v8102_v28  ;;  %1199 = vst [vmem:[#allocation2 + $0x84] sm:$0xf] %v8103_v20  ;;  %v1277_v42 = vsel %vm11437_vm5, %v1231_v27, 0  ;;  %v653_v21 = vmul.f32 %v11270_v4, %v11160_v7  ;;  %v688_v58 = vadd.f32 %v11311_v24, %v652_v23  ;;  %9632 = vmatpush3.bf16.msra.mxu1 %v10105_v13  ;;  %2115 = vmatprep.mubr.bf16.mxu0 %v10109_v43 }
 0x152   : > { %909 = vst [vmem:[#allocation2 + $0x94] sm:$0xf] %v8728_v53  ;;  %910 = vst [vmem:[#allocation2 + $0xa0] sm:$0xf] %v8729_v29  ;;  %v8132_v10 = vcombine.low %v1276_v22, %v1276_v22  ;;  %v8133_v15 = vcombine.high %v1276_v22, %v1276_v22  ;;  %v8134_v9 = vcombine.low %v1277_v42, %v1277_v42  ;;  %9633 = vmatprep.subr.bf16.mxu1 %v11499_v17  ;;  %v10120_v20 = vld [vmem:[#allocation2 + $0x20] ss:$12 sps:$4 sm:$0xff]  }
 0x153   : > { %1405 = vst [vmem:[#allocation2 + $0x50] sm:$0xf] %v8130_v8  ;;  %1406 = vst [vmem:[#allocation2 + $0x5c] sm:$0xf] %v8131_v34  ;;  %v8135_v25 = vcombine.high %v1277_v42, %v1277_v42  ;;  %v967_v33 = vshrl.u32 %v775_v5, 16  ;;  %v970_v1 = vshll.u32 %v775_v5, 16  ;;  %v689_v7 = vadd.f32 %v11311_v24, %v653_v21  ;;  %9679 = vmatprep.subr.bf16.mxu0 %v10140_v14 }
 0x154   : > { %v654_v13 = vmul.f32 %v11270_v4, %v11166_v12  ;;  %v10115_v49 = vld [vmem:[#allocation2 + $0x180] ss:$12 sps:$4 sm:$0xff]   ;;  %1407 = vst [vmem:[#allocation2 + $0x68] sm:$0xf] %v8132_v10  ;;  %1408 = vst [vmem:[#allocation2 + $0x74] sm:$0xf] %v8133_v15  ;;  %v655_v62 = vmul.f32 %v11270_v4, %v11171_v18  ;;  %v656_v47 = vmul.f32 %v11270_v4, %v11177_v26  ;;  %2211 = vmatprep.mubr.bf16.mxu1 %v10111_v37 }
 0x155   : > { %v718_v16 = vmul.f32 0.2, %v11497_v57  ;;  %1409 = vst [vmem:[#allocation2 + $0x80] sm:$0xf] %v8134_v9  ;;  %1410 = vst [vmem:[#allocation2 + $0x8c] sm:$0xf] %v8135_v25  ;;  %v11537_v40 = vmul.f32 %v11270_v4, %v11182_v32  ;;  %9680 = vmatpush3.bf16.msra.mxu0 %v10140_v14  ;;  %9634 = vmatpush3.bf16.msra.mxu1 %v11499_v17 }
 0x156   : > { %v10117_v12 = vld [vmem:[#allocation9 + $0x140] sm:$0xff]   ;;  %v969_v30 = vrot.slane %v967_v33, 7  ;;  %v719_v27 = vmul.f32 0.2, %v11506_v41  ;;  %v1232_v23 = vrot.slane %v970_v1, 1  ;;  %9681 = vmatprep.subr.bf16.mxu0 %v11524_v35  ;;  %v690_v26 = vadd.f32 %v11311_v24, %v654_v13  ;;  %9635 = vmatprep.subr.bf16.mxu1 %v11515_v3  ;;  %v10162_v10 = vld [vmem:[#allocation9 + $0x88] sm:$0xff]  }
 0x157   : > { %v720_v31 = vmul.f32 0.2, %v688_v58  ;;  %v750_v28 = vmax.f32 %v11497_v57, %v718_v16  ;;  %v721_v18 = vmul.f32 0.2, %v689_v7  ;;  %v691_v32 = vadd.f32 %v11311_v24, %v655_v62  ;;  %v10118_v8 = vld [vmem:[#allocation2 + $0x7c] ss:$12 sps:$4 sm:$0xff]  }
 0x158   : > { %v972_v53 = vor.u32 %v970_v1, %v969_v30  ;;  %v751_v59 = vmax.f32 %v11506_v41, %v719_v27  ;;  %v1233_v5 = vor.u32 %v1232_v23, %v967_v33  ;;  %v722_v14 = vmul.f32 0.2, %v690_v26  ;;  %2116 = vmatmul.mubr.bf16.gmra.mxu0 %v10114_v38  ;;  %2212 = vmatmul.mubr.bf16.gmra.mxu1 %v10115_v49  ;;  %v10121_v41 = vld [vmem:[#allocation9 + $0x78] sm:$0xff]   ;;  %v10123_v37 = vld [vmem:[#allocation2 + $0x38] ss:$12 sps:$4 sm:$0xff]  }
 0x159   : > { %v752_v29 = vmax.f32 %v688_v58, %v720_v31  ;;  %v8730_v34 = vpack.c.bf16 %v750_v28, %v750_v28  ;;  %v753_v17 = vmax.f32 %v689_v7, %v721_v18  ;;  %v692_v57 = vadd.f32 %v11311_v24, %v656_v47  ;;  %9636 = vmatpush3.bf16.msra.mxu1 %v11515_v3  ;;  %v10124_v13 = vld [vmem:[#allocation9 + $0x38] sm:$0xff]   ;;  %v10122_v62 = vld [vmem:[#allocation2 + $0x78] ss:$12 sps:$4 sm:$0xff]  }
 0x15a   : > { %v1067_v43 = vsel %vm11367_vm2, 0, %v972_v53  ;;  %v776_v22 = vpack.c.bf16 %v751_v59, %v750_v28  ;;  %v8731_v42 = vpack.c.bf16 %v751_v59, %v751_v59  ;;  %v1278_v21 = vsel %vm11437_vm5, %v1233_v5, 0  ;;  %2123 = vmatprep.mubr.bf16.mxu0 %v10118_v8  ;;  %9637 = vmatprep.subr.bf16.mxu1 %v10117_v12  ;;  %v10128_v47 = vld [vmem:[#allocation2 + $0x50] ss:$12 sps:$4 sm:$0xff]  }
 0x15b   : > { %v8104_v58 = vcombine.low %v1067_v43, %v1067_v43  ;;  %v8105_v15 = vcombine.high %v1067_v43, %v1067_v43  ;;  %911 = vst [vmem:[#allocation2 + $0xac] sm:$0xf] %v8730_v34  ;;  %v8136_v9 = vcombine.low %v1278_v21, %v1278_v21  ;;  %v723_v25 = vmul.f32 0.2, %v691_v32  ;;  %9639 = vmatprep.mubr.bf16.mxu1 %v10120_v20  ;;  %v10170_v8 = vld [vmem:[#allocation9 + $0x80] sm:$0xff]  }
 0x15c   : > { %912 = vst [vmem:[#allocation2 + $0xb8] sm:$0xf] %v8731_v42  ;;  %v8137_v33 = vcombine.high %v1278_v21, %v1278_v21  ;;  %v777_v1 = vpack.c.bf16 %v753_v17, %v752_v29  ;;  %v8732_v7 = vpack.c.bf16 %v752_v29, %v752_v29  ;;  %v974_v38 = vshrl.u32 %v776_v22, 16  ;;  %9682 = vmatpush3.bf16.msra.mxu0 %v11524_v35  ;;  %v10129_v35 = vld [vmem:[#allocation9 + $0x70] sm:$0xff]   ;;  %v10181_v42 = vld [vmem:[#allocation9 + $0x1f8] sm:$0xff]  }
 0x15d   : > { %1200 = vst [vmem:[#allocation2 + $0x90] sm:$0xf] %v8104_v58  ;;  %1201 = vst [vmem:[#allocation2 + $0x9c] sm:$0xf] %v8105_v15  ;;  %v977_v49 = vshll.u32 %v776_v22, 16  ;;  %v8733_v3 = vpack.c.bf16 %v753_v17, %v753_v17  ;;  %v754_v16 = vmax.f32 %v690_v26, %v722_v14  ;;  %v755_v23 = vmax.f32 %v691_v32, %v723_v25  ;;  %v10132_v21 = vld [vmem:[#allocation9 + $0x30] sm:$0xff]  }
 0x15e   : > { %1411 = vst [vmem:[#allocation2 + $0x98] sm:$0xf] %v8136_v9  ;;  %1412 = vst [vmem:[#allocation2 + $0xa4] sm:$0xf] %v8137_v33  ;;  %v981_v30 = vshrl.u32 %v777_v1, 16  ;;  %v984_v27 = vshll.u32 %v777_v1, 16  ;;  %v693_v31 = vadd.f32 %v11311_v24, %v11537_v40  ;;  %9683 = vmatprep.subr.bf16.mxu0 %v10162_v10  ;;  %9638 = vmatpush3.bf16.msra.mxu1 %v10117_v12 }
 0x15f   : > { %913 = vst [vmem:[#allocation2 + $0xc4] sm:$0xf] %v8732_v7  ;;  %v976_v28 = vrot.slane %v974_v38, 7  ;;  %914 = vst [vmem:[#allocation2 + $0xd0] sm:$0xf] %v8733_v3  ;;  %v1234_v18 = vrot.slane %v977_v49, 1  ;;  %v8734_v20 = vpack.c.bf16 %v754_v16, %v754_v16  ;;  %8919 = vmatprep.subr.bf16.mxu1 %v10121_v41  ;;  %v11556_v5 = vpack.c.bf16 %v755_v23, %v754_v16 }
 0x160   : > { %v724_v53 = vmul.f32 0.2, %v692_v57  ;;  %v983_v26 = vrot.slane %v981_v30, 7  ;;  %v1236_v59 = vrot.slane %v984_v27, 1  ;;  %v8735_v29 = vpack.c.bf16 %v755_v23, %v755_v23  ;;  %9684 = vmatpush3.bf16.msra.mxu0 %v10162_v10  ;;  %v10136_v58 = vld [vmem:[#allocation9 + $0x68] sm:$0xff]  }
 0x161   : > { %v979_v34 = vor.u32 %v977_v49, %v976_v28  ;;  %v1235_v32 = vor.u32 %v1234_v18, %v974_v38  ;;  %915 = vst [vmem:[#allocation2 + $0xdc] sm:$0xf] %v8734_v20  ;;  %v725_v17 = vmul.f32 0.2, %v693_v31  ;;  %2124 = vmatmul.mubr.bf16.gmra.mxu0 %v10122_v62  ;;  %9640 = vmatmul.mubr.bf16.vlgmr.msra.gmra.mxu1 %v10123_v37  ;;  %v988_v43 = vshrl.u32 %v11556_v5, 16  ;;  %v10139_v38 = vld [vmem:[#allocation9 + $0x28] sm:$0xff]  }
 0x162   : > { %v756_v40 = vmax.f32 %v692_v57, %v724_v53  ;;  %v986_v12 = vor.u32 %v984_v27, %v983_v26  ;;  %v1237_v14 = vor.u32 %v1236_v59, %v981_v30  ;;  %916 = vst [vmem:[#allocation2 + $0xe8] sm:$0xf] %v8735_v29  ;;  %v991_v22 = vshll.u32 %v11556_v5, 16  ;;  %8920 = vmatpush3.bf16.msra.mxu1 %v10124_v13  ;;  %v10126_v9 = vld [vmem:[#allocation2 + $0x94] ss:$12 sps:$4 sm:$0xff]  }
 0x163   : > { %9643 = vmatprep.mubr.bf16.mxu1 %v10128_v47  ;;  %v1068_v41 = vsel %vm11367_vm2, 0, %v979_v34  ;;  %v1279_v57 = vsel %vm11437_vm5, %v1235_v32, 0  ;;  %v757_v10 = vmax.f32 %v693_v31, %v725_v17  ;;  %8921 = vmatprep.subr.bf16.mxu1 %v10129_v35  ;;  %v10131_v25 = vld [vmem:[#allocation2 + $0x68] ss:$12 sps:$4 sm:$0xff]   ;;  %v10135_v13 = vld [vmem:[#allocation2 + $0x80] ss:$12 sps:$4 sm:$0xff]   ;;  %v658_v5 = vmul.f32 %v11270_v4, %v11188_v39 }
 0x164   : > { %v8736_v15 = vpack.c.bf16 %v756_v40, %v756_v40  ;;  %v8106_v37 = vcombine.low %v1068_v41, %v1068_v41  ;;  %v8107_v33 = vcombine.high %v1068_v41, %v1068_v41  ;;  %v1069_v1 = vsel %vm11367_vm2, 0, %v986_v12  ;;  %9685 = vmatprep.subr.bf16.mxu0 %v10170_v8  ;;  %2131 = vmatprep.mubr.bf16.mxu0 %v10126_v9  ;;  %v10130_v47 = vld [vmem:[#allocation2 + $0x90] ss:$12 sps:$4 sm:$0xff]  }
 0x165   : > { %v8138_v7 = vcombine.low %v1279_v57, %v1279_v57  ;;  %v8108_v49 = vcombine.low %v1069_v1, %v1069_v1  ;;  %v8109_v3 = vcombine.high %v1069_v1, %v1069_v1  ;;  %v8139_v16 = vcombine.high %v1279_v57, %v1279_v57  ;;  %9686 = vmatpush3.bf16.msra.mxu0 %v10170_v8  ;;  %v10144_v35 = vld [vmem:[#allocation9 + $0x60] sm:$0xff]  }
 0x166   : > { %v779_v62 = vpack.c.bf16 %v757_v10, %v756_v40  ;;  %917 = vst [vmem:[#allocation2 + $0xf4] sm:$0xf] %v8736_v15  ;;  %1202 = vst [vmem:[#allocation2 + $0xa8] sm:$0xf] %v8106_v37  ;;  %v1280_v30 = vsel %vm11437_vm5, %v1237_v14, 0  ;;  %v990_v27 = vrot.slane %v988_v43, 7  ;;  %v8737_v31 = vpack.c.bf16 %v757_v10, %v757_v10  ;;  %9055 = vmatprep.subr.bf16.mxu0 %v10181_v42 }
 0x167   : > { %1203 = vst [vmem:[#allocation2 + $0xb4] sm:$0xf] %v8107_v33  ;;  %1413 = vst [vmem:[#allocation2 + $0xb0] sm:$0xf] %v8138_v7  ;;  %v1238_v23 = vrot.slane %v991_v22, 1  ;;  %8922 = vmatpush3.bf16.msra.mxu1 %v10132_v21  ;;  %v8140_v28 = vcombine.low %v1280_v30, %v1280_v30  ;;  %v8141_v18 = vcombine.high %v1280_v30, %v1280_v30  ;;  %v10147_v14 = vld [vmem:[#allocation9 + $0x20] sm:$0xff]  }
 0x168   : > { %1204 = vst [vmem:[#allocation2 + $0xc0] sm:$0xf] %v8108_v49  ;;  %1205 = vst [vmem:[#allocation2 + $0xcc] sm:$0xf] %v8109_v3  ;;  %v995_v20 = vshrl.u32 %v779_v62, 16  ;;  %v998_v53 = vshll.u32 %v779_v62, 16  ;;  %8923 = vmatprep.subr.bf16.mxu1 %v10136_v58  ;;  %v993_v26 = vor.u32 %v991_v22, %v990_v27  ;;  %v659_v29 = vmul.f32 %v11270_v4, %v11193_v44 }
 0x169   : > { %1414 = vst [vmem:[#allocation2 + $0xbc] sm:$0xf] %v8139_v16  ;;  %v1239_v59 = vor.u32 %v1238_v23, %v988_v43  ;;  %918 = vst [vmem:[#allocation2 + $0x100] sm:$0xf] %v8737_v31  ;;  %v660_v32 = vmul.f32 %v11270_v4, %v11199_v50  ;;  %v661_v17 = vmul.f32 %v11270_v4, %v11204_v55  ;;  %2132 = vmatmul.mubr.bf16.gmra.mxu0 %v10130_v47  ;;  %v10138_v4 = vld [vmem:[#allocation2 + $0x98] ss:$12 sps:$4 sm:$0xff]  }
 0x16a   : > { %1415 = vst [vmem:[#allocation2 + $0xc8] sm:$0xf] %v8140_v28  ;;  %1416 = vst [vmem:[#allocation2 + $0xd4] sm:$0xf] %v8141_v18  ;;  %v997_v8 = vrot.slane %v995_v20, 7  ;;  %v1240_v34 = vrot.slane %v998_v53, 1  ;;  %9644 = vmatmul.mubr.bf16.gmra.mxu1 %v10131_v25  ;;  %v694_v44 = vadd.f32 %v11311_v24, %v658_v5  ;;  %v695_v12 = vadd.f32 %v11311_v24, %v659_v29 }
 0x16b   : > { %v1070_v40 = vsel %vm11367_vm2, 0, %v993_v26  ;;  %v1281_v39 = vsel %vm11437_vm5, %v1239_v59, 0  ;;  %9647 = vmatprep.mubr.bf16.mxu1 %v10135_v13  ;;  %8924 = vmatpush3.bf16.msra.mxu1 %v10139_v38  ;;  %v1246_v55 = vrot.slane %v1019_v46, 1  ;;  %v10152_v21 = vld [vmem:[#allocation9 + $0x58] sm:$0xff]   ;;  %v10133_v10 = vld [vmem:[#allocation2 + $0xac] ss:$12 sps:$4 sm:$0xff]   ;;  %v696_v9 = vadd.f32 %v11311_v24, %v660_v32 }
 0x16c   : > { %v8110_v43 = vcombine.low %v1070_v40, %v1070_v40  ;;  %v8111_v50 = vcombine.high %v1070_v40, %v1070_v40  ;;  %v8142_v22 = vcombine.low %v1281_v39, %v1281_v39  ;;  %8925 = vmatprep.subr.bf16.mxu1 %v10144_v35  ;;  %v8143_v42 = vcombine.high %v1281_v39, %v1281_v39  ;;  %v11592_v13 = vld [vmem:[#allocation2 + $0xc4] ss:$12 sps:$4 sm:$0xff]   ;;  %v10158_v27 = vld [vmem:[#allocation9 + $0x50] sm:$0xff]  }
 0x16d   : > { %v1241_v41 = vor.u32 %v1240_v34, %v995_v20  ;;  %v1000_v58 = vor.u32 %v998_v53, %v997_v8  ;;  %v726_v57 = vmul.f32 0.2, %v694_v44  ;;  %v727_v15 = vmul.f32 0.2, %v695_v12  ;;  %2139 = vmatprep.mubr.bf16.mxu0 %v10133_v10  ;;  %v10154_v16 = vld [vmem:[#allocation9 + $0x18] sm:$0xff]   ;;  %v10161_v31 = vld [vmem:[#allocation9 + $0x10] sm:$0xff]  }
 0x16e   : > { %1206 = vst [vmem:[#allocation2 + $0xd8] sm:$0xf] %v8110_v43  ;;  %1207 = vst [vmem:[#allocation2 + $0xe4] sm:$0xf] %v8111_v50  ;;  %v697_v25 = vadd.f32 %v11311_v24, %v661_v17  ;;  %v10137_v37 = vld [vmem:[#allocation2 + $0xa8] ss:$12 sps:$4 sm:$0xff]   ;;  %v1247_v7 = vor.u32 %v1246_v55, %v1016_v61 }
 0x16f   : > { %1417 = vst [vmem:[#allocation2 + $0xe0] sm:$0xf] %v8142_v22  ;;  %1418 = vst [vmem:[#allocation2 + $0xec] sm:$0xf] %v8143_v42  ;;  %v1282_v46 = vsel %vm11437_vm5, %v1241_v41, 0  ;;  %v1071_v33 = vsel %vm11367_vm2, 0, %v1000_v58  ;;  %v758_v1 = vmax.f32 %v694_v44, %v726_v57  ;;  %8926 = vmatpush3.bf16.msra.mxu1 %v10147_v14  ;;  %v759_v47 = vmax.f32 %v695_v12, %v727_v15 }
 0x170   : > { %v8144_v38 = vcombine.low %v1282_v46, %v1282_v46  ;;  %v8145_v49 = vcombine.high %v1282_v46, %v1282_v46  ;;  %v8112_v3 = vcombine.low %v1071_v33, %v1071_v33  ;;  %v10143_v24 = vld [vmem:[#allocation2 + $0xb0] ss:$12 sps:$4 sm:$0xff]   ;;  %8927 = vmatprep.subr.bf16.mxu1 %v10152_v21  ;;  %v8113_v62 = vcombine.high %v1071_v33, %v1071_v33  ;;  %v10166_v26 = vld [vmem:[#allocation9 + $0x48] sm:$0xff]  }
 0x171   : > { %v8738_v30 = vpack.c.bf16 %v758_v1, %v758_v1  ;;  %v728_v23 = vmul.f32 0.2, %v696_v9  ;;  %2140 = vmatmul.mubr.bf16.gmra.mxu0 %v10137_v37  ;;  %v780_v11 = vpack.c.bf16 %v759_v47, %v758_v1  ;;  %v729_v61 = vmul.f32 0.2, %v697_v25  ;;  %v11599_v5 = vld [vmem:[#allocation2 + $0xc0] ss:$12 sps:$4 sm:$0xff]  }
 0x172   : > { %1419 = vst [vmem:[#allocation2 + $0xf8] sm:$0xf] %v8144_v38  ;;  %1420 = vst [vmem:[#allocation2 + $0x104] sm:$0xf] %v8145_v49  ;;  %9648 = vmatmul.mubr.bf16.gmra.mxu1 %v10138_v4  ;;  %v8739_v28 = vpack.c.bf16 %v759_v47, %v759_v47  ;;  %v1285_v18 = vsel %vm11437_vm5, %v1247_v7, 0  ;;  %2147 = vmatprep.mubr.bf16.mxu0 %v11592_v13  ;;  %v1248_v59 = vrot.slane %v1026_v6, 1 }
 0x173   : > { %1208 = vst [vmem:[#allocation2 + $0xf0] sm:$0xf] %v8112_v3  ;;  %1209 = vst [vmem:[#allocation2 + $0xfc] sm:$0xf] %v8113_v62  ;;  %9651 = vmatprep.mubr.bf16.mxu1 %v10143_v24  ;;  %v760_v20 = vmax.f32 %v696_v9, %v728_v23  ;;  %v8150_v53 = vcombine.low %v1285_v18, %v1285_v18  ;;  %v8151_v35 = vcombine.high %v1285_v18, %v1285_v18  ;;  %v10146_v29 = vld [vmem:[#allocation2 + $0xc8] ss:$12 sps:$4 sm:$0xff]  }
 0x174   : > { %919 = vst [vmem:[#allocation2 + $0x10c] sm:$0xf] %v8738_v30  ;;  %8928 = vmatpush3.bf16.msra.mxu1 %v10154_v16  ;;  %v1002_v8 = vshrl.u32 %v780_v11, 16  ;;  %v1005_v34 = vshll.u32 %v780_v11, 16  ;;  %v761_v32 = vmax.f32 %v697_v25, %v729_v61  ;;  %920 = vst [vmem:[#allocation2 + $0x118] sm:$0xf] %v8739_v28  ;;  %v1249_v40 = vor.u32 %v1248_v59, %v1023_v0 }
 0x175   : > { %v11601_v17 = vld [vmem:[#allocation2 + $0xdc] ss:$12 sps:$4 sm:$0xff]   ;;  %8929 = vmatprep.subr.bf16.mxu1 %v10158_v27  ;;  %1425 = vst [vmem:[#allocation2 + $0x140] sm:$0xf] %v8150_v53  ;;  %1426 = vst [vmem:[#allocation2 + $0x14c] sm:$0xf] %v8151_v35  ;;  %v8740_v39 = vpack.c.bf16 %v760_v20, %v760_v20 }
 0x176   : > { %v1004_v44 = vrot.slane %v1002_v8, 7  ;;  %v1242_v12 = vrot.slane %v1005_v34, 1  ;;  %v781_v6 = vpack.c.bf16 %v761_v32, %v760_v20  ;;  %v10169_v14 = vld [vmem:[#allocation9 + $0x8] sm:$0xff]   ;;  %v8741_v43 = vpack.c.bf16 %v761_v32, %v761_v32  ;;  %v10174_v4 = vld [vmem:[#allocation9 + $0x40] sm:$0xff]   ;;  %v11623_v7 = vld [vmem:[#allocation9 + $0x238] sm:$0xff]  }
 0x177   : > { %v10151_v50 = vld [vmem:[#allocation2 + $0xe0] ss:$12 sps:$4 sm:$0xff]   ;;  %v1286_v22 = vsel %vm11437_vm5, %v1249_v40, 0  ;;  %921 = vst [vmem:[#allocation2 + $0x124] sm:$0xf] %v8740_v39  ;;  %v1250_v55 = vrot.slane %v1033_v63, 1 }
 0x178   : > { %v1252_v42 = vrot.slane %v1040_v56, 1  ;;  %v1578_v45 = vld [vmem:[#allocation2 + $0xd8] sm:$0xff]  ;;  %v1243_v0 = vor.u32 %v1242_v12, %v1002_v8  ;;  %8930 = vmatpush3.bf16.msra.mxu1 %v10161_v31  ;;  %v1007_v21 = vor.u32 %v1005_v34, %v1004_v44  ;;  %v8152_v41 = vcombine.low %v1286_v22, %v1286_v22  ;;  %922 = vst [vmem:[#allocation2 + $0x130] sm:$0xf] %v8741_v43  ;;  %v1580_v57 = vld [vmem:[#allocation2 + $0xe4] sm:$0xff] }
 0x179   : > { %v8153_v58 = vcombine.high %v1286_v22, %v1286_v22  ;;  %v1009_v10 = vshrl.u32 %v781_v6, 16  ;;  %v1012_v15 = vshll.u32 %v781_v6, 16  ;;  %8931 = vmatprep.subr.bf16.mxu1 %v10166_v26  ;;  %v1251_v9 = vor.u32 %v1250_v55, %v1030_v36  ;;  %2148 = vmatmul.mubr.bf16.gmra.mxu0 %v11599_v5  ;;  %v10153_v16 = vld [vmem:[#allocation2 + $0xf8] ss:$12 sps:$4 sm:$0xff]   ;;  %v11629_v23 = vld [vmem:[#allocation2 + $0xf4] ss:$12 sps:$4 sm:$0xff]  }
 0x17a   : > { %v1253_v63 = vor.u32 %v1252_v42, %v1037_v51  ;;  %9652 = vmatmul.mubr.bf16.gmra.mxu1 %v10146_v29  ;;  %v1283_v56 = vsel %vm11437_vm5, %v1243_v0, 0  ;;  %v1072_v25 = vsel %vm11367_vm2, 0, %v1007_v21  ;;  %1427 = vst [vmem:[#allocation2 + $0x158] sm:$0xf] %v8152_v41  ;;  %2155 = vmatprep.mubr.bf16.mxu0 %v11601_v17  ;;  %v11621_v51 = vcombine.low %v1578_v45, %v1580_v57  ;;  %v11638_v35 = vld [vmem:[#allocation2 + $0xf0] ss:$12 sps:$4 sm:$0xff]  }
 0x17b   : > { %1428 = vst [vmem:[#allocation2 + $0x164] sm:$0xf] %v8153_v58  ;;  %9655 = vmatprep.mubr.bf16.mxu1 %v10151_v50  ;;  %v8146_v37 = vcombine.low %v1283_v56, %v1283_v56  ;;  %v8147_v19 = vcombine.high %v1283_v56, %v1283_v56  ;;  %v1011_v36 = vrot.slane %v1009_v10, 7  ;;  %v1244_v46 = vrot.slane %v1012_v15, 1  ;;  %v11640_v26 = vld [vmem:[#allocation2 + $0x10c] ss:$12 sps:$4 sm:$0xff]  }
 0x17c   : > { %v8114_v33 = vcombine.low %v1072_v25, %v1072_v25  ;;  %v8115_v1 = vcombine.high %v1072_v25, %v1072_v25  ;;  %8932 = vmatpush3.bf16.msra.mxu1 %v10169_v14  ;;  %v1287_v3 = vsel %vm11437_vm5, %v1251_v9, 0  ;;  %v1288_v24 = vsel %vm11437_vm5, %v1253_v63, 0  ;;  %v10165_v59 = vld [vmem:[#allocation2 + $0x140] ss:$12 sps:$4 sm:$0xff]   ;;  %v10178_v12 = vld [vmem:[#allocation2 + $0x8] ss:$12 sps:$4 sm:$0xff]  }
 0x17d   : > { %1421 = vst [vmem:[#allocation2 + $0x110] sm:$0xf] %v8146_v37  ;;  %1422 = vst [vmem:[#allocation2 + $0x11c] sm:$0xf] %v8147_v19  ;;  %v1245_v38 = vor.u32 %v1244_v46, %v1009_v10  ;;  %v1014_v49 = vor.u32 %v1012_v15, %v1011_v36  ;;  %8933 = vmatprep.subr.bf16.mxu1 %v10174_v4  ;;  %v8154_v62 = vcombine.low %v1287_v3, %v1287_v3  ;;  %v10526_v6 = vld [vmem:[#allocation2] sm:$0xff]  ;;  %v10182_v22 = vld [vmem:[#allocation9 + $0x1b8] sm:$0xff]  }
 0x17e   : > { %1210 = vst [vmem:[#allocation2 + $0x108] sm:$0xf] %v8114_v33  ;;  %1211 = vst [vmem:[#allocation2 + $0x114] sm:$0xf] %v8115_v1  ;;  %v8155_v47 = vcombine.high %v1287_v3, %v1287_v3  ;;  %v8156_v30 = vcombine.low %v1288_v24, %v1288_v24  ;;  %v8157_v27 = vcombine.high %v1288_v24, %v1288_v24  ;;  %v10180_v43 = vld [vmem:[#allocation2 + $0x20] ss:$12 sps:$4 sm:$0xff]  }
 0x17f   : > { %v1284_v11 = vsel %vm11437_vm5, %v1245_v38, 0  ;;  %v1073_v61 = vsel %vm11367_vm2, 0, %v1014_v49  ;;  %1429 = vst [vmem:[#allocation2 + $0x170] sm:$0xf] %v8154_v62  ;;  %v11646_v32 = vld [vmem:[#allocation2 + $0x124] ss:$12 sps:$4 sm:$0xff]   ;;  %v11652_v14 = vcombine.high %v10526_v6, %v10526_v6  ;;  %v11656_v50 = vcombine.low %v10526_v6, %v10526_v6 }
 0x180   : > { %v8148_v31 = vcombine.low %v1284_v11, %v1284_v11  ;;  %v8149_v28 = vcombine.high %v1284_v11, %v1284_v11  ;;  %v8116_v18 = vcombine.low %v1073_v61, %v1073_v61  ;;  %v8117_v20 = vcombine.high %v1073_v61, %v1073_v61  ;;  %1430 = vst [vmem:[#allocation2 + $0x17c] sm:$0xf] %v8155_v47  ;;  %v10183_v55 = vld [vmem:[#allocation2 + $0x1c] ss:$12 sps:$4 sm:$0xff]   ;;  %v10185_v4 = vld [vmem:[#allocation2 + $0x38] ss:$12 sps:$4 sm:$0xff]  }
 0x181   : > { %1431 = vst [vmem:[#allocation2 + $0x188] sm:$0xf] %v8156_v30  ;;  %1432 = vst [vmem:[#allocation2 + $0x194] sm:$0xf] %v8157_v27  ;;  %8934 = vmatpush3.bf16.msra.mxu1 %v10177_v2  ;;  %2156 = vmatmul.mubr.bf16.gmra.mxu0 %v11621_v51  ;;  %v10188_v42 = vld [vmem:[#allocation9 + $0x1f0] sm:$0xff]   ;;  %v10196_v21 = vld [vmem:[#allocation9 + $0x1e8] sm:$0xff]  }
 0x182   : > { %9719 = vmatprep.subr.bf16.mxu1 %v11623_v7  ;;  %9656 = vmatmul.mubr.bf16.gmra.mxu1 %v10153_v16  ;;  %1423 = vst [vmem:[#allocation2 + $0x128] sm:$0xf] %v8148_v31  ;;  %1424 = vst [vmem:[#allocation2 + $0x134] sm:$0xf] %v8149_v28  ;;  %v10168_v34 = vld [vmem:[#allocation2 + $0x158] ss:$12 sps:$4 sm:$0xff]  }
 0x183   : > { %1212 = vst [vmem:[#allocation2 + $0x120] sm:$0xf] %v8116_v18  ;;  %1213 = vst [vmem:[#allocation2 + $0x12c] sm:$0xf] %v8117_v20  ;;  %2163 = vmatprep.mubr.bf16.mxu0 %v11629_v23  ;;  %v10193_v45 = vld [vmem:[#allocation9 + $0x230] sm:$0xff]   ;;  %v10208_v41 = vld [vmem:[#allocation9 + $0x228] sm:$0xff]  }
 0x184   : > { %v10157_v53 = vld [vmem:[#allocation2 + $0x110] ss:$12 sps:$4 sm:$0xff]   ;;  %v10189_v0 = vld [vmem:[#allocation9 + $0x1b0] sm:$0xff]   ;;  %v10186_v57 = vld [vmem:[#allocation2 + $0x18] ss:$12 sps:$4 sm:$0xff]  }
 0x185   : > { %9659 = vmatprep.mubr.bf16.mxu1 %v10157_v53  ;;  %v11644_v8 = vld [vmem:[#allocation2 + $0x108] ss:$12 sps:$4 sm:$0xff]   ;;  %v10187_v58 = vld [vmem:[#allocation2 + $0x50] ss:$12 sps:$4 sm:$0xff]   ;;  %v10197_v9 = vld [vmem:[#allocation9 + $0x1a8] sm:$0xff]  }
 0x186   : > { %v10192_v10 = vld [vmem:[#allocation2 + $0x68] ss:$12 sps:$4 sm:$0xff]   ;;  %v10203_v63 = vld [vmem:[#allocation9 + $0x1e0] sm:$0xff]   ;;  %v10195_v19 = vld [vmem:[#allocation2 + $0x80] ss:$12 sps:$4 sm:$0xff]  }
 0x187   : > { %v10173_v40 = vld [vmem:[#allocation2 + $0x170] ss:$12 sps:$4 sm:$0xff]   ;;  %v11660_v15 = vld [vmem:[#allocation2 + $0x34] ss:$12 sps:$4 sm:$0xff]   ;;  %v10200_v2 = vld [vmem:[#allocation2 + $0x98] ss:$12 sps:$4 sm:$0xff]  }
 0x188   : > { %v10176_v44 = vld [vmem:[#allocation2 + $0x188] ss:$12 sps:$4 sm:$0xff]   ;;  %v10223_v56 = vld [vmem:[#allocation9 + $0x220] sm:$0xff]   ;;  %v10226_v3 = vld [vmem:[#allocation9 + $0x1c8] sm:$0xff]  }
 0x189   : > { %v10160_v29 = vld [vmem:[#allocation2 + $0x128] ss:$12 sps:$4 sm:$0xff]   ;;  %2164 = vmatmul.mubr.bf16.gmra.mxu0 %v11638_v35  ;;  %v10204_v25 = vld [vmem:[#allocation9 + $0x1a0] sm:$0xff]   ;;  %v10237_v16 = vld [vmem:[#allocation9 + $0x208] sm:$0xff]  }
 0x18a   : > { %9660 = vmatmul.mubr.bf16.gmra.mxu1 %v10160_v29  ;;  %2171 = vmatprep.mubr.bf16.mxu0 %v11640_v26  ;;  %v11650_v39 = vld [vmem:[#allocation2 + $0x120] ss:$12 sps:$4 sm:$0xff]   ;;  %v10211_v37 = vld [vmem:[#allocation9 + $0x1d8] sm:$0xff]   ;;  %v10233_v11 = vld [vmem:[#allocation9 + $0x1c0] sm:$0xff]  }
 0x18b   : > { %9663 = vmatprep.mubr.bf16.mxu1 %v10165_v59  ;;  %v10235_v36 = vld [vmem:[#allocation9 + $0x218] sm:$0xff]   ;;  %v11665_v33 = vld [vmem:[#allocation2 + $0x4c] ss:$12 sps:$4 sm:$0xff]   ;;  %v10227_v27 = vld [vmem:[#allocation9 + $0x188] sm:$0xff]  }
 0x18c   : > { %v11663_v46 = vld [vmem:[#allocation2 + $0x30] ss:$12 sps:$4 sm:$0xff]   ;;  %v10236_v38 = vld [vmem:[#allocation9 + $0x210] sm:$0xff]   ;;  %v10215_v20 = vld [vmem:[#allocation2 + $0xf8] ss:$12 sps:$4 sm:$0xff]  }
 0x18d   : > { %v10212_v1 = vld [vmem:[#allocation9 + $0x198] sm:$0xff]   ;;  %v10219_v49 = vld [vmem:[#allocation9 + $0x190] sm:$0xff]   ;;  %v10245_v61 = vld [vmem:[#allocation9 + $0x200] sm:$0xff]  }
 0x18e   : > { %v10202_v24 = vld [vmem:[#allocation2 + $0xb0] ss:$12 sps:$4 sm:$0xff]   ;;  %v10201_v62 = vld [vmem:[#allocation2 + $0x48] ss:$12 sps:$4 sm:$0xff]   ;;  %v10210_v28 = vld [vmem:[#allocation2 + $0xe0] ss:$12 sps:$4 sm:$0xff]  }
 0x18f   : > { %v10207_v47 = vld [vmem:[#allocation2 + $0xc8] ss:$12 sps:$4 sm:$0xff]   ;;  %v10205_v30 = vld [vmem:[#allocation2 + $0x64] ss:$12 sps:$4 sm:$0xff]   ;;  %v10234_v31 = vld [vmem:[#allocation9 + $0x180] sm:$0xff]  }
 0x190   : > { %v10209_v18 = vld [vmem:[#allocation2 + $0x60] ss:$12 sps:$4 sm:$0xff]   ;;  %v10213_v53 = vld [vmem:[#allocation2 + $0x7c] ss:$12 sps:$4 sm:$0xff]   ;;  %v10216_v29 = vld [vmem:[#allocation2 + $0x78] ss:$12 sps:$4 sm:$0xff]  }
 0x191   : > { %2172 = vmatmul.mubr.bf16.gmra.mxu0 %v11644_v8  ;;  %v10217_v59 = vld [vmem:[#allocation2 + $0x110] ss:$12 sps:$4 sm:$0xff]   ;;  %v10230_v6 = vld [vmem:[#allocation2 + $0x158] ss:$12 sps:$4 sm:$0xff]  }
 0x192   : > { %9664 = vmatmul.mubr.bf16.gmra.mxu1 %v10168_v34  ;;  %2179 = vmatprep.mubr.bf16.mxu0 %v11646_v32  ;;  %v10222_v34 = vld [vmem:[#allocation2 + $0x128] ss:$12 sps:$4 sm:$0xff]  }
 0x193   : > { %9667 = vmatprep.mubr.bf16.mxu1 %v10173_v40  ;;  %v10220_v40 = vld [vmem:[#allocation2 + $0x94] ss:$12 sps:$4 sm:$0xff]  }
 0x199   : > { %2180 = vmatmul.mubr.bf16.gmra.mxu0 %v11650_v39 }
 0x19a   : > { %9668 = vmatmul.mubr.bf16.gmra.mxu1 %v10176_v44  ;;  %9687 = vmatprep.mubr.bf16.mxu0 %v10178_v12  ;;  %v10225_v44 = vld [vmem:[#allocation2 + $0x140] ss:$12 sps:$4 sm:$0xff]   ;;  %v10224_v12 = vld [vmem:[#allocation2 + $0x90] ss:$12 sps:$4 sm:$0xff]  }
 0x19b   : > { %2813 = vmatprep.mubr.bf16.mxu1 %v11652_v14 }
 0x1a1   : > { %9688 = vmatmul.mubr.bf16.vlgmr.msra.gmra.mxu0 %v10180_v43  ;;  %v10228_v43 = vld [vmem:[#allocation2 + $0xac] ss:$12 sps:$4 sm:$0xff]  }
 0x1a2   : > { %2814 = vmatmul.mubr.bf16.vlgmr.msra.gmra.mxu1 %v11656_v50  ;;  %9056 = vmatpush3.bf16.msra.mxu0 %v10182_v22  ;;  %v10232_v22 = vld [vmem:[#allocation2 + $0x170] ss:$12 sps:$4 sm:$0xff]  }
 0x1a3   : > { %9720 = vmatpush3.bf16.msra.mxu1 %v11623_v7  ;;  %2821 = vmatprep.mubr.bf16.mxu1 %v10183_v55  ;;  %v10218_v7 = vld [vmem:[#allocation9 + $0x1d0] sm:$0xff]  }
 0x1a4   : > { %9691 = vmatprep.mubr.bf16.mxu0 %v10185_v4  ;;  %9057 = vmatprep.subr.bf16.mxu0 %v10188_v42  ;;  %v10231_v55 = vld [vmem:[#allocation2 + $0xa8] ss:$12 sps:$4 sm:$0xff]  }
 0x1a5   : > { %9721 = vmatprep.subr.bf16.mxu1 %v10193_v45 }
 0x1a6   : > { %9058 = vmatpush3.bf16.msra.mxu0 %v10189_v0  ;;  %v11689_v0 = vld [vmem:[#allocation2 + $0x138] ss:$12 sps:$4 sm:$0xff]  }
 0x1a7   : > { %9722 = vmatpush3.bf16.msra.mxu1 %v10193_v45  ;;  %9059 = vmatprep.subr.bf16.mxu0 %v10196_v21  ;;  %v10243_v21 = vld [vmem:[#allocation2 + $0xc4] ss:$12 sps:$4 sm:$0xff]  }
 0x1a8   : > { %9723 = vmatprep.subr.bf16.mxu1 %v10208_v41 }
 0x1a9   : > { %9692 = vmatmul.mubr.bf16.gmra.mxu0 %v10187_v58 }
 0x1aa   : > { %2822 = vmatmul.mubr.bf16.gmra.mxu1 %v10186_v57  ;;  %9695 = vmatprep.mubr.bf16.mxu0 %v10192_v10  ;;  %v11691_v57 = vld [vmem:[#allocation2 + $0x154] ss:$12 sps:$4 sm:$0xff]  }
 0x1ab   : > { %2829 = vmatprep.mubr.bf16.mxu1 %v11660_v15  ;;  %9060 = vmatpush3.bf16.msra.mxu0 %v10197_v9 }
 0x1ac   : > { %9061 = vmatprep.subr.bf16.mxu0 %v10203_v63  ;;  %9724 = vmatpush3.bf16.msra.mxu1 %v10208_v41 }
 0x1ad   : > { %9725 = vmatprep.subr.bf16.mxu1 %v10223_v56 }
 0x1af   : > { %9062 = vmatpush3.bf16.msra.mxu0 %v10204_v25 }
 0x1b0   : > { %9063 = vmatprep.subr.bf16.mxu0 %v10211_v37  ;;  %9726 = vmatpush3.bf16.msra.mxu1 %v10223_v56 }
 0x1b1   : > { %9696 = vmatmul.mubr.bf16.gmra.mxu0 %v10195_v19  ;;  %9727 = vmatprep.subr.bf16.mxu1 %v10235_v36 }
 0x1b2   : > { %2830 = vmatmul.mubr.bf16.gmra.mxu1 %v11663_v46  ;;  %9699 = vmatprep.mubr.bf16.mxu0 %v10200_v2  ;;  %v10247_v2 = vld [vmem:[#allocation2 + $0xc0] ss:$12 sps:$4 sm:$0xff]  }
 0x1b3   : > { %2837 = vmatprep.mubr.bf16.mxu1 %v11665_v33  ;;  %9064 = vmatpush3.bf16.msra.mxu0 %v10212_v1  ;;  %v10250_v1 = vld [vmem:[#allocation2 + $0xdc] ss:$12 sps:$4 sm:$0xff]  }
 0x1b4   : > { %9065 = vmatprep.subr.bf16.mxu0 %v10218_v7  ;;  %9728 = vmatpush3.bf16.msra.mxu1 %v10235_v36 }
 0x1b5   : > { %9729 = vmatprep.subr.bf16.mxu1 %v10236_v38 }
 0x1b7   : > { %9066 = vmatpush3.bf16.msra.mxu0 %v10219_v49  ;;  %v11703_v49 = vld [vmem:[#allocation2 + $0x16c] ss:$12 sps:$4 sm:$0xff]  }
 0x1b8   : > { %9067 = vmatprep.subr.bf16.mxu0 %v10226_v3  ;;  %9730 = vmatpush3.bf16.msra.mxu1 %v10236_v38 }
 0x1b9   : > { %9700 = vmatmul.mubr.bf16.gmra.mxu0 %v10202_v24  ;;  %9731 = vmatprep.subr.bf16.mxu1 %v10237_v16 }
 0x1ba   : > { %2838 = vmatmul.mubr.bf16.gmra.mxu1 %v10201_v62  ;;  %9703 = vmatprep.mubr.bf16.mxu0 %v10207_v47 }
 0x1bb   : > { %2845 = vmatprep.mubr.bf16.mxu1 %v10205_v30  ;;  %9068 = vmatpush3.bf16.msra.mxu0 %v10227_v27 }
 0x1bc   : > { %9069 = vmatprep.subr.bf16.mxu0 %v10233_v11  ;;  %9732 = vmatpush3.bf16.msra.mxu1 %v10237_v16 }
 0x1bd   : > { %9733 = vmatprep.subr.bf16.mxu1 %v10245_v61 }
 0x1bf   : > { %9070 = vmatpush3.bf16.msra.mxu0 %v10234_v31 }
 0x1c0   : > { %9734 = vmatpush3.bf16.msra.mxu1 %v10245_v61 }
 0x1c1   : > { %9704 = vmatmul.mubr.bf16.gmra.mxu0 %v10210_v28  ;;  %v10253_v28 = vld [vmem:[#allocation2 + $0xd8] ss:$12 sps:$4 sm:$0xff]  }
 0x1c2   : > { %2846 = vmatmul.mubr.bf16.gmra.mxu1 %v10209_v18  ;;  %9707 = vmatprep.mubr.bf16.mxu0 %v10215_v20  ;;  %v10254_v20 = vld [vmem:[#allocation2 + $0xf4] ss:$12 sps:$4 sm:$0xff]  }
 0x1c3   : > { %2853 = vmatprep.mubr.bf16.mxu1 %v10213_v53 }
 0x1c9   : > { %9708 = vmatmul.mubr.bf16.gmra.mxu0 %v10217_v59 }
 0x1ca   : > { %2854 = vmatmul.mubr.bf16.gmra.mxu1 %v10216_v29  ;;  %9711 = vmatprep.mubr.bf16.mxu0 %v10222_v34 }
 0x1cb   : > { %2861 = vmatprep.mubr.bf16.mxu1 %v10220_v40 }
 0x1d1   : > { %9712 = vmatmul.mubr.bf16.gmra.mxu0 %v10225_v44 }
 0x1d2   : > { %2862 = vmatmul.mubr.bf16.gmra.mxu1 %v10224_v12  ;;  %9715 = vmatprep.mubr.bf16.mxu0 %v10230_v6 }
 0x1d3   : > { %2869 = vmatprep.mubr.bf16.mxu1 %v10228_v43 }
 0x1d9   : > { %9716 = vmatmul.mubr.bf16.gmra.mxu0 %v10232_v22 }
 0x1da   : > { %2870 = vmatmul.mubr.bf16.gmra.mxu1 %v10231_v55  ;;  %3649 = vmatprep.mubr.bf16.mxu0 %v11660_v15 }
 0x1db   : > { %2877 = vmatprep.mubr.bf16.mxu1 %v11592_v13  ;;  %v11681_v13 = vld [vmem:[#allocation2 + $0x13c] ss:$12 sps:$4 sm:$0xff]  }
 0x1e1   : > { %3650 = vmatmul.mubr.bf16.vlgmr.msra.gmra.mxu0 %v11663_v46 }
 0x1e2   : > { %2878 = vmatmul.mubr.bf16.gmra.mxu1 %v11599_v5  ;;  %3657 = vmatprep.mubr.bf16.mxu0 %v11665_v33  ;;  %v11701_v33 = vld [vmem:[#allocation2 + $0x150] ss:$12 sps:$4 sm:$0xff]  }
 0x1e3   : > { %2885 = vmatprep.mubr.bf16.mxu1 %v11601_v17 }
 0x1e9   : > { %3658 = vmatmul.mubr.bf16.gmra.mxu0 %v10201_v62 }
 0x1ea   : > { %2886 = vmatmul.mubr.bf16.gmra.mxu1 %v11621_v51  ;;  %3665 = vmatprep.mubr.bf16.mxu0 %v10205_v30 }
 0x1eb   : > { %2893 = vmatprep.mubr.bf16.mxu1 %v11629_v23 }
 0x1f1   : > { %3666 = vmatmul.mubr.bf16.gmra.mxu0 %v10209_v18  ;;  %v11711_v18 = vld [vmem:[#allocation2 + $0x168] ss:$12 sps:$4 sm:$0xff]  }
 0x1f2   : > { %2894 = vmatmul.mubr.bf16.gmra.mxu1 %v11638_v35  ;;  %3673 = vmatprep.mubr.bf16.mxu0 %v10213_v53 }
 0x1f3   : > { %2901 = vmatprep.mubr.bf16.mxu1 %v11640_v26 }
 0x1f9   : > { %3674 = vmatmul.mubr.bf16.gmra.mxu0 %v10216_v29  ;;  %v10256_v29 = vld [vmem:[#allocation2 + $0x38] ss:$12 sps:$4 sm:$0xff]  }
 0x1fa   : > { %2902 = vmatmul.mubr.bf16.gmra.mxu1 %v11644_v8  ;;  %3681 = vmatprep.mubr.bf16.mxu0 %v10220_v40 }
 0x1fb   : > { %2909 = vmatprep.mubr.bf16.mxu1 %v11646_v32 }
 0x1fe   : > { %v8799_v5 = vpop.f32.mrf.mxu0  ;;  %v8871_v17 = vpop.f32.mrf.mxu1 }
 0x200   : > { %v8800_v51 = vpop.f32.mrf.mxu0  ;;  %v8872_v23 = vpop.f32.mrf.mxu1 }
 0x201   : > { %3682 = vmatmul.mubr.bf16.gmra.mxu0 %v10224_v12  ;;  %v11685_v35 = vadd.f32 %v8800_v51, %v8799_v5  ;;  %v11687_v4 = vadd.f32 %v8872_v23, %v8871_v17  ;;  %v10257_v51 = vld [vmem:[#allocation2 + $0xf0] ss:$12 sps:$4 sm:$0xff]  }
 0x202   : > { %2910 = vmatmul.mubr.bf16.gmra.mxu1 %v11650_v39  ;;  %3689 = vmatprep.mubr.bf16.mxu0 %v10228_v43  ;;  %v8802_v42 = vpop.f32.mrf.mxu0  ;;  %v8874_v45 = vpop.f32.mrf.mxu1  ;;  %v10258_v23 = vld [vmem:[#allocation2 + $0x50] ss:$12 sps:$4 sm:$0xff]  }
 0x203   : > { %2917 = vmatprep.mubr.bf16.mxu1 %v11681_v13 }
 0x204   : > { %v8803_v41 = vpop.f32.mrf.mxu0  ;;  %v8875_v58 = vpop.f32.mrf.mxu1 }
 0x205   : > { %v11693_v10 = vadd.f32 %v8803_v41, %v8802_v42  ;;  %v11695_v15 = vadd.f32 %v8875_v58, %v8874_v45 }
 0x207   : > { %v8805_v9 = vpop.f32.mrf.mxu0 }
 0x208   : > { %v8877_v63 = vpop.f32.mrf.mxu1 }
 0x209   : > { %3690 = vmatmul.mubr.bf16.gmra.mxu0 %v10231_v55  ;;  %v8806_v56 = vpop.f32.mrf.mxu0 }
 0x20a   : > { %2918 = vmatmul.mubr.bf16.gmra.mxu1 %v11689_v0  ;;  %3697 = vmatprep.mubr.bf16.mxu0 %v10243_v21  ;;  %v8878_v25 = vpop.f32.mrf.mxu1  ;;  %v8807_v37 = vadd.f32 %v8806_v56, %v8805_v9  ;;  %v10259_v21 = vld [vmem:[#allocation2 + $0x68] ss:$12 sps:$4 sm:$0xff]  }
 0x20b   : > { %2925 = vmatprep.mubr.bf16.mxu1 %v11691_v57  ;;  %v11699_v19 = vadd.f32 %v8878_v25, %v8877_v63  ;;  %v8808_v36 = vpop.f32.mrf.mxu0 }
 0x20c   : > { %v8880_v46 = vpop.f32.mrf.mxu1 }
 0x20d   : > { %v8809_v7 = vpop.f32.mrf.mxu0 }
 0x20e   : > { %v8881_v38 = vpop.f32.mrf.mxu1  ;;  %v8810_v3 = vadd.f32 %v8809_v7, %v8808_v36 }
 0x20f   : > { %v11705_v24 = vadd.f32 %v8881_v38, %v8880_v46 }
 0x210   : > { %v8811_v16 = vpop.f32.mrf.mxu0  ;;  %v8883_v62 = vpop.f32.mrf.mxu1 }
 0x211   : > { %3698 = vmatmul.mubr.bf16.gmra.mxu0 %v10247_v2 }
 0x212   : > { %2926 = vmatmul.mubr.bf16.gmra.mxu1 %v11701_v33  ;;  %3705 = vmatprep.mubr.bf16.mxu0 %v10250_v1  ;;  %v8812_v47 = vpop.f32.mrf.mxu0  ;;  %v8884_v30 = vpop.f32.mrf.mxu1 }
 0x213   : > { %2933 = vmatprep.mubr.bf16.mxu1 %v11703_v49  ;;  %v8813_v27 = vadd.f32 %v8812_v47, %v8811_v16  ;;  %v11709_v11 = vadd.f32 %v8884_v30, %v8883_v62  ;;  %v10260_v16 = vld [vmem:[#allocation2 + $0x80] ss:$12 sps:$4 sm:$0xff]   ;;  %v10261_v30 = vld [vmem:[#allocation2 + $0x98] ss:$12 sps:$4 sm:$0xff]  }
 0x214   : > { %v8814_v61 = vpop.f32.mrf.mxu0  ;;  %v8886_v31 = vpop.f32.mrf.mxu1 }
 0x216   : > { %v8815_v53 = vpop.f32.mrf.mxu0  ;;  %v8887_v59 = vpop.f32.mrf.mxu1 }
 0x217   : > { %v8816_v34 = vadd.f32 %v8815_v53, %v8814_v61  ;;  %v11713_v40 = vadd.f32 %v8887_v59, %v8886_v31 }
 0x218   : > { %v8817_v44 = vpop.f32.mrf.mxu0  ;;  %v8889_v12 = vpop.f32.mrf.mxu1 }
 0x219   : > { %3706 = vmatmul.mubr.bf16.gmra.mxu0 %v10253_v28 }
 0x21a   : > { %2934 = vmatmul.mubr.bf16.gmra.mxu1 %v11711_v18  ;;  %3713 = vmatprep.mubr.bf16.mxu0 %v10254_v20  ;;  %v8818_v6 = vpop.f32.mrf.mxu0  ;;  %v8890_v43 = vpop.f32.mrf.mxu1 }
 0x21b   : > { %9735 = vmatprep.mubr.bf16.mxu1 %v10256_v29  ;;  %v8819_v22 = vadd.f32 %v8818_v6, %v8817_v44  ;;  %v11716_v55 = vadd.f32 %v8890_v43, %v8889_v12  ;;  %v10263_v43 = vld [vmem:[#allocation2 + $0xc8] ss:$12 sps:$4 sm:$0xff]  }
 0x21c   : > { %v8820_v5 = vpop.f32.mrf.mxu0  ;;  %v8892_v17 = vpop.f32.mrf.mxu1 }
 0x21e   : > { %v8821_v42 = vpop.f32.mrf.mxu0  ;;  %v8893_v45 = vpop.f32.mrf.mxu1 }
 0x21f   : > { %v8822_v41 = vadd.f32 %v8821_v42, %v8820_v5  ;;  %v11718_v58 = vadd.f32 %v8893_v45, %v8892_v17 }
 0x221   : > { %v8823_v9 = vpop.f32.mrf.mxu0  ;;  %v9641_v63 = vpop.f32.mrf.mxu1  ;;  %3714 = vmatmul.mubr.bf16.gmra.mxu0 %v10257_v51 }
 0x222   : > { %v11720_v56 = vadd.f32 %v9641_v63, %v8807_v37  ;;  %9736 = vmatmul.mubr.bf16.vlgmr.msra.gmra.mxu1 %v10258_v23  ;;  %3721 = vmatprep.mubr.bf16.mxu0 %v11640_v26 }
 0x223   : > { %v8824_v25 = vpop.f32.mrf.mxu0  ;;  %v2254_v36 = vpop.f32.mrf.mxu1  ;;  %9739 = vmatprep.mubr.bf16.mxu1 %v10259_v21 }
 0x224   : > { %v8825_v46 = vadd.f32 %v8824_v25, %v8823_v9  ;;  %v11724_v2 = vadd.f32 %v11685_v35, %v2254_v36  ;;  %v10265_v25 = vld [vmem:[#allocation2 + $0xf8] ss:$12 sps:$4 sm:$0xff]  }
 0x225   : > { %v8826_v1 = vpop.f32.mrf.mxu0  ;;  %v9642_v7 = vpop.f32.mrf.mxu1 }
 0x226   : > { %v11726_v38 = vadd.f32 %v9642_v7, %v8810_v3 }
 0x227   : > { %v8827_v62 = vpop.f32.mrf.mxu0  ;;  %v2257_v47 = vpop.f32.mrf.mxu1 }
 0x228   : > { %v8828_v37 = vadd.f32 %v8827_v62, %v8826_v1  ;;  %v11729_v61 = vadd.f32 %v11693_v10, %v2257_v47  ;;  %v10262_v10 = vld [vmem:[#allocation2 + $0xb0] ss:$12 sps:$4 sm:$0xff]  }
 0x229   : > { %v8829_v26 = vpop.f32.mrf.mxu0  ;;  %3722 = vmatmul.mubr.bf16.gmra.mxu0 %v11644_v8 }
 0x22a   : > { %v9645_v31 = vpop.f32.mrf.mxu1  ;;  %9740 = vmatmul.mubr.bf16.gmra.mxu1 %v10260_v16  ;;  %3729 = vmatprep.mubr.bf16.mxu0 %v11646_v32 }
 0x22b   : > { %v11732_v28 = vadd.f32 %v9645_v31, %v8819_v22  ;;  %v8830_v35 = vpop.f32.mrf.mxu0  ;;  %9743 = vmatprep.mubr.bf16.mxu1 %v10261_v30  ;;  %v10266_v31 = vld [vmem:[#allocation2 + $0x110] ss:$12 sps:$4 sm:$0xff]  }
 0x22c   : > { %v2270_v3 = vpop.f32.mrf.mxu1  ;;  %v8831_v20 = vadd.f32 %v8830_v35, %v8829_v26 }
 0x22d   : > { %v11735_v53 = vadd.f32 %v8813_v27, %v2270_v3  ;;  %v8832_v59 = vpop.f32.mrf.mxu0  ;;  %v10267_v3 = vld [vmem:[#allocation2 + $0x128] ss:$12 sps:$4 sm:$0xff]  }
 0x22e   : > { %v9646_v29 = vpop.f32.mrf.mxu1 }
 0x22f   : > { %v11737_v44 = vadd.f32 %v9646_v29, %v8822_v41  ;;  %v8833_v12 = vpop.f32.mrf.mxu0 }
 0x230   : > { %v2273_v6 = vpop.f32.mrf.mxu1  ;;  %v8834_v8 = vadd.f32 %v8833_v12, %v8832_v59 }
 0x231   : > { %v11739_v22 = vadd.f32 %v8816_v34, %v2273_v6  ;;  %v8835_v5 = vpop.f32.mrf.mxu0  ;;  %3730 = vmatmul.mubr.bf16.gmra.mxu0 %v11650_v39  ;;  %v10264_v34 = vld [vmem:[#allocation2 + $0xe0] ss:$12 sps:$4 sm:$0xff]  }
 0x232   : > { %v9649_v17 = vpop.f32.mrf.mxu1  ;;  %9744 = vmatmul.mubr.bf16.gmra.mxu1 %v10262_v10  ;;  %3737 = vmatprep.mubr.bf16.mxu0 %v11681_v13 }
 0x233   : > { %v11742_v32 = vadd.f32 %v9649_v17, %v8831_v20  ;;  %v8836_v27 = vpop.f32.mrf.mxu0  ;;  %9747 = vmatprep.mubr.bf16.mxu1 %v10263_v43  ;;  %v10268_v17 = vld [vmem:[#allocation2 + $0x140] ss:$12 sps:$4 sm:$0xff]  }
 0x234   : > { %v2286_v51 = vpop.f32.mrf.mxu1  ;;  %v8837_v23 = vadd.f32 %v8836_v27, %v8835_v5  ;;  %v10269_v27 = vld [vmem:[#allocation2 + $0x184] ss:$12 sps:$4 sm:$0xff]  }
 0x235   : > { %v11745_v42 = vadd.f32 %v8825_v46, %v2286_v51  ;;  %v8838_v45 = vpop.f32.mrf.mxu0 }
 0x236   : > { %v9650_v21 = vpop.f32.mrf.mxu1 }
 0x237   : > { %v11747_v41 = vadd.f32 %v9650_v21, %v8834_v8  ;;  %v8839_v9 = vpop.f32.mrf.mxu0 }
 0x238   : > { %v2289_v63 = vpop.f32.mrf.mxu1  ;;  %v8840_v39 = vadd.f32 %v8839_v9, %v8838_v45 }
 0x239   : > { %v11749_v36 = vadd.f32 %v8828_v37, %v2289_v63  ;;  %v8841_v1 = vpop.f32.mrf.mxu0  ;;  %3738 = vmatmul.mubr.bf16.gmra.mxu0 %v11689_v0 }
 0x23a   : > { %v9653_v7 = vpop.f32.mrf.mxu1  ;;  %9748 = vmatmul.mubr.bf16.gmra.mxu1 %v10264_v34  ;;  %3745 = vmatprep.mubr.bf16.mxu0 %v11691_v57 }
 0x23b   : > { %v8842_v13 = vpop.f32.mrf.mxu0  ;;  %9751 = vmatprep.mubr.bf16.mxu1 %v10265_v25  ;;  %v10272_v25 = vld [vmem:[#allocation2 + $0x180] ss:$12 sps:$4 sm:$0xff]  }
 0x23c   : > { %v2302_v46 = vpop.f32.mrf.mxu1  ;;  %v8843_v16 = vadd.f32 %v8842_v13, %v8841_v1 }
 0x23d   : > { %v11753_v62 = vadd.f32 %v8837_v23, %v2302_v46  ;;  %v8844_v47 = vpop.f32.mrf.mxu0  ;;  %v10274_v46 = vld [vmem:[#allocation2 + $0x188] ss:$12 sps:$4 sm:$0xff]  }
 0x23e   : > { %v9654_v30 = vpop.f32.mrf.mxu1  ;;  %v11755_v26 = vadd.f32 %v9653_v7, %v8843_v16  ;;  %v10273_v7 = vld [vmem:[#allocation2 + $0x170] ss:$12 sps:$4 sm:$0xff]  }
 0x23f   : > { %v8845_v37 = vpop.f32.mrf.mxu0 }
 0x240   : > { %v2305_v35 = vpop.f32.mrf.mxu1  ;;  %v8846_v20 = vadd.f32 %v8845_v37, %v8844_v47 }
 0x241   : > { %v11757_v59 = vadd.f32 %v8840_v39, %v2305_v35  ;;  %v8847_v0 = vpop.f32.mrf.mxu0  ;;  %3746 = vmatmul.mubr.bf16.gmra.mxu0 %v11701_v33  ;;  %v10271_v33 = vld [vmem:[#allocation2 + $0x158] ss:$12 sps:$4 sm:$0xff]  }
 0x242   : > { %v9657_v29 = vpop.f32.mrf.mxu1  ;;  %v11760_v57 = vadd.f32 %v9654_v30, %v8846_v20  ;;  %9752 = vmatmul.mubr.bf16.gmra.mxu1 %v10266_v31  ;;  %3753 = vmatprep.mubr.bf16.mxu0 %v11703_v49 }
 0x243   : > { %v8848_v10 = vpop.f32.mrf.mxu0  ;;  %9755 = vmatprep.mubr.bf16.mxu1 %v10267_v3 }
 0x244   : > { %v2318_v12 = vpop.f32.mrf.mxu1  ;;  %v8849_v6 = vadd.f32 %v8848_v10, %v8847_v0 }
 0x245   : > { %v11763_v43 = vpop.f32.mrf.mxu0 }
 0x246   : > { %v9658_v8 = vpop.f32.mrf.mxu1  ;;  %v11765_v5 = vadd.f32 %v8849_v6, %v2318_v12  ;;  %v10275_v6 = vld [vmem:[#allocation2 + $0x1a0] ss:$12 sps:$4 sm:$0xff]  }
 0x247   : > { %v11767_v51 = vpop.f32.mrf.mxu0 }
 0x248   : > { %v11769_v23 = vpop.f32.mrf.mxu1 }
 0x249   : > { %v8853_v45 = vpop.f32.mrf.mxu0  ;;  %3754 = vmatmul.mubr.bf16.gmra.mxu0 %v11711_v18 }
 0x24a   : > { %v9661_v49 = vpop.f32.mrf.mxu1  ;;  %9756 = vmatmul.mubr.bf16.gmra.mxu1 %v10268_v17  ;;  %3761 = vmatprep.mubr.bf16.mxu0 %v10269_v27 }
 0x24b   : > { %v8854_v21 = vpop.f32.mrf.mxu0  ;;  %9759 = vmatprep.mubr.bf16.mxu1 %v10271_v33 }
 0x24c   : > { %v8855_v34 = vadd.f32 %v8854_v21, %v8853_v45  ;;  %v2334_v9 = vpop.f32.mrf.mxu1 }
 0x24d   : > { %v8856_v63 = vpop.f32.mrf.mxu0 }
 0x24e   : > { %v11772_v39 = vadd.f32 %v9657_v29, %v8855_v34  ;;  %v9662_v1 = vpop.f32.mrf.mxu1 }
 0x24f   : > { %v8857_v13 = vpop.f32.mrf.mxu0 }
 0x250   : > { %v8858_v16 = vadd.f32 %v8857_v13, %v8856_v63  ;;  %v11774_v47 = vpop.f32.mrf.mxu1 }
 0x251   : > { %v8859_v30 = vpop.f32.mrf.mxu0  ;;  %3762 = vmatmul.mubr.bf16.gmra.mxu0 %v10272_v25 }
 0x252   : > { %v11776_v18 = vadd.f32 %v9658_v8, %v8858_v16  ;;  %v9665_v31 = vpop.f32.mrf.mxu1  ;;  %9760 = vmatmul.mubr.bf16.gmra.mxu1 %v10273_v7  ;;  %3769 = vmatprep.mubr.bf16.mxu0 %v11652_v14 }
 0x253   : > { %v11780_v37 = vadd.f32 %v9665_v31, %v11699_v19  ;;  %v8860_v35 = vpop.f32.mrf.mxu0  ;;  %9763 = vmatprep.mubr.bf16.mxu1 %v10274_v46 }
 0x254   : > { %v8861_v3 = vadd.f32 %v8860_v35, %v8859_v30  ;;  %v2350_v20 = vpop.f32.mrf.mxu1 }
 0x255   : > { %v11783_v0 = vadd.f32 %v11687_v4, %v2350_v20  ;;  %v11785_v29 = vpop.f32.mrf.mxu0 }
 0x256   : > { %v11787_v10 = vadd.f32 %v8861_v3, %v2334_v9  ;;  %v9666_v12 = vpop.f32.mrf.mxu1 }
 0x257   : > { %v11790_v8 = vadd.f32 %v9666_v12, %v11705_v24  ;;  %v11792_v14 = vpop.f32.mrf.mxu0 }
 0x258   : > { %v11794_v19 = vpop.f32.mrf.mxu1 }
 0x259   : > { %v8865_v17 = vpop.f32.mrf.mxu0  ;;  %3770 = vmatmul.mubr.bf16.gmra.mxu0 %v11656_v50 }
 0x25a   : > { %v9669_v27 = vpop.f32.mrf.mxu1  ;;  %9764 = vmatmul.mubr.bf16.gmra.mxu1 %v10275_v6 }
 0x25b   : > { %v11798_v4 = vadd.f32 %v9669_v27, %v11716_v55  ;;  %v8866_v33 = vpop.f32.mrf.mxu0 }
 0x25c   : > { %v8867_v45 = vadd.f32 %v8866_v33, %v8865_v17  ;;  %v2366_v21 = vpop.f32.mrf.mxu1 }
 0x25d   : > { %v11801_v34 = vadd.f32 %v11709_v11, %v2366_v21  ;;  %v8868_v24 = vpop.f32.mrf.mxu0 }
 0x25e   : > { %v11803_v9 = vadd.f32 %v9661_v49, %v8867_v45  ;;  %v9670_v63 = vpop.f32.mrf.mxu1 }
 0x25f   : > { %v11806_v25 = vadd.f32 %v9670_v63, %v11718_v58  ;;  %v8869_v7 = vpop.f32.mrf.mxu0 }
 0x260   : > { %v8870_v50 = vadd.f32 %v8869_v7, %v8868_v24  ;;  %v11808_v13 = vpop.f32.mrf.mxu1 }
 0x261   : > { %v9689_v46 = vpop.f32.mrf.mxu0 }
 0x262   : > { %v11810_v55 = vadd.f32 %v9662_v1, %v8870_v50  ;;  %v8935_v16 = vpop.f32.mrf.mxu1 }
 0x263   : > { %v2976_v30 = vpop.f32.mrf.mxu0 }
 0x264   : > { %v8936_v31 = vpop.f32.mrf.mxu1 }
 0x265   : > { %v8937_v35 = vadd.f32 %v8936_v31, %v8935_v16  ;;  %v9690_v11 = vpop.f32.mrf.mxu0 }
 0x266   : > { %v8938_v3 = vpop.f32.mrf.mxu1 }
 0x267   : > { %v2816_v49 = vadd.f32 %v8937_v35, %v11724_v2  ;;  %v11813_v20 = vpop.f32.mrf.mxu0 }
 0x268   : > { %v8939_v12 = vpop.f32.mrf.mxu1 }
 0x269   : > { %v11815_v58 = vadd.f32 %v2976_v30, %v2816_v49  ;;  %v8940_v6 = vadd.f32 %v8939_v12, %v8938_v3  ;;  %v9693_v17 = vpop.f32.mrf.mxu0 }
 0x26a   : > { %v8941_v27 = vpop.f32.mrf.mxu1 }
 0x26b   : > { %v11818_v33 = vadd.f32 %v8940_v6, %v11729_v61  ;;  %v2992_v1 = vpop.f32.mrf.mxu0 }
 0x26c   : > { %v8942_v45 = vpop.f32.mrf.mxu1 }
 0x26d   : > { %v8943_v21 = vadd.f32 %v8942_v45, %v8941_v27  ;;  %v9694_v24 = vpop.f32.mrf.mxu0 }
 0x26e   : > { %v8944_v63 = vpop.f32.mrf.mxu1 }
 0x26f   : > { %v2824_v7 = vadd.f32 %v8943_v21, %v11720_v56  ;;  %v11821_v50 = vpop.f32.mrf.mxu0 }
 0x270   : > { %v8945_v2 = vpop.f32.mrf.mxu1 }
 0x271   : > { %v8946_v16 = vadd.f32 %v8945_v2, %v8944_v63  ;;  %v9697_v31 = vpop.f32.mrf.mxu0  ;;  %v11823_v30 = vadd.f32 %v9689_v46, %v2824_v7 }
 0x272   : > { %v8947_v35 = vpop.f32.mrf.mxu1 }
 0x273   : > { %v2827_v3 = vadd.f32 %v8946_v16, %v11726_v38  ;;  %v3008_v49 = vpop.f32.mrf.mxu0 }
 0x274   : > { %v8948_v61 = vpop.f32.mrf.mxu1 }
 0x275   : > { %v8949_v12 = vadd.f32 %v8948_v61, %v8947_v35  ;;  %v9698_v6 = vpop.f32.mrf.mxu0  ;;  %v11826_v60 = vadd.f32 %v9690_v11, %v2827_v3 }
 0x276   : > { %v8950_v27 = vpop.f32.mrf.mxu1 }
 0x277   : > { %v2832_v45 = vadd.f32 %v8949_v12, %v11735_v53  ;;  %v11829_v56 = vpop.f32.mrf.mxu0 }
 0x278   : > { %13836 = vst [vmem:[#allocation28_spill] sm:$0xff] %v11829_v56  ;;  %v8951_v21 = vpop.f32.mrf.mxu1 }
 0x279   : > { %v8952_v48 = vadd.f32 %v8951_v21, %v8950_v27  ;;  %v11831_v63 = vpop.f32.mrf.mxu0  ;;  %v11833_v46 = vadd.f32 %v2992_v1, %v2832_v45 }
 0x27a   : > { %v8953_v7 = vpop.f32.mrf.mxu1 }
 0x27b   : > { %v11836_v38 = vadd.f32 %v8952_v48, %v11739_v22  ;;  %v3024_v2 = vpop.f32.mrf.mxu0 }
 0x27c   : > { %v8954_v16 = vpop.f32.mrf.mxu1 }
 0x27d   : > { %v8955_v35 = vadd.f32 %v8954_v16, %v8953_v7  ;;  %v11838_v11 = vpop.f32.mrf.mxu0 }
 0x27e   : > { %v8956_v3 = vpop.f32.mrf.mxu1 }
 0x27f   : > { %v2840_v53 = vadd.f32 %v8955_v35, %v11732_v28  ;;  %v11841_v61 = vpop.f32.mrf.mxu0 }
 0x280   : > { %13837 = vst [vmem:[#allocation29_spill] sm:$0xff] %v11841_v61  ;;  %v8957_v12 = vpop.f32.mrf.mxu1 }
 0x281   : > { %v8958_v27 = vadd.f32 %v8957_v12, %v8956_v3  ;;  %v11843_v21 = vpop.f32.mrf.mxu0  ;;  %v11845_v1 = vadd.f32 %v9693_v17, %v2840_v53  ;;  %v10276_v12 = vld [vmem:[#allocation11 + $0x178] sm:$0xff]  }
 0x282   : > { %v8959_v45 = vpop.f32.mrf.mxu1  ;;  %9767 = vmatprep.subr.bf16.mxu0 %v10276_v12 }
 0x283   : > { %v2843_v48 = vadd.f32 %v8958_v27, %v11737_v44  ;;  %v11848_v22 = vpop.f32.mrf.mxu0  ;;  %9768 = vmatpush3.bf16.msra.mxu0 %v10276_v12 }
 0x284   : > { %v8960_v52 = vpop.f32.mrf.mxu1 }
 0x285   : > { %v8961_v7 = vadd.f32 %v8960_v52, %v8959_v45  ;;  %v11850_v16 = vpop.f32.mrf.mxu0  ;;  %v11852_v54 = vadd.f32 %v9694_v24, %v2843_v48 }
 0x286   : > { %v8962_v28 = vpop.f32.mrf.mxu1 }
 0x287   : > { %v2848_v35 = vadd.f32 %v8961_v7, %v11745_v42  ;;  %v11855_v61 = vpop.f32.mrf.mxu0 }
 0x288   : > { %13838 = vst [vmem:[#allocation30_spill] sm:$0xff] %v11855_v61  ;;  %v8963_v3 = vpop.f32.mrf.mxu1 }
 0x289   : > { %v8964_v17 = vadd.f32 %v8963_v3, %v8962_v28  ;;  %v11857_v53 = vpop.f32.mrf.mxu0  ;;  %v11859_v56 = vadd.f32 %v3008_v49, %v2848_v35 }
 0x28a   : > { %v8965_v44 = vpop.f32.mrf.mxu1 }
 0x28b   : > { %13839 = vst [vmem:[#allocation31_spill] sm:$0xff] %v11859_v56  ;;  %v11862_v52 = vadd.f32 %v8964_v17, %v11749_v36  ;;  %v11864_v27 = vpop.f32.mrf.mxu0 }
 0x28c   : > { %v8966_v24 = vpop.f32.mrf.mxu1 }
 0x28d   : > { %13840 = vst [vmem:[#allocation32_spill] sm:$0xff] %v11862_v52  ;;  %v8967_v45 = vadd.f32 %v8966_v24, %v8965_v44  ;;  %v11866_v42 = vpop.f32.mrf.mxu0 }
 0x28e   : > { %v8968_v48 = vpop.f32.mrf.mxu1 }
 0x28f   : > { %v2856_v7 = vadd.f32 %v8967_v45, %v11742_v32  ;;  %v11869_v28 = vpop.f32.mrf.mxu0 }
 0x290   : > { %13841 = vst [vmem:[#allocation33_spill] sm:$0xff] %v11869_v28  ;;  %v8969_v3 = vpop.f32.mrf.mxu1 }
 0x291   : > { %v8970_v49 = vadd.f32 %v8969_v3, %v8968_v48  ;;  %v11871_v35 = vpop.f32.mrf.mxu0  ;;  %v11873_v61 = vadd.f32 %v9697_v31, %v2856_v7  ;;  %v10277_v3 = vld [vmem:[#allocation11 + $0x170] sm:$0xff]  }
 0x292   : > { %v8971_v36 = vpop.f32.mrf.mxu1  ;;  %9769 = vmatprep.subr.bf16.mxu0 %v10277_v3 }
 0x293   : > { %13842 = vst [vmem:[#allocation34_spill] sm:$0xff] %v11873_v61  ;;  %v2859_v17 = vadd.f32 %v8970_v49, %v11747_v41  ;;  %v11876_v52 = vpop.f32.mrf.mxu0  ;;  %9770 = vmatpush3.bf16.msra.mxu0 %v10277_v3 }
 0x294   : > { %v8972_v12 = vpop.f32.mrf.mxu1 }
 0x295   : > { %v8973_v44 = vadd.f32 %v8972_v12, %v8971_v36  ;;  %v11878_v24 = vpop.f32.mrf.mxu0  ;;  %v11880_v56 = vadd.f32 %v9698_v6, %v2859_v17 }
 0x296   : > { %v8974_v32 = vpop.f32.mrf.mxu1 }
 0x297   : > { %v2864_v45 = vadd.f32 %v8973_v44, %v11753_v62  ;;  %v11883_v28 = vpop.f32.mrf.mxu0 }
 0x298   : > { %13843 = vst [vmem:[#allocation35_spill] sm:$0xff] %v11883_v28  ;;  %v8975_v48 = vpop.f32.mrf.mxu1 }
 0x299   : > { %v8976_v31 = vadd.f32 %v8975_v48, %v8974_v32  ;;  %v11885_v7 = vpop.f32.mrf.mxu0  ;;  %v11887_v61 = vadd.f32 %v3024_v2, %v2864_v45 }
 0x29a   : > { %13844 = vst [vmem:[#allocation36_spill] sm:$0xff] %v11885_v7  ;;  %v8977_v41 = vpop.f32.mrf.mxu1 }
 0x29b   : > { %v11890_v49 = vadd.f32 %v8976_v31, %v11757_v59  ;;  %v11892_v36 = vpop.f32.mrf.mxu0 }
 0x29c   : > { %v8978_v6 = vpop.f32.mrf.mxu1 }
 0x29d   : > { %13845 = vst [vmem:[#allocation37_spill] sm:$0xff] %v11890_v49  ;;  %v8979_v17 = vadd.f32 %v8978_v6, %v8977_v41  ;;  %v11894_v62 = vpop.f32.mrf.mxu0  ;;  %v8852_v41 = vadd.f32 %v11767_v51, %v11763_v43 }
 0x29e   : > { %13846 = vst [vmem:[#allocation38_spill] sm:$0xff] %v11894_v62  ;;  %v8980_v12 = vpop.f32.mrf.mxu1 }
 0x29f   : > { %v2872_v44 = vadd.f32 %v8979_v17, %v11755_v26  ;;  %v11897_v32 = vpop.f32.mrf.mxu0 }
 0x2a0   : > { %13847 = vst [vmem:[#allocation39_spill] sm:$0xff] %v11897_v32  ;;  %v8981_v48 = vpop.f32.mrf.mxu1 }
 0x2a1   : > { %v8982_v2 = vadd.f32 %v8981_v48, %v8980_v12  ;;  %v9071_v45 = vpop.f32.mrf.mxu0  ;;  %v11900_v7 = vadd.f32 %v11831_v63, %v2872_v44 }
 0x2a2   : > { %v8983_v59 = vpop.f32.mrf.mxu1 }
 0x2a3   : > { %v2875_v31 = vadd.f32 %v8982_v2, %v11760_v57  ;;  %v9072_v28 = vpop.f32.mrf.mxu0  ;;  %v10278_v57 = vld [vmem:[#allocation11 + $0x168] sm:$0xff]   ;;  %v2322_v2 = vadd.f32 %v8852_v41, %v11769_v23 }
 0x2a4   : > { %v8984_v3 = vpop.f32.mrf.mxu1  ;;  %v11903_v49 = vadd.f32 %v9072_v28, %v9071_v45  ;;  %9771 = vmatprep.subr.bf16.mxu0 %v10278_v57 }
 0x2a5   : > { %v8985_v6 = vadd.f32 %v8984_v3, %v8983_v59  ;;  %v11907_v26 = vpop.f32.mrf.mxu0  ;;  %v11910_v17 = vadd.f32 %v11838_v11, %v2875_v31  ;;  %9772 = vmatpush3.bf16.msra.mxu0 %v10278_v57 }
 0x2a6   : > { %v8986_v12 = vpop.f32.mrf.mxu1 }
 0x2a7   : > { %v2880_v63 = vadd.f32 %v8985_v6, %v11765_v5  ;;  %v11913_v44 = vpop.f32.mrf.mxu0 }
 0x2a8   : > { %v8987_v48 = vpop.f32.mrf.mxu1 }
 0x2a9   : > { %v8988_v28 = vadd.f32 %v8987_v48, %v8986_v12  ;;  %v11916_v45 = vpop.f32.mrf.mxu0  ;;  %v11919_v43 = vadd.f32 %v11848_v22, %v2880_v63 }
 0x2aa   : > { %v8989_v51 = vpop.f32.mrf.mxu1 }
 0x2ab   : > { %v11921_v59 = vadd.f32 %v8988_v28, %v2322_v2  ;;  %v11923_v11 = vpop.f32.mrf.mxu0 }
 0x2ac   : > { %v8990_v5 = vpop.f32.mrf.mxu1 }
 0x2ad   : > { %v8991_v31 = vadd.f32 %v8990_v5, %v8989_v51  ;;  %v11925_v3 = vpop.f32.mrf.mxu0  ;;  %v8864_v5 = vadd.f32 %v11792_v14, %v11785_v29 }
 0x2ae   : > { %v8992_v6 = vpop.f32.mrf.mxu1 }
 0x2af   : > { %v2888_v23 = vadd.f32 %v8991_v31, %v11772_v39  ;;  %v11928_v41 = vpop.f32.mrf.mxu0 }
 0x2b0   : > { %v8993_v12 = vpop.f32.mrf.mxu1 }
 0x2b1   : > { %v8994_v48 = vadd.f32 %v8993_v12, %v8992_v6  ;;  %v11930_v22 = vpop.f32.mrf.mxu0  ;;  %v11933_v63 = vadd.f32 %v11843_v21, %v2888_v23 }
 0x2b2   : > { %v8995_v2 = vpop.f32.mrf.mxu1 }
 0x2b3   : > { %13848 = vst [vmem:[#allocation40_spill] sm:$0xff] %v11933_v63  ;;  %v2891_v28 = vadd.f32 %v8994_v48, %v11776_v18  ;;  %v11936_v57 = vpop.f32.mrf.mxu0  ;;  %v2338_v18 = vadd.f32 %v8864_v5, %v11774_v47 }
 0x2b4   : > { %v8996_v51 = vpop.f32.mrf.mxu1 }
 0x2b5   : > { %v8997_v62 = vadd.f32 %v8996_v51, %v8995_v2  ;;  %v11940_v39 = vpop.f32.mrf.mxu0  ;;  %v11943_v31 = vadd.f32 %v11850_v16, %v2891_v28 }
 0x2b6   : > { %v8998_v6 = vpop.f32.mrf.mxu1 }
 0x2b7   : > { %13849 = vst [vmem:[#allocation41_spill] sm:$0xff] %v11943_v31  ;;  %v2896_v12 = vadd.f32 %v8997_v62, %v11787_v10  ;;  %v11946_v21 = vpop.f32.mrf.mxu0 }
 0x2b8   : > { %v8999_v23 = vpop.f32.mrf.mxu1 }
 0x2b9   : > { %v9000_v48 = vadd.f32 %v8999_v23, %v8998_v6  ;;  %v11949_v32 = vpop.f32.mrf.mxu0  ;;  %v11952_v63 = vadd.f32 %v11864_v27, %v2896_v12 }
 0x2ba   : > { %v9001_v29 = vpop.f32.mrf.mxu1 }
 0x2bb   : > { %13850 = vst [vmem:[#allocation42_spill] sm:$0xff] %v11952_v63  ;;  %v11954_v14 = vadd.f32 %v9000_v48, %v2338_v18  ;;  %v11956_v2 = vpop.f32.mrf.mxu0 }
 0x2bc   : > { %v9002_v16 = vpop.f32.mrf.mxu1 }
 0x2bd   : > { %13851 = vst [vmem:[#allocation43_spill] sm:$0xff] %v11954_v14  ;;  %v9003_v28 = vadd.f32 %v9002_v16, %v9001_v29  ;;  %v11958_v51 = vpop.f32.mrf.mxu0 }
 0x2be   : > { %v9004_v10 = vpop.f32.mrf.mxu1 }
 0x2bf   : > { %v2904_v62 = vadd.f32 %v9003_v28, %v11803_v9  ;;  %v11961_v31 = vpop.f32.mrf.mxu0 }
 0x2c0   : > { %v9005_v47 = vpop.f32.mrf.mxu1 }
 0x2c1   : > { %v9006_v5 = vadd.f32 %v9005_v47, %v9004_v10  ;;  %v11963_v6 = vpop.f32.mrf.mxu0  ;;  %v11966_v27 = vadd.f32 %v11857_v53, %v2904_v62  ;;  %v2354_v53 = vadd.f32 %v11695_v15, %v11794_v19 }
 0x2c2   : > { %v9007_v12 = vpop.f32.mrf.mxu1 }
 0x2c3   : > { %13852 = vst [vmem:[#allocation44_spill] sm:$0xff] %v11966_v27  ;;  %v2907_v23 = vadd.f32 %v9006_v5, %v11810_v55  ;;  %v11969_v18 = vpop.f32.mrf.mxu0 }
 0x2c4   : > { %v9008_v48 = vpop.f32.mrf.mxu1 }
 0x2c5   : > { %v9009_v29 = vadd.f32 %v9008_v48, %v9007_v12  ;;  %v11971_v16 = vpop.f32.mrf.mxu0  ;;  %v11974_v9 = vadd.f32 %v11866_v42, %v2907_v23 }
 0x2c6   : > { %v9010_v28 = vpop.f32.mrf.mxu1 }
 0x2c7   : > { %13853 = vst [vmem:[#allocation45_spill] sm:$0xff] %v11974_v9  ;;  %v2912_v10 = vadd.f32 %v9009_v29, %v11783_v0  ;;  %v11977_v47 = vpop.f32.mrf.mxu0 }
 0x2c8   : > { %v9011_v14 = vpop.f32.mrf.mxu1 }
 0x2c9   : > { %v9012_v62 = vadd.f32 %v9011_v14, %v9010_v28  ;;  %v11981_v55 = vpop.f32.mrf.mxu0  ;;  %v11984_v5 = vadd.f32 %v11876_v52, %v2912_v10 }
 0x2ca   : > { %v9013_v12 = vpop.f32.mrf.mxu1 }
 0x2cb   : > { %v11986_v48 = vadd.f32 %v9012_v62, %v2354_v53  ;;  %v11988_v42 = vpop.f32.mrf.mxu0 }
 0x2cc   : > { %v9014_v23 = vpop.f32.mrf.mxu1 }
 0x2cd   : > { %13854 = vst [vmem:[#allocation46_spill] sm:$0xff] %v11986_v48  ;;  %v9015_v9 = vadd.f32 %v9014_v23, %v9013_v12  ;;  %v11990_v0 = vpop.f32.mrf.mxu0 }
 0x2ce   : > { %v9016_v29 = vpop.f32.mrf.mxu1 }
 0x2cf   : > { %v2920_v27 = vadd.f32 %v9015_v9, %v11780_v37  ;;  %v11993_v63 = vpop.f32.mrf.mxu0 }
 0x2d0   : > { %v9017_v15 = vpop.f32.mrf.mxu1 }
 0x2d1   : > { %v9018_v19 = vadd.f32 %v9017_v15, %v9016_v29  ;;  %v11995_v14 = vpop.f32.mrf.mxu0  ;;  %v11998_v52 = vadd.f32 %v11871_v35, %v2920_v27  ;;  %v2370_v35 = vadd.f32 %v11713_v40, %v11808_v13 }
 0x2d2   : > { %v9019_v28 = vpop.f32.mrf.mxu1 }
 0x2d3   : > { %13855 = vst [vmem:[#allocation47_spill] sm:$0xff] %v11998_v52  ;;  %v2923_v10 = vadd.f32 %v9018_v19, %v11790_v8  ;;  %v12001_v53 = vpop.f32.mrf.mxu0 }
 0x2d4   : > { %v9020_v62 = vpop.f32.mrf.mxu1 }
 0x2d5   : > { %v9021_v12 = vadd.f32 %v9020_v62, %v9019_v28  ;;  %v12003_v23 = vpop.f32.mrf.mxu0  ;;  %v12006_v37 = vadd.f32 %v11878_v24, %v2923_v10 }
 0x2d6   : > { %v9022_v9 = vpop.f32.mrf.mxu1 }
 0x2d7   : > { %13856 = vst [vmem:[#allocation48_spill] sm:$0xff] %v12006_v37  ;;  %v2928_v29 = vadd.f32 %v9021_v12, %v11801_v34  ;;  %v12009_v15 = vpop.f32.mrf.mxu0 }
 0x2d8   : > { %v9023_v48 = vpop.f32.mrf.mxu1 }
 0x2d9   : > { %v9024_v27 = vadd.f32 %v9023_v48, %v9022_v9  ;;  %v12013_v8 = vpop.f32.mrf.mxu0  ;;  %v12016_v19 = vadd.f32 %v11892_v36, %v2928_v29  ;;  %v9079_v29 = vadd.f32 %v11923_v11, %v11916_v45 }
 0x2da   : > { %v9025_v28 = vpop.f32.mrf.mxu1 }
 0x2db   : > { %13857 = vst [vmem:[#allocation49_spill] sm:$0xff] %v12016_v19  ;;  %v12018_v62 = vadd.f32 %v9024_v27, %v2370_v35  ;;  %v12020_v24 = vpop.f32.mrf.mxu0 }
 0x2dc   : > { %v9026_v10 = vpop.f32.mrf.mxu1 }
 0x2dd   : > { %v9027_v37 = vadd.f32 %v9026_v10, %v9025_v28  ;;  %v12022_v34 = vpop.f32.mrf.mxu0 }
 0x2de   : > { %v9028_v12 = vpop.f32.mrf.mxu1 }
 0x2df   : > { %v12025_v52 = vadd.f32 %v9027_v37, %v11798_v4  ;;  %v12027_v40 = vpop.f32.mrf.mxu0  ;;  %v9082_v4 = vadd.f32 %v11928_v41, %v11925_v3  ;;  %v12053_v3 = vld [vmem:[%s13751_s4] ss:$0 sm:$0xff] }
 0x2e0   : > { %v9029_v13 = vpop.f32.mrf.mxu1 }
 0x2e1   : > { %v9030_v48 = vadd.f32 %v9029_v13, %v9028_v12  ;;  %v12029_v9 = vpop.f32.mrf.mxu0  ;;  %v9076_v13 = vadd.f32 %v11913_v44, %v11907_v26 }
 0x2e2   : > { %v9737_v36 = vpop.f32.mrf.mxu1 }
 0x2e3   : > { %v12034_v35 = vadd.f32 %v9030_v48, %v11806_v25  ;;  %v12036_v27 = vpop.f32.mrf.mxu0  ;;  %v3821_v37 = vadd.f32 %v9737_v36, %v9079_v29  ;;  %v10279_v29 = vld [vmem:[#allocation11 + $0x160] sm:$0xff]  }
 0x2e4   : > { %v3812_v28 = vpop.f32.mrf.mxu1  ;;  %9773 = vmatprep.subr.bf16.mxu0 %v10279_v29 }
 0x2e5   : > { %13858 = vst [vmem:[#allocation50_spill] sm:$0xff] %v12034_v35  ;;  %v3813_v10 = vadd.f32 %v11903_v49, %v3812_v28  ;;  %v12041_v19 = vpop.f32.mrf.mxu0  ;;  %v2980_v35 = vadd.f32 %v11813_v20, %v11818_v33  ;;  %v3941_v49 = vadd.f32 %v3821_v37, %v11823_v30  ;;  %v9085_v20 = vadd.f32 %v11936_v57, %v11930_v22 }
 0x2e6   : > { %v9738_v12 = vpop.f32.mrf.mxu1  ;;  %9774 = vmatpush3.bf16.msra.mxu0 %v10279_v29  ;;  %v9094_v22 = vadd.f32 %v11961_v31, %v11958_v51  ;;  %v9088_v31 = vadd.f32 %v11946_v21, %v11940_v39 }
 0x2e7   : > { %v3939_v45 = vadd.f32 %v3813_v10, %v11815_v58  ;;  %v3824_v11 = vadd.f32 %v9738_v12, %v9082_v4  ;;  %v12046_v25 = vpop.f32.mrf.mxu0  ;;  %v9091_v58 = vadd.f32 %v11956_v2, %v11949_v32  ;;  %v12069_v10 = vadd.f32 %v12053_v3, %v3941_v49 }
 0x2e8   : > { %v3815_v48 = vpop.f32.mrf.mxu1 }
 0x2e9   : > { %v3816_v41 = vadd.f32 %v9076_v13, %v3815_v48  ;;  %v12056_v36 = vpop.f32.mrf.mxu0  ;;  %v12061_v26 = vadd.f32 %v12053_v3, %v3939_v45  ;;  %v3942_v33 = vadd.f32 %v3824_v11, %v11826_v60 }
 0x2ea   : > { %v9741_v44 = vpop.f32.mrf.mxu1 }
 0x2eb   : > { %v3940_v28 = vadd.f32 %v3816_v41, %v2980_v35  ;;  %v12066_v4 = vpop.f32.mrf.mxu0  ;;  %v3837_v30 = vadd.f32 %v9741_v44, %v9091_v58  ;;  %v4048_v60 = vmul.f32 %v12061_v26, %v12061_v26  ;;  %v12081_v35 = vadd.f32 %v12053_v3, %v3942_v33 }
 0x2ec   : > { %v3828_v37 = vpop.f32.mrf.mxu1  ;;  %v4050_v58 = vmul.f32 %v12069_v10, %v12069_v10 }
 0x2ed   : > { %v12072_v32 = vadd.f32 %v12053_v3, %v3940_v28  ;;  %v3829_v2 = vadd.f32 %v9085_v20, %v3828_v37  ;;  %v12074_v12 = vpop.f32.mrf.mxu0  ;;  %v3945_v51 = vadd.f32 %v3837_v30, %v11845_v1  ;;  %v9097_v1 = vadd.f32 %v11969_v18, %v11963_v6 }
 0x2ee   : > { %v9742_v57 = vpop.f32.mrf.mxu1  ;;  %v4051_v21 = vmul.f32 %v12081_v35, %v12081_v35 }
 0x2ef   : > { %v4010_v13 = vadd.f32 %v12072_v32, %v12061_v26  ;;  %v4049_v45 = vmul.f32 %v12072_v32, %v12072_v32  ;;  %v3943_v11 = vadd.f32 %v3829_v2, %v11833_v46  ;;  %v12088_v48 = vpop.f32.mrf.mxu0  ;;  %v3840_v49 = vadd.f32 %v9742_v57, %v9094_v22 }
 0x2f0   : > { %v3831_v41 = vpop.f32.mrf.mxu1  ;;  %v2996_v46 = vadd.f32 %v11821_v50, %v11836_v38  ;;  %v9103_v22 = vadd.f32 %v11988_v42, %v11981_v55 }
 0x2f1   : > { %v4011_v44 = vadd.f32 %v4010_v13, %v12069_v10  ;;  %v4080_v29 = vadd.f32 %v4049_v45, %v4048_v60  ;;  %v12097_v20 = vadd.f32 %v12053_v3, %v3943_v11  ;;  %v12099_v33 = vpop.f32.mrf.mxu0  ;;  %v3832_v28 = vadd.f32 %v9088_v31, %v3831_v41  ;;  %v13859_v41 = vld [vmem:[#allocation31_spill] sm:$0xff] }
 0x2f2   : > { %v9745_v39 = vpop.f32.mrf.mxu1  ;;  %v12113_v60 = vadd.f32 %v12053_v3, %v3945_v51  ;;  %v3946_v50 = vadd.f32 %v3840_v49, %v11852_v54  ;;  %v9106_v31 = vadd.f32 %v11993_v63, %v11990_v0  ;;  %v9100_v54 = vadd.f32 %v11977_v47, %v11971_v16  ;;  %v13861_v16 = vld [vmem:[#allocation28_spill] sm:$0xff] }
 0x2f3   : > { %v4081_v30 = vadd.f32 %v4080_v29, %v4050_v58  ;;  %v4012_v37 = vadd.f32 %v4011_v44, %v12081_v35  ;;  %v12108_v2 = vpop.f32.mrf.mxu0  ;;  %v3944_v38 = vadd.f32 %v3832_v28, %v2996_v46  ;;  %v4052_v18 = vmul.f32 %v12097_v20, %v12097_v20 }
 0x2f4   : > { %v3844_v57 = vpop.f32.mrf.mxu1  ;;  %v3853_v42 = vadd.f32 %v9745_v39, %v9103_v22  ;;  %v12132_v29 = vadd.f32 %v12053_v3, %v3946_v50  ;;  %v4054_v39 = vmul.f32 %v12113_v60, %v12113_v60  ;;  %v13862_v50 = vld [vmem:[#allocation34_spill] sm:$0xff] }
 0x2f5   : > { %v4013_v6 = vadd.f32 %v4012_v37, %v12097_v20  ;;  %v4082_v13 = vadd.f32 %v4081_v30, %v4051_v21  ;;  %v3845_v45 = vadd.f32 %v9097_v1, %v3844_v57  ;;  %v12119_v11 = vpop.f32.mrf.mxu0  ;;  %v12124_v55 = vadd.f32 %v12053_v3, %v3944_v38  ;;  %v13860_v1 = vld [vmem:[#allocation32_spill] sm:$0xff] }
 0x2f6   : > { %v9746_v51 = vpop.f32.mrf.mxu1  ;;  %v3012_v47 = vadd.f32 %v13861_v16, %v13860_v1  ;;  %v3949_v38 = vadd.f32 %v3853_v42, %v13862_v50 }
 0x2f7   : > { %v4083_v49 = vadd.f32 %v4082_v13, %v4052_v18  ;;  %v3947_v58 = vadd.f32 %v3845_v45, %v13859_v41  ;;  %v12129_v44 = vpop.f32.mrf.mxu0  ;;  %v4014_v46 = vadd.f32 %v4013_v6, %v12124_v55  ;;  %v4053_v63 = vmul.f32 %v12124_v55, %v12124_v55 }
 0x2f8   : > { %v3856_v0 = vadd.f32 %v9746_v51, %v9106_v31  ;;  %v3847_v28 = vpop.f32.mrf.mxu1  ;;  %v9109_v18 = vadd.f32 %v12001_v53, %v11995_v14  ;;  %v9115_v13 = vadd.f32 %v12020_v24, %v12013_v8  ;;  %v4055_v51 = vmul.f32 %v12132_v29, %v12132_v29 }
 0x2f9   : > { %v3848_v21 = vadd.f32 %v9100_v54, %v3847_v28  ;;  %v12141_v30 = vpop.f32.mrf.mxu0  ;;  %v4015_v37 = vadd.f32 %v4014_v46, %v12113_v60  ;;  %v4084_v22 = vadd.f32 %v4083_v49, %v4053_v63  ;;  %v12146_v57 = vadd.f32 %v12053_v3, %v3947_v58 }
 0x2fa   : > { %v9749_v6 = vpop.f32.mrf.mxu1  ;;  %v3950_v42 = vadd.f32 %v3856_v0, %v11880_v56  ;;  %v9118_v58 = vadd.f32 %v12027_v40, %v12022_v34  ;;  %v12166_v46 = vadd.f32 %v12053_v3, %v3949_v38  ;;  %v9112_v34 = vadd.f32 %v12009_v15, %v12003_v23  ;;  %v13863_v38 = vld [vmem:[#allocation37_spill] sm:$0xff] }
 0x2fb   : > { %v3948_v45 = vadd.f32 %v3848_v21, %v3012_v47  ;;  %v12152_v31 = vpop.f32.mrf.mxu0  ;;  %v4085_v54 = vadd.f32 %v4084_v22, %v4054_v39  ;;  %v4016_v49 = vadd.f32 %v4015_v37, %v12132_v29  ;;  %v3869_v53 = vadd.f32 %v9749_v6, %v9115_v13  ;;  %v13864_v6 = vld [vmem:[#allocation29_spill] sm:$0xff] }
 0x2fc   : > { %v3860_v41 = vpop.f32.mrf.mxu1  ;;  %v4056_v28 = vmul.f32 %v12146_v57, %v12146_v57  ;;  %v12177_v47 = vadd.f32 %v12053_v3, %v3950_v42 }
 0x2fd   : > { %v12161_v14 = vadd.f32 %v12053_v3, %v3948_v45  ;;  %v3861_v8 = vadd.f32 %v9109_v18, %v3860_v41  ;;  %v12163_v24 = vpop.f32.mrf.mxu0  ;;  %v4017_v63 = vadd.f32 %v4016_v49, %v12146_v57  ;;  %v4086_v56 = vadd.f32 %v4085_v54, %v4055_v51 }
 0x2fe   : > { %v9750_v0 = vpop.f32.mrf.mxu1  ;;  %v3953_v50 = vadd.f32 %v3869_v53, %v11900_v7  ;;  %v3028_v18 = vadd.f32 %v13864_v6, %v13863_v38  ;;  %v9121_v49 = vadd.f32 %v12036_v27, %v12029_v9  ;;  %v9127_v7 = vadd.f32 %v12066_v4, %v12056_v36 }
 0x2ff   : > { %v4057_v40 = vmul.f32 %v12161_v14, %v12161_v14  ;;  %v3951_v39 = vadd.f32 %v3861_v8, %v11887_v61  ;;  %v9141_v1 = vpop.f32.mrf.mxu0  ;;  %v4087_v16 = vadd.f32 %v4086_v56, %v4056_v28  ;;  %v4018_v21 = vadd.f32 %v4017_v63, %v12161_v14 }
 0x300   : > { %v3872_v37 = vadd.f32 %v9750_v0, %v9118_v58  ;;  %v3863_v22 = vpop.f32.mrf.mxu1  ;;  %v4058_v61 = vmul.f32 %v12166_v46, %v12166_v46  ;;  %v4059_v58 = vmul.f32 %v12177_v47, %v12177_v47  ;;  %v9130_v56 = vadd.f32 %v12088_v48, %v12074_v12 }
 0x301   : > { %v3864_v23 = vadd.f32 %v9112_v34, %v3863_v22  ;;  %v12183_v15 = vpop.f32.mrf.mxu0  ;;  %v4019_v13 = vadd.f32 %v4018_v21, %v12166_v46  ;;  %v4088_v45 = vadd.f32 %v4087_v16, %v4057_v40  ;;  %v12189_v51 = vadd.f32 %v12053_v3, %v3951_v39 }
 0x302   : > { %v9753_v54 = vpop.f32.mrf.mxu1  ;;  %v3954_v63 = vadd.f32 %v3872_v37, %v11910_v17  ;;  %v12204_v9 = vadd.f32 %v12053_v3, %v3953_v50  ;;  %v9124_v12 = vadd.f32 %v12046_v25, %v12041_v19  ;;  %v13865_v19 = vld [vmem:[#allocation30_spill] sm:$0xff] }
 0x303   : > { %v3952_v42 = vadd.f32 %v3864_v23, %v3028_v18  ;;  %v12195_v41 = vpop.f32.mrf.mxu0  ;;  %v4089_v53 = vadd.f32 %v4088_v45, %v4058_v61  ;;  %v4020_v8 = vadd.f32 %v4019_v13, %v12177_v47  ;;  %v4060_v34 = vmul.f32 %v12189_v51, %v12189_v51  ;;  %v13866_v45 = vld [vmem:[#allocation40_spill] sm:$0xff] }
 0x304   : > { %v3876_v28 = vpop.f32.mrf.mxu1  ;;  %v3885_v17 = vadd.f32 %v9753_v54, %v9127_v7  ;;  %v12222_v22 = vadd.f32 %v12053_v3, %v3954_v63  ;;  %v4062_v18 = vmul.f32 %v12204_v9, %v12204_v9  ;;  %v3044_v25 = vadd.f32 %v13865_v19, %v11921_v59 }
 0x305   : > { %v12207_v27 = vadd.f32 %v12053_v3, %v3952_v42  ;;  %v3877_v36 = vadd.f32 %v9121_v49, %v3876_v28  ;;  %v12209_v4 = vpop.f32.mrf.mxu0  ;;  %v4021_v0 = vadd.f32 %v4020_v8, %v12189_v51  ;;  %v4090_v40 = vadd.f32 %v4089_v53, %v4059_v58 }
 0x306   : > { %v9754_v39 = vpop.f32.mrf.mxu1  ;;  %v3957_v54 = vadd.f32 %v3885_v17, %v13866_v45  ;;  %v9133_v42 = vadd.f32 %v12108_v2, %v12099_v33  ;;  %v9139_v58 = vadd.f32 %v12152_v31, %v12141_v30  ;;  %v4063_v59 = vmul.f32 %v12222_v22, %v12222_v22  ;;  %v13871_v45 = vld [vmem:[#allocation33_spill] sm:$0xff] }
 0x307   : > { %v4061_v48 = vmul.f32 %v12207_v27, %v12207_v27  ;;  %v3955_v16 = vadd.f32 %v3877_v36, %v11919_v43  ;;  %v12219_v21 = vpop.f32.mrf.mxu0  ;;  %v4091_v37 = vadd.f32 %v4090_v40, %v4060_v34  ;;  %v4022_v50 = vadd.f32 %v4021_v0, %v12207_v27 }
 0x308   : > { %v3888_v38 = vadd.f32 %v9754_v39, %v9130_v56  ;;  %v3879_v6 = vpop.f32.mrf.mxu1  ;;  %v13867_v56 = vld [vmem:[#allocation41_spill] sm:$0xff]  ;;  %v9142_v34 = vadd.f32 %v9141_v1, %v12163_v24  ;;  %v12247_v30 = vadd.f32 %v12053_v3, %v3957_v54  ;;  %v13868_v1 = vld [vmem:[#allocation42_spill] sm:$0xff] }
 0x309   : > { %v3880_v23 = vadd.f32 %v9124_v12, %v3879_v6  ;;  %v9149_v61 = vpop.f32.mrf.mxu0  ;;  %v4023_v43 = vadd.f32 %v4022_v50, %v12204_v9  ;;  %v4092_v13 = vadd.f32 %v4091_v37, %v4061_v48  ;;  %v12232_v49 = vadd.f32 %v12053_v3, %v3955_v16 }
 0x30a   : > { %v9757_v7 = vpop.f32.mrf.mxu1  ;;  %v3958_v36 = vadd.f32 %v3888_v38, %v13867_v56  ;;  %v9136_v16 = vadd.f32 %v12129_v44, %v12119_v11  ;;  %v13872_v56 = vld [vmem:[#allocation45_spill] sm:$0xff] }
 0x30b   : > { %v3956_v53 = vadd.f32 %v3880_v23, %v3044_v25  ;;  %v9150_v8 = vpop.f32.mrf.mxu0  ;;  %v4093_v63 = vadd.f32 %v4092_v13, %v4062_v18  ;;  %v4024_v28 = vadd.f32 %v4023_v43, %v12222_v22  ;;  %v3901_v33 = vadd.f32 %v9757_v7, %v9139_v58  ;;  %v13869_v23 = vld [vmem:[#allocation44_spill] sm:$0xff]  ;;  %v13870_v13 = vld [vmem:[#allocation43_spill] sm:$0xff] }
 0x30c   : > { %v3892_v0 = vpop.f32.mrf.mxu1  ;;  %v4064_v39 = vmul.f32 %v12232_v49, %v12232_v49  ;;  %v12258_v18 = vadd.f32 %v12053_v3, %v3958_v36  ;;  %v3060_v54 = vadd.f32 %v13871_v45, %v13870_v13  ;;  %v4066_v7 = vmul.f32 %v12247_v30, %v12247_v30 }
 0x30d   : > { %v12244_v40 = vadd.f32 %v12053_v3, %v3956_v53  ;;  %v3893_v2 = vadd.f32 %v9133_v42, %v3892_v0  ;;  %v9152_v17 = vpop.f32.mrf.mxu0  ;;  %v4025_v31 = vadd.f32 %v4024_v28, %v12232_v49  ;;  %v4094_v12 = vadd.f32 %v4093_v63, %v4063_v59 }
 0x30e   : > { %v9758_v48 = vpop.f32.mrf.mxu1  ;;  %v3961_v43 = vadd.f32 %v3901_v33, %v13869_v23  ;;  %v9145_v63 = vadd.f32 %v12195_v41, %v12183_v15  ;;  %v9151_v28 = vadd.f32 %v9150_v8, %v9149_v61  ;;  %v4067_v33 = vmul.f32 %v12258_v18, %v12258_v18 }
 0x30f   : > { %v4065_v24 = vmul.f32 %v12244_v40, %v12244_v40  ;;  %v3959_v37 = vadd.f32 %v3893_v2, %v13868_v1  ;;  %v3904_v50 = vadd.f32 %v9758_v48, %v9142_v34  ;;  %v9153_v38 = vpop.f32.mrf.mxu0  ;;  %v4095_v6 = vadd.f32 %v4094_v12, %v4064_v39 }
 0x310   : > { %v4026_v19 = vadd.f32 %v4025_v31, %v12244_v40  ;;  %v3895_v25 = vpop.f32.mrf.mxu1  ;;  %v12277_v12 = vadd.f32 %v12053_v3, %v3961_v43  ;;  %v9154_v1 = vadd.f32 %v9153_v38, %v9152_v17  ;;  %v13874_v38 = vld [vmem:[#allocation46_spill] sm:$0xff] }
 0x311   : > { %v3896_v11 = vadd.f32 %v9136_v16, %v3895_v25  ;;  %v9155_v44 = vpop.f32.mrf.mxu0  ;;  %v4096_v58 = vadd.f32 %v4095_v6, %v4065_v24  ;;  %v12268_v53 = vadd.f32 %v12053_v3, %v3959_v37  ;;  %v3962_v36 = vadd.f32 %v3904_v50, %v13872_v56 }
 0x312   : > { %v4027_v42 = vadd.f32 %v4026_v19, %v12247_v30  ;;  %v9761_v59 = vpop.f32.mrf.mxu1  ;;  %v9148_v50 = vadd.f32 %v12219_v21, %v12209_v4 }
 0x313   : > { %v3960_v0 = vadd.f32 %v3896_v11, %v3060_v54  ;;  %v9156_v34 = vpop.f32.mrf.mxu0  ;;  %v4097_v2 = vadd.f32 %v4096_v58, %v4066_v7  ;;  %v3917_v16 = vadd.f32 %v9761_v59, %v9151_v28  ;;  %v4068_v8 = vmul.f32 %v12268_v53, %v12268_v53  ;;  %v13873_v11 = vld [vmem:[#allocation47_spill] sm:$0xff] }
 0x314   : > { %v4028_v31 = vadd.f32 %v4027_v42, %v12258_v18  ;;  %v3908_v39 = vpop.f32.mrf.mxu1  ;;  %v12288_v6 = vadd.f32 %v12053_v3, %v3962_v36  ;;  %v13875_v7 = vld [vmem:[#allocation35_spill] sm:$0xff]  ;;  %v4070_v58 = vmul.f32 %v12277_v12, %v12277_v12  ;;  %v9157_v36 = vadd.f32 %v9156_v34, %v9155_v44 }
 0x315   : > { %v12280_v48 = vadd.f32 %v12053_v3, %v3960_v0  ;;  %v3909_v15 = vadd.f32 %v9145_v63, %v3908_v39  ;;  %v9158_v41 = vpop.f32.mrf.mxu0  ;;  %v4098_v24 = vadd.f32 %v4097_v2, %v4067_v33  ;;  %v3965_v17 = vadd.f32 %v3917_v16, %v13873_v11  ;;  %v13876_v39 = vld [vmem:[#allocation48_spill] sm:$0xff]  ;;  %v13877_v44 = vld [vmem:[#allocation39_spill] sm:$0xff] }
 0x316   : > { %v4029_v61 = vadd.f32 %v4028_v31, %v12268_v53  ;;  %v9762_v37 = vpop.f32.mrf.mxu1  ;;  %v3076_v42 = vadd.f32 %v13875_v7, %v13874_v38  ;;  %v4071_v56 = vmul.f32 %v12288_v6, %v12288_v6  ;;  %v3092_v34 = vadd.f32 %v13877_v44, %v12018_v62  ;;  %v13878_v11 = vld [vmem:[#allocation36_spill] sm:$0xff] }
 0x317   : > { %v4069_v19 = vmul.f32 %v12280_v48, %v12280_v48  ;;  %v3963_v25 = vadd.f32 %v3909_v15, %v11984_v5  ;;  %v9159_v23 = vpop.f32.mrf.mxu0  ;;  %v4099_v43 = vadd.f32 %v4098_v24, %v4068_v8  ;;  %v3920_v45 = vadd.f32 %v9762_v37, %v9154_v1  ;;  %v10280_v8 = vld [vmem:[#allocation11 + $0x138] sm:$0xff]  }
 0x318   : > { %v4030_v13 = vadd.f32 %v4029_v61, %v12280_v48  ;;  %v3911_v54 = vpop.f32.mrf.mxu1  ;;  %v12308_v24 = vadd.f32 %v12053_v3, %v3965_v17  ;;  %9191 = vmatprep.subr.bf16.mxu1 %v10280_v8  ;;  %v3097_v17 = vadd.f32 %v13878_v11, %v12025_v52  ;;  %v9160_v38 = vadd.f32 %v9159_v23, %v9158_v41 }
 0x319   : > { %v3912_v4 = vadd.f32 %v9148_v50, %v3911_v54  ;;  %v9161_v21 = vpop.f32.mrf.mxu0  ;;  %v4100_v63 = vadd.f32 %v4099_v43, %v4069_v19  ;;  %v12301_v5 = vadd.f32 %v12053_v3, %v3963_v25  ;;  %v3966_v16 = vadd.f32 %v3920_v45, %v13876_v39  ;;  %v10281_v19 = vld [vmem:[#allocation11 + $0xf8] sm:$0xff]  }
 0x31a   : > { %v4031_v59 = vadd.f32 %v4030_v13, %v12277_v12  ;;  %v9765_v28 = vpop.f32.mrf.mxu1  ;;  %9192 = vmatpush3.bf16.msra.mxu1 %v10281_v19  ;;  %v4074_v41 = vmul.f32 %v12308_v24, %v12308_v24  ;;  %v10285_v19 = vld [vmem:[#allocation11 + $0x128] sm:$0xff]  }
 0x31b   : > { %v3964_v0 = vadd.f32 %v3912_v4, %v3076_v42  ;;  %v9162_v33 = vpop.f32.mrf.mxu0  ;;  %v4101_v2 = vadd.f32 %v4100_v63, %v4070_v58  ;;  %v4072_v43 = vmul.f32 %v12301_v5, %v12301_v5  ;;  %v13879_v42 = vld [vmem:[#allocation49_spill] sm:$0xff]  ;;  %v12324_v58 = vadd.f32 %v12053_v3, %v3966_v16 }
 0x31c   : > { %v4032_v31 = vadd.f32 %v4031_v59, %v12288_v6  ;;  %v9163_v15 = vadd.f32 %v9162_v33, %v9161_v21  ;;  %v3924_v61 = vpop.f32.mrf.mxu1 }
 0x31d   : > { %v12311_v1 = vadd.f32 %v12053_v3, %v3964_v0  ;;  %v3925_v37 = vadd.f32 %v9157_v36, %v3924_v61  ;;  %v9164_v50 = vpop.f32.mrf.mxu0  ;;  %v4102_v13 = vadd.f32 %v4101_v2, %v4071_v56  ;;  %v10282_v56 = vld [vmem:[#allocation11 + $0x130] sm:$0xff]   ;;  %v13880_v36 = vld [vmem:[#allocation50_spill] sm:$0xff]  ;;  %v4075_v8 = vmul.f32 %v12324_v58, %v12324_v58 }
 0x31e   : > { %v4033_v25 = vadd.f32 %v4032_v31, %v12301_v5  ;;  %v3933_v45 = vadd.f32 %v9765_v28, %v9163_v15  ;;  %v9766_v54 = vpop.f32.mrf.mxu1  ;;  %v13881_v0 = vld [vmem:[#allocation38_spill] sm:$0xff]  ;;  %v10284_v2 = vld [vmem:[#allocation11 + $0xf0] sm:$0xff]   ;;  %9193 = vmatprep.subr.bf16.mxu1 %v10282_v56 }
 0x31f   : > { %v4073_v7 = vmul.f32 %v12311_v1, %v12311_v1  ;;  %v3967_v4 = vadd.f32 %v3925_v37, %v13879_v42  ;;  %v9165_v62 = vpop.f32.mrf.mxu0  ;;  %v4103_v21 = vadd.f32 %v4102_v13, %v4072_v43  ;;  %v3100_v52 = vadd.f32 %v13881_v0, %v13880_v36  ;;  %9194 = vmatpush3.bf16.msra.mxu1 %v10284_v2  ;;  %v10286_v43 = vld [vmem:[#allocation11 + $0xe8] sm:$0xff]   ;;  %v10287_v42 = vld [vmem:[#allocation11 + $0x120] sm:$0xff]   ;;  %v10290_v36 = vld [vmem:[#allocation11 + $0x118] sm:$0xff]  }
 0x320   : > { %v4034_v59 = vadd.f32 %v4033_v25, %v12311_v1  ;;  %v9166_v63 = vadd.f32 %v9165_v62, %v9164_v50  ;;  %v3927_v28 = vpop.f32.mrf.mxu1  ;;  %v3969_v23 = vadd.f32 %v3933_v45, %v3097_v17  ;;  %9195 = vmatprep.subr.bf16.mxu1 %v10285_v19  ;;  %v10291_v0 = vld [vmem:[#allocation11 + $0xd8] sm:$0xff]   ;;  %v10288_v2 = vld [vmem:[#allocation11 + $0x150] sm:$0xff]   ;;  %v10296_v19 = vld [vmem:[#allocation11 + $0xc8] sm:$0xff]  }
 0x321   : > { %v3928_v33 = vadd.f32 %v9160_v38, %v3927_v28  ;;  %v4104_v39 = vadd.f32 %v4103_v21, %v4073_v7  ;;  %v12333_v16 = vadd.f32 %v12053_v3, %v3967_v4  ;;  %v10289_v4 = vld [vmem:[#allocation11 + $0xe0] sm:$0xff]  }
 0x322   : > { %v4035_v31 = vadd.f32 %v4034_v59, %v12308_v24  ;;  %v3936_v15 = vadd.f32 %v9766_v54, %v9166_v63  ;;  %v12342_v13 = vadd.f32 %v12053_v3, %v3969_v23 }
 0x323   : > { %v3968_v61 = vadd.f32 %v3928_v33, %v3092_v34  ;;  %v4105_v37 = vadd.f32 %v4104_v39, %v4074_v41  ;;  %v4076_v34 = vmul.f32 %v12333_v16, %v12333_v16  ;;  %9196 = vmatpush3.bf16.msra.mxu1 %v10286_v43  ;;  %v10294_v39 = vld [vmem:[#allocation11 + $0xd0] sm:$0xff]   ;;  %v10297_v43 = vld [vmem:[#allocation11 + $0x100] sm:$0xff]  }
 0x324   : > { %v4036_v50 = vadd.f32 %v4035_v31, %v12324_v58  ;;  %v3970_v44 = vadd.f32 %v3936_v15, %v3100_v52  ;;  %v4078_v62 = vmul.f32 %v12342_v13, %v12342_v13  ;;  %9197 = vmatprep.subr.bf16.mxu1 %v10287_v42  ;;  %v10292_v31 = vld [vmem:[#allocation11 + $0x110] sm:$0xff]   ;;  %v12359_v42 = vld [vmem:[#allocation11 + $0xb8] sm:$0xff]  }
 0x325   : > { %v12339_v25 = vadd.f32 %v12053_v3, %v3968_v61  ;;  %v4106_v54 = vadd.f32 %v4105_v37, %v4075_v8 }
 0x326   : > { %v4037_v45 = vadd.f32 %v4036_v50, %v12333_v16  ;;  %v12350_v38 = vadd.f32 %v12053_v3, %v3970_v44  ;;  %v10283_v3 = vld [vmem:[#allocation11 + $0x158] sm:$0xff]   ;;  %v10293_v50 = vld [vmem:[#allocation11 + $0x148] sm:$0xff]  }
 0x327   : > { %v4077_v11 = vmul.f32 %v12339_v25, %v12339_v25  ;;  %v4107_v17 = vadd.f32 %v4106_v54, %v4076_v34  ;;  %9198 = vmatpush3.bf16.msra.mxu1 %v10289_v4  ;;  %9775 = vmatprep.subr.bf16.mxu0 %v10283_v3  ;;  %v10295_v44 = vld [vmem:[#allocation11 + $0x108] sm:$0xff]   ;;  %v10310_v4 = vld [vmem:[#allocation11 + $0x78] sm:$0xff]  }
 0x328   : > { %v4038_v7 = vadd.f32 %v4037_v45, %v12339_v25  ;;  %v4079_v63 = vmul.f32 %v12350_v38, %v12350_v38  ;;  %9199 = vmatprep.subr.bf16.mxu1 %v10290_v36  ;;  %9776 = vmatpush3.bf16.msra.mxu0 %v10283_v3  ;;  %v10298_v45 = vld [vmem:[#allocation11 + $0x140] sm:$0xff]   ;;  %v4009_v36 = vld [vmem:[%s11078_s17] sm:$0x3] }
 0x329   : > { %v4108_v59 = vadd.f32 %v4107_v17, %v4077_v11  ;;  %9777 = vmatprep.subr.bf16.mxu0 %v10288_v2  ;;  %v10299_v11 = vld [vmem:[#allocation11 + $0xc0] sm:$0xff]  }
 0x32a   : > { %v4039_v21 = vadd.f32 %v4038_v7, %v12342_v13 }
 0x32b   : > { %v4109_v56 = vadd.f32 %v4108_v59, %v4078_v62  ;;  %9200 = vmatpush3.bf16.msra.mxu1 %v10291_v0  ;;  %v4123_v0 = vadd.f32 1.0, %v4009_v36 }
 0x32c   : > { %v4040_v28 = vadd.f32 %v4039_v21, %v12350_v38  ;;  %9201 = vmatprep.subr.bf16.mxu1 %v10292_v31  ;;  %9778 = vmatpush3.bf16.msra.mxu0 %v10288_v2 }
 0x32d   : > { %v4110_v41 = vadd.f32 %v4109_v56, %v4079_v63  ;;  %9779 = vmatprep.subr.bf16.mxu0 %v10293_v50 }
 0x32e   : > { %v4041_v52 = vrot.slane %v4040_v28, 4 }
 0x32f   : > { %v4111_v33 = vrot.slane %v4110_v41, 4  ;;  %9202 = vmatpush3.bf16.msra.mxu1 %v10294_v39 }
 0x330   : > { %v4042_v23 = vadd.f32 %v4041_v52, %v4040_v28  ;;  %9203 = vmatprep.subr.bf16.mxu1 %v10295_v44  ;;  %9780 = vmatpush3.bf16.msra.mxu0 %v10293_v50 }
 0x331   : > { %v4112_v61 = vadd.f32 %v4111_v33, %v4110_v41  ;;  %9781 = vmatprep.subr.bf16.mxu0 %v10298_v45  ;;  %v13882_v33 = vld [vmem:[#allocation25_spill] sm:$0xff] }
 0x332   : > { %v4043_v15 = vrot.slane %v4042_v23, 2  ;;  %v13883_v2 = vsub.s32 0, %v13882_v33 }
 0x333   : > { %v4113_v37 = vrot.slane %v4112_v61, 2  ;;  %9204 = vmatpush3.bf16.msra.mxu1 %v10296_v19 }
 0x334   : > { %v4044_v8 = vadd.f32 %v4043_v15, %v4042_v23  ;;  %9205 = vmatprep.subr.bf16.mxu1 %v10297_v43  ;;  %9782 = vmatpush3.bf16.msra.mxu0 %v10298_v45 }
 0x335   : > { %v4114_v54 = vadd.f32 %v4113_v37, %v4112_v61  ;;  %9327 = vmatprep.subr.bf16.mxu0 %v10310_v4 }
 0x336   : > { %v4045_v34 = vrot.slane %v4044_v8, 1 }
 0x337   : > { %v4115_v7 = vrot.slane %v4114_v54, 1  ;;  %9206 = vmatpush3.bf16.msra.mxu1 %v10299_v11 }
 0x338   : > { %v4046_v17 = vadd.f32 %v4045_v34, %v4044_v8  ;;  %9815 = vmatprep.subr.bf16.mxu1 %v12359_v42 }
 0x339   : > { %v4116_v21 = vadd.f32 %v4115_v7, %v4114_v54 }
 0x33a   : > { %v4047_v62 = vmul.f32 0.00390625, %v4046_v17 }
 0x33b   : > { %v4117_v59 = vmul.f32 0.00390625, %v4116_v21 }
 0x33c   : > { %v4118_v63 = vmul.f32 %v4047_v62, %v4047_v62 }
 0x33e   : > { %v4119_v28 = vsub.f32 %v4117_v59, %v4118_v63 }
 0x340   : > { %v4120_v56 = vmax.f32 %v4119_v28, 0.0 }
 0x342   : > { %v4121_v3 = vadd.f32 1e-05, %v4120_v56 }
 0x344   : > { %10522 = vrsqrt.f32 %v4121_v3 }
 0x351   : > { %v10523_v52 = vpop.eup %10522 }
 0x352   : > { %v4124_v41 = vmul.f32 %v10523_v52, %v4123_v0 }
 0x354   : > { %v4125_v23 = vmul.f32 %v4124_v41, %v4047_v62  ;;  %v4133_v31 = vrot.slane %v4124_v41, %v13883_v2 }
 0x356   : > { %v4127_v39 = vrot.slane %v4125_v23, 7  ;;  %v4162_v15 = vmul.f32 %v4133_v31, %v12333_v16  ;;  %v4163_v61 = vmul.f32 %v4133_v31, %v12339_v25  ;;  %v4134_v8 = vmul.f32 %v4133_v31, %v12061_v26 }
 0x357   : > { %v4135_v37 = vmul.f32 %v4133_v31, %v12072_v32  ;;  %v4136_v50 = vmul.f32 %v4133_v31, %v12069_v10  ;;  %v4137_v44 = vmul.f32 %v4133_v31, %v12081_v35  ;;  %v4138_v19 = vmul.f32 %v4133_v31, %v12097_v20 }
 0x358   : > { %v4129_v43 = vsub.f32 %v4009_v36, %v4127_v39  ;;  %v4139_v45 = vmul.f32 %v4133_v31, %v12124_v55  ;;  %v4140_v34 = vmul.f32 %v4133_v31, %v12113_v60  ;;  %v4141_v54 = vmul.f32 %v4133_v31, %v12132_v29 }
 0x359   : > { %v4142_v16 = vmul.f32 %v4133_v31, %v12146_v57  ;;  %v4143_v25 = vmul.f32 %v4133_v31, %v12161_v14  ;;  %v4144_v26 = vmul.f32 %v4133_v31, %v12166_v46  ;;  %v4145_v32 = vmul.f32 %v4133_v31, %v12177_v47 }
 0x35a   : > { %v13884_v10 = vsub.s32 1, %v13882_v33  ;;  %v4146_v20 = vmul.f32 %v4133_v31, %v12189_v51  ;;  %v4147_v55 = vmul.f32 %v4133_v31, %v12207_v27  ;;  %v4148_v60 = vmul.f32 %v4133_v31, %v12204_v9 }
 0x35b   : > { %v4149_v29 = vmul.f32 %v4133_v31, %v12222_v22  ;;  %v4150_v57 = vmul.f32 %v4133_v31, %v12232_v49  ;;  %v4151_v14 = vmul.f32 %v4133_v31, %v12244_v40  ;;  %v4152_v46 = vmul.f32 %v4133_v31, %v12247_v30 }
 0x35c   : > { %v12381_v35 = vrot.slane %v4129_v43, %v13884_v10  ;;  %v4153_v17 = vmul.f32 %v4133_v31, %v12258_v18  ;;  %v4154_v51 = vmul.f32 %v4133_v31, %v12268_v53  ;;  %v4155_v27 = vmul.f32 %v4133_v31, %v12280_v48 }
 0x35d   : > { %v4156_v9 = vmul.f32 %v4133_v31, %v12277_v12  ;;  %v4157_v22 = vmul.f32 %v4133_v31, %v12288_v6  ;;  %v4158_v49 = vmul.f32 %v4133_v31, %v12301_v5  ;;  %v4159_v30 = vmul.f32 %v4133_v31, %v12311_v1 }
 0x35e   : > { %v4198_v47 = vadd.f32 %v12381_v35, %v4162_v15  ;;  %v4199_v11 = vadd.f32 %v12381_v35, %v4163_v61  ;;  %v4160_v4 = vmul.f32 %v4133_v31, %v12308_v24  ;;  %v4161_v62 = vmul.f32 %v4133_v31, %v12324_v58 }
 0x35f   : > { %v4164_v18 = vmul.f32 %v4133_v31, %v12342_v13  ;;  %v4165_v53 = vmul.f32 %v4133_v31, %v12350_v38  ;;  %v4170_v48 = vadd.f32 %v12381_v35, %v4134_v8  ;;  %v4171_v6 = vadd.f32 %v12381_v35, %v4135_v37 }
 0x360   : > { %v4230_v7 = vmul.f32 0.2, %v4198_v47  ;;  %v4231_v40 = vmul.f32 0.2, %v4199_v11  ;;  %v4172_v5 = vadd.f32 %v12381_v35, %v4136_v50  ;;  %v12407_v59 = vadd.f32 %v12381_v35, %v4137_v44 }
 0x361   : > { %v12410_v1 = vadd.f32 %v12381_v35, %v4138_v19  ;;  %v12413_v24 = vadd.f32 %v12381_v35, %v4139_v45  ;;  %v12416_v58 = vadd.f32 %v12381_v35, %v4140_v34  ;;  %v12419_v28 = vadd.f32 %v12381_v35, %v4141_v54 }
 0x362   : > { %v4262_v21 = vmax.f32 %v4198_v47, %v4230_v7  ;;  %v4263_v12 = vmax.f32 %v4199_v11, %v4231_v40  ;;  %v12422_v56 = vadd.f32 %v12381_v35, %v4142_v16  ;;  %v12425_v3 = vadd.f32 %v12381_v35, %v4143_v25 }
 0x363   : > { %v12428_v36 = vadd.f32 %v12381_v35, %v4144_v26  ;;  %v12431_v0 = vadd.f32 %v12381_v35, %v4145_v32  ;;  %v12434_v23 = vadd.f32 %v12381_v35, %v4146_v20  ;;  %v12437_v33 = vadd.f32 %v12381_v35, %v4147_v55 }
 0x364   : > { %v4280_v13 = vpack.c.bf16 %v4263_v12, %v4262_v21  ;;  %v8779_v38 = vpack.c.bf16 %v4263_v12, %v4263_v12  ;;  %v8778_v63 = vpack.c.bf16 %v4262_v21, %v4262_v21  ;;  %v12440_v2 = vadd.f32 %v12381_v35, %v4148_v60 }
 0x365   : > { %v12443_v31 = vadd.f32 %v12381_v35, %v4149_v29  ;;  %v12446_v39 = vadd.f32 %v12381_v35, %v4150_v57  ;;  %v12449_v15 = vadd.f32 %v12381_v35, %v4151_v14  ;;  %v12452_v37 = vadd.f32 %v12381_v35, %v4152_v46 }
 0x366   : > { %4423 = vst [vmem:[#allocation2 + $0x178] sm:$0xf] %v8779_v38  ;;  %v4525_v52 = vshrl.u32 %v4280_v13, 16  ;;  %v4528_v41 = vshll.u32 %v4280_v13, 16  ;;  %4422 = vst [vmem:[#allocation2 + $0x16c] sm:$0xf] %v8778_v63  ;;  %v12455_v50 = vadd.f32 %v12381_v35, %v4153_v17  ;;  %v12458_v44 = vadd.f32 %v12381_v35, %v4154_v51 }
 0x367   : > { %v12461_v19 = vadd.f32 %v12381_v35, %v4155_v27  ;;  %v12464_v43 = vadd.f32 %v12381_v35, %v4156_v9  ;;  %v12467_v45 = vadd.f32 %v12381_v35, %v4157_v22  ;;  %v12470_v16 = vadd.f32 %v12381_v35, %v4158_v49 }
 0x368   : > { %v4527_v61 = vrot.slane %v4525_v52, 7  ;;  %v4742_v8 = vrot.slane %v4528_v41, 1  ;;  %v12473_v25 = vadd.f32 %v12381_v35, %v4159_v30  ;;  %v12476_v26 = vadd.f32 %v12381_v35, %v4160_v4 }
 0x369   : > { %v12479_v32 = vadd.f32 %v12381_v35, %v4161_v62  ;;  %v12482_v10 = vadd.f32 %v12381_v35, %v4164_v18  ;;  %v12485_v20 = vadd.f32 %v12381_v35, %v4165_v53  ;;  %v4202_v14 = vmul.f32 0.2, %v4170_v48 }
 0x36a   : > { %v4530_v34 = vor.u32 %v4528_v41, %v4527_v61  ;;  %v4743_v54 = vor.u32 %v4742_v8, %v4525_v52  ;;  %v4203_v46 = vmul.f32 0.2, %v4171_v6  ;;  %v4204_v27 = vmul.f32 0.2, %v4172_v5 }
 0x36b   : > { %v4205_v9 = vmul.f32 0.2, %v12407_v59  ;;  %v4206_v22 = vmul.f32 0.2, %v12410_v1  ;;  %v12493_v49 = vmax.f32 %v4170_v48, %v4202_v14  ;;  %v4207_v35 = vmul.f32 0.2, %v12413_v24 }
 0x36c   : > { %v4568_v60 = vsel %vm11367_vm2, 0, %v4530_v34  ;;  %v4776_v57 = vsel %vm11437_vm5, %v4743_v54, 0  ;;  %v4208_v7 = vmul.f32 0.2, %v12416_v58  ;;  %v4209_v40 = vmul.f32 0.2, %v12419_v28 }
 0x36d   : > { %v8435_v47 = vcombine.low %v4568_v60, %v4568_v60  ;;  %v8436_v11 = vcombine.high %v4568_v60, %v4568_v60  ;;  %v8467_v17 = vcombine.low %v4776_v57, %v4776_v57  ;;  %v8468_v51 = vcombine.high %v4776_v57, %v4776_v57 }
 0x36e   : > { %v12498_v30 = vmax.f32 %v4171_v6, %v4203_v46  ;;  %v4210_v4 = vmul.f32 0.2, %v12422_v56  ;;  %v4211_v62 = vmul.f32 0.2, %v12425_v3  ;;  %v4212_v18 = vmul.f32 0.2, %v12428_v36 }
 0x36f   : > { %4710 = vst [vmem:[#allocation2 + $0x168] sm:$0xf] %v8435_v47  ;;  %4711 = vst [vmem:[#allocation2 + $0x174] sm:$0xf] %v8436_v11  ;;  %v12503_v53 = vmax.f32 %v4172_v5, %v4204_v27  ;;  %v4213_v48 = vmul.f32 0.2, %v12431_v0  ;;  %v12509_v13 = vmax.f32 %v12407_v59, %v4205_v9  ;;  %v12515_v52 = vmax.f32 %v12410_v1, %v4206_v22 }
 0x370   : > { %4918 = vst [vmem:[#allocation2 + $0x170] sm:$0xf] %v8467_v17  ;;  %4919 = vst [vmem:[#allocation2 + $0x17c] sm:$0xf] %v8468_v51  ;;  %v4214_v21 = vmul.f32 0.2, %v12434_v23  ;;  %v12521_v8 = vmax.f32 %v12413_v24, %v4207_v35  ;;  %v12527_v60 = vmax.f32 %v12416_v58, %v4208_v7  ;;  %v12533_v46 = vmax.f32 %v12419_v28, %v4209_v40 }
 0x371   : > { %v4215_v12 = vmul.f32 0.2, %v12437_v33  ;;  %v4216_v6 = vmul.f32 0.2, %v12440_v2  ;;  %v4217_v38 = vmul.f32 0.2, %v12443_v31  ;;  %v12539_v17 = vmax.f32 %v12422_v56, %v4210_v4 }
 0x372   : > { %v4218_v63 = vmul.f32 0.2, %v12446_v39  ;;  %v4219_v5 = vmul.f32 0.2, %v12449_v15  ;;  %v4220_v41 = vmul.f32 0.2, %v12452_v37  ;;  %v12543_v51 = vmax.f32 %v12425_v3, %v4211_v62 }
 0x373   : > { %v4221_v61 = vmul.f32 0.2, %v12455_v50  ;;  %v4222_v59 = vmul.f32 0.2, %v12458_v44  ;;  %v4223_v34 = vmul.f32 0.2, %v12461_v19  ;;  %v12546_v27 = vmax.f32 %v12428_v36, %v4212_v18 }
 0x374   : > { %v4224_v54 = vmul.f32 0.2, %v12464_v43  ;;  %v4225_v1 = vmul.f32 0.2, %v12467_v45  ;;  %v4226_v57 = vmul.f32 0.2, %v12470_v16  ;;  %v12549_v28 = vmax.f32 %v12431_v0, %v4213_v48 }
 0x375   : > { %v4227_v14 = vmul.f32 0.2, %v12473_v25  ;;  %v4228_v24 = vmul.f32 0.2, %v12476_v26  ;;  %v4229_v47 = vmul.f32 0.2, %v12479_v32  ;;  %v12552_v9 = vmax.f32 %v12434_v23, %v4214_v21 }
 0x376   : > { %v4232_v11 = vmul.f32 0.2, %v12482_v10  ;;  %v4233_v58 = vmul.f32 0.2, %v12485_v20  ;;  %v12555_v22 = vmax.f32 %v12437_v33, %v4215_v12  ;;  %v12558_v56 = vmax.f32 %v12440_v2, %v4216_v6 }
 0x377   : > { %v12561_v35 = vmax.f32 %v12443_v31, %v4217_v38  ;;  %v12564_v3 = vmax.f32 %v12446_v39, %v4218_v63  ;;  %v12567_v36 = vmax.f32 %v12449_v15, %v4219_v5  ;;  %v12570_v0 = vmax.f32 %v12452_v37, %v4220_v41 }
 0x378   : > { %v12573_v23 = vmax.f32 %v12455_v50, %v4221_v61  ;;  %v12576_v33 = vmax.f32 %v12458_v44, %v4222_v59  ;;  %v12579_v2 = vmax.f32 %v12461_v19, %v4223_v34  ;;  %v12582_v31 = vmax.f32 %v12464_v43, %v4224_v54 }
 0x379   : > { %v12585_v39 = vmax.f32 %v12467_v45, %v4225_v1  ;;  %v12588_v15 = vmax.f32 %v12470_v16, %v4226_v57  ;;  %v12591_v37 = vmax.f32 %v12473_v25, %v4227_v14  ;;  %v12594_v50 = vmax.f32 %v12476_v26, %v4228_v24 }
 0x37a   : > { %v12597_v44 = vmax.f32 %v12479_v32, %v4229_v47  ;;  %v12600_v19 = vmax.f32 %v12482_v10, %v4232_v11  ;;  %v12603_v43 = vmax.f32 %v12485_v20, %v4233_v58  ;;  %v12607_v45 = vpack.c.bf16 %v12498_v30, %v12493_v49 }
 0x37b   : > { %v12611_v16 = vpack.c.bf16 %v12509_v13, %v12503_v53  ;;  %v12615_v25 = vpack.c.bf16 %v12521_v8, %v12515_v52  ;;  %v12619_v26 = vpack.c.bf16 %v12533_v46, %v12527_v60  ;;  %v12623_v32 = vpack.c.bf16 %v12543_v51, %v12539_v17 }
 0x37c   : > { %v12627_v10 = vpack.c.bf16 %v12549_v28, %v12546_v27  ;;  %v12631_v20 = vpack.c.bf16 %v12555_v22, %v12552_v9  ;;  %v12635_v7 = vpack.c.bf16 %v12561_v35, %v12558_v56  ;;  %v12639_v40 = vpack.c.bf16 %v12567_v36, %v12564_v3 }
 0x37d   : > { %v12643_v4 = vpack.c.bf16 %v12573_v23, %v12570_v0  ;;  %v12647_v62 = vpack.c.bf16 %v12579_v2, %v12576_v33  ;;  %v12651_v18 = vpack.c.bf16 %v12585_v39, %v12582_v31  ;;  %v12655_v48 = vpack.c.bf16 %v12591_v37, %v12588_v15 }
 0x37e   : > { %v12659_v21 = vpack.c.bf16 %v12597_v44, %v12594_v50  ;;  %v12663_v12 = vpack.c.bf16 %v12603_v43, %v12600_v19  ;;  %v8750_v6 = vpack.c.bf16 %v12493_v49, %v12493_v49  ;;  %v8751_v38 = vpack.c.bf16 %v12498_v30, %v12498_v30 }
 0x37f   : > { %v8752_v63 = vpack.c.bf16 %v12503_v53, %v12503_v53  ;;  %v8753_v5 = vpack.c.bf16 %v12509_v13, %v12509_v13  ;;  %v8754_v41 = vpack.c.bf16 %v12515_v52, %v12515_v52  ;;  %v8755_v61 = vpack.c.bf16 %v12521_v8, %v12521_v8 }
 0x380   : > { %v8756_v59 = vpack.c.bf16 %v12527_v60, %v12527_v60  ;;  %v8757_v49 = vpack.c.bf16 %v12533_v46, %v12533_v46  ;;  %v8758_v30 = vpack.c.bf16 %v12539_v17, %v12539_v17  ;;  %v8759_v53 = vpack.c.bf16 %v12543_v51, %v12543_v51  ;;  %4394 = vst [vmem:[#allocation2 + $0x1c] sm:$0xf] %v8750_v6 }
 0x381   : > { %v8760_v13 = vpack.c.bf16 %v12546_v27, %v12546_v27  ;;  %4395 = vst [vmem:[#allocation2 + $0x28] sm:$0xf] %v8751_v38  ;;  %4396 = vst [vmem:[#allocation2 + $0x34] sm:$0xf] %v8752_v63  ;;  %v8761_v52 = vpack.c.bf16 %v12549_v28, %v12549_v28  ;;  %v8762_v8 = vpack.c.bf16 %v12552_v9, %v12552_v9  ;;  %v4465_v6 = vshll.u32 %v12627_v10, 16 }
 0x382   : > { %v8763_v34 = vpack.c.bf16 %v12555_v22, %v12555_v22  ;;  %v8764_v54 = vpack.c.bf16 %v12558_v56, %v12558_v56  ;;  %4397 = vst [vmem:[#allocation2 + $0x40] sm:$0xf] %v8753_v5  ;;  %4398 = vst [vmem:[#allocation2 + $0x4c] sm:$0xf] %v8754_v41  ;;  %v8765_v60 = vpack.c.bf16 %v12561_v35, %v12561_v35  ;;  %v4427_v56 = vshrl.u32 %v12607_v45, 16 }
 0x383   : > { %4399 = vst [vmem:[#allocation2 + $0x58] sm:$0xf] %v8755_v61  ;;  %4400 = vst [vmem:[#allocation2 + $0x64] sm:$0xf] %v8756_v59  ;;  %v8766_v1 = vpack.c.bf16 %v12564_v3, %v12564_v3  ;;  %v8767_v57 = vpack.c.bf16 %v12567_v36, %v12567_v36  ;;  %v8768_v14 = vpack.c.bf16 %v12570_v0, %v12570_v0  ;;  %v4430_v35 = vshll.u32 %v12607_v45, 16 }
 0x384   : > { %4401 = vst [vmem:[#allocation2 + $0x70] sm:$0xf] %v8757_v49  ;;  %4402 = vst [vmem:[#allocation2 + $0x7c] sm:$0xf] %v8758_v30  ;;  %v8769_v46 = vpack.c.bf16 %v12573_v23, %v12573_v23  ;;  %v8770_v24 = vpack.c.bf16 %v12576_v33, %v12576_v33  ;;  %v8771_v47 = vpack.c.bf16 %v12579_v2, %v12579_v2  ;;  %v4434_v3 = vshrl.u32 %v12611_v16, 16 }
 0x385   : > { %4403 = vst [vmem:[#allocation2 + $0x88] sm:$0xf] %v8759_v53  ;;  %4404 = vst [vmem:[#allocation2 + $0x94] sm:$0xf] %v8760_v13  ;;  %v8772_v11 = vpack.c.bf16 %v12582_v31, %v12582_v31  ;;  %v8773_v17 = vpack.c.bf16 %v12585_v39, %v12585_v39  ;;  %v8774_v58 = vpack.c.bf16 %v12588_v15, %v12588_v15  ;;  %v4437_v36 = vshll.u32 %v12611_v16, 16 }
 0x386   : > { %4405 = vst [vmem:[#allocation2 + $0xa0] sm:$0xf] %v8761_v52  ;;  %4406 = vst [vmem:[#allocation2 + $0xac] sm:$0xf] %v8762_v8  ;;  %v8775_v51 = vpack.c.bf16 %v12591_v37, %v12591_v37  ;;  %v8776_v27 = vpack.c.bf16 %v12594_v50, %v12594_v50  ;;  %v8777_v28 = vpack.c.bf16 %v12597_v44, %v12597_v44  ;;  %v4441_v0 = vshrl.u32 %v12615_v25, 16 }
 0x387   : > { %4407 = vst [vmem:[#allocation2 + $0xb8] sm:$0xf] %v8763_v34  ;;  %4408 = vst [vmem:[#allocation2 + $0xc4] sm:$0xf] %v8764_v54  ;;  %v8780_v9 = vpack.c.bf16 %v12600_v19, %v12600_v19  ;;  %v8781_v22 = vpack.c.bf16 %v12603_v43, %v12603_v43  ;;  %v4429_v23 = vrot.slane %v4427_v56, 7  ;;  %v4444_v33 = vshll.u32 %v12615_v25, 16 }
 0x388   : > { %4409 = vst [vmem:[#allocation2 + $0xd0] sm:$0xf] %v8765_v60  ;;  %4410 = vst [vmem:[#allocation2 + $0xdc] sm:$0xf] %v8766_v1  ;;  %v4448_v2 = vshrl.u32 %v12619_v26, 16  ;;  %v4451_v31 = vshll.u32 %v12619_v26, 16 }
 0x389   : > { %4411 = vst [vmem:[#allocation2 + $0xe8] sm:$0xf] %v8767_v57  ;;  %4412 = vst [vmem:[#allocation2 + $0xf4] sm:$0xf] %v8768_v14  ;;  %v4436_v39 = vrot.slane %v4434_v3, 7  ;;  %v4443_v15 = vrot.slane %v4441_v0, 7  ;;  %v4432_v44 = vor.u32 %v4430_v35, %v4429_v23 }
 0x38a   : > { %4413 = vst [vmem:[#allocation2 + $0x100] sm:$0xf] %v8769_v46  ;;  %4414 = vst [vmem:[#allocation2 + $0x10c] sm:$0xf] %v8770_v24  ;;  %v4455_v37 = vshrl.u32 %v12623_v32, 16  ;;  %v4458_v50 = vshll.u32 %v12623_v32, 16 }
 0x38b   : > { %4415 = vst [vmem:[#allocation2 + $0x118] sm:$0xf] %v8771_v47  ;;  %4416 = vst [vmem:[#allocation2 + $0x124] sm:$0xf] %v8772_v11  ;;  %v4450_v19 = vrot.slane %v4448_v2, 7  ;;  %v4462_v43 = vshrl.u32 %v12627_v10, 16  ;;  %v4439_v38 = vor.u32 %v4437_v36, %v4436_v39  ;;  %v4446_v63 = vor.u32 %v4444_v33, %v4443_v15 }
 0x38c   : > { %4417 = vst [vmem:[#allocation2 + $0x130] sm:$0xf] %v8773_v17  ;;  %4418 = vst [vmem:[#allocation2 + $0x13c] sm:$0xf] %v8774_v58  ;;  %v4457_v5 = vrot.slane %v4455_v37, 7  ;;  %v4469_v41 = vshrl.u32 %v12631_v20, 16 }
 0x38d   : > { %4419 = vst [vmem:[#allocation2 + $0x148] sm:$0xf] %v8775_v51  ;;  %4420 = vst [vmem:[#allocation2 + $0x154] sm:$0xf] %v8776_v27  ;;  %v4453_v61 = vor.u32 %v4451_v31, %v4450_v19  ;;  %v4464_v59 = vrot.slane %v4462_v43, 7  ;;  %v4472_v49 = vshll.u32 %v12631_v20, 16 }
 0x38e   : > { %4421 = vst [vmem:[#allocation2 + $0x160] sm:$0xf] %v8777_v28  ;;  %4424 = vst [vmem:[#allocation2 + $0x184] sm:$0xf] %v8780_v9  ;;  %v4476_v30 = vshrl.u32 %v12635_v7, 16  ;;  %v4460_v53 = vor.u32 %v4458_v50, %v4457_v5  ;;  %v4471_v13 = vrot.slane %v4469_v41, 7 }
 0x38f   : > { %4425 = vst [vmem:[#allocation2 + $0x190] sm:$0xf] %v8781_v22  ;;  %v4479_v52 = vshll.u32 %v12635_v7, 16  ;;  %v13788_v8 = vshrl.u32 %v12639_v40, 16  ;;  %v4467_v34 = vor.u32 %v4465_v6, %v4464_v59  ;;  %v13795_v60 = vshll.u32 %v12639_v40, 16 }
 0x390   : > { %v4478_v54 = vrot.slane %v4476_v30, 7  ;;  %v13786_v1 = vshrl.u32 %v12643_v4, 16  ;;  %v4474_v57 = vor.u32 %v4472_v49, %v4471_v13  ;;  %v13794_v46 = vshll.u32 %v12643_v4, 16 }
 0x391   : > { %v4485_v14 = vrot.slane %v13788_v8, 7  ;;  %v13784_v24 = vshrl.u32 %v12647_v62, 16  ;;  %v13793_v17 = vshll.u32 %v12647_v62, 16  ;;  %v13782_v58 = vshrl.u32 %v12651_v18, 16 }
 0x392   : > { %v4481_v47 = vor.u32 %v4479_v52, %v4478_v54  ;;  %v4492_v11 = vrot.slane %v13786_v1, 7  ;;  %v13792_v28 = vshll.u32 %v12651_v18, 16  ;;  %v13783_v9 = vshrl.u32 %v12655_v48, 16 }
 0x393   : > { %v4488_v51 = vor.u32 %v13795_v60, %v4485_v14  ;;  %v4499_v27 = vrot.slane %v13784_v24, 7  ;;  %v4506_v23 = vrot.slane %v13782_v58, 7  ;;  %v13791_v39 = vshll.u32 %v12655_v48, 16 }
 0x394   : > { %v4495_v22 = vor.u32 %v13794_v46, %v4492_v11  ;;  %v13785_v15 = vshrl.u32 %v12659_v21, 16  ;;  %v4513_v5 = vrot.slane %v13783_v9, 7  ;;  %v13790_v59 = vshll.u32 %v12659_v21, 16 }
 0x395   : > { %v4502_v19 = vor.u32 %v13793_v17, %v4499_v27  ;;  %v13787_v13 = vshrl.u32 %v12663_v12, 16  ;;  %v4509_v54 = vor.u32 %v13792_v28, %v4506_v23  ;;  %v13789_v11 = vshll.u32 %v12663_v12, 16 }
 0x396   : > { %v4520_v14 = vrot.slane %v13785_v15, 7  ;;  %v4554_v58 = vsel %vm11367_vm2, 0, %v4432_v44  ;;  %v4516_v27 = vor.u32 %v13791_v39, %v4513_v5  ;;  %v4555_v24 = vsel %vm11367_vm2, 0, %v4439_v38 }
 0x397   : > { %v4534_v9 = vrot.slane %v13787_v13, 7  ;;  %v4556_v23 = vsel %vm11367_vm2, 0, %v4446_v63  ;;  %v4557_v1 = vsel %vm11367_vm2, 0, %v4453_v61  ;;  %v4558_v44 = vsel %vm11367_vm2, 0, %v4460_v53 }
 0x398   : > { %v4523_v15 = vor.u32 %v13790_v59, %v4520_v14  ;;  %v4559_v5 = vsel %vm11367_vm2, 0, %v4467_v34  ;;  %v4560_v38 = vsel %vm11367_vm2, 0, %v4474_v57  ;;  %v4561_v63 = vsel %vm11367_vm2, 0, %v4481_v47 }
 0x399   : > { %v4537_v13 = vor.u32 %v13789_v11, %v4534_v9  ;;  %v4562_v14 = vsel %vm11367_vm2, 0, %v4488_v51  ;;  %v4563_v61 = vsel %vm11367_vm2, 0, %v4495_v22  ;;  %v4564_v53 = vsel %vm11367_vm2, 0, %v4502_v19 }
 0x39a   : > { %v4565_v34 = vsel %vm11367_vm2, 0, %v4509_v54  ;;  %v4566_v9 = vsel %vm11367_vm2, 0, %v4516_v27  ;;  %v12843_v57 = vsel %vm11367_vm2, 0, %v4523_v15  ;;  %v8407_v51 = vcombine.low %v4554_v58, %v4554_v58 }
 0x39b   : > { %v12847_v47 = vsel %vm11367_vm2, 0, %v4537_v13  ;;  %v8408_v8 = vcombine.high %v4554_v58, %v4554_v58  ;;  %v8409_v22 = vcombine.low %v4555_v24, %v4555_v24  ;;  %v8410_v11 = vcombine.high %v4555_v24, %v4555_v24 }
 0x39c   : > { %v8411_v59 = vcombine.low %v4556_v23, %v4556_v23  ;;  %v8412_v19 = vcombine.high %v4556_v23, %v4556_v23  ;;  %v8413_v39 = vcombine.low %v4557_v1, %v4557_v1  ;;  %v8414_v28 = vcombine.high %v4557_v1, %v4557_v1  ;;  %4682 = vst [vmem:[#allocation2 + $0x18] sm:$0xf] %v8407_v51 }
 0x39d   : > { %v8415_v54 = vcombine.low %v4558_v44, %v4558_v44  ;;  %v8416_v17 = vcombine.high %v4558_v44, %v4558_v44  ;;  %4683 = vst [vmem:[#allocation2 + $0x24] sm:$0xf] %v8408_v8  ;;  %v8417_v27 = vcombine.low %v4559_v5, %v4559_v5  ;;  %v8418_v46 = vcombine.high %v4559_v5, %v4559_v5 }
 0x39e   : > { %v8419_v15 = vcombine.low %v4560_v38, %v4560_v38  ;;  %v8420_v60 = vcombine.high %v4560_v38, %v4560_v38  ;;  %4684 = vst [vmem:[#allocation2 + $0x30] sm:$0xf] %v8409_v22  ;;  %4685 = vst [vmem:[#allocation2 + $0x3c] sm:$0xf] %v8410_v11  ;;  %v8421_v55 = vcombine.low %v4561_v63, %v4561_v63  ;;  %v13887_v26 = vshll.u32 %v12639_v40, 16 }
 0x39f   : > { %4686 = vst [vmem:[#allocation2 + $0x48] sm:$0xf] %v8411_v59  ;;  %4687 = vst [vmem:[#allocation2 + $0x54] sm:$0xf] %v8412_v19  ;;  %v8422_v58 = vcombine.high %v4561_v63, %v4561_v63  ;;  %v8423_v13 = vcombine.low %v4562_v14, %v4562_v14  ;;  %v8424_v24 = vcombine.high %v4562_v14, %v4562_v14  ;;  %v4716_v63 = vrot.slane %v4437_v36, 1 }
 0x3a0   : > { %4688 = vst [vmem:[#allocation2 + $0x60] sm:$0xf] %v8413_v39  ;;  %4689 = vst [vmem:[#allocation2 + $0x6c] sm:$0xf] %v8414_v28  ;;  %v8425_v1 = vcombine.low %v4563_v61, %v4563_v61  ;;  %v8426_v23 = vcombine.high %v4563_v61, %v4563_v61  ;;  %v8427_v44 = vcombine.low %v4564_v53, %v4564_v53  ;;  %v4718_v14 = vrot.slane %v4444_v33, 1 }
 0x3a1   : > { %4690 = vst [vmem:[#allocation2 + $0x78] sm:$0xf] %v8415_v54  ;;  %4691 = vst [vmem:[#allocation2 + $0x84] sm:$0xf] %v8416_v17  ;;  %v8428_v8 = vcombine.high %v4564_v53, %v4564_v53  ;;  %v8429_v5 = vcombine.low %v4565_v34, %v4565_v34  ;;  %v8430_v11 = vcombine.high %v4565_v34, %v4565_v34  ;;  %v4720_v61 = vrot.slane %v4451_v31, 1 }
 0x3a2   : > { %4692 = vst [vmem:[#allocation2 + $0x90] sm:$0xf] %v8417_v27  ;;  %4693 = vst [vmem:[#allocation2 + $0x9c] sm:$0xf] %v8418_v46  ;;  %v8431_v59 = vcombine.low %v4566_v9, %v4566_v9  ;;  %v8432_v38 = vcombine.high %v4566_v9, %v4566_v9  ;;  %v8433_v28 = vcombine.low %v12843_v57, %v12843_v57  ;;  %v4714_v46 = vrot.slane %v4430_v35, 1 }
 0x3a3   : > { %4694 = vst [vmem:[#allocation2 + $0xa8] sm:$0xf] %v8419_v15  ;;  %4695 = vst [vmem:[#allocation2 + $0xb4] sm:$0xf] %v8420_v60  ;;  %v8434_v17 = vcombine.high %v12843_v57, %v12843_v57  ;;  %v8437_v39 = vcombine.low %v12847_v47, %v12847_v47  ;;  %v8438_v60 = vcombine.high %v12847_v47, %v12847_v47  ;;  %v4722_v53 = vrot.slane %v4458_v50, 1 }
 0x3a4   : > { %4696 = vst [vmem:[#allocation2 + $0xc0] sm:$0xf] %v8421_v55  ;;  %4697 = vst [vmem:[#allocation2 + $0xcc] sm:$0xf] %v8422_v58  ;;  %v4724_v34 = vrot.slane %v4465_v6, 1  ;;  %v4726_v35 = vrot.slane %v4472_v49, 1  ;;  %v4715_v33 = vor.u32 %v4714_v46, %v4427_v56  ;;  %v4717_v31 = vor.u32 %v4716_v63, %v4434_v3 }
 0x3a5   : > { %4698 = vst [vmem:[#allocation2 + $0xd8] sm:$0xf] %v8423_v13  ;;  %4699 = vst [vmem:[#allocation2 + $0xe4] sm:$0xf] %v8424_v24  ;;  %v4728_v36 = vrot.slane %v4479_v52, 1  ;;  %v4719_v50 = vor.u32 %v4718_v14, %v4441_v0  ;;  %v4721_v6 = vor.u32 %v4720_v61, %v4448_v2  ;;  %v4723_v52 = vor.u32 %v4722_v53, %v4455_v37  ;;  %v10318_v56 = vld [vmem:[#allocation11 + $0xb0] sm:$0xff]  }
 0x3a6   : > { %4700 = vst [vmem:[#allocation2 + $0xf0] sm:$0xf] %v8425_v1  ;;  %4701 = vst [vmem:[#allocation2 + $0xfc] sm:$0xf] %v8426_v23  ;;  %v12881_v49 = vld [vmem:[#allocation2 + $0x18] ss:$12 sps:$4 sm:$0xff]   ;;  %v4725_v45 = vor.u32 %v4724_v34, %v4462_v43  ;;  %v4727_v16 = vor.u32 %v4726_v35, %v4469_v41 }
 0x3a7   : > { %4702 = vst [vmem:[#allocation2 + $0x108] sm:$0xf] %v8427_v44  ;;  %4703 = vst [vmem:[#allocation2 + $0x114] sm:$0xf] %v8428_v8  ;;  %v12883_v9 = vld [vmem:[#allocation2 + $0x1c] ss:$12 sps:$4 sm:$0xff]   ;;  %v4729_v25 = vor.u32 %v4728_v36, %v4476_v30 }
 0x3a8   : > { %4704 = vst [vmem:[#allocation2 + $0x120] sm:$0xf] %v8429_v5  ;;  %4705 = vst [vmem:[#allocation2 + $0x12c] sm:$0xf] %v8430_v11  ;;  %v4730_v3 = vrot.slane %v13887_v26, 1  ;;  %v13888_v0 = vshll.u32 %v12643_v4, 16  ;;  %5580 = vmatprep.mubr.bf16.mxu1 %v12883_v9 }
 0x3a9   : > { %4706 = vst [vmem:[#allocation2 + $0x138] sm:$0xf] %v8431_v59  ;;  %4707 = vst [vmem:[#allocation2 + $0x144] sm:$0xf] %v8432_v38  ;;  %v13889_v57 = vshll.u32 %v12647_v62, 16  ;;  %v13890_v37 = vshll.u32 %v12651_v18, 16  ;;  %5581 = vmatmul.mubr.bf16.vlgmr.msra.gmra.mxu1 %v12881_v49 }
 0x3aa   : > { %4708 = vst [vmem:[#allocation2 + $0x150] sm:$0xf] %v8433_v28  ;;  %4709 = vst [vmem:[#allocation2 + $0x15c] sm:$0xf] %v8434_v17  ;;  %v4732_v2 = vrot.slane %v13888_v0, 1  ;;  %v13891_v20 = vshll.u32 %v12655_v48, 16  ;;  %9816 = vmatpush3.bf16.msra.mxu1 %v12359_v42 }
 0x3ab   : > { %4712 = vst [vmem:[#allocation2 + $0x180] sm:$0xf] %v8437_v39  ;;  %4713 = vst [vmem:[#allocation2 + $0x18c] sm:$0xf] %v8438_v60  ;;  %v4734_v32 = vrot.slane %v13889_v57, 1  ;;  %v4736_v10 = vrot.slane %v13890_v37, 1  ;;  %9817 = vmatprep.subr.bf16.mxu1 %v10318_v56 }
 0x3ac   : > { %v4738_v43 = vrot.slane %v13891_v20, 1  ;;  %v13892_v7 = vshll.u32 %v12659_v21, 16  ;;  %v13893_v30 = vshll.u32 %v12663_v12, 16  ;;  %v4762_v51 = vsel %vm11437_vm5, %v4715_v33, 0  ;;  %v12911_v22 = vld [vmem:[#allocation2 + $0x34] ss:$12 sps:$4 sm:$0xff]  }
 0x3ad   : > { %v13894_v19 = vshrl.u32 %v12639_v40, 16  ;;  %v13895_v27 = vshrl.u32 %v12643_v4, 16  ;;  %v13896_v55 = vshrl.u32 %v12647_v62, 16  ;;  %v13897_v13 = vshrl.u32 %v12651_v18, 16  ;;  %5588 = vmatprep.mubr.bf16.mxu1 %v12911_v22  ;;  %v10333_v62 = vld [vmem:[#allocation11 + $0xa8] sm:$0xff]   ;;  %v12971_v34 = vld [vmem:[#allocation11 + $0xa0] sm:$0xff]  }
 0x3ae   : > { %v4740_v41 = vrot.slane %v13892_v7, 1  ;;  %v4744_v47 = vrot.slane %v13893_v30, 1  ;;  %v13898_v1 = vshrl.u32 %v12655_v48, 16  ;;  %v13899_v44 = vshrl.u32 %v12659_v21, 16  ;;  %9818 = vmatpush3.bf16.msra.mxu1 %v10318_v56  ;;  %v12969_v53 = vld [vmem:[#allocation2 + $0x30] ss:$12 sps:$4 sm:$0xff]  }
 0x3af   : > { %v4731_v54 = vor.u32 %v4730_v3, %v13894_v19  ;;  %v4733_v15 = vor.u32 %v4732_v2, %v13895_v27  ;;  %v4735_v58 = vor.u32 %v4734_v32, %v13896_v55  ;;  %v4737_v24 = vor.u32 %v4736_v10, %v13897_v13  ;;  %9819 = vmatprep.subr.bf16.mxu1 %v10333_v62  ;;  %v10312_v27 = vld [vmem:[#allocation11 + $0x38] sm:$0xff]   ;;  %v10317_v55 = vld [vmem:[#allocation11 + $0x70] sm:$0xff]  }
 0x3b0   : > { %v4739_v23 = vor.u32 %v4738_v43, %v13898_v1  ;;  %v4741_v8 = vor.u32 %v4740_v41, %v13899_v44  ;;  %v13900_v40 = vshrl.u32 %v12663_v12, 16  ;;  %v4763_v4 = vsel %vm11437_vm5, %v4717_v31, 0  ;;  %v10363_v43 = vld [vmem:[#allocation11 + $0x98] sm:$0xff]   ;;  %v10371_v13 = vld [vmem:[#allocation11 + $0x90] sm:$0xff]  }
 0x3b1   : > { %v4764_v18 = vsel %vm11437_vm5, %v4719_v50, 0  ;;  %v4765_v42 = vsel %vm11437_vm5, %v4721_v6, 0  ;;  %v4766_v48 = vsel %vm11437_vm5, %v4723_v52, 0  ;;  %v4767_v21 = vsel %vm11437_vm5, %v4725_v45, 0  ;;  %v12973_v50 = vld [vmem:[#allocation2 + $0x4c] ss:$12 sps:$4 sm:$0xff]   ;;  %5589 = vmatmul.mubr.bf16.gmra.mxu1 %v12969_v53 }
 0x3b2   : > { %v4745_v5 = vor.u32 %v4744_v47, %v13900_v40  ;;  %v4768_v12 = vsel %vm11437_vm5, %v4727_v16, 0  ;;  %v4769_v11 = vsel %vm11437_vm5, %v4729_v25, 0  ;;  %v4770_v59 = vsel %vm11437_vm5, %v4731_v54, 0  ;;  %5596 = vmatprep.mubr.bf16.mxu1 %v12973_v50  ;;  %9820 = vmatpush3.bf16.msra.mxu1 %v10333_v62  ;;  %v10320_v44 = vld [vmem:[#allocation11 + $0x30] sm:$0xff]   ;;  %v10325_v40 = vld [vmem:[#allocation11 + $0x68] sm:$0xff]   ;;  %v10332_v62 = vld [vmem:[#allocation11 + $0x60] sm:$0xff]  }
 0x3b3   : > { %v12947_v38 = vsel %vm11437_vm5, %v4733_v15, 0  ;;  %v12951_v28 = vsel %vm11437_vm5, %v4735_v58, 0  ;;  %v12955_v17 = vsel %vm11437_vm5, %v4737_v24, 0  ;;  %v12959_v39 = vsel %vm11437_vm5, %v4739_v23, 0  ;;  %9821 = vmatprep.subr.bf16.mxu1 %v12971_v34  ;;  %v13002_v15 = vld [vmem:[#allocation2 + $0x48] ss:$12 sps:$4 sm:$0xff]  }
 0x3b4   : > { %v12963_v60 = vsel %vm11437_vm5, %v4741_v8, 0  ;;  %v12967_v46 = vsel %vm11437_vm5, %v4745_v5, 0  ;;  %v8439_v63 = vcombine.low %v4762_v51, %v4762_v51  ;;  %v8440_v14 = vcombine.high %v4762_v51, %v4762_v51  ;;  %v13004_v58 = vld [vmem:[#allocation2 + $0x64] ss:$12 sps:$4 sm:$0xff]  }
 0x3b5   : > { %v8441_v61 = vcombine.low %v4763_v4, %v4763_v4  ;;  %v8442_v35 = vcombine.high %v4763_v4, %v4763_v4  ;;  %v8443_v36 = vcombine.low %v4764_v18, %v4764_v18  ;;  %v8444_v33 = vcombine.high %v4764_v18, %v4764_v18  ;;  %v10379_v8 = vld [vmem:[#allocation11 + $0x88] sm:$0xff]   ;;  %v10387_v18 = vld [vmem:[#allocation11 + $0x80] sm:$0xff]  }
 0x3b6   : > { %v8445_v31 = vcombine.low %v4765_v42, %v4765_v42  ;;  %v8446_v6 = vcombine.high %v4765_v42, %v4765_v42  ;;  %v8447_v52 = vcombine.low %v4766_v48, %v4766_v48  ;;  %v8448_v45 = vcombine.high %v4766_v48, %v4766_v48  ;;  %4890 = vst [vmem:[#allocation2 + $0x20] sm:$0xf] %v8439_v63  ;;  %v10327_v5 = vld [vmem:[#allocation11 + $0x28] sm:$0xff]   ;;  %v13011_v42 = vld [vmem:[#allocation2 + $0x7c] ss:$12 sps:$4 sm:$0xff]  }
 0x3b7   : > { %v8449_v29 = vcombine.low %v4767_v21, %v4767_v21  ;;  %4891 = vst [vmem:[#allocation2 + $0x2c] sm:$0xf] %v8440_v14  ;;  %4892 = vst [vmem:[#allocation2 + $0x38] sm:$0xf] %v8441_v61  ;;  %v8450_v16 = vcombine.high %v4767_v21, %v4767_v21  ;;  %v8451_v25 = vcombine.low %v4768_v12, %v4768_v12  ;;  %9822 = vmatpush3.bf16.msra.mxu1 %v12971_v34  ;;  %v13009_v4 = vld [vmem:[#allocation2 + $0x60] ss:$12 sps:$4 sm:$0xff]  }
 0x3b8   : > { %v8452_v56 = vcombine.high %v4768_v12, %v4768_v12  ;;  %v8453_v26 = vcombine.low %v4769_v11, %v4769_v11  ;;  %4893 = vst [vmem:[#allocation2 + $0x44] sm:$0xf] %v8442_v35  ;;  %4896 = vst [vmem:[#allocation2 + $0x68] sm:$0xf] %v8445_v31  ;;  %v8454_v3 = vcombine.high %v4769_v11, %v4769_v11  ;;  %9823 = vmatprep.subr.bf16.mxu1 %v10363_v43  ;;  %v10335_v12 = vld [vmem:[#allocation11 + $0x20] sm:$0xff]   ;;  %v10340_v11 = vld [vmem:[#allocation11 + $0x58] sm:$0xff]  }
 0x3b9   : > { %4894 = vst [vmem:[#allocation2 + $0x50] sm:$0xf] %v8443_v36  ;;  %4895 = vst [vmem:[#allocation2 + $0x5c] sm:$0xf] %v8444_v33  ;;  %v8455_v0 = vcombine.low %v4770_v59, %v4770_v59  ;;  %v8456_v2 = vcombine.high %v4770_v59, %v4770_v59  ;;  %v8457_v57 = vcombine.low %v12947_v38, %v12947_v38  ;;  %5597 = vmatmul.mubr.bf16.gmra.mxu1 %v13002_v15  ;;  %v10342_v59 = vld [vmem:[#allocation11 + $0x18] sm:$0xff]   ;;  %v10350_v63 = vld [vmem:[#allocation11 + $0x10] sm:$0xff]  }
 0x3ba   : > { %4897 = vst [vmem:[#allocation2 + $0x74] sm:$0xf] %v8446_v6  ;;  %4900 = vst [vmem:[#allocation2 + $0x98] sm:$0xf] %v8449_v29  ;;  %v8458_v32 = vcombine.high %v12947_v38, %v12947_v38  ;;  %v8459_v37 = vcombine.low %v12951_v28, %v12951_v28  ;;  %v8460_v10 = vcombine.high %v12951_v28, %v12951_v28  ;;  %5604 = vmatprep.mubr.bf16.mxu1 %v13004_v58  ;;  %v13015_v38 = vld [vmem:[#allocation2 + $0x78] ss:$12 sps:$4 sm:$0xff]  }
 0x3bb   : > { %4898 = vst [vmem:[#allocation2 + $0x80] sm:$0xf] %v8447_v52  ;;  %4899 = vst [vmem:[#allocation2 + $0x8c] sm:$0xf] %v8448_v45  ;;  %v8461_v20 = vcombine.low %v12955_v17, %v12955_v17  ;;  %v8462_v7 = vcombine.high %v12955_v17, %v12955_v17  ;;  %v8463_v41 = vcombine.low %v12959_v39, %v12959_v39  ;;  %9824 = vmatpush3.bf16.msra.mxu1 %v10363_v43  ;;  %v13017_v28 = vld [vmem:[#allocation2 + $0x94] ss:$12 sps:$4 sm:$0xff]  }
 0x3bc   : > { %4901 = vst [vmem:[#allocation2 + $0xa4] sm:$0xf] %v8450_v16  ;;  %4904 = vst [vmem:[#allocation2 + $0xc8] sm:$0xf] %v8453_v26  ;;  %v8464_v30 = vcombine.high %v12959_v39, %v12959_v39  ;;  %v8465_v47 = vcombine.low %v12963_v60, %v12963_v60  ;;  %v8466_v51 = vcombine.high %v12963_v60, %v12963_v60  ;;  %9825 = vmatprep.subr.bf16.mxu1 %v10371_v13  ;;  %v10347_v39 = vld [vmem:[#allocation11 + $0x50] sm:$0xff]   ;;  %v10355_v14 = vld [vmem:[#allocation11 + $0x48] sm:$0xff]  }
 0x3bd   : > { %4902 = vst [vmem:[#allocation2 + $0xb0] sm:$0xf] %v8451_v25  ;;  %4903 = vst [vmem:[#allocation2 + $0xbc] sm:$0xf] %v8452_v56  ;;  %v8469_v19 = vcombine.low %v12967_v46, %v12967_v46  ;;  %v8470_v54 = vcombine.high %v12967_v46, %v12967_v46  ;;  %v10393_v46 = vld [vmem:[#allocation11 + $0x1f8] sm:$0xff]   ;;  %v10357_v61 = vld [vmem:[#allocation11 + $0x8] sm:$0xff]  }
 0x3be   : > { %4905 = vst [vmem:[#allocation2 + $0xd4] sm:$0xf] %v8454_v3  ;;  %4908 = vst [vmem:[#allocation2 + $0xf8] sm:$0xf] %v8457_v57  ;;  %v10303_v24 = vld [vmem:[#allocation2 + $0x20] ss:$12 sps:$4 sm:$0xff]  }
 0x3bf   : > { %4906 = vst [vmem:[#allocation2 + $0xe0] sm:$0xf] %v8455_v0  ;;  %4907 = vst [vmem:[#allocation2 + $0xec] sm:$0xf] %v8456_v2  ;;  %v10305_v1 = vld [vmem:[#allocation2 + $0x38] ss:$12 sps:$4 sm:$0xff]   ;;  %9783 = vmatprep.mubr.bf16.mxu0 %v10303_v24  ;;  %9826 = vmatpush3.bf16.msra.mxu1 %v10371_v13 }
 0x3c0   : > { %4909 = vst [vmem:[#allocation2 + $0x104] sm:$0xf] %v8458_v32  ;;  %4912 = vst [vmem:[#allocation2 + $0x128] sm:$0xf] %v8461_v20  ;;  %v10309_v23 = vld [vmem:[#allocation2 + $0x50] ss:$12 sps:$4 sm:$0xff]   ;;  %9784 = vmatmul.mubr.bf16.vlgmr.msra.gmra.mxu0 %v10305_v1  ;;  %9827 = vmatprep.subr.bf16.mxu1 %v10379_v8 }
 0x3c1   : > { %4910 = vst [vmem:[#allocation2 + $0x110] sm:$0xf] %v8459_v37  ;;  %4911 = vst [vmem:[#allocation2 + $0x11c] sm:$0xf] %v8460_v10  ;;  %9787 = vmatprep.mubr.bf16.mxu0 %v10309_v23  ;;  %9328 = vmatpush3.bf16.msra.mxu0 %v10312_v27  ;;  %v10311_v48 = vld [vmem:[#allocation2 + $0x68] ss:$12 sps:$4 sm:$0xff]  }
 0x3c2   : > { %4913 = vst [vmem:[#allocation2 + $0x134] sm:$0xf] %v8462_v7  ;;  %4916 = vst [vmem:[#allocation2 + $0x158] sm:$0xf] %v8465_v47  ;;  %9329 = vmatprep.subr.bf16.mxu0 %v10317_v55  ;;  %5605 = vmatmul.mubr.bf16.gmra.mxu1 %v13009_v4  ;;  %v10316_v21 = vld [vmem:[#allocation2 + $0x80] ss:$12 sps:$4 sm:$0xff]  }
 0x3c3   : > { %4914 = vst [vmem:[#allocation2 + $0x140] sm:$0xf] %v8463_v41  ;;  %4915 = vst [vmem:[#allocation2 + $0x14c] sm:$0xf] %v8464_v30  ;;  %5612 = vmatprep.mubr.bf16.mxu1 %v13011_v42  ;;  %9828 = vmatpush3.bf16.msra.mxu1 %v10379_v8  ;;  %v10319_v17 = vld [vmem:[#allocation2 + $0x98] ss:$12 sps:$4 sm:$0xff]  }
 0x3c4   : > { %4917 = vst [vmem:[#allocation2 + $0x164] sm:$0xf] %v8466_v51  ;;  %4920 = vst [vmem:[#allocation2 + $0x188] sm:$0xf] %v8469_v19  ;;  %9829 = vmatprep.subr.bf16.mxu1 %v10387_v18  ;;  %v10324_v60 = vld [vmem:[#allocation2 + $0xb0] ss:$12 sps:$4 sm:$0xff]  }
 0x3c5   : > { %4921 = vst [vmem:[#allocation2 + $0x194] sm:$0xf] %v8470_v54  ;;  %9330 = vmatpush3.bf16.msra.mxu0 %v10320_v44  ;;  %v13021_v34 = vld [vmem:[#allocation2 + $0x90] ss:$12 sps:$4 sm:$0xff]   ;;  %v13023_v35 = vld [vmem:[#allocation2 + $0xac] ss:$12 sps:$4 sm:$0xff]  }
 0x3c6   : > { %9331 = vmatprep.subr.bf16.mxu0 %v10325_v40  ;;  %v10326_v36 = vld [vmem:[#allocation2 + $0xc8] ss:$12 sps:$4 sm:$0xff]   ;;  %v10361_v33 = vld [vmem:[#allocation11 + $0x40] sm:$0xff]   ;;  %v10331_v31 = vld [vmem:[#allocation2 + $0xe0] ss:$12 sps:$4 sm:$0xff]  }
 0x3c7   : > { %9830 = vmatpush3.bf16.msra.mxu1 %v10387_v18  ;;  %v10362_v6 = vld [vmem:[#allocation11] sm:$0xff]   ;;  %v10367_v52 = vld [vmem:[#allocation11 + $0x238] sm:$0xff]   ;;  %v13033_v56 = vld [vmem:[#allocation2 + $0xc0] ss:$12 sps:$4 sm:$0xff]  }
 0x3c8   : > { %9788 = vmatmul.mubr.bf16.gmra.mxu0 %v10311_v48  ;;  %9463 = vmatprep.subr.bf16.mxu1 %v10393_v46  ;;  %v13027_v45 = vld [vmem:[#allocation2 + $0xa8] ss:$12 sps:$4 sm:$0xff]   ;;  %v13029_v29 = vld [vmem:[#allocation2 + $0xc4] ss:$12 sps:$4 sm:$0xff]   ;;  %v13049_v7 = vld [vmem:[#allocation2 + $0x10c] ss:$12 sps:$4 sm:$0xff]  }
 0x3c9   : > { %9791 = vmatprep.mubr.bf16.mxu0 %v10316_v21  ;;  %9332 = vmatpush3.bf16.msra.mxu0 %v10327_v5  ;;  %v10334_v16 = vld [vmem:[#allocation2 + $0xf8] ss:$12 sps:$4 sm:$0xff]   ;;  %v10339_v25 = vld [vmem:[#allocation2 + $0x110] ss:$12 sps:$4 sm:$0xff]   ;;  %v10341_v3 = vld [vmem:[#allocation2 + $0x128] ss:$12 sps:$4 sm:$0xff]  }
 0x3ca   : > { %9333 = vmatprep.subr.bf16.mxu0 %v10332_v62  ;;  %5613 = vmatmul.mubr.bf16.gmra.mxu1 %v13015_v38  ;;  %v13035_v26 = vld [vmem:[#allocation2 + $0xdc] ss:$12 sps:$4 sm:$0xff]   ;;  %v10346_v0 = vld [vmem:[#allocation2 + $0x140] ss:$12 sps:$4 sm:$0xff]   ;;  %v13039_v2 = vld [vmem:[#allocation2 + $0xd8] ss:$12 sps:$4 sm:$0xff]  }
 0x3cb   : > { %5620 = vmatprep.mubr.bf16.mxu1 %v13017_v28  ;;  %v13041_v57 = vld [vmem:[#allocation2 + $0xf4] ss:$12 sps:$4 sm:$0xff]   ;;  %v10349_v32 = vld [vmem:[#allocation2 + $0x158] ss:$12 sps:$4 sm:$0xff]   ;;  %v10354_v37 = vld [vmem:[#allocation2 + $0x170] ss:$12 sps:$4 sm:$0xff]  }
 0x3cc   : > { %v13045_v10 = vld [vmem:[#allocation2 + $0xf0] ss:$12 sps:$4 sm:$0xff]   ;;  %v10527_v20 = vld [vmem:[#allocation2] sm:$0xff]  ;;  %v10356_v41 = vld [vmem:[#allocation2 + $0x188] ss:$12 sps:$4 sm:$0xff]  }
 0x3cd   : > { %9334 = vmatpush3.bf16.msra.mxu0 %v10335_v12  ;;  %v13047_v43 = vcombine.high %v10527_v20, %v10527_v20  ;;  %v13054_v30 = vcombine.low %v10527_v20, %v10527_v20  ;;  %v13056_v47 = vld [vmem:[#allocation2 + $0x108] ss:$12 sps:$4 sm:$0xff]   ;;  %v13058_v51 = vld [vmem:[#allocation2 + $0x124] ss:$12 sps:$4 sm:$0xff]   ;;  %v13064_v27 = vld [vmem:[#allocation2 + $0x120] ss:$12 sps:$4 sm:$0xff]  }
 0x3ce   : > { %9335 = vmatprep.subr.bf16.mxu0 %v10340_v11  ;;  %v10375_v19 = vld [vmem:[#allocation11 + $0x230] sm:$0xff]   ;;  %v10383_v54 = vld [vmem:[#allocation11 + $0x228] sm:$0xff]   ;;  %v10391_v13 = vld [vmem:[#allocation11 + $0x220] sm:$0xff]  }
 0x3cf   : > { %v13066_v55 = vld [vmem:[#allocation2 + $0x13c] ss:$12 sps:$4 sm:$0xff]   ;;  %v13072_v24 = vld [vmem:[#allocation2 + $0x138] ss:$12 sps:$4 sm:$0xff]   ;;  %v13074_v1 = vld [vmem:[#allocation2 + $0x154] ss:$12 sps:$4 sm:$0xff]  }
 0x3d0   : > { %9792 = vmatmul.mubr.bf16.gmra.mxu0 %v10319_v17  ;;  %v10407_v23 = vld [vmem:[#allocation11 + $0x210] sm:$0xff]   ;;  %v13080_v44 = vld [vmem:[#allocation2 + $0x150] ss:$12 sps:$4 sm:$0xff]   ;;  %v10396_v17 = vld [vmem:[#allocation2 + $0x38] ss:$12 sps:$4 sm:$0xff]  }
 0x3d1   : > { %9795 = vmatprep.mubr.bf16.mxu0 %v10324_v60  ;;  %9336 = vmatpush3.bf16.msra.mxu0 %v10342_v59  ;;  %v13082_v8 = vld [vmem:[#allocation2 + $0x16c] ss:$12 sps:$4 sm:$0xff]   ;;  %v13088_v5 = vld [vmem:[#allocation12 + $0x38] sm:$0xff]   ;;  %v10404_v60 = vld [vmem:[#allocation11 + $0x1a8] sm:$0xff]  }
 0x3d2   : > { %9337 = vmatprep.subr.bf16.mxu0 %v10347_v39  ;;  %5621 = vmatmul.mubr.bf16.gmra.mxu1 %v13021_v34  ;;  %v10425_v40 = vld [vmem:[#allocation11 + $0x200] sm:$0xff]   ;;  %v13090_v62 = vld [vmem:[#allocation2 + $0x168] ss:$12 sps:$4 sm:$0xff]   ;;  %v10390_v18 = vld [vmem:[#allocation2 + $0x184] ss:$12 sps:$4 sm:$0xff]  }
 0x3d3   : > { %5628 = vmatprep.mubr.bf16.mxu1 %v13023_v35  ;;  %v10392_v48 = vld [vmem:[#allocation2 + $0x8] ss:$12 sps:$4 sm:$0xff]   ;;  %v10388_v21 = vld [vmem:[#allocation2 + $0x180] ss:$12 sps:$4 sm:$0xff]   ;;  %v10399_v46 = vld [vmem:[#allocation2 + $0x50] ss:$12 sps:$4 sm:$0xff]  }
 0x3d4   : > { %v10395_v12 = vld [vmem:[#allocation11 + $0x1b8] sm:$0xff]   ;;  %v10394_v11 = vld [vmem:[#allocation2 + $0x20] ss:$12 sps:$4 sm:$0xff]  }
 0x3d5   : > { %9338 = vmatpush3.bf16.msra.mxu0 %v10350_v63  ;;  %v10397_v59 = vld [vmem:[#allocation11 + $0x1f0] sm:$0xff]   ;;  %v10409_v63 = vld [vmem:[#allocation11 + $0x1a0] sm:$0xff]  }
 0x3d6   : > { %9339 = vmatprep.subr.bf16.mxu0 %v10355_v14  ;;  %v10400_v39 = vld [vmem:[#allocation11 + $0x1b0] sm:$0xff]   ;;  %v10411_v14 = vld [vmem:[#allocation11 + $0x1d8] sm:$0xff]  }
 0x3d8   : > { %9796 = vmatmul.mubr.bf16.gmra.mxu0 %v10326_v36  ;;  %v10405_v36 = vld [vmem:[#allocation2 + $0x98] ss:$12 sps:$4 sm:$0xff]  }
 0x3d9   : > { %9799 = vmatprep.mubr.bf16.mxu0 %v10331_v31  ;;  %9340 = vmatpush3.bf16.msra.mxu0 %v10357_v61  ;;  %v10413_v61 = vld [vmem:[#allocation11 + $0x198] sm:$0xff]   ;;  %v10420_v31 = vld [vmem:[#allocation11 + $0x1c8] sm:$0xff]  }
 0x3da   : > { %9341 = vmatprep.subr.bf16.mxu0 %v10361_v33  ;;  %5629 = vmatmul.mubr.bf16.gmra.mxu1 %v13027_v45  ;;  %v10418_v33 = vld [vmem:[#allocation11 + $0x190] sm:$0xff]  }
 0x3db   : > { %5636 = vmatprep.mubr.bf16.mxu1 %v13029_v29 }
 0x3dd   : > { %9342 = vmatpush3.bf16.msra.mxu0 %v10362_v6  ;;  %v10422_v6 = vld [vmem:[#allocation11 + $0x188] sm:$0xff]  }
 0x3de   : > { %9863 = vmatprep.subr.bf16.mxu0 %v10367_v52 }
 0x3e0   : > { %9800 = vmatmul.mubr.bf16.gmra.mxu0 %v10334_v16  ;;  %v10427_v16 = vld [vmem:[#allocation11 + $0x180] sm:$0xff]  }
 0x3e1   : > { %9803 = vmatprep.mubr.bf16.mxu0 %v10339_v25  ;;  %v10412_v25 = vld [vmem:[#allocation2 + $0xe0] ss:$12 sps:$4 sm:$0xff]  }
 0x3e2   : > { %5637 = vmatmul.mubr.bf16.gmra.mxu1 %v13033_v56 }
 0x3e3   : > { %5644 = vmatprep.mubr.bf16.mxu1 %v13035_v26 }
 0x3e8   : > { %9804 = vmatmul.mubr.bf16.gmra.mxu0 %v10341_v3  ;;  %v10419_v3 = vld [vmem:[#allocation2 + $0x128] ss:$12 sps:$4 sm:$0xff]  }
 0x3e9   : > { %9807 = vmatprep.mubr.bf16.mxu0 %v10346_v0  ;;  %v10421_v0 = vld [vmem:[#allocation2 + $0x140] ss:$12 sps:$4 sm:$0xff]  }
 0x3ea   : > { %5645 = vmatmul.mubr.bf16.gmra.mxu1 %v13039_v2 }
 0x3eb   : > { %5652 = vmatprep.mubr.bf16.mxu1 %v13041_v57 }
 0x3f0   : > { %9808 = vmatmul.mubr.bf16.gmra.mxu0 %v10349_v32 }
 0x3f1   : > { %9811 = vmatprep.mubr.bf16.mxu0 %v10354_v37 }
 0x3f2   : > { %5653 = vmatmul.mubr.bf16.gmra.mxu1 %v13045_v10 }
 0x3f3   : > { %5660 = vmatprep.mubr.bf16.mxu1 %v13049_v7 }
 0x3f8   : > { %9812 = vmatmul.mubr.bf16.gmra.mxu0 %v10356_v41 }
 0x3f9   : > { %6302 = vmatprep.mubr.bf16.mxu0 %v13047_v43 }
 0x3fa   : > { %5661 = vmatmul.mubr.bf16.gmra.mxu1 %v13056_v47 }
 0x3fb   : > { %5668 = vmatprep.mubr.bf16.mxu1 %v13058_v51 }
 0x400   : > { %6303 = vmatmul.mubr.bf16.vlgmr.msra.gmra.mxu0 %v13054_v30 }
 0x401   : > { %6310 = vmatprep.mubr.bf16.mxu0 %v12883_v9  ;;  %9864 = vmatpush3.bf16.msra.mxu0 %v10367_v52  ;;  %v10398_v9 = vld [vmem:[#allocation11 + $0x218] sm:$0xff]  }
 0x402   : > { %9865 = vmatprep.subr.bf16.mxu0 %v10375_v19  ;;  %5669 = vmatmul.mubr.bf16.gmra.mxu1 %v13064_v27  ;;  %v10408_v52 = vld [vmem:[#allocation2 + $0xb0] ss:$12 sps:$4 sm:$0xff]  }
 0x403   : > { %5676 = vmatprep.mubr.bf16.mxu1 %v13066_v55 }
 0x405   : > { %9866 = vmatpush3.bf16.msra.mxu0 %v10375_v19 }
 0x406   : > { %9867 = vmatprep.subr.bf16.mxu0 %v10383_v54 }
 0x408   : > { %6311 = vmatmul.mubr.bf16.gmra.mxu0 %v12881_v49  ;;  %v10416_v49 = vld [vmem:[#allocation11 + $0x208] sm:$0xff]  }
 0x409   : > { %6318 = vmatprep.mubr.bf16.mxu0 %v12911_v22  ;;  %9868 = vmatpush3.bf16.msra.mxu0 %v10383_v54 }
 0x40a   : > { %9869 = vmatprep.subr.bf16.mxu0 %v10391_v13  ;;  %5677 = vmatmul.mubr.bf16.gmra.mxu1 %v13072_v24 }
 0x40b   : > { %5684 = vmatprep.mubr.bf16.mxu1 %v13074_v1 }
 0x40d   : > { %9870 = vmatpush3.bf16.msra.mxu0 %v10391_v13  ;;  %v10434_v13 = vld [vmem:[#allocation12 + $0x30] sm:$0xff]  }
 0x40e   : > { %9871 = vmatprep.subr.bf16.mxu0 %v10398_v9 }
 0x410   : > { %6319 = vmatmul.mubr.bf16.gmra.mxu0 %v12969_v53 }
 0x411   : > { %6326 = vmatprep.mubr.bf16.mxu0 %v12973_v50  ;;  %9872 = vmatpush3.bf16.msra.mxu0 %v10398_v9 }
 0x412   : > { %9873 = vmatprep.subr.bf16.mxu0 %v10407_v23  ;;  %5685 = vmatmul.mubr.bf16.gmra.mxu1 %v13080_v44 }
 0x413   : > { %5692 = vmatprep.mubr.bf16.mxu1 %v13082_v8 }
 0x415   : > { %9874 = vmatpush3.bf16.msra.mxu0 %v10407_v23 }
 0x416   : > { %9875 = vmatprep.subr.bf16.mxu0 %v10416_v49 }
 0x418   : > { %6327 = vmatmul.mubr.bf16.gmra.mxu0 %v13002_v15 }
 0x419   : > { %6334 = vmatprep.mubr.bf16.mxu0 %v13004_v58  ;;  %9876 = vmatpush3.bf16.msra.mxu0 %v10416_v49 }
 0x41a   : > { %9877 = vmatprep.subr.bf16.mxu0 %v10425_v40  ;;  %5693 = vmatmul.mubr.bf16.gmra.mxu1 %v13090_v62 }
 0x41b   : > { %5700 = vmatprep.mubr.bf16.mxu1 %v10390_v18  ;;  %v10436_v18 = vld [vmem:[#allocation2 + $0x78] ss:$12 sps:$4 sm:$0xff]  }
 0x41d   : > { %9878 = vmatpush3.bf16.msra.mxu0 %v10425_v40 }
 0x41e   : > { %9911 = vmatprep.subr.bf16.mxu0 %v13088_v5 }
 0x420   : > { %6335 = vmatmul.mubr.bf16.gmra.mxu0 %v13009_v4 }
 0x421   : > { %6342 = vmatprep.mubr.bf16.mxu0 %v13011_v42  ;;  %v10402_v42 = vld [vmem:[#allocation11 + $0x1e8] sm:$0xff]  }
 0x422   : > { %5701 = vmatmul.mubr.bf16.gmra.mxu1 %v10388_v21 }
 0x423   : > { %9831 = vmatprep.mubr.bf16.mxu1 %v10392_v48 }
 0x428   : > { %6343 = vmatmul.mubr.bf16.gmra.mxu0 %v13015_v38  ;;  %v10406_v38 = vld [vmem:[#allocation11 + $0x1e0] sm:$0xff]  }
 0x429   : > { %6350 = vmatprep.mubr.bf16.mxu0 %v13017_v28  ;;  %v10401_v28 = vld [vmem:[#allocation2 + $0x68] ss:$12 sps:$4 sm:$0xff]  }
 0x42a   : > { %9832 = vmatmul.mubr.bf16.vlgmr.msra.gmra.mxu1 %v10394_v11 }
 0x42b   : > { %9464 = vmatpush3.bf16.msra.mxu1 %v10395_v12  ;;  %9835 = vmatprep.mubr.bf16.mxu1 %v10396_v17  ;;  %v10444_v12 = vld [vmem:[#allocation2 + $0x94] ss:$12 sps:$4 sm:$0xff]   ;;  %v10446_v17 = vld [vmem:[#allocation12 + $0x20] sm:$0xff]  }
 0x42c   : > { %9465 = vmatprep.subr.bf16.mxu1 %v10397_v59  ;;  %v10432_v59 = vld [vmem:[#allocation2 + $0x80] ss:$12 sps:$4 sm:$0xff]  }
 0x42f   : > { %9466 = vmatpush3.bf16.msra.mxu1 %v10400_v39 }
 0x430   : > { %6351 = vmatmul.mubr.bf16.gmra.mxu0 %v13021_v34  ;;  %9467 = vmatprep.subr.bf16.mxu1 %v10402_v42  ;;  %v10403_v34 = vld [vmem:[#allocation2 + $0x80] ss:$12 sps:$4 sm:$0xff]   ;;  %v10433_v42 = vld [vmem:[#allocation2 + $0x98] ss:$12 sps:$4 sm:$0xff]  }
 0x431   : > { %6358 = vmatprep.mubr.bf16.mxu0 %v13023_v35  ;;  %v10415_v35 = vld [vmem:[#allocation11 + $0x1d0] sm:$0xff]  }
 0x432   : > { %9836 = vmatmul.mubr.bf16.gmra.mxu1 %v10399_v46 }
 0x433   : > { %9839 = vmatprep.mubr.bf16.mxu1 %v10401_v28  ;;  %9468 = vmatpush3.bf16.msra.mxu1 %v10404_v60 }
 0x434   : > { %9469 = vmatprep.subr.bf16.mxu1 %v10406_v38 }
 0x437   : > { %9470 = vmatpush3.bf16.msra.mxu1 %v10409_v63 }
 0x438   : > { %6359 = vmatmul.mubr.bf16.gmra.mxu0 %v13027_v45  ;;  %9471 = vmatprep.subr.bf16.mxu1 %v10411_v14  ;;  %v10424_v45 = vld [vmem:[#allocation11 + $0x1c0] sm:$0xff]   ;;  %v10452_v14 = vld [vmem:[#allocation12 + $0x18] sm:$0xff]  }
 0x439   : > { %6366 = vmatprep.mubr.bf16.mxu0 %v13029_v29  ;;  %v10410_v29 = vld [vmem:[#allocation2 + $0xc8] ss:$12 sps:$4 sm:$0xff]  }
 0x43a   : > { %9840 = vmatmul.mubr.bf16.gmra.mxu1 %v10403_v34 }
 0x43b   : > { %9843 = vmatprep.mubr.bf16.mxu1 %v10405_v36  ;;  %9472 = vmatpush3.bf16.msra.mxu1 %v10413_v61  ;;  %v10442_v36 = vld [vmem:[#allocation2 + $0x90] ss:$12 sps:$4 sm:$0xff]  }
 0x43c   : > { %9473 = vmatprep.subr.bf16.mxu1 %v10415_v35 }
 0x43f   : > { %9474 = vmatpush3.bf16.msra.mxu1 %v10418_v33 }
 0x440   : > { %6367 = vmatmul.mubr.bf16.gmra.mxu0 %v13033_v56  ;;  %9475 = vmatprep.subr.bf16.mxu1 %v10420_v31  ;;  %v10414_v56 = vld [vmem:[#allocation2 + $0xf8] ss:$12 sps:$4 sm:$0xff]  }
 0x441   : > { %6374 = vmatprep.mubr.bf16.mxu0 %v13035_v26  ;;  %v10417_v26 = vld [vmem:[#allocation2 + $0x110] ss:$12 sps:$4 sm:$0xff]  }
 0x442   : > { %9844 = vmatmul.mubr.bf16.gmra.mxu1 %v10408_v52 }
 0x443   : > { %9847 = vmatprep.mubr.bf16.mxu1 %v10410_v29  ;;  %9476 = vmatpush3.bf16.msra.mxu1 %v10422_v6  ;;  %v10450_v6 = vld [vmem:[#allocation2 + $0xac] ss:$12 sps:$4 sm:$0xff]  }
 0x444   : > { %9477 = vmatprep.subr.bf16.mxu1 %v10424_v45  ;;  %v10435_v45 = vld [vmem:[#allocation2 + $0xb0] ss:$12 sps:$4 sm:$0xff]  }
 0x447   : > { %9478 = vmatpush3.bf16.msra.mxu1 %v10427_v16  ;;  %v10458_v16 = vld [vmem:[#allocation12 + $0x10] sm:$0xff]  }
 0x448   : > { %6375 = vmatmul.mubr.bf16.gmra.mxu0 %v13039_v2  ;;  %v10423_v2 = vld [vmem:[#allocation2 + $0x158] ss:$12 sps:$4 sm:$0xff]  }
 0x449   : > { %6382 = vmatprep.mubr.bf16.mxu0 %v13041_v57  ;;  %v10426_v57 = vld [vmem:[#allocation2 + $0x170] ss:$12 sps:$4 sm:$0xff]  }
 0x44a   : > { %9848 = vmatmul.mubr.bf16.gmra.mxu1 %v10412_v25  ;;  %v10439_v25 = vld [vmem:[#allocation2 + $0xc8] ss:$12 sps:$4 sm:$0xff]  }
 0x44b   : > { %9851 = vmatprep.mubr.bf16.mxu1 %v10414_v56 }
 0x450   : > { %6383 = vmatmul.mubr.bf16.gmra.mxu0 %v13045_v10 }
 0x451   : > { %6390 = vmatprep.mubr.bf16.mxu0 %v13049_v7 }
 0x452   : > { %9852 = vmatmul.mubr.bf16.gmra.mxu1 %v10417_v26 }
 0x453   : > { %9855 = vmatprep.mubr.bf16.mxu1 %v10419_v3 }
 0x458   : > { %6391 = vmatmul.mubr.bf16.gmra.mxu0 %v13056_v47 }
 0x459   : > { %6398 = vmatprep.mubr.bf16.mxu0 %v13058_v51 }
 0x45a   : > { %9856 = vmatmul.mubr.bf16.gmra.mxu1 %v10421_v0 }
 0x45b   : > { %9859 = vmatprep.mubr.bf16.mxu1 %v10423_v2 }
 0x460   : > { %6399 = vmatmul.mubr.bf16.gmra.mxu0 %v13064_v27  ;;  %v10438_v27 = vld [vmem:[#allocation2 + $0x7c] ss:$12 sps:$4 sm:$0xff]  }
 0x461   : > { %6406 = vmatprep.mubr.bf16.mxu0 %v13066_v55  ;;  %v10429_v55 = vld [vmem:[#allocation2 + $0x50] ss:$12 sps:$4 sm:$0xff]  }
 0x462   : > { %9860 = vmatmul.mubr.bf16.gmra.mxu1 %v10426_v57 }
 0x463   : > { %7137 = vmatprep.mubr.bf16.mxu1 %v12911_v22  ;;  %v10428_v22 = vld [vmem:[#allocation2 + $0x38] ss:$12 sps:$4 sm:$0xff]  }
 0x468   : > { %6407 = vmatmul.mubr.bf16.gmra.mxu0 %v13072_v24  ;;  %v10430_v24 = vld [vmem:[#allocation2 + $0x68] ss:$12 sps:$4 sm:$0xff]  }
 0x469   : > { %6414 = vmatprep.mubr.bf16.mxu0 %v13074_v1  ;;  %v9207_v32 = vpop.f32.mrf.mxu1 }
 0x46a   : > { %7138 = vmatmul.mubr.bf16.vlgmr.msra.gmra.mxu1 %v12969_v53 }
 0x46b   : > { %7145 = vmatprep.mubr.bf16.mxu1 %v12973_v50  ;;  %v9208_v37 = vpop.f32.mrf.mxu1 }
 0x46c   : > { %v9209_v10 = vadd.f32 %v9208_v37, %v9207_v32  ;;  %v10464_v37 = vld [vmem:[#allocation12 + $0x8] sm:$0xff]  }
 0x46d   : > { %v9210_v20 = vpop.f32.mrf.mxu1 }
 0x46f   : > { %v9211_v7 = vpop.f32.mrf.mxu1 }
 0x470   : > { %6415 = vmatmul.mubr.bf16.gmra.mxu0 %v13080_v44  ;;  %v9212_v41 = vadd.f32 %v9211_v7, %v9210_v20  ;;  %v10448_v7 = vld [vmem:[#allocation2 + $0xa8] ss:$12 sps:$4 sm:$0xff]  }
 0x471   : > { %6422 = vmatprep.mubr.bf16.mxu0 %v13082_v8  ;;  %v9213_v47 = vpop.f32.mrf.mxu1  ;;  %v10440_v8 = vld [vmem:[#allocation12 + $0x28] sm:$0xff]  }
 0x472   : > { %7146 = vmatmul.mubr.bf16.gmra.mxu1 %v13002_v15 }
 0x473   : > { %7153 = vmatprep.mubr.bf16.mxu1 %v13004_v58  ;;  %v9214_v53 = vpop.f32.mrf.mxu1 }
 0x474   : > { %v9215_v50 = vadd.f32 %v9214_v53, %v9213_v47 }
 0x475   : > { %v9216_v51 = vpop.f32.mrf.mxu1 }
 0x477   : > { %v9217_v19 = vpop.f32.mrf.mxu1 }
 0x478   : > { %6423 = vmatmul.mubr.bf16.gmra.mxu0 %v13090_v62  ;;  %v9218_v54 = vadd.f32 %v9217_v19, %v9216_v51  ;;  %v10469_v19 = vld [vmem:[#allocation12] sm:$0xff]  }
 0x479   : > { %9879 = vmatprep.mubr.bf16.mxu0 %v10428_v22  ;;  %v9219_v9 = vpop.f32.mrf.mxu1  ;;  %v10456_v22 = vld [vmem:[#allocation2 + $0xc4] ss:$12 sps:$4 sm:$0xff]  }
 0x47a   : > { %7154 = vmatmul.mubr.bf16.gmra.mxu1 %v13009_v4 }
 0x47b   : > { %7161 = vmatprep.mubr.bf16.mxu1 %v10438_v27  ;;  %v9220_v1 = vpop.f32.mrf.mxu1 }
 0x47c   : > { %v9221_v23 = vadd.f32 %v9220_v1, %v9219_v9 }
 0x47d   : > { %v9222_v44 = vpop.f32.mrf.mxu1 }
 0x47f   : > { %v9223_v4 = vpop.f32.mrf.mxu1 }
 0x480   : > { %v9785_v15 = vpop.f32.mrf.mxu0  ;;  %9880 = vmatmul.mubr.bf16.vlgmr.msra.gmra.mxu0 %v10429_v55  ;;  %v9224_v21 = vadd.f32 %v9223_v4, %v9222_v44  ;;  %v10447_v4 = vld [vmem:[#allocation2 + $0x110] ss:$12 sps:$4 sm:$0xff]  }
 0x481   : > { %9883 = vmatprep.mubr.bf16.mxu0 %v10430_v24  ;;  %9912 = vmatpush3.bf16.msra.mxu0 %v13088_v5  ;;  %v13124_v58 = vadd.f32 %v9785_v15, %v9215_v50  ;;  %v10441_v50 = vld [vmem:[#allocation2 + $0xe0] ss:$12 sps:$4 sm:$0xff]  }
 0x482   : > { %v5743_v49 = vpop.f32.mrf.mxu0  ;;  %9913 = vmatprep.subr.bf16.mxu0 %v10434_v13  ;;  %v9225_v5 = vpop.f32.mrf.mxu1  ;;  %7162 = vmatmul.mubr.bf16.gmra.mxu1 %v10436_v18 }
 0x483   : > { %v13126_v40 = vadd.f32 %v9209_v10, %v5743_v49  ;;  %7169 = vmatprep.mubr.bf16.mxu1 %v10444_v12  ;;  %v10454_v49 = vld [vmem:[#allocation2 + $0xc0] ss:$12 sps:$4 sm:$0xff]   ;;  %v10451_v12 = vld [vmem:[#allocation2 + $0x128] ss:$12 sps:$4 sm:$0xff]  }
 0x484   : > { %v9786_v62 = vpop.f32.mrf.mxu0  ;;  %v9226_v46 = vpop.f32.mrf.mxu1 }
 0x485   : > { %v13128_v48 = vadd.f32 %v9786_v62, %v9218_v54  ;;  %9914 = vmatpush3.bf16.msra.mxu0 %v10434_v13  ;;  %v9227_v38 = vadd.f32 %v9226_v46, %v9225_v5  ;;  %v10445_v54 = vld [vmem:[#allocation2 + $0xf8] ss:$12 sps:$4 sm:$0xff]   ;;  %v10462_v62 = vld [vmem:[#allocation2 + $0xdc] ss:$12 sps:$4 sm:$0xff]  }
 0x486   : > { %v5746_v11 = vpop.f32.mrf.mxu0  ;;  %9915 = vmatprep.subr.bf16.mxu0 %v10440_v8  ;;  %v9228_v63 = vpop.f32.mrf.mxu1 }
 0x487   : > { %v13130_v39 = vadd.f32 %v9212_v41, %v5746_v11 }
 0x488   : > { %v9789_v60 = vpop.f32.mrf.mxu0  ;;  %9884 = vmatmul.mubr.bf16.gmra.mxu0 %v10432_v59  ;;  %v9229_v33 = vpop.f32.mrf.mxu1 }
 0x489   : > { %9887 = vmatprep.mubr.bf16.mxu0 %v10433_v42  ;;  %9916 = vmatpush3.bf16.msra.mxu0 %v10440_v8  ;;  %v13134_v34 = vadd.f32 %v9789_v60, %v9227_v38  ;;  %v9230_v31 = vadd.f32 %v9229_v33, %v9228_v63  ;;  %v10453_v33 = vld [vmem:[#allocation2 + $0x140] ss:$12 sps:$4 sm:$0xff]  }
 0x48a   : > { %v5759_v28 = vpop.f32.mrf.mxu0  ;;  %9917 = vmatprep.subr.bf16.mxu0 %v10446_v17  ;;  %v9231_v29 = vpop.f32.mrf.mxu1  ;;  %7170 = vmatmul.mubr.bf16.gmra.mxu1 %v10442_v36 }
 0x48b   : > { %v13132_v61 = vadd.f32 %v9221_v23, %v5759_v28  ;;  %7177 = vmatprep.mubr.bf16.mxu1 %v10450_v6  ;;  %v10460_v28 = vld [vmem:[#allocation2 + $0xd8] ss:$12 sps:$4 sm:$0xff]  }
 0x48c   : > { %v9790_v35 = vpop.f32.mrf.mxu0  ;;  %v9232_v0 = vpop.f32.mrf.mxu1  ;;  %v10457_v6 = vld [vmem:[#allocation2 + $0x158] ss:$12 sps:$4 sm:$0xff]  }
 0x48d   : > { %9918 = vmatpush3.bf16.msra.mxu0 %v10446_v17  ;;  %v13138_v26 = vadd.f32 %v9790_v35, %v9230_v31  ;;  %v9233_v2 = vadd.f32 %v9232_v0, %v9231_v29  ;;  %v10468_v35 = vld [vmem:[#allocation2 + $0xf4] ss:$12 sps:$4 sm:$0xff]  }
 0x48e   : > { %v5762_v52 = vpop.f32.mrf.mxu0  ;;  %9919 = vmatprep.subr.bf16.mxu0 %v10452_v14  ;;  %v9234_v32 = vpop.f32.mrf.mxu1 }
 0x48f   : > { %v13136_v56 = vadd.f32 %v9224_v21, %v5762_v52 }
 0x490   : > { %v9793_v3 = vpop.f32.mrf.mxu0  ;;  %9888 = vmatmul.mubr.bf16.gmra.mxu0 %v10435_v45  ;;  %v9235_v41 = vpop.f32.mrf.mxu1 }
 0x491   : > { %9891 = vmatprep.mubr.bf16.mxu0 %v10439_v25  ;;  %9920 = vmatpush3.bf16.msra.mxu0 %v10452_v14  ;;  %v9236_v47 = vadd.f32 %v9235_v41, %v9234_v32  ;;  %v10459_v41 = vld [vmem:[#allocation2 + $0x170] ss:$12 sps:$4 sm:$0xff]  }
 0x492   : > { %v5775_v57 = vpop.f32.mrf.mxu0  ;;  %9921 = vmatprep.subr.bf16.mxu0 %v10458_v16  ;;  %v9237_v51 = vpop.f32.mrf.mxu1  ;;  %7178 = vmatmul.mubr.bf16.gmra.mxu1 %v10448_v7 }
 0x493   : > { %v13140_v10 = vadd.f32 %v9233_v2, %v5775_v57  ;;  %7185 = vmatprep.mubr.bf16.mxu1 %v10456_v22  ;;  %v10466_v57 = vld [vmem:[#allocation2 + $0xf0] ss:$12 sps:$4 sm:$0xff]   ;;  %v10463_v22 = vld [vmem:[#allocation2 + $0x188] ss:$12 sps:$4 sm:$0xff]  }
 0x494   : > { %v9794_v20 = vpop.f32.mrf.mxu0  ;;  %v9238_v13 = vpop.f32.mrf.mxu1 }
 0x495   : > { %9922 = vmatpush3.bf16.msra.mxu0 %v10458_v16  ;;  %v9239_v9 = vadd.f32 %v9238_v13, %v9237_v51 }
 0x496   : > { %v5778_v53 = vpop.f32.mrf.mxu0  ;;  %9923 = vmatprep.subr.bf16.mxu0 %v10464_v37  ;;  %v9240_v15 = vpop.f32.mrf.mxu1 }
 0x497   : > { %v13142_v27 = vadd.f32 %v9236_v47, %v5778_v53  ;;  %v13144_v1 = vadd.f32 %v9793_v3, %v9239_v9 }
 0x498   : > { %v9797_v55 = vpop.f32.mrf.mxu0  ;;  %9892 = vmatmul.mubr.bf16.gmra.mxu0 %v10441_v50  ;;  %v9241_v44 = vpop.f32.mrf.mxu1 }
 0x499   : > { %9895 = vmatprep.mubr.bf16.mxu0 %v10445_v54  ;;  %9924 = vmatpush3.bf16.msra.mxu0 %v10464_v37  ;;  %v9242_v8 = vadd.f32 %v9241_v44, %v9240_v15  ;;  %v10472_v15 = vld [vmem:[#allocation2 + $0x108] ss:$12 sps:$4 sm:$0xff]  }
 0x49a   : > { %v5791_v24 = vpop.f32.mrf.mxu0  ;;  %9925 = vmatprep.subr.bf16.mxu0 %v10469_v19  ;;  %v9243_v21 = vpop.f32.mrf.mxu1  ;;  %7186 = vmatmul.mubr.bf16.gmra.mxu1 %v10454_v49  ;;  %v10528_v44 = vld [vmem:[%s11064_s10] sm:$0xff]  }
 0x49b   : > { %v13146_v11 = vadd.f32 %v9794_v20, %v9242_v8  ;;  %7193 = vmatprep.mubr.bf16.mxu1 %v10462_v62  ;;  %v10474_v20 = vld [vmem:[#allocation2 + $0x10c] ss:$12 sps:$4 sm:$0xff]   ;;  %v10479_v8 = vld [vmem:[#allocation2 + $0x124] ss:$12 sps:$4 sm:$0xff]  }
 0x49c   : > { %v9798_v23 = vpop.f32.mrf.mxu0  ;;  %v9244_v5 = vpop.f32.mrf.mxu1 }
 0x49d   : > { %9926 = vmatpush3.bf16.msra.mxu0 %v10469_v19  ;;  %v9245_v17 = vadd.f32 %v9244_v5, %v9243_v21 }
 0x49e   : > { %v5794_v18 = vpop.f32.mrf.mxu0  ;;  %v9246_v60 = vpop.f32.mrf.mxu1 }
 0x49f   : > { %v13150_v46 = vadd.f32 %v9245_v17, %v5791_v24  ;;  %v10465_v24 = vld [vmem:[#allocation2 + $0x1a0] ss:$12 sps:$4 sm:$0xff]  }
 0x4a0   : > { %v13148_v59 = vpop.f32.mrf.mxu0  ;;  %9896 = vmatmul.mubr.bf16.gmra.mxu0 %v10447_v4  ;;  %v9247_v63 = vpop.f32.mrf.mxu1 }
 0x4a1   : > { %9899 = vmatprep.mubr.bf16.mxu0 %v10451_v12  ;;  %v9248_v14 = vadd.f32 %v9247_v63, %v9246_v60  ;;  %v10529_v63 = vld [vmem:[%s11064_s10 + $0x8] sm:$0xff]  }
 0x4a2   : > { %v5807_v42 = vpop.f32.mrf.mxu0  ;;  %v9249_v31 = vpop.f32.mrf.mxu1  ;;  %7194 = vmatmul.mubr.bf16.gmra.mxu1 %v10460_v28 }
 0x4a3   : > { %v13154_v52 = vadd.f32 %v9248_v14, %v5794_v18  ;;  %7201 = vmatprep.mubr.bf16.mxu1 %v10468_v35  ;;  %v10477_v14 = vld [vmem:[#allocation2 + $0x120] ss:$12 sps:$4 sm:$0xff]  }
 0x4a4   : > { %v13152_v38 = vpop.f32.mrf.mxu0  ;;  %v9250_v29 = vpop.f32.mrf.mxu1 }
 0x4a5   : > { %v9251_v16 = vadd.f32 %v9250_v29, %v9249_v31  ;;  %v10484_v31 = vld [vmem:[#allocation2 + $0x13c] ss:$12 sps:$4 sm:$0xff]  }
 0x4a6   : > { %v5810_v36 = vpop.f32.mrf.mxu0  ;;  %v9252_v3 = vpop.f32.mrf.mxu1 }
 0x4a7   : > { %v13160_v0 = vadd.f32 %v9797_v55, %v9251_v16 }
 0x4a8   : > { %v13156_v45 = vpop.f32.mrf.mxu0  ;;  %9900 = vmatmul.mubr.bf16.gmra.mxu0 %v10453_v33  ;;  %v9253_v32 = vpop.f32.mrf.mxu1 }
 0x4a9   : > { %9903 = vmatprep.mubr.bf16.mxu0 %v10457_v6  ;;  %v9254_v37 = vadd.f32 %v9253_v32, %v9252_v3 }
 0x4aa   : > { %v13158_v25 = vpop.f32.mrf.mxu0  ;;  %v9255_v47 = vpop.f32.mrf.mxu1  ;;  %7202 = vmatmul.mubr.bf16.gmra.mxu1 %v10466_v57 }
 0x4ab   : > { %v13166_v53 = vadd.f32 %v9798_v23, %v9254_v37  ;;  %7209 = vmatprep.mubr.bf16.mxu1 %v10474_v20 }
 0x4ac   : > { %v13162_v2 = vpop.f32.mrf.mxu0  ;;  %v9256_v51 = vpop.f32.mrf.mxu1 }
 0x4ad   : > { %v9257_v19 = vadd.f32 %v9256_v51, %v9255_v47  ;;  %v10482_v51 = vld [vmem:[#allocation2 + $0x138] ss:$12 sps:$4 sm:$0xff]  }
 0x4ae   : > { %v13164_v7 = vpop.f32.mrf.mxu0  ;;  %v9258_v55 = vpop.f32.mrf.mxu1 }
 0x4af   : > { %v13172_v13 = vadd.f32 %v9257_v19, %v5807_v42 }
 0x4b0   : > { %v13168_v50 = vpop.f32.mrf.mxu0  ;;  %9904 = vmatmul.mubr.bf16.gmra.mxu0 %v10459_v41  ;;  %v9259_v49 = vpop.f32.mrf.mxu1 }
 0x4b1   : > { %9907 = vmatprep.mubr.bf16.mxu0 %v10463_v22  ;;  %v9260_v23 = vadd.f32 %v9259_v49, %v9258_v55  ;;  %v10531_v22 = vld [vmem:[%s11064_s10 + $0x18] sm:$0xff]   ;;  %v10532_v55 = vld [vmem:[%s11064_s10 + $0x20] sm:$0xff]  }
 0x4b2   : > { %v13170_v54 = vpop.f32.mrf.mxu0  ;;  %v9261_v18 = vpop.f32.mrf.mxu1  ;;  %7210 = vmatmul.mubr.bf16.gmra.mxu1 %v10472_v15 }
 0x4b3   : > { %v13179_v4 = vadd.f32 %v9260_v23, %v5810_v36  ;;  %7217 = vmatprep.mubr.bf16.mxu1 %v10479_v8  ;;  %v10530_v36 = vld [vmem:[%s11064_s10 + $0x10] sm:$0xff]  }
 0x4b4   : > { %v13174_v9 = vpop.f32.mrf.mxu0  ;;  %v9262_v12 = vpop.f32.mrf.mxu1 }
 0x4b5   : > { %v9263_v5 = vadd.f32 %v9262_v12, %v9261_v18 }
 0x4b6   : > { %v13177_v62 = vpop.f32.mrf.mxu0  ;;  %v9264_v42 = vpop.f32.mrf.mxu1 }
 0x4b7   : > { %v13186_v60 = vadd.f32 %v13148_v59, %v9263_v5 }
 0x4b8   : > { %v13181_v21 = vpop.f32.mrf.mxu0  ;;  %9908 = vmatmul.mubr.bf16.gmra.mxu0 %v10465_v24  ;;  %v9265_v35 = vpop.f32.mrf.mxu1 }
 0x4b9   : > { %9927 = vmatprep.mubr.bf16.mxu0 %v10528_v44  ;;  %v9266_v33 = vadd.f32 %v9265_v35, %v9264_v42 }
 0x4ba   : > { %v13183_v17 = vpop.f32.mrf.mxu0  ;;  %v9267_v29 = vpop.f32.mrf.mxu1  ;;  %7218 = vmatmul.mubr.bf16.gmra.mxu1 %v10477_v14 }
 0x4bb   : > { %v13195_v16 = vadd.f32 %v13152_v38, %v9266_v33  ;;  %7225 = vmatprep.mubr.bf16.mxu1 %v10484_v31  ;;  %v10489_v38 = vld [vmem:[#allocation2 + $0x154] ss:$12 sps:$4 sm:$0xff]  }
 0x4bc   : > { %v13188_v28 = vpop.f32.mrf.mxu0  ;;  %v9268_v3 = vpop.f32.mrf.mxu1  ;;  %v10534_v31 = vld [vmem:[%s11064_s10 + $0x30] sm:$0xff]  }
 0x4bd   : > { %v9269_v57 = vadd.f32 %v9268_v3, %v9267_v29 }
 0x4be   : > { %v13192_v6 = vpop.f32.mrf.mxu0  ;;  %v9270_v37 = vpop.f32.mrf.mxu1 }
 0x4bf   : > { %v13198_v41 = vadd.f32 %v9269_v57, %v13158_v25 }
 0x4c0   : > { %v9343_v59 = vpop.f32.mrf.mxu0  ;;  %9928 = vmatmul.mubr.bf16.vlgmr.msra.gmra.mxu0 %v10529_v63  ;;  %v9271_v19 = vpop.f32.mrf.mxu1 }
 0x4c1   : > { %9931 = vmatprep.mubr.bf16.mxu0 %v10530_v36  ;;  %v9272_v24 = vadd.f32 %v9271_v19, %v9270_v37  ;;  %v10533_v36 = vld [vmem:[%s11064_s10 + $0x28] sm:$0xff]  }
 0x4c2   : > { %v9344_v32 = vpop.f32.mrf.mxu0  ;;  %v9273_v44 = vpop.f32.mrf.mxu1  ;;  %7226 = vmatmul.mubr.bf16.gmra.mxu1 %v10482_v51 }
 0x4c3   : > { %v9345_v20 = vadd.f32 %v9344_v32, %v9343_v59  ;;  %v13206_v8 = vadd.f32 %v9272_v24, %v13164_v7  ;;  %7233 = vmatprep.mubr.bf16.mxu1 %v10489_v38  ;;  %v10487_v7 = vld [vmem:[#allocation2 + $0x150] ss:$12 sps:$4 sm:$0xff]   ;;  %v10494_v59 = vld [vmem:[#allocation2 + $0x16c] ss:$12 sps:$4 sm:$0xff]  }
 0x4c4   : > { %v9346_v47 = vpop.f32.mrf.mxu0  ;;  %v9274_v18 = vpop.f32.mrf.mxu1  ;;  %v10535_v38 = vld [vmem:[%s11064_s10 + $0x38] sm:$0xff]  }
 0x4c5   : > { %v13203_v15 = vadd.f32 %v9345_v20, %v13126_v40  ;;  %v9275_v12 = vadd.f32 %v9274_v18, %v9273_v44  ;;  %v10536_v44 = vld [vmem:[%s11064_s10 + $0x40] sm:$0xff]  }
 0x4c6   : > { %v9347_v49 = vpop.f32.mrf.mxu0  ;;  %v9276_v42 = vpop.f32.mrf.mxu1 }
 0x4c7   : > { %v9348_v23 = vadd.f32 %v9347_v49, %v9346_v47  ;;  %v13212_v14 = vadd.f32 %v13156_v45, %v9275_v12 }
 0x4c8   : > { %v9349_v25 = vpop.f32.mrf.mxu0  ;;  %9932 = vmatmul.mubr.bf16.gmra.mxu0 %v10531_v22  ;;  %v9277_v33 = vpop.f32.mrf.mxu1 }
 0x4c9   : > { %9935 = vmatprep.mubr.bf16.mxu0 %v10532_v55  ;;  %v13209_v5 = vadd.f32 %v9348_v23, %v13130_v39  ;;  %v9278_v29 = vadd.f32 %v9277_v33, %v9276_v42 }
 0x4ca   : > { %v9350_v40 = vpop.f32.mrf.mxu0  ;;  %v9279_v32 = vpop.f32.mrf.mxu1  ;;  %7234 = vmatmul.mubr.bf16.gmra.mxu1 %v10487_v7 }
 0x4cb   : > { %v9351_v63 = vadd.f32 %v9350_v40, %v9349_v25  ;;  %v13220_v37 = vadd.f32 %v13162_v2, %v9278_v29  ;;  %7241 = vmatprep.mubr.bf16.mxu1 %v10494_v59  ;;  %v10492_v2 = vld [vmem:[#allocation2 + $0x168] ss:$12 sps:$4 sm:$0xff]   ;;  %v10499_v25 = vld [vmem:[#allocation2 + $0x184] ss:$12 sps:$4 sm:$0xff]   ;;  %v10537_v59 = vld [vmem:[%s11064_s10 + $0x48] sm:$0xff]  }
 0x4cc   : > { %v9352_v35 = vpop.f32.mrf.mxu0  ;;  %v9280_v20 = vpop.f32.mrf.mxu1 }
 0x4cd   : > { %v13217_v3 = vadd.f32 %v9351_v63, %v13124_v58  ;;  %v9281_v47 = vadd.f32 %v9280_v20, %v9279_v32  ;;  %v10538_v32 = vld [vmem:[%s11064_s10 + $0x50] sm:$0xff]  }
 0x4ce   : > { %v9353_v57 = vpop.f32.mrf.mxu0  ;;  %v9282_v51 = vpop.f32.mrf.mxu1 }
 0x4cf   : > { %v9354_v39 = vadd.f32 %v9353_v57, %v9352_v35  ;;  %v13226_v55 = vadd.f32 %v9281_v47, %v13170_v54 }
 0x4d0   : > { %v9355_v45 = vpop.f32.mrf.mxu0  ;;  %9936 = vmatmul.mubr.bf16.gmra.mxu0 %v10533_v36  ;;  %v9283_v49 = vpop.f32.mrf.mxu1 }
 0x4d1   : > { %9939 = vmatprep.mubr.bf16.mxu0 %v10534_v31  ;;  %v13223_v22 = vadd.f32 %v9354_v39, %v13128_v48  ;;  %v9284_v23 = vadd.f32 %v9283_v49, %v9282_v51 }
 0x4d2   : > { %v9356_v58 = vpop.f32.mrf.mxu0  ;;  %v9285_v40 = vpop.f32.mrf.mxu1  ;;  %7242 = vmatmul.mubr.bf16.gmra.mxu1 %v10492_v2 }
 0x4d3   : > { %v9357_v19 = vadd.f32 %v9356_v58, %v9355_v45  ;;  %v13234_v42 = vadd.f32 %v9284_v23, %v13177_v62  ;;  %7249 = vmatprep.mubr.bf16.mxu1 %v10499_v25  ;;  %v10497_v62 = vld [vmem:[#allocation2 + $0x180] ss:$12 sps:$4 sm:$0xff]   ;;  %v10540_v25 = vld [vmem:[%s11064_s10 + $0x60] sm:$0xff]  }
 0x4d4   : > { %v9358_v24 = vpop.f32.mrf.mxu0  ;;  %v9286_v63 = vpop.f32.mrf.mxu1  ;;  %v10539_v23 = vld [vmem:[%s11064_s10 + $0x58] sm:$0xff]  }
 0x4d5   : > { %v13231_v18 = vadd.f32 %v9357_v19, %v13132_v61  ;;  %v9287_v35 = vadd.f32 %v9286_v63, %v9285_v40 }
 0x4d6   : > { %v9359_v12 = vpop.f32.mrf.mxu0  ;;  %v9288_v7 = vpop.f32.mrf.mxu1 }
 0x4d7   : > { %v9360_v48 = vadd.f32 %v9359_v12, %v9358_v24  ;;  %v13240_v31 = vadd.f32 %v13168_v50, %v9287_v35 }
 0x4d8   : > { %v9361_v54 = vpop.f32.mrf.mxu0  ;;  %9940 = vmatmul.mubr.bf16.gmra.mxu0 %v10535_v38  ;;  %v9289_v57 = vpop.f32.mrf.mxu1 }
 0x4d9   : > { %9943 = vmatprep.mubr.bf16.mxu0 %v10536_v44  ;;  %v13237_v36 = vadd.f32 %v9360_v48, %v13136_v56  ;;  %v9290_v39 = vadd.f32 %v9289_v57, %v9288_v7  ;;  %v10542_v57 = vld [vmem:[%s11064_s10 + $0x70] sm:$0xff]  }
 0x4da   : > { %v9362_v61 = vpop.f32.mrf.mxu0  ;;  %v9291_v47 = vpop.f32.mrf.mxu1  ;;  %7250 = vmatmul.mubr.bf16.gmra.mxu1 %v10497_v62 }
 0x4db   : > { %v9363_v33 = vadd.f32 %v9362_v61, %v9361_v54  ;;  %v13248_v58 = vadd.f32 %v13174_v9, %v9290_v39  ;;  %7257 = vmatprep.mubr.bf16.mxu1 %v13047_v43 }
 0x4dc   : > { %v9364_v29 = vpop.f32.mrf.mxu0  ;;  %v9292_v51 = vpop.f32.mrf.mxu1 }
 0x4dd   : > { %v13245_v45 = vadd.f32 %v9363_v33, %v13134_v34  ;;  %v9293_v19 = vadd.f32 %v9292_v51, %v9291_v47 }
 0x4de   : > { %v9365_v20 = vpop.f32.mrf.mxu0  ;;  %v9294_v38 = vpop.f32.mrf.mxu1 }
 0x4df   : > { %v9366_v56 = vadd.f32 %v9365_v20, %v9364_v29  ;;  %v13255_v49 = vadd.f32 %v9293_v19, %v13183_v17 }
 0x4e0   : > { %v9367_v50 = vpop.f32.mrf.mxu0  ;;  %9944 = vmatmul.mubr.bf16.gmra.mxu0 %v10537_v59  ;;  %v9295_v9 = vpop.f32.mrf.mxu1 }
 0x4e1   : > { %9947 = vmatprep.mubr.bf16.mxu0 %v10538_v32  ;;  %v13252_v24 = vadd.f32 %v9366_v56, %v13138_v26  ;;  %v9296_v12 = vadd.f32 %v9295_v9, %v9294_v38 }
 0x4e2   : > { %v9368_v34 = vpop.f32.mrf.mxu0  ;;  %v9297_v48 = vpop.f32.mrf.mxu1  ;;  %7258 = vmatmul.mubr.bf16.gmra.mxu1 %v13054_v30  ;;  %v10541_v30 = vld [vmem:[%s11064_s10 + $0x68] sm:$0xff]  }
 0x4e3   : > { %v9369_v2 = vadd.f32 %v9368_v34, %v9367_v50  ;;  %v13264_v54 = vadd.f32 %v9296_v12, %v13192_v6 }
 0x4e4   : > { %v9370_v44 = vpop.f32.mrf.mxu0  ;;  %v9298_v63 = vpop.f32.mrf.mxu1 }
 0x4e5   : > { %v13260_v43 = vadd.f32 %v9369_v2, %v13140_v10  ;;  %v9299_v35 = vadd.f32 %v9298_v63, %v9297_v48 }
 0x4e6   : > { %v9371_v40 = vpop.f32.mrf.mxu0  ;;  %v9300_v10 = vpop.f32.mrf.mxu1 }
 0x4e7   : > { %v9372_v26 = vadd.f32 %v9371_v40, %v9370_v44  ;;  %v13268_v29 = vadd.f32 %v13181_v21, %v9299_v35  ;;  %v10543_v44 = vld [vmem:[%s11064_s10 + $0x78] sm:$0xff]  }
 0x4e8   : > { %v9373_v17 = vpop.f32.mrf.mxu0  ;;  %9948 = vmatmul.mubr.bf16.gmra.mxu0 %v10539_v23  ;;  %v9301_v62 = vpop.f32.mrf.mxu1 }
 0x4e9   : > { %9951 = vmatprep.mubr.bf16.mxu0 %v10540_v25  ;;  %v6340_v61 = vadd.f32 %v9372_v26, %v13142_v27  ;;  %v9302_v32 = vadd.f32 %v9301_v62, %v9300_v10 }
 0x4ea   : > { %v9374_v7 = vpop.f32.mrf.mxu0  ;;  %v9833_v20 = vpop.f32.mrf.mxu1 }
 0x4eb   : > { %v9375_v33 = vadd.f32 %v9374_v7, %v9373_v17  ;;  %v13274_v56 = vadd.f32 %v13188_v28, %v9302_v32  ;;  %v13277_v27 = vadd.f32 %v9833_v20, %v13217_v3 }
 0x4ec   : > { %v9376_v59 = vpop.f32.mrf.mxu0  ;;  %v6465_v21 = vpop.f32.mrf.mxu1 }
 0x4ed   : > { %v6345_v6 = vadd.f32 %v9375_v33, %v13144_v1  ;;  %v13280_v51 = vadd.f32 %v6465_v21, %v13203_v15 }
 0x4ee   : > { %v9377_v39 = vpop.f32.mrf.mxu0  ;;  %v9834_v34 = vpop.f32.mrf.mxu1 }
 0x4ef   : > { %v9378_v47 = vadd.f32 %v9377_v39, %v9376_v59  ;;  %v13284_v2 = vadd.f32 %v9834_v34, %v13223_v22 }
 0x4f0   : > { %v9379_v50 = vpop.f32.mrf.mxu0  ;;  %9952 = vmatmul.mubr.bf16.gmra.mxu0 %v10541_v30  ;;  %v6468_v23 = vpop.f32.mrf.mxu1 }
 0x4f1   : > { %9955 = vmatprep.mubr.bf16.mxu0 %v10542_v57  ;;  %v6348_v19 = vadd.f32 %v9378_v47, %v13146_v11  ;;  %v13288_v3 = vadd.f32 %v6468_v23, %v13209_v5 }
 0x4f2   : > { %v9380_v1 = vpop.f32.mrf.mxu0  ;;  %v9837_v12 = vpop.f32.mrf.mxu1 }
 0x4f3   : > { %v9381_v38 = vadd.f32 %v9380_v1, %v9379_v50  ;;  %v13292_v40 = vadd.f32 %v9837_v12, %v13245_v45 }
 0x4f4   : > { %v9382_v28 = vpop.f32.mrf.mxu0  ;;  %v6481_v48 = vpop.f32.mrf.mxu1 }
 0x4f5   : > { %v6353_v9 = vadd.f32 %v9381_v38, %v13150_v46  ;;  %v13295_v22 = vadd.f32 %v6481_v48, %v13231_v18 }
 0x4f6   : > { %v9383_v25 = vpop.f32.mrf.mxu0  ;;  %v9838_v63 = vpop.f32.mrf.mxu1 }
 0x4f7   : > { %v9384_v15 = vadd.f32 %v9383_v25, %v9382_v28  ;;  %v13299_v35 = vadd.f32 %v9838_v63, %v13252_v24 }
 0x4f8   : > { %v9385_v11 = vpop.f32.mrf.mxu0  ;;  %9956 = vmatmul.mubr.bf16.gmra.mxu0 %v10543_v44  ;;  %v6484_v7 = vpop.f32.mrf.mxu1 }
 0x4f9   : > { %v6356_v26 = vadd.f32 %v9384_v15, %v13154_v52  ;;  %v13302_v10 = vadd.f32 %v6484_v7, %v13237_v36 }
 0x4fa   : > { %v9386_v17 = vpop.f32.mrf.mxu0  ;;  %v9841_v59 = vpop.f32.mrf.mxu1 }
 0x4fb   : > { %v9387_v5 = vadd.f32 %v9386_v17, %v9385_v11  ;;  %v13305_v18 = vadd.f32 %v9841_v59, %v6345_v6 }
 0x4fc   : > { %v9388_v46 = vpop.f32.mrf.mxu0  ;;  %v6497_v52 = vpop.f32.mrf.mxu1 }
 0x4fd   : > { %v6361_v45 = vadd.f32 %v9387_v5, %v13160_v0  ;;  %v13308_v57 = vadd.f32 %v6497_v52, %v13260_v43 }
 0x4fe   : > { %v9389_v33 = vpop.f32.mrf.mxu0  ;;  %v9842_v39 = vpop.f32.mrf.mxu1 }
 0x4ff   : > { %v9390_v30 = vadd.f32 %v9389_v33, %v9388_v46  ;;  %v13311_v47 = vadd.f32 %v9842_v39, %v6348_v19 }
 0x500   : > { %v9391_v62 = vpop.f32.mrf.mxu0  ;;  %v6500_v50 = vpop.f32.mrf.mxu1 }
 0x501   : > { %v6364_v24 = vadd.f32 %v9390_v30, %v13166_v53  ;;  %v13313_v0 = vadd.f32 %v6500_v50, %v6340_v61 }
 0x502   : > { %v9392_v32 = vpop.f32.mrf.mxu0  ;;  %v9845_v1 = vpop.f32.mrf.mxu1 }
 0x503   : > { %v9393_v20 = vadd.f32 %v9392_v32, %v9391_v62  ;;  %v13316_v38 = vadd.f32 %v9845_v1, %v6361_v45 }
 0x504   : > { %v9394_v36 = vpop.f32.mrf.mxu0  ;;  %v6513_v28 = vpop.f32.mrf.mxu1 }
 0x505   : > { %v6369_v21 = vadd.f32 %v9393_v20, %v13172_v13  ;;  %13901 = vst [vmem:[#allocation31_spill] sm:$0xff] %v13316_v38  ;;  %v13318_v44 = vadd.f32 %v6513_v28, %v6353_v9 }
 0x506   : > { %v9395_v6 = vpop.f32.mrf.mxu0  ;;  %v9846_v19 = vpop.f32.mrf.mxu1 }
 0x507   : > { %v9396_v34 = vadd.f32 %v9395_v6, %v9394_v36  ;;  %13902 = vst [vmem:[#allocation32_spill] sm:$0xff] %v13318_v44  ;;  %v13321_v12 = vadd.f32 %v9846_v19, %v6364_v24 }
 0x508   : > { %v9397_v43 = vpop.f32.mrf.mxu0  ;;  %v6516_v15 = vpop.f32.mrf.mxu1 }
 0x509   : > { %v6372_v53 = vadd.f32 %v9396_v34, %v13179_v4  ;;  %13903 = vst [vmem:[#allocation28_spill] sm:$0xff] %v13321_v12  ;;  %v13323_v11 = vadd.f32 %v6516_v15, %v6356_v26 }
 0x50a   : > { %v9398_v23 = vpop.f32.mrf.mxu0  ;;  %v9849_v17 = vpop.f32.mrf.mxu1 }
 0x50b   : > { %v9399_v25 = vadd.f32 %v9398_v23, %v9397_v43  ;;  %13904 = vst [vmem:[#allocation34_spill] sm:$0xff] %v13323_v11 }
 0x50c   : > { %v9400_v61 = vpop.f32.mrf.mxu0  ;;  %v6529_v46 = vpop.f32.mrf.mxu1 }
 0x50d   : > { %v6377_v13 = vadd.f32 %v9399_v25, %v13186_v60  ;;  %v13328_v7 = vadd.f32 %v6529_v46, %v6369_v21 }
 0x50e   : > { %v9401_v48 = vpop.f32.mrf.mxu0  ;;  %v9850_v33 = vpop.f32.mrf.mxu1 }
 0x50f   : > { %v9402_v63 = vadd.f32 %v9401_v48, %v9400_v61  ;;  %v13326_v5 = vadd.f32 %v9849_v17, %v6377_v13  ;;  %13906 = vst [vmem:[#allocation29_spill] sm:$0xff] %v13328_v7 }
 0x510   : > { %v9403_v9 = vpop.f32.mrf.mxu0  ;;  %v6532_v62 = vpop.f32.mrf.mxu1 }
 0x511   : > { %13905 = vst [vmem:[#allocation37_spill] sm:$0xff] %v13326_v5  ;;  %v6380_v4 = vadd.f32 %v9402_v63, %v13195_v16  ;;  %v13333_v52 = vadd.f32 %v6532_v62, %v6372_v53 }
 0x512   : > { %v9404_v45 = vpop.f32.mrf.mxu0  ;;  %v9853_v32 = vpop.f32.mrf.mxu1 }
 0x513   : > { %v9405_v59 = vadd.f32 %v9404_v45, %v9403_v9  ;;  %v13331_v30 = vadd.f32 %v9850_v33, %v6380_v4  ;;  %13908 = vst [vmem:[#allocation40_spill] sm:$0xff] %v13333_v52 }
 0x514   : > { %v9406_v26 = vpop.f32.mrf.mxu0  ;;  %v6545_v36 = vpop.f32.mrf.mxu1 }
 0x515   : > { %13907 = vst [vmem:[#allocation30_spill] sm:$0xff] %v13331_v30  ;;  %v6385_v60 = vadd.f32 %v9405_v59, %v13198_v41 }
 0x516   : > { %v9407_v24 = vpop.f32.mrf.mxu0  ;;  %v9854_v6 = vpop.f32.mrf.mxu1 }
 0x517   : > { %v9408_v39 = vadd.f32 %v9407_v24, %v9406_v26  ;;  %v13336_v50 = vadd.f32 %v6545_v36, %v6385_v60 }
 0x518   : > { %v9409_v20 = vpop.f32.mrf.mxu0  ;;  %v6548_v43 = vpop.f32.mrf.mxu1 }
 0x519   : > { %13909 = vst [vmem:[#allocation41_spill] sm:$0xff] %v13336_v50  ;;  %v6388_v16 = vadd.f32 %v9408_v39, %v13206_v8 }
 0x51a   : > { %v9410_v21 = vpop.f32.mrf.mxu0  ;;  %v9857_v41 = vpop.f32.mrf.mxu1 }
 0x51b   : > { %v9411_v1 = vadd.f32 %v9410_v21, %v9409_v20  ;;  %v13340_v53 = vadd.f32 %v6548_v43, %v6388_v16 }
 0x51c   : > { %v9412_v34 = vpop.f32.mrf.mxu0  ;;  %v6561_v15 = vpop.f32.mrf.mxu1 }
 0x51d   : > { %v6393_v28 = vadd.f32 %v9411_v1, %v13212_v14  ;;  %13910 = vst [vmem:[#allocation42_spill] sm:$0xff] %v13340_v53 }
 0x51e   : > { %v9413_v23 = vpop.f32.mrf.mxu0  ;;  %v9858_v8 = vpop.f32.mrf.mxu1 }
 0x51f   : > { %v9414_v19 = vadd.f32 %v9413_v23, %v9412_v34  ;;  %v13342_v25 = vadd.f32 %v9853_v32, %v6393_v28 }
 0x520   : > { %v9415_v61 = vpop.f32.mrf.mxu0  ;;  %v6564_v46 = vpop.f32.mrf.mxu1 }
 0x521   : > { %13911 = vst [vmem:[#allocation44_spill] sm:$0xff] %v13342_v25  ;;  %v6396_v13 = vadd.f32 %v9414_v19, %v13220_v37 }
 0x522   : > { %v9416_v48 = vpop.f32.mrf.mxu0  ;;  %v9861_v45 = vpop.f32.mrf.mxu1 }
 0x523   : > { %v9417_v17 = vadd.f32 %v9416_v48, %v9415_v61  ;;  %v13345_v63 = vadd.f32 %v9854_v6, %v6396_v13 }
 0x524   : > { %v9418_v9 = vpop.f32.mrf.mxu0  ;;  %v6577_v62 = vpop.f32.mrf.mxu1 }
 0x525   : > { %13912 = vst [vmem:[#allocation43_spill] sm:$0xff] %v13345_v63  ;;  %v6401_v14 = vadd.f32 %v9417_v17, %v13226_v55 }
 0x526   : > { %v9419_v4 = vpop.f32.mrf.mxu0  ;;  %v9862_v37 = vpop.f32.mrf.mxu1 }
 0x527   : > { %v9420_v33 = vadd.f32 %v9419_v4, %v9418_v9  ;;  %v13348_v59 = vadd.f32 %v6561_v15, %v6401_v14 }
 0x528   : > { %v9421_v26 = vpop.f32.mrf.mxu0  ;;  %v6580_v36 = vpop.f32.mrf.mxu1 }
 0x529   : > { %13913 = vst [vmem:[#allocation33_spill] sm:$0xff] %v13348_v59  ;;  %v6404_v60 = vadd.f32 %v9420_v33, %v13234_v42 }
 0x52a   : > { %v9422_v24 = vpop.f32.mrf.mxu0  ;;  %v9479_v55 = vpop.f32.mrf.mxu1 }
 0x52b   : > { %v9423_v32 = vadd.f32 %v9422_v24, %v9421_v26  ;;  %v13351_v39 = vadd.f32 %v6564_v46, %v6404_v60 }
 0x52c   : > { %v9424_v20 = vpop.f32.mrf.mxu0  ;;  %v9480_v43 = vpop.f32.mrf.mxu1 }
 0x52d   : > { %13914 = vst [vmem:[#allocation45_spill] sm:$0xff] %v13351_v39  ;;  %v6409_v16 = vadd.f32 %v9423_v32, %v13240_v31  ;;  %v9481_v23 = vadd.f32 %v9480_v43, %v9479_v55 }
 0x52e   : > { %v9425_v21 = vpop.f32.mrf.mxu0  ;;  %v9482_v19 = vpop.f32.mrf.mxu1 }
 0x52f   : > { %v9426_v6 = vadd.f32 %v9425_v21, %v9424_v20  ;;  %v13354_v1 = vadd.f32 %v9857_v41, %v6409_v16 }
 0x530   : > { %v9427_v34 = vpop.f32.mrf.mxu0  ;;  %v9483_v48 = vpop.f32.mrf.mxu1 }
 0x531   : > { %13915 = vst [vmem:[#allocation47_spill] sm:$0xff] %v13354_v1  ;;  %v6412_v28 = vadd.f32 %v9426_v6, %v13248_v58  ;;  %v9484_v31 = vadd.f32 %v9483_v48, %v9482_v19 }
 0x532   : > { %v9428_v42 = vpop.f32.mrf.mxu0  ;;  %v13360_v46 = vpop.f32.mrf.mxu1 }
 0x533   : > { %v9429_v61 = vadd.f32 %v9428_v42, %v9427_v34  ;;  %v13357_v15 = vadd.f32 %v9858_v8, %v6412_v28 }
 0x534   : > { %v9430_v13 = vpop.f32.mrf.mxu0  ;;  %v13364_v33 = vpop.f32.mrf.mxu1 }
 0x535   : > { %13916 = vst [vmem:[#allocation46_spill] sm:$0xff] %v13357_v15  ;;  %v6417_v17 = vadd.f32 %v9429_v61, %v13255_v49 }
 0x536   : > { %v9431_v9 = vpop.f32.mrf.mxu0  ;;  %v13367_v60 = vpop.f32.mrf.mxu1 }
 0x537   : > { %v9432_v41 = vadd.f32 %v9431_v9, %v9430_v13  ;;  %v13362_v14 = vadd.f32 %v6577_v62, %v6417_v17 }
 0x538   : > { %v9433_v4 = vpop.f32.mrf.mxu0  ;;  %v13371_v49 = vpop.f32.mrf.mxu1 }
 0x539   : > { %13917 = vst [vmem:[#allocation35_spill] sm:$0xff] %v13362_v14  ;;  %v6420_v58 = vadd.f32 %v9432_v41, %v13264_v54 }
 0x53a   : > { %v9434_v26 = vpop.f32.mrf.mxu0  ;;  %v13374_v21 = vpop.f32.mrf.mxu1 }
 0x53b   : > { %v9435_v8 = vadd.f32 %v9434_v26, %v9433_v4  ;;  %v13369_v24 = vadd.f32 %v6580_v36, %v6420_v58 }
 0x53c   : > { %v9436_v32 = vpop.f32.mrf.mxu0  ;;  %v13380_v54 = vpop.f32.mrf.mxu1 }
 0x53d   : > { %13918 = vst [vmem:[#allocation48_spill] sm:$0xff] %v13369_v24  ;;  %v6425_v20 = vadd.f32 %v9435_v8, %v13268_v29 }
 0x53e   : > { %v9437_v16 = vpop.f32.mrf.mxu0  ;;  %v13383_v36 = vpop.f32.mrf.mxu1 }
 0x53f   : > { %v13376_v62 = vadd.f32 %v9861_v45, %v6425_v20  ;;  %v9438_v55 = vadd.f32 %v9437_v16, %v9436_v32 }
 0x540   : > { %v13378_v6 = vpop.f32.mrf.mxu0  ;;  %v13387_v29 = vpop.f32.mrf.mxu1 }
 0x541   : > { %13919 = vst [vmem:[#allocation39_spill] sm:$0xff] %v13376_v62  ;;  %v6428_v34 = vadd.f32 %v9438_v55, %v13274_v56 }
 0x542   : > { %v7300_v43 = vpop.f32.mrf.mxu0  ;;  %v9497_v13 = vpop.f32.mrf.mxu1 }
 0x543   : > { %v13385_v28 = vadd.f32 %v9862_v37, %v6428_v34  ;;  %v7301_v42 = vadd.f32 %v9481_v23, %v7300_v43 }
 0x544   : > { %v9882_v19 = vpop.f32.mrf.mxu0  ;;  %v9498_v9 = vpop.f32.mrf.mxu1 }
 0x545   : > { %13920 = vst [vmem:[#allocation36_spill] sm:$0xff] %v13385_v28  ;;  %v13390_v61 = vadd.f32 %v7301_v42, %v13280_v51 }
 0x546   : > { %v7303_v45 = vpop.f32.mrf.mxu0  ;;  %v13399_v37 = vpop.f32.mrf.mxu1 }
 0x547   : > { %v7304_v48 = vadd.f32 %v9484_v31, %v7303_v45 }
 0x548   : > { %v13392_v17 = vpop.f32.mrf.mxu0  ;;  %v9501_v4 = vpop.f32.mrf.mxu1 }
 0x549   : > { %v13395_v56 = vadd.f32 %v7304_v48, %v13288_v3 }
 0x54a   : > { %v13397_v41 = vpop.f32.mrf.mxu0  ;;  %v13405_v51 = vpop.f32.mrf.mxu1 }
 0x54c   : > { %v13401_v23 = vpop.f32.mrf.mxu0  ;;  %v13409_v31 = vpop.f32.mrf.mxu1 }
 0x54e   : > { %v13403_v58 = vpop.f32.mrf.mxu0  ;;  %v13413_v32 = vpop.f32.mrf.mxu1 }
 0x550   : > { %v13407_v26 = vpop.f32.mrf.mxu0  ;;  %v13417_v20 = vpop.f32.mrf.mxu1 }
 0x552   : > { %v13411_v8 = vpop.f32.mrf.mxu0  ;;  %v9509_v55 = vpop.f32.mrf.mxu1 }
 0x554   : > { %v13415_v3 = vpop.f32.mrf.mxu0  ;;  %v9510_v43 = vpop.f32.mrf.mxu1 }
 0x556   : > { %v13419_v16 = vpop.f32.mrf.mxu0  ;;  %v13425_v45 = vpop.f32.mrf.mxu1 }
 0x558   : > { %v13421_v34 = vpop.f32.mrf.mxu0  ;;  %v13429_v24 = vpop.f32.mrf.mxu1 }
 0x55a   : > { %v13423_v42 = vpop.f32.mrf.mxu0  ;;  %v13433_v14 = vpop.f32.mrf.mxu1 }
 0x55c   : > { %v13427_v48 = vpop.f32.mrf.mxu0  ;;  %v13437_v39 = vpop.f32.mrf.mxu1 }
 0x55e   : > { %v13431_v28 = vpop.f32.mrf.mxu0  ;;  %v13441_v59 = vpop.f32.mrf.mxu1 }
 0x55f   : > { %13921 = vst [vmem:[#allocation49_spill] sm:$0xff] %v13431_v28 }
 0x560   : > { %v13435_v62 = vpop.f32.mrf.mxu0  ;;  %v13445_v53 = vpop.f32.mrf.mxu1 }
 0x561   : > { %13922 = vst [vmem:[#allocation50_spill] sm:$0xff] %v13435_v62 }
 0x562   : > { %v13439_v15 = vpop.f32.mrf.mxu0  ;;  %v13449_v50 = vpop.f32.mrf.mxu1 }
 0x563   : > { %13923 = vst [vmem:[#allocation38_spill] sm:$0xff] %v13439_v15 }
 0x564   : > { %v13443_v1 = vpop.f32.mrf.mxu0  ;;  %v13453_v52 = vpop.f32.mrf.mxu1 }
 0x565   : > { %13924 = vst [vmem:[#allocation25_spill] sm:$0xff] %v13443_v1 }
 0x566   : > { %v13447_v63 = vpop.f32.mrf.mxu0  ;;  %v13457_v7 = vpop.f32.mrf.mxu1 }
 0x567   : > { %13925 = vst [vmem:[#allocation26_spill] sm:$0xff] %v13447_v63 }
 0x568   : > { %v13451_v25 = vpop.f32.mrf.mxu0  ;;  %v13461_v15 = vpop.f32.mrf.mxu1 }
 0x569   : > { %13926 = vst [vmem:[#allocation27_spill] sm:$0xff] %v13451_v25 }
 0x56a   : > { %v13455_v30 = vpop.f32.mrf.mxu0  ;;  %v13465_v1 = vpop.f32.mrf.mxu1 }
 0x56b   : > { %13927 = vst [vmem:[#allocation51_spill] sm:$0xff] %v13455_v30  ;;  %13930 = vst [vmem:[#allocation54_spill] sm:$0xff] %v13465_v1  ;;  %v9487_v30 = vadd.f32 %v13364_v33, %v13360_v46 }
 0x56c   : > { %v13459_v5 = vpop.f32.mrf.mxu0  ;;  %v13469_v63 = vpop.f32.mrf.mxu1 }
 0x56d   : > { %13928 = vst [vmem:[#allocation52_spill] sm:$0xff] %v13459_v5  ;;  %13932 = vst [vmem:[#allocation56_spill] sm:$0xff] %v13469_v63  ;;  %v9490_v63 = vadd.f32 %v13371_v49, %v13367_v60  ;;  %v13509_v49 = vld [vmem:[%s13753_s6] ss:$0 sm:$0xff] }
 0x56e   : > { %v13463_v11 = vpop.f32.mrf.mxu0  ;;  %v13473_v25 = vpop.f32.mrf.mxu1 }
 0x56f   : > { %13929 = vst [vmem:[#allocation53_spill] sm:$0xff] %v13463_v11  ;;  %13934 = vst [vmem:[#allocation58_spill] sm:$0xff] %v13473_v25  ;;  %v7312_v33 = vadd.f32 %v9882_v19, %v9490_v63 }
 0x570   : > { %v13467_v12 = vpop.f32.mrf.mxu0  ;;  %v13479_v5 = vpop.f32.mrf.mxu1 }
 0x571   : > { %13931 = vst [vmem:[#allocation55_spill] sm:$0xff] %v13467_v12  ;;  %13936 = vst [vmem:[#allocation60_spill] sm:$0xff] %v13479_v5  ;;  %v7309_v12 = vadd.f32 %v13378_v6, %v9487_v30  ;;  %v9493_v30 = vadd.f32 %v13380_v54, %v13374_v21  ;;  %v7430_v19 = vadd.f32 %v7312_v33, %v13284_v2 }
 0x572   : > { %v13471_v62 = vpop.f32.mrf.mxu0  ;;  %v13483_v11 = vpop.f32.mrf.mxu1  ;;  %v9496_v21 = vadd.f32 %v13387_v29, %v13383_v36 }
 0x573   : > { %13933 = vst [vmem:[#allocation57_spill] sm:$0xff] %v13471_v62  ;;  %v7429_v5 = vadd.f32 %v7309_v12, %v13277_v27  ;;  %v9502_v27 = vadd.f32 %v9501_v4, %v13399_v37  ;;  %v7468_v36 = vadd.f32 %v13509_v49, %v7430_v19  ;;  %v9505_v4 = vadd.f32 %v13409_v31, %v13405_v51 }
 0x574   : > { %v13477_v44 = vpop.f32.mrf.mxu0  ;;  %v13490_v25 = vpop.f32.mrf.mxu1 }
 0x575   : > { %13935 = vst [vmem:[#allocation59_spill] sm:$0xff] %v13477_v44  ;;  %v9499_v44 = vadd.f32 %v9498_v9, %v9497_v13  ;;  %v7467_v12 = vadd.f32 %v13509_v49, %v7429_v5  ;;  %v7317_v9 = vadd.f32 %v9493_v30, %v13397_v41  ;;  %v7328_v5 = vadd.f32 %v13401_v23, %v9502_v27 }
 0x576   : > { %v13481_v28 = vpop.f32.mrf.mxu0  ;;  %v13494_v46 = vpop.f32.mrf.mxu1  ;;  %v7320_v41 = vadd.f32 %v9496_v21, %v13403_v58  ;;  %v9514_v58 = vadd.f32 %v13429_v24, %v13425_v45 }
 0x577   : > { %13937 = vst [vmem:[#allocation61_spill] sm:$0xff] %v13481_v28  ;;  %v7325_v63 = vadd.f32 %v13392_v17, %v9499_v44  ;;  %v7434_v31 = vadd.f32 %v7328_v5, %v13299_v35 }
 0x578   : > { %v13488_v62 = vpop.f32.mrf.mxu0  ;;  %v13499_v38 = vpop.f32.mrf.mxu1  ;;  %v7344_v35 = vadd.f32 %v13415_v3, %v9514_v58  ;;  %v13944_v58 = vld [vmem:[#allocation56_spill] sm:$0xff] }
 0x579   : > { %v7433_v29 = vadd.f32 %v7325_v63, %v13292_v40 }
 0x57a   : > { %v13492_v1 = vpop.f32.mrf.mxu0  ;;  %v13511_v6 = vpop.f32.mrf.mxu1 }
 0x57b   : > { %13938 = vst [vmem:[#allocation62_spill] sm:$0xff] %v13492_v1  ;;  %v9511_v1 = vadd.f32 %v9510_v43, %v9509_v55  ;;  %v7466_v55 = vadd.f32 %v13509_v49, %v13395_v56  ;;  %v7471_v51 = vadd.f32 %v13509_v49, %v7433_v29  ;;  %v7432_v56 = vadd.f32 %v7320_v41, %v13302_v10 }
 0x57c   : > { %v13497_v28 = vpop.f32.mrf.mxu0  ;;  %v13519_v13 = vpop.f32.mrf.mxu1  ;;  %v9523_v10 = vadd.f32 %v13453_v52, %v13449_v50 }
 0x57d   : > { %13939 = vst [vmem:[#allocation63_spill] sm:$0xff] %v13497_v28  ;;  %v7465_v28 = vadd.f32 %v13509_v49, %v13390_v61  ;;  %v7341_v43 = vadd.f32 %v13407_v26, %v9511_v1  ;;  %v9508_v1 = vadd.f32 %v13417_v20, %v13413_v32  ;;  %v7472_v32 = vadd.f32 %v13509_v49, %v7434_v31  ;;  %v13946_v31 = vld [vmem:[#allocation50_spill] sm:$0xff] }
 0x57e   : > { %v13504_v60 = vpop.f32.mrf.mxu0  ;;  %v13524_v17 = vpop.f32.mrf.mxu1  ;;  %v7470_v19 = vadd.f32 %v13509_v49, %v7432_v56  ;;  %v7357_v5 = vadd.f32 %v13421_v34, %v9523_v10  ;;  %v13948_v10 = vld [vmem:[#allocation34_spill] sm:$0xff] }
 0x57f   : > { %13940 = vst [vmem:[#allocation64_spill] sm:$0xff] %v13504_v60  ;;  %v7437_v27 = vadd.f32 %v7341_v43, %v13305_v18  ;;  %v9517_v18 = vadd.f32 %v13437_v39, %v13433_v14  ;;  %v7438_v39 = vadd.f32 %v7344_v35, %v13311_v47  ;;  %v9520_v14 = vadd.f32 %v13445_v53, %v13441_v59 }
 0x580   : > { %v9929_v54 = vpop.f32.mrf.mxu0  ;;  %v13533_v37 = vpop.f32.mrf.mxu1 }
 0x581   : > { %v7820_v60 = vadd.f32 %v9929_v54, %v7467_v12  ;;  %v7336_v54 = vadd.f32 %v9508_v1, %v13419_v16  ;;  %v7349_v29 = vadd.f32 %v9517_v18, %v13423_v42  ;;  %v7476_v42 = vadd.f32 %v13509_v49, %v7438_v39  ;;  %v13951_v18 = vld [vmem:[#allocation60_spill] sm:$0xff] }
 0x582   : > { %v7691_v44 = vpop.f32.mrf.mxu0  ;;  %v13542_v40 = vpop.f32.mrf.mxu1  ;;  %v9538_v1 = vadd.f32 %v13499_v38, %v13494_v46 }
 0x583   : > { %7852 = vst [vmem:[%s13527_s27 + $0x10] sm:$0xff] %v7820_v60  ;;  %v7818_v2 = vadd.f32 %v7691_v44, %v7465_v28  ;;  %v7431_v28 = vadd.f32 %v7317_v9, %v13295_v22  ;;  %v7333_v22 = vadd.f32 %v9505_v4, %v13411_v8  ;;  %v7475_v9 = vadd.f32 %v13509_v49, %v7437_v27  ;;  %v13941_v4 = vld [vmem:[#allocation31_spill] sm:$0xff] }
 0x584   : > { %v9930_v61 = vpop.f32.mrf.mxu0  ;;  %v13550_v63 = vpop.f32.mrf.mxu1 }
 0x585   : > { %7850 = vst [vmem:[%s13527_s27] sm:$0xff] %v7818_v2  ;;  %v7821_v23 = vadd.f32 %v9930_v61, %v7468_v36  ;;  %v7469_v26 = vadd.f32 %v13509_v49, %v7431_v28  ;;  %v7435_v52 = vadd.f32 %v7333_v22, %v13308_v57  ;;  %v9526_v2 = vadd.f32 %v13461_v15, %v13457_v7 }
 0x586   : > { %v7694_v33 = vpop.f32.mrf.mxu0  ;;  %v13558_v12 = vpop.f32.mrf.mxu1  ;;  %v7436_v7 = vadd.f32 %v7336_v54, %v13313_v0  ;;  %v9535_v15 = vadd.f32 %v13490_v25, %v13483_v11  ;;  %v13943_v0 = vld [vmem:[#allocation54_spill] sm:$0xff]  ;;  %v9547_v39 = vadd.f32 %v13550_v63, %v13542_v40 }
 0x587   : > { %7853 = vst [vmem:[%s13527_s27 + $0x18] sm:$0xff] %v7821_v23  ;;  %v7819_v30 = vadd.f32 %v7694_v33, %v7466_v55  ;;  %v7473_v34 = vadd.f32 %v13509_v49, %v7435_v52  ;;  %v7360_v53 = vadd.f32 %v13427_v48, %v9526_v2  ;;  %v7441_v23 = vadd.f32 %v7357_v5, %v13941_v4  ;;  %v13942_v55 = vld [vmem:[#allocation49_spill] sm:$0xff]  ;;  %v13950_v54 = vld [vmem:[#allocation58_spill] sm:$0xff] }
 0x588   : > { %v9933_v60 = vpop.f32.mrf.mxu0  ;;  %v13566_v21 = vpop.f32.mrf.mxu1  ;;  %v7352_v28 = vadd.f32 %v9520_v14, %v13942_v55  ;;  %v9529_v11 = vadd.f32 %v13944_v58, %v13943_v0  ;;  %v7474_v48 = vadd.f32 %v13509_v49, %v7436_v7  ;;  %v13953_v2 = vld [vmem:[#allocation25_spill] sm:$0xff]  ;;  %v13954_v7 = vld [vmem:[#allocation26_spill] sm:$0xff] }
 0x589   : > { %7851 = vst [vmem:[%s13527_s27 + $0x8] sm:$0xff] %v7819_v30  ;;  %v7824_v24 = vadd.f32 %v9933_v60, %v7471_v51  ;;  %v13945_v30 = vld [vmem:[#allocation32_spill] sm:$0xff]  ;;  %v7373_v60 = vadd.f32 %v13946_v31, %v9535_v15  ;;  %v13957_v0 = vld [vmem:[#allocation30_spill] sm:$0xff] }
 0x58a   : > { %v7707_v45 = vpop.f32.mrf.mxu0  ;;  %v13574_v44 = vpop.f32.mrf.mxu1  ;;  %v7439_v51 = vadd.f32 %v7349_v29, %v13945_v30 }
 0x58b   : > { %7856 = vst [vmem:[%s13527_s27 + $0x30] sm:$0xff] %v7824_v24  ;;  %v7822_v8 = vadd.f32 %v7707_v45, %v7469_v26  ;;  %v7479_v26 = vadd.f32 %v13509_v49, %v7441_v23  ;;  %v13947_v45 = vld [vmem:[#allocation28_spill] sm:$0xff]  ;;  %v13956_v23 = vld [vmem:[#allocation27_spill] sm:$0xff] }
 0x58c   : > { %v9934_v20 = vpop.f32.mrf.mxu0  ;;  %v13583_v57 = vpop.f32.mrf.mxu1  ;;  %v7442_v27 = vadd.f32 %v7360_v53, %v13947_v45  ;;  %v7477_v38 = vadd.f32 %v13509_v49, %v7439_v51  ;;  %v7389_v55 = vadd.f32 %v13956_v23, %v9547_v39  ;;  %v13962_v45 = vld [vmem:[#allocation53_spill] sm:$0xff] }
 0x58d   : > { %7854 = vst [vmem:[%s13527_s27 + $0x20] sm:$0xff] %v7822_v8  ;;  %v7825_v3 = vadd.f32 %v9934_v20, %v7472_v32  ;;  %v7440_v8 = vadd.f32 %v7352_v28, %v13948_v10  ;;  %v13949_v20 = vld [vmem:[#allocation38_spill] sm:$0xff]  ;;  %v9550_v28 = vadd.f32 %v13566_v21, %v13558_v12  ;;  %v13960_v21 = vld [vmem:[#allocation52_spill] sm:$0xff]  ;;  %v13970_v23 = vld [vmem:[#allocation61_spill] sm:$0xff] }
 0x58e   : > { %v7710_v50 = vpop.f32.mrf.mxu0  ;;  %v13591_v47 = vpop.f32.mrf.mxu1 }
 0x58f   : > { %7857 = vst [vmem:[%s13527_s27 + $0x38] sm:$0xff] %v7825_v3  ;;  %v7823_v16 = vadd.f32 %v7710_v50, %v7470_v19  ;;  %v7365_v19 = vadd.f32 %v9529_v11, %v13949_v20  ;;  %v9532_v3 = vadd.f32 %v13951_v18, %v13950_v54  ;;  %v13952_v50 = vld [vmem:[#allocation37_spill] sm:$0xff] }
 0x590   : > { %v9937_v36 = vpop.f32.mrf.mxu0  ;;  %v13598_v33 = vpop.f32.mrf.mxu1  ;;  %v13964_v18 = vld [vmem:[#allocation41_spill] sm:$0xff] }
 0x591   : > { %7855 = vst [vmem:[%s13527_s27 + $0x28] sm:$0xff] %v7823_v16  ;;  %v7828_v41 = vadd.f32 %v9937_v36, %v7475_v9  ;;  %v7445_v9 = vadd.f32 %v7373_v60, %v13952_v50  ;;  %v7376_v16 = vadd.f32 %v13953_v2, %v9538_v1  ;;  %v7480_v36 = vadd.f32 %v13509_v49, %v7442_v27  ;;  %v13959_v60 = vld [vmem:[#allocation40_spill] sm:$0xff]  ;;  %v13966_v2 = vld [vmem:[#allocation57_spill] sm:$0xff] }
 0x592   : > { %v7723_v61 = vpop.f32.mrf.mxu0  ;;  %v9557_v22 = vpop.f32.mrf.mxu1  ;;  %v7368_v15 = vadd.f32 %v9532_v3, %v13954_v7  ;;  %v9556_v39 = vadd.f32 %v13598_v33, %v13591_v47 }
 0x593   : > { %7860 = vst [vmem:[%s13527_s27 + $0x50] sm:$0xff] %v7828_v41  ;;  %v7826_v59 = vadd.f32 %v7723_v61, %v7473_v34  ;;  %v7478_v41 = vadd.f32 %v13509_v49, %v7440_v8  ;;  %v9541_v61 = vadd.f32 %v13519_v13, %v13511_v6  ;;  %v7483_v40 = vadd.f32 %v13509_v49, %v7445_v9  ;;  %v13963_v8 = vld [vmem:[#allocation55_spill] sm:$0xff] }
 0x594   : > { %v9938_v43 = vpop.f32.mrf.mxu0  ;;  %v9558_v32 = vpop.f32.mrf.mxu1  ;;  %v7446_v58 = vadd.f32 %v7376_v16, %v13957_v0  ;;  %v9544_v6 = vadd.f32 %v13533_v37, %v13524_v17  ;;  %v13961_v37 = vld [vmem:[#allocation44_spill] sm:$0xff] }
 0x595   : > { %7858 = vst [vmem:[%s13527_s27 + $0x40] sm:$0xff] %v7826_v59  ;;  %v7829_v25 = vadd.f32 %v9938_v43, %v7476_v42  ;;  %v13955_v59 = vld [vmem:[#allocation29_spill] sm:$0xff]  ;;  %v9559_v11 = vadd.f32 %v9558_v32, %v9557_v22  ;;  %v7449_v22 = vadd.f32 %v7389_v55, %v13961_v37  ;;  %v7400_v55 = vadd.f32 %v9556_v39, %v13970_v23 }
 0x596   : > { %v7726_v56 = vpop.f32.mrf.mxu0  ;;  %v9560_v5 = vpop.f32.mrf.mxu1  ;;  %v7443_v42 = vadd.f32 %v7365_v19, %v13955_v59  ;;  %v7484_v17 = vadd.f32 %v13509_v49, %v7446_v58  ;;  %v7384_v27 = vadd.f32 %v9544_v6, %v13962_v45  ;;  %v13971_v58 = vld [vmem:[#allocation33_spill] sm:$0xff] }
 0x597   : > { %7861 = vst [vmem:[%s13527_s27 + $0x58] sm:$0xff] %v7829_v25  ;;  %v7827_v24 = vadd.f32 %v7726_v56, %v7474_v48  ;;  %v13958_v48 = vld [vmem:[#allocation51_spill] sm:$0xff]  ;;  %v7444_v56 = vadd.f32 %v7368_v15, %v13959_v60  ;;  %v7405_v32 = vadd.f32 %v13963_v8, %v9559_v11  ;;  %v7487_v9 = vadd.f32 %v13509_v49, %v7449_v22  ;;  %v13973_v60 = vld [vmem:[#allocation62_spill] sm:$0xff] }
 0x598   : > { %v9941_v35 = vpop.f32.mrf.mxu0  ;;  %v9561_v34 = vpop.f32.mrf.mxu1  ;;  %v7381_v30 = vadd.f32 %v9541_v61, %v13958_v48  ;;  %v7481_v31 = vadd.f32 %v13509_v49, %v7443_v42  ;;  %v13969_v61 = vld [vmem:[#allocation59_spill] sm:$0xff]  ;;  %v13972_v48 = vld [vmem:[#allocation46_spill] sm:$0xff] }
 0x599   : > { %7859 = vst [vmem:[%s13527_s27 + $0x48] sm:$0xff] %v7827_v24  ;;  %v7832_v52 = vadd.f32 %v9941_v35, %v7479_v26  ;;  %v7392_v24 = vadd.f32 %v13960_v21, %v9550_v28  ;;  %v9553_v35 = vadd.f32 %v13583_v57, %v13574_v44  ;;  %v7482_v54 = vadd.f32 %v13509_v49, %v7444_v56  ;;  %v13965_v44 = vld [vmem:[#allocation43_spill] sm:$0xff] }
 0x59a   : > { %v7739_v46 = vpop.f32.mrf.mxu0  ;;  %v9563_v63 = vpop.f32.mrf.mxu1  ;;  %v7447_v3 = vadd.f32 %v7381_v30, %v13964_v18 }
 0x59b   : > { %7864 = vst [vmem:[%s13527_s27 + $0x70] sm:$0xff] %v7832_v52  ;;  %v7830_v14 = vadd.f32 %v7739_v46, %v7477_v38  ;;  %v9562_v52 = vadd.f32 %v9561_v34, %v9560_v5  ;;  %v7450_v57 = vadd.f32 %v7392_v24, %v13965_v44  ;;  %v7397_v16 = vadd.f32 %v9553_v35, %v13966_v2 }
 0x59c   : > { %v9942_v29 = vpop.f32.mrf.mxu0  ;;  %v9564_v25 = vpop.f32.mrf.mxu1  ;;  %v7485_v15 = vadd.f32 %v13509_v49, %v7447_v3 }
 0x59d   : > { %7862 = vst [vmem:[%s13527_s27 + $0x60] sm:$0xff] %v7830_v14  ;;  %v7833_v53 = vadd.f32 %v9942_v29, %v7480_v36  ;;  %v13967_v36 = vld [vmem:[#allocation42_spill] sm:$0xff]  ;;  %v7488_v47 = vadd.f32 %v13509_v49, %v7450_v57  ;;  %v9565_v33 = vadd.f32 %v9564_v25, %v9563_v63  ;;  %v7451_v6 = vadd.f32 %v7397_v16, %v13971_v58  ;;  %v13980_v57 = vld [vmem:[#allocation48_spill] sm:$0xff] }
 0x59e   : > { %v7742_v4 = vpop.f32.mrf.mxu0  ;;  %v9566_v12 = vpop.f32.mrf.mxu1  ;;  %v7448_v29 = vadd.f32 %v7384_v27, %v13967_v36  ;;  %v13976_v27 = vld [vmem:[#allocation63_spill] sm:$0xff] }
 0x59f   : > { %7865 = vst [vmem:[%s13527_s27 + $0x78] sm:$0xff] %v7833_v53  ;;  %v7831_v43 = vadd.f32 %v7742_v4, %v7478_v41  ;;  %v13968_v41 = vld [vmem:[#allocation47_spill] sm:$0xff]  ;;  %v7408_v53 = vadd.f32 %v13969_v61, %v9562_v52  ;;  %v7413_v56 = vadd.f32 %v9565_v33, %v13973_v60  ;;  %v7489_v24 = vadd.f32 %v13509_v49, %v7451_v6 }
 0x5a0   : > { %v9945_v13 = vpop.f32.mrf.mxu0  ;;  %v9567_v20 = vpop.f32.mrf.mxu1  ;;  %v7453_v7 = vadd.f32 %v7405_v32, %v13968_v41  ;;  %v13977_v32 = vld [vmem:[#allocation64_spill] sm:$0xff] }
 0x5a1   : > { %7863 = vst [vmem:[%s13527_s27 + $0x68] sm:$0xff] %v7831_v43  ;;  %v7836_v51 = vadd.f32 %v9945_v13, %v7483_v40  ;;  %v7486_v43 = vadd.f32 %v13509_v49, %v7448_v29  ;;  %v7454_v30 = vadd.f32 %v7408_v53, %v13972_v48 }
 0x5a2   : > { %v7755_v1 = vpop.f32.mrf.mxu0  ;;  %v9569_v46 = vpop.f32.mrf.mxu1  ;;  %v7491_v0 = vadd.f32 %v13509_v49, %v7453_v7 }
 0x5a3   : > { %7868 = vst [vmem:[%s13527_s27 + $0x90] sm:$0xff] %v7836_v51  ;;  %v7834_v26 = vadd.f32 %v7755_v1, %v7481_v31  ;;  %v9568_v1 = vadd.f32 %v9567_v20, %v9566_v12  ;;  %v7492_v22 = vadd.f32 %v13509_v49, %v7454_v30  ;;  %v13978_v20 = vld [vmem:[#allocation35_spill] sm:$0xff] }
 0x5a4   : > { %v9946_v10 = vpop.f32.mrf.mxu0  ;;  %v9570_v5 = vpop.f32.mrf.mxu1 }
 0x5a5   : > { %7866 = vst [vmem:[%s13527_s27 + $0x80] sm:$0xff] %v7834_v26  ;;  %v7837_v19 = vadd.f32 %v9946_v10, %v7484_v17  ;;  %v9571_v59 = vadd.f32 %v9570_v5, %v9569_v46  ;;  %v13974_v26 = vld [vmem:[#allocation45_spill] sm:$0xff]  ;;  %v7416_v12 = vadd.f32 %v9568_v1, %v13977_v32 }
 0x5a6   : > { %v7758_v38 = vpop.f32.mrf.mxu0  ;;  %v9572_v4 = vpop.f32.mrf.mxu1  ;;  %v7452_v17 = vadd.f32 %v7400_v55, %v13974_v26 }
 0x5a7   : > { %7869 = vst [vmem:[%s13527_s27 + $0x98] sm:$0xff] %v7837_v19  ;;  %v7835_v50 = vadd.f32 %v7758_v38, %v7482_v54  ;;  %v7421_v51 = vadd.f32 %v13488_v62, %v9571_v59  ;;  %v13975_v62 = vld [vmem:[#allocation39_spill] sm:$0xff]  ;;  %v7455_v19 = vadd.f32 %v7413_v56, %v13978_v20  ;;  %v13979_v38 = vld [vmem:[#allocation36_spill] sm:$0xff]  ;;  %v7456_v2 = vadd.f32 %v7416_v12, %v13980_v57 }
 0x5a8   : > { %v9949_v14 = vpop.f32.mrf.mxu0  ;;  %v9573_v13 = vpop.f32.mrf.mxu1  ;;  %v7490_v3 = vadd.f32 %v13509_v49, %v7452_v17 }
 0x5a9   : > { %7867 = vst [vmem:[%s13527_s27 + $0x88] sm:$0xff] %v7835_v50  ;;  %v7840_v34 = vadd.f32 %v9949_v14, %v7487_v9  ;;  %v9574_v31 = vadd.f32 %v9573_v13, %v9572_v4  ;;  %v7457_v45 = vadd.f32 %v7421_v51, %v13975_v62  ;;  %v7493_v44 = vadd.f32 %v13509_v49, %v7455_v19 }
 0x5aa   : > { %v7771_v42 = vpop.f32.mrf.mxu0  ;;  %v7494_v41 = vadd.f32 %v13509_v49, %v7456_v2 }
 0x5ab   : > { %7872 = vst [vmem:[%s13527_s27 + $0xb0] sm:$0xff] %v7840_v34  ;;  %v7838_v40 = vadd.f32 %v7771_v42, %v7485_v15  ;;  %v7424_v35 = vadd.f32 %v13976_v27, %v9574_v31  ;;  %v7495_v52 = vadd.f32 %v13509_v49, %v7457_v45 }
 0x5ac   : > { %v9950_v28 = vpop.f32.mrf.mxu0 }
 0x5ad   : > { %7870 = vst [vmem:[%s13527_s27 + $0xa0] sm:$0xff] %v7838_v40  ;;  %v7841_v11 = vadd.f32 %v9950_v28, %v7488_v47  ;;  %v7458_v46 = vadd.f32 %v7424_v35, %v13979_v38 }
 0x5ae   : > { %v7774_v63 = vpop.f32.mrf.mxu0 }
 0x5af   : > { %7873 = vst [vmem:[%s13527_s27 + $0xb8] sm:$0xff] %v7841_v11  ;;  %v7839_v25 = vadd.f32 %v7774_v63, %v7486_v43  ;;  %v7496_v14 = vadd.f32 %v13509_v49, %v7458_v46 }
 0x5b0   : > { %v9953_v21 = vpop.f32.mrf.mxu0 }
 0x5b1   : > { %7871 = vst [vmem:[%s13527_s27 + $0xa8] sm:$0xff] %v7839_v25  ;;  %v7844_v37 = vadd.f32 %v9953_v21, %v7491_v0 }
 0x5b2   : > { %v7787_v10 = vpop.f32.mrf.mxu0 }
 0x5b3   : > { %7876 = vst [vmem:[%s13527_s27 + $0xd0] sm:$0xff] %v7844_v37  ;;  %v7842_v8 = vadd.f32 %v7787_v10, %v7489_v24 }
 0x5b4   : > { %v9954_v54 = vpop.f32.mrf.mxu0 }
 0x5b5   : > { %7874 = vst [vmem:[%s13527_s27 + $0xc0] sm:$0xff] %v7842_v8  ;;  %v7845_v18 = vadd.f32 %v9954_v54, %v7492_v22 }
 0x5b6   : > { %v7790_v50 = vpop.f32.mrf.mxu0 }
 0x5b7   : > { %7877 = vst [vmem:[%s13527_s27 + $0xd8] sm:$0xff] %v7845_v18  ;;  %v7843_v9 = vadd.f32 %v7790_v50, %v7490_v3 }
 0x5b8   : > { %v9957_v16 = vpop.f32.mrf.mxu0 }
 0x5b9   : > { %7875 = vst [vmem:[%s13527_s27 + $0xc8] sm:$0xff] %v7843_v9  ;;  %v7848_v39 = vadd.f32 %v9957_v16, %v7495_v52 }
 0x5ba   : > { %v7803_v36 = vpop.f32.mrf.mxu0 }
 0x5bb   : > { %7880 = vst [vmem:[%s13527_s27 + $0xf0] sm:$0xff] %v7848_v39  ;;  %v7846_v29 = vadd.f32 %v7803_v36, %v7493_v44 }
 0x5bc   : > { %v9958_v7 = vpop.f32.mrf.mxu0 }
 0x5bd   : > { %7878 = vst [vmem:[%s13527_s27 + $0xe0] sm:$0xff] %v7846_v29  ;;  %v7849_v5 = vadd.f32 %v9958_v7, %v7496_v14 }
 0x5be   : > { %v7806_v34 = vpop.f32.mrf.mxu0 }
 0x5bf   : > { %7881 = vst [vmem:[%s13527_s27 + $0xf8] sm:$0xff] %v7849_v5  ;;  %v7847_v15 = vadd.f32 %v7806_v34, %v7494_v41 }
 0x5c1   : > { %7879 = vst [vmem:[%s13527_s27 + $0xe8] sm:$0xff] %v7847_v15 }
 0x5c2   : > { %10719 = shalt.err (!%p10716_p3)
}
 0x5c3   : > { %s10720_s10 = scalar_lea.hbm %s13700_s24, 4096  ;;  %s10724_s20 = scalar_lea.hbm %s13755_s8, 8192 }
 0x5c4   : > { %p10721_p5 = scmp.ne.s32.totalorder %s13700_s24, %s10720_s10  ;;  %p10725_p2 = scmp.lt.s32.totalorder %s13700_s24, %s13755_s8 }
 0x5c5   : > { %p10726_p13 = scmp.lt.s32.totalorder %s10724_s20, %s10720_s10 }
 0x5c6   : > { %p10722_p10 = pnand %p10721_p5, %p13981_p8 }
 0x5c7   : > { %p10727_p1 = por %p10726_p13, %p10725_p2 }
 0x5c8   : > { %p10723_p9 = pneg %p10722_p10 }
 0x5ca   : > { %p10728_p6 = pnand %p10727_p1, %p10723_p9 }
 0x5cc   : > { %10731 = shalt.err (!%p10728_p6)
}
 0x5cd   : > { %s10794_s11 = smov 128   ;;  %s10795_s16 = smov 8  }
 0x5ce   : > { %9993 = dma.vmem_to_hbm [thread:$0]  (%p13981_p8), %s13702_s14, 4096, %s13700_s24, %s7883_s25, %s10794_s11, %s10794_s11, %s10795_s16  }
 0x5cf PF: > { %s13982_s19 = sld [smem:[#allocation20_spill]]  ;;  %p13985_p12 = scmp.ge.s32.totalorder %s10782_s30, 2 }
 0x5d0   : > { %s13983_s5 = sld [smem:[#allocation22_spill]] }
 0x5d5   : > { %s7911_s7 = sand.u32 1, %s13982_s19  }
 0x5d6   : > { %p13984_p11 = scmp.ne.s32.totalorder %s13983_s5, 0  ;;  %s7912_s27 = scalar_lea.sflag [#allocation5], %s7911_s7 }
 0x5d8   : > { %p10016_p4 = pnand %p13985_p12, %p13984_p11 }
 0x5da   : > { %p10017_p7 = pneg %p10016_p4 }
 0x5dc   : > { %10765 = dma.done.wait (%p10017_p7), %s7912_s27, 4096  }
 0x5dd   : > { %10767 = vsyncadd (%p10017_p7), %s7912_s27, 4294963200  ;;  %s13986_s30 = sld [smem:[#allocation23_spill]]  ;;  %s13989_s27 = smov %s10774_s28 }
 0x5de   : > { %s13987_s21 = sld [smem:[#allocation21_spill]] }
 0x5df   : > { %s13988_s29 = sld [smem:[#allocation24_spill]] }
 0x5e3   : > { %p26_p0 = scmp.ge.s32.totalorder %s13986_s30, 4  }
 0x5e4   : > { %s13990_s28 = smov %s13987_s21 }
 0x5e5   :  { %28 = sbr.rel (!%p26_p0) target bundleno = 14 (0xe), region = 140 }
 0x5ea   :  { %7917 = vsyncpa [#allocation4], 1 }
 0x5eb   :  { %7919 = vsyncpa [#allocation4 + $0x1], 1 }
 0x5ec   :  { %7920 = vsyncpa [#allocation7], 1 }
 0x5ed   :  { %7922 = vsyncpa [#allocation7 + $0x1], 1 }
 0x5ee   :  { %7923 = vsyncpa [#allocation10], 1 }
 0x5ef   :  { %7924 = vsyncpa [#allocation13], 1 }
 0x5f0   :  { %7925 = vsyncpa [#allocation5], 1 }
 0x5f1   :  { %7927 = vsyncpa [#allocation5 + $0x1], 1 }

</bundles_post_ra>
